<compile_context>
chip_gen: v6e
topology: v6e:2x2x1
jax: 0.10.0
libtpu: 0.0.40
codegen_flags: <defaults>
</compile_context>

<pallas_src>
import jax
import jax.numpy as jnp
from jax.experimental import pallas as pl
from jax.experimental.pallas import tpu as pltpu

INPUT_DIM = 10      # latent dim for the synthetic test
H = 1200            # hidden width (as in the PyTorch module)
OUT = 4096          # 1 * 64 * 64
TN = 1024           # streamed tile width over the final 4096-wide layer


def _mlp_decoder_kernel(z_ref, w1_ref, b1_ref, w2_ref, b2_ref,
                        w3_ref, b3_ref, w4_ref, b4_ref, out_ref, h3_ref):
    # Layers 1-3: computed once (first grid step) into a resident bf16 scratch.
    @pl.when(pl.program_id(0) == 0)
    def _():
        h = jnp.tanh(
            jnp.dot(z_ref[...].astype(jnp.bfloat16), w1_ref[...],
                    preferred_element_type=jnp.float32) + b1_ref[...])
        h = jnp.tanh(
            jnp.dot(h.astype(jnp.bfloat16), w2_ref[...],
                    preferred_element_type=jnp.float32) + b2_ref[...])
        h = jnp.tanh(
            jnp.dot(h.astype(jnp.bfloat16), w3_ref[...],
                    preferred_element_type=jnp.float32) + b3_ref[...])
        h3_ref[...] = h.astype(jnp.bfloat16)

    # Layer 4 (no activation): one (H, TN) weight tile per grid step.
    out_ref[...] = (
        jnp.dot(h3_ref[...], w4_ref[...], preferred_element_type=jnp.float32)
        + b4_ref[...])


def _resident_spec(shape):
    # Whole-array block with a constant index_map: fetched once, stays resident
    # in VMEM across all grid steps (block == array satisfies the (8,128) rule).
    return pl.BlockSpec(shape, lambda j: (0,) * len(shape))


def mlp_decoder_forward(z, params):
    """z: (B, input_dim) float32.  Returns mu_img: (B, 1, 64, 64) float32."""
    B = z.shape[0]
    z2d = z.reshape(B, -1).astype(jnp.float32)   # z.view(z.size(0), -1)
    (w1, b1, w2, b2, w3, b3, w4, b4) = params
    in_dim = z2d.shape[1]

    in_specs = [
        _resident_spec(z2d.shape),
        _resident_spec(w1.shape), _resident_spec(b1.shape),
        _resident_spec(w2.shape), _resident_spec(b2.shape),
        _resident_spec(w3.shape), _resident_spec(b3.shape),
        pl.BlockSpec((H, TN), lambda j: (0, j)),   # streamed W4 tile
        pl.BlockSpec((1, TN), lambda j: (0, j)),   # streamed b4 tile
    ]
    out_spec = pl.BlockSpec((B, TN), lambda j: (0, j))

    # Scheduling hint: this kernel is HBM-bandwidth bound (weights >> activations).
    bytes_accessed = int(sum(a.size * a.dtype.itemsize for a in (z2d,) + tuple(params))
                         + B * OUT * 4)
    flops = 2 * B * (in_dim * H + H * H + H * H + H * OUT)

    h = pl.pallas_call(
        _mlp_decoder_kernel,
        grid=(OUT // TN,),
        in_specs=in_specs,
        out_specs=out_spec,
        out_shape=jax.ShapeDtypeStruct((B, OUT), jnp.float32),
        scratch_shapes=[pltpu.VMEM((B, H), jnp.bfloat16)],   # resident h3
        compiler_params=pltpu.CompilerParams(
            dimension_semantics=("arbitrary",),    # h3 scratch carried across steps
            vmem_limit_bytes=48 << 20,             # fits v7x (64 MiB physical)
        ),
        cost_estimate=pl.CostEstimate(
            flops=flops,
            transcendentals=3 * B * H,
            bytes_accessed=bytes_accessed,
        ),
    )(z2d, w1, b1, w2, b2, w3, b3, w4, b4)

    return h.reshape(B, 1, 64, 64)


def init_params(key, input_dim):
    """Synthetic init mimicking PyTorch nn.Linear default
    (uniform(-1/sqrt(fan_in), 1/sqrt(fan_in))).  Weights stored as
    (in_features, out_features) = PyTorch weight.T, cast to bf16 for DMA;
    biases kept (1, out_features) f32."""
    dims = [(input_dim, H), (H, H), (H, H), (H, OUT)]
    params = []
    keys = jax.random.split(key, 2 * len(dims))
    for i, (fan_in, fan_out) in enumerate(dims):
        bound = 1.0 / (fan_in ** 0.5)
        w = jax.random.uniform(keys[2 * i], (fan_in, fan_out),
                               jnp.float32, -bound, bound).astype(jnp.bfloat16)
        b = jax.random.uniform(keys[2 * i + 1], (1, fan_out),
                               jnp.float32, -bound, bound)
        params += [w, b]
    return tuple(params)


def reference_forward(z, params):
    """Pure-JAX reference with the same numerics (bf16 MXU inputs, f32 accum)."""
    (w1, b1, w2, b2, w3, b3, w4, b4) = params
    h = z.reshape(z.shape[0], -1)
    h = jnp.tanh(jnp.dot(h.astype(jnp.bfloat16), w1,
                         preferred_element_type=jnp.float32) + b1)
    h = jnp.tanh(jnp.dot(h.astype(jnp.bfloat16), w2,
                         preferred_element_type=jnp.float32) + b2)
    h = jnp.tanh(jnp.dot(h.astype(jnp.bfloat16), w3,
                         preferred_element_type=jnp.float32) + b3)
    h = jnp.dot(h.astype(jnp.bfloat16), w4,
                preferred_element_type=jnp.float32) + b4
    return h.reshape(z.shape[0], 1, 64, 64)


if __name__ == "__main__":
    key = jax.random.PRNGKey(0)
    k_z, k_p = jax.random.split(key)

    B = 2
    z = jax.random.normal(k_z, (B, INPUT_DIM), jnp.float32)
    params = init_params(k_p, INPUT_DIM)

    mu_img = mlp_decoder_forward(z, params)
    mu_img = jax.block_until_ready(mu_img)

    ref = reference_forward(z, params)
    assert mu_img.shape == (B, 1, 64, 64)
    assert jnp.allclose(mu_img, ref, rtol=1e-2, atol=1e-2)

    print("KERNEL_OK")
</pallas_src>

<mosaic_0001>
module attributes {stable_mosaic.version = 11 : i64} {
  func.func @_mlp_decoder_kernel(%arg0: i32, %arg1: memref<2x10xf32, #tpu.memory_space<vmem>>, %arg2: memref<10x1200xbf16, #tpu.memory_space<vmem>>, %arg3: memref<1x1200xf32, #tpu.memory_space<vmem>>, %arg4: memref<1200x1200xbf16, #tpu.memory_space<vmem>>, %arg5: memref<1x1200xf32, #tpu.memory_space<vmem>>, %arg6: memref<1200x1200xbf16, #tpu.memory_space<vmem>>, %arg7: memref<1x1200xf32, #tpu.memory_space<vmem>>, %arg8: memref<1200x1024xbf16, #tpu.memory_space<vmem>>, %arg9: memref<1x1024xf32, #tpu.memory_space<vmem>>, %arg10: memref<2x1024xf32, #tpu.memory_space<vmem>>, %arg11: memref<2x1200xbf16, #tpu.memory_space<vmem>>) attributes {dimension_semantics = [#tpu.dimension_semantics<arbitrary>], iteration_bounds = array<i64: 4>, scalar_prefetch = 0 : i64, scratch_operands = 1 : i64, tpu.core_type = #tpu.core_type<tc>, window_params = [{pipeline_mode = #tpu.pipeline_mode<synchronous>, transform_indices = @transform_0, window_bounds = array<i64: 2, 10>}, {pipeline_mode = #tpu.pipeline_mode<synchronous>, transform_indices = @transform_1, window_bounds = array<i64: 10, 1200>}, {pipeline_mode = #tpu.pipeline_mode<synchronous>, transform_indices = @transform_2, window_bounds = array<i64: 1, 1200>}, {pipeline_mode = #tpu.pipeline_mode<synchronous>, transform_indices = @transform_3, window_bounds = array<i64: 1200, 1200>}, {pipeline_mode = #tpu.pipeline_mode<synchronous>, transform_indices = @transform_4, window_bounds = array<i64: 1, 1200>}, {pipeline_mode = #tpu.pipeline_mode<synchronous>, transform_indices = @transform_5, window_bounds = array<i64: 1200, 1200>}, {pipeline_mode = #tpu.pipeline_mode<synchronous>, transform_indices = @transform_6, window_bounds = array<i64: 1, 1200>}, {transform_indices = @transform_7, window_bounds = array<i64: 1200, 1024>}, {transform_indices = @transform_8, window_bounds = array<i64: 1, 1024>}, {transform_indices = @transform_9, window_bounds = array<i64: 2, 1024>}]} {
    %c0_i32 = arith.constant 0 : i32
    %0 = arith.cmpi eq, %arg0, %c0_i32 : i32
    %1 = arith.extui %0 : i1 to i32
    %c0_i32_0 = arith.constant 0 : i32
    %2 = arith.cmpi ne, %1, %c0_i32_0 : i32
    scf.if %2 {
      %c0_8 = arith.constant 0 : index
      %c0_9 = arith.constant 0 : index
      %10 = vector.load %arg1[%c0_8, %c0_9] : memref<2x10xf32, #tpu.memory_space<vmem>>, vector<2x10xf32>
      %11 = arith.truncf %10 : vector<2x10xf32> to vector<2x10xbf16>
      %c0_10 = arith.constant 0 : index
      %c0_11 = arith.constant 0 : index
      %12 = vector.load %arg2[%c0_10, %c0_11] : memref<10x1200xbf16, #tpu.memory_space<vmem>>, vector<10x1200xbf16>
      %cst_12 = arith.constant dense<0.000000e+00> : vector<2x1200xf32>
      %13 = tpu.matmul %11, %12, %cst_12 {dimension_numbers = #tpu.dot_dimension_numbers<[1], [0], [0], [1], [0, 0, 1, 1], [], []>} : vector<2x10xbf16>, vector<10x1200xbf16>, vector<2x1200xf32> -> vector<2x1200xf32>
      %c0_13 = arith.constant 0 : index
      %c0_14 = arith.constant 0 : index
      %14 = vector.load %arg3[%c0_13, %c0_14] : memref<1x1200xf32, #tpu.memory_space<vmem>>, vector<1x1200xf32>
      %15 = vector.broadcast %14 : vector<1x1200xf32> to vector<2x1200xf32>
      %16 = arith.addf %13, %15 : vector<2x1200xf32>
      %17 = math.tanh %16 : vector<2x1200xf32>
      %18 = arith.truncf %17 : vector<2x1200xf32> to vector<2x1200xbf16>
      %c0_15 = arith.constant 0 : index
      %c0_16 = arith.constant 0 : index
      %19 = vector.load %arg4[%c0_15, %c0_16] : memref<1200x1200xbf16, #tpu.memory_space<vmem>>, vector<1200x1200xbf16>
      %cst_17 = arith.constant dense<0.000000e+00> : vector<2x1200xf32>
      %20 = tpu.matmul %18, %19, %cst_17 {dimension_numbers = #tpu.dot_dimension_numbers<[1], [0], [0], [1], [0, 0, 1, 1], [], []>} : vector<2x1200xbf16>, vector<1200x1200xbf16>, vector<2x1200xf32> -> vector<2x1200xf32>
      %c0_18 = arith.constant 0 : index
      %c0_19 = arith.constant 0 : index
      %21 = vector.load %arg5[%c0_18, %c0_19] : memref<1x1200xf32, #tpu.memory_space<vmem>>, vector<1x1200xf32>
      %22 = vector.broadcast %21 : vector<1x1200xf32> to vector<2x1200xf32>
      %23 = arith.addf %20, %22 : vector<2x1200xf32>
      %24 = math.tanh %23 : vector<2x1200xf32>
      %25 = arith.truncf %24 : vector<2x1200xf32> to vector<2x1200xbf16>
      %c0_20 = arith.constant 0 : index
      %c0_21 = arith.constant 0 : index
      %26 = vector.load %arg6[%c0_20, %c0_21] : memref<1200x1200xbf16, #tpu.memory_space<vmem>>, vector<1200x1200xbf16>
      %cst_22 = arith.constant dense<0.000000e+00> : vector<2x1200xf32>
      %27 = tpu.matmul %25, %26, %cst_22 {dimension_numbers = #tpu.dot_dimension_numbers<[1], [0], [0], [1], [0, 0, 1, 1], [], []>} : vector<2x1200xbf16>, vector<1200x1200xbf16>, vector<2x1200xf32> -> vector<2x1200xf32>
      %c0_23 = arith.constant 0 : index
      %c0_24 = arith.constant 0 : index
      %28 = vector.load %arg7[%c0_23, %c0_24] : memref<1x1200xf32, #tpu.memory_space<vmem>>, vector<1x1200xf32>
      %29 = vector.broadcast %28 : vector<1x1200xf32> to vector<2x1200xf32>
      %30 = arith.addf %27, %29 : vector<2x1200xf32>
      %31 = math.tanh %30 : vector<2x1200xf32>
      %32 = arith.truncf %31 : vector<2x1200xf32> to vector<2x1200xbf16>
      %c0_25 = arith.constant 0 : index
      %c0_26 = arith.constant 0 : index
      %33 = vector.load %arg11[%c0_25, %c0_26] : memref<2x1200xbf16, #tpu.memory_space<vmem>>, vector<2x1200xbf16>
      tpu.vector_store %arg11[%c0_25, %c0_26], %32 {strides = array<i32>} : memref<2x1200xbf16, #tpu.memory_space<vmem>>, vector<2x1200xbf16>,
    } else {
    }
    %c0 = arith.constant 0 : index
    %c0_1 = arith.constant 0 : index
    %3 = vector.load %arg11[%c0, %c0_1] : memref<2x1200xbf16, #tpu.memory_space<vmem>>, vector<2x1200xbf16>
    %c0_2 = arith.constant 0 : index
    %c0_3 = arith.constant 0 : index
    %4 = vector.load %arg8[%c0_2, %c0_3] : memref<1200x1024xbf16, #tpu.memory_space<vmem>>, vector<1200x1024xbf16>
    %cst = arith.constant dense<0.000000e+00> : vector<2x1024xf32>
    %5 = tpu.matmul %3, %4, %cst {dimension_numbers = #tpu.dot_dimension_numbers<[1], [0], [0], [1], [0, 0, 1, 1], [], []>} : vector<2x1200xbf16>, vector<1200x1024xbf16>, vector<2x1024xf32> -> vector<2x1024xf32>
    %c0_4 = arith.constant 0 : index
    %c0_5 = arith.constant 0 : index
    %6 = vector.load %arg9[%c0_4, %c0_5] : memref<1x1024xf32, #tpu.memory_space<vmem>>, vector<1x1024xf32>
    %7 = vector.broadcast %6 : vector<1x1024xf32> to vector<2x1024xf32>
    %8 = arith.addf %5, %7 : vector<2x1024xf32>
    %c0_6 = arith.constant 0 : index
    %c0_7 = arith.constant 0 : index
    %9 = vector.load %arg10[%c0_6, %c0_7] : memref<2x1024xf32, #tpu.memory_space<vmem>>, vector<2x1024xf32>
    tpu.vector_store %arg10[%c0_6, %c0_7], %8 {strides = array<i32>} : memref<2x1024xf32, #tpu.memory_space<vmem>>, vector<2x1024xf32>,
    return
  }
  func.func @transform_0(%arg0: i32) -> (i32, i32) {
    %c0_i32 = arith.constant 0 : i32
    %c0_i32_0 = arith.constant 0 : i32
    %c0_i32_1 = arith.constant 0 : i32
    return %c0_i32, %c0_i32_0 : i32, i32
  }
  func.func @transform_1(%arg0: i32) -> (i32, i32) {
    %c0_i32 = arith.constant 0 : i32
    %c0_i32_0 = arith.constant 0 : i32
    %c0_i32_1 = arith.constant 0 : i32
    return %c0_i32, %c0_i32_0 : i32, i32
  }
  func.func @transform_2(%arg0: i32) -> (i32, i32) {
    %c0_i32 = arith.constant 0 : i32
    %c0_i32_0 = arith.constant 0 : i32
    %c0_i32_1 = arith.constant 0 : i32
    return %c0_i32, %c0_i32_0 : i32, i32
  }
  func.func @transform_3(%arg0: i32) -> (i32, i32) {
    %c0_i32 = arith.constant 0 : i32
    %c0_i32_0 = arith.constant 0 : i32
    %c0_i32_1 = arith.constant 0 : i32
    return %c0_i32, %c0_i32_0 : i32, i32
  }
  func.func @transform_4(%arg0: i32) -> (i32, i32) {
    %c0_i32 = arith.constant 0 : i32
    %c0_i32_0 = arith.constant 0 : i32
    %c0_i32_1 = arith.constant 0 : i32
    return %c0_i32, %c0_i32_0 : i32, i32
  }
  func.func @transform_5(%arg0: i32) -> (i32, i32) {
    %c0_i32 = arith.constant 0 : i32
    %c0_i32_0 = arith.constant 0 : i32
    %c0_i32_1 = arith.constant 0 : i32
    return %c0_i32, %c0_i32_0 : i32, i32
  }
  func.func @transform_6(%arg0: i32) -> (i32, i32) {
    %c0_i32 = arith.constant 0 : i32
    %c0_i32_0 = arith.constant 0 : i32
    %c0_i32_1 = arith.constant 0 : i32
    return %c0_i32, %c0_i32_0 : i32, i32
  }
  func.func @transform_7(%arg0: i32) -> (i32, i32) {
    %c0_i32 = arith.constant 0 : i32
    %c0_i32_0 = arith.constant 0 : i32
    return %c0_i32, %arg0 : i32, i32
  }
  func.func @transform_8(%arg0: i32) -> (i32, i32) {
    %c0_i32 = arith.constant 0 : i32
    %c0_i32_0 = arith.constant 0 : i32
    return %c0_i32, %arg0 : i32, i32
  }
  func.func @transform_9(%arg0: i32) -> (i32, i32) {
    %c0_i32 = arith.constant 0 : i32
    %c0_i32_0 = arith.constant 0 : i32
    return %c0_i32, %arg0 : i32, i32
  }
}

</mosaic_0001>

<bundles_post_ra>
// kernel: tpu_custom_call.1
= control target key start
LH: loop header
LB: loop body
LE: loop exit
PB: predicated region body
PF: predicated region fallthrough
CT: control target
= control target key end

     0   :  { %s23436_s0 = inlined_call_operand.hbm [shape: f32[2,10], index: 0, kind: input, shape index: {}]   ;;  %s23437_s1 = inlined_call_operand.hbm [shape: bf16[10,1200], index: 1, kind: input, shape index: {}]   ;;  %s23438_s2 = inlined_call_operand.hbm [shape: f32[1,1200], index: 2, kind: input, shape index: {}]   ;;  %s23439_s3 = inlined_call_operand.hbm [shape: bf16[1200,1200], index: 3, kind: input, shape index: {}]   ;;  %s23440_s4 = inlined_call_operand.hbm [shape: f32[1,1200], index: 4, kind: input, shape index: {}]   ;;  %s23441_s5 = inlined_call_operand.hbm [shape: bf16[1200,1200], index: 5, kind: input, shape index: {}]   ;;  %s23442_s6 = inlined_call_operand.hbm [shape: f32[1,1200], index: 6, kind: input, shape index: {}]   ;;  %s23443_s7 = inlined_call_operand.hbm [shape: bf16[1200,4096], index: 7, kind: input, shape index: {}]   ;;  %s23444_s8 = inlined_call_operand.hbm [shape: f32[1,4096], index: 8, kind: input, shape index: {}]   ;;  %s23445_s9 = inlined_call_operand.hbm [shape: f32[2,4096], index: 9, kind: output, shape index: {}]  }
   0x1   :  { %23458 = sst [smem:[#allocation27_spill]] %s23437_s1 }
   0x2   :  { %23459 = sst [smem:[#allocation28_spill]] %s23439_s3 }
   0x3   :  { %23460 = sst [smem:[#allocation29_spill]] %s23441_s5 }
   0x4   :  { %23461 = sst [smem:[#allocation30_spill]] %s23443_s7 }
   0x5   :  { %14 = vsyncpa [#allocation4], 0 }
   0x6   :  { %15 = vsyncpa [#allocation7], 0 }
   0x7   :  { %16 = vsyncpa [#allocation10], 0 }
   0x8   :  { %17 = vsyncpa [#allocation13], 0 }
   0x9   :  { %18 = vsyncpa [#allocation16], 0 }
   0xa   :  { %20 = vsyncpa [#allocation16 + $0x1], 0 }
   0xb   :  { %21 = vsyncpa [#allocation5], 0 }
   0xc   :  { %23 = vsyncpa [#allocation5 + $0x1], 0  ;;  %s21936_s30 = smov 0   ;;  %s21938_s10 = smov 0  }
   0xd   :  { %s21940_s11 = smov 0   ;;  %s21942_s12 = smov 0  }
   0xe LB: > { %s21867_s13 = smov [#allocation6]   ;;  %s21957_s15 = sadd.s32 4294967295, %s21865_s12   ;;  %s21865_s12 = sphi %s21942_s12, %s23493_s12   ;;  %s21861_s11 = sphi %s21940_s11, %s23497_s11   ;;  %s21857_s10 = sphi %s21938_s10, %s23496_s10   ;;  %s21853_s30 = sphi %s21936_s30, %s23495_s30  }
   0xf   : > { %s282_s14 = sshll.u32 %s21867_s13, 4  ;;  %p16911_p0 = scmp.ge.s32.totalorder %s21865_s12, 1  ;;  %s283_s14 = int_to_ptr.vmem [resolvable:$true] %s282_s14 }
  0x10   : > { %p23450_p1 = scmp.eq.s32.totalorder %s21957_s15, 0  ;;  %p259_p2 = scmp.lt.s32.totalorder %s21865_s12, 5 }
  0x11   : > { %s21868_s17 = smov [#allocation9]   ;;  %s21869_s20 = smov [#allocation12]  }
  0x12   : > { %p21963_p4 = pnand %p16911_p0, %p259_p2  ;;  %s306_s18 = sshll.u32 %s21868_s17, 4  ;;  %s21975_s18 = int_to_ptr.vmem [resolvable:$true] %s306_s18 }
  0x13   : > { %s330_s21 = sshll.u32 %s21869_s20, 4  ;;  %s21558_s23 = scalar_lea.vmem %s283_s14, 1280  ;;  %s21977_s21 = int_to_ptr.vmem [resolvable:$true] %s330_s21 }
  0x14   : > { %s23462_s16 = scalar_select %p21963_p4, 1, 0 }
  0x15   : > { %p19120_p5 = pneg %p21963_p4  ;;  %p21559_p8 = scmp.ne.s32.totalorder %s283_s14, %s21558_s23 }
  0x16   : > { %p21566_p11 = scmp.lt.s32.totalorder %s283_s14, %s283_s14  ;;  %p21567_p12 = scmp.lt.s32.totalorder %s21558_s23, %s21558_s23 }
  0x17   : > { %p21971_p6 = pnand %p19120_p5, %p23450_p1 }
  0x18   : > { %p21568_p13 = por %p21567_p12, %p21566_p11 }
  0x19   : > { %s23463_s19 = scalar_select %p21971_p6, 1, 0 }
  0x1a   : > { %p21981_p7 = pneg %p21971_p6 }
  0x1c   : > { %p21561_p9 = pnand %p21559_p8, %p21981_p7 }
  0x1e   : > { %p21562_p10 = pneg %p21561_p9 }
  0x20   : > { %p21569_p0 = pnand %p21568_p13, %p21562_p10 }
  0x22   : > { %21572 = shalt.err (!%p21569_p0)
}
  0x23   : > { %s21870_s24 = smov 640   ;;  %s21871_s25 = smov 40  }
  0x24   : > { %s23465_s1 = sld [smem:[#allocation27_spill]]  ;;  %s21584_s28 = scalar_lea.vmem %s21975_s18, 96000 }
  0x25   : > { %p21585_p2 = scmp.ne.s32.totalorder %s21975_s18, %s21584_s28  ;;  %p21592_p9 = scmp.lt.s32.totalorder %s21975_s18, %s21975_s18 }
  0x26   : > { %p21593_p10 = scmp.lt.s32.totalorder %s21584_s28, %s21584_s28 }
  0x27   : > { %p21587_p5 = pnand %p21585_p2, %p21981_p7 }
  0x28   : > { %p21594_p11 = por %p21593_p10, %p21592_p9 }
  0x29   : > { %p21588_p8 = pneg %p21587_p5 }
  0x2a   : > { %19126 = dma.hbm_to_vmem [thread:$0]  (!%p21971_p6), %s23465_s1, 1280, %s283_s14, [#allocation7], %s21870_s24, %s21870_s24, %s21871_s25  }
  0x2b   : > { %p21595_p12 = pnand %p21594_p11, %p21588_p8 }
  0x2d   : > { %21598 = shalt.err (!%p21595_p12)
}
  0x2e   : > { %s23466_s3 = sld [smem:[#allocation28_spill]]  ;;  %s21610_s14 = scalar_lea.vmem %s21977_s21, 96000 }
  0x2f   : > { %p21611_p13 = scmp.ne.s32.totalorder %s21977_s21, %s21610_s14  ;;  %p21618_p5 = scmp.lt.s32.totalorder %s21977_s21, %s21977_s21 }
  0x30   : > { %p21619_p8 = scmp.lt.s32.totalorder %s21610_s14, %s21610_s14 }
  0x31   : > { %p21613_p0 = pnand %p21611_p13, %p21981_p7 }
  0x32   : > { %p21620_p9 = por %p21619_p8, %p21618_p5 }
  0x33   : > { %p21614_p2 = pneg %p21613_p0 }
  0x34   : > { %19132 = dma.hbm_to_vmem [thread:$0]  (!%p21971_p6), %s23466_s3, 96000, %s21975_s18, [#allocation10], %s21870_s24, %s21870_s24, %s21871_s25  }
  0x35   : > { %p21621_p10 = pnand %p21620_p9, %p21614_p2 }
  0x37   : > { %21624 = shalt.err (!%p21621_p10)
}
  0x38   : > { %s23467_s5 = sld [smem:[#allocation29_spill]]  ;;  %s16910_s18 = sadd.s32 4294967294, %s21865_s12  }
  0x39   : > { %s22018_s23 = sadd.s32 1, %s21865_s12   ;;  %s183_s26 = sadd.s32 1, %s21861_s11 }
  0x3a   : > { %23468 = sst [smem:[#allocation25_spill]] %s22018_s23  ;;  %s180_s27 = ssub.s32 %s21865_s12, %s22018_s23 }
  0x3b   : > { %p190_p11 = scmp.ne.s32.totalorder %s21861_s11, %s21857_s10  ;;  %p181_p12 = scmp.eq.s32.totalorder %s180_s27, 0 }
  0x3c   : > { %p191_p13 = scmp.eq.s32.totalorder %s21865_s12, 0  ;;  %p196_p0 = scmp.ne.s32.totalorder %s21857_s10, %s21853_s30 }
  0x3d   : > { %p246_p2 = scmp.eq.s32.totalorder %s21957_s15, 3  ;;  %p252_p10 = scmp.eq.s32.totalorder %s16910_s18, 3 }
  0x3e   : > { %19138 = dma.hbm_to_vmem [thread:$0]  (!%p21971_p6), %s23467_s5, 96000, %s21977_s21, [#allocation13], %s21870_s24, %s21870_s24, %s21871_s25  }
  0x3f   : > { %s22030_s28 = scalar_select %p181_p12, %s21861_s11, %s183_s26  }
  0x40   : > { %p192_p5 = por %p191_p13, %p190_p11  ;;  %p22034_p8 = por %p23450_p1, %p196_p0 }
  0x41   : > { %23469 = sst [smem:[#allocation26_spill]] %s22030_s28  ;;  %p22038_p9 = por %p246_p2, %p190_p11 }
  0x42   : > { %s23470_s21 = scalar_select %p22034_p8, 1, 0 }
  0x43   : > { %s23471_s24 = scalar_select %p22038_p9, 1, 0 }
  0x44   : > { %p19160_p3 = scmp.lt.s32.totalorder %s21865_s12, 4  ;;  %s355_s25 = sand.u32 1, %s21865_s12  }
  0x45   : > { %p22044_p4 = por %p252_p10, %p196_p0  ;;  %s23447_s13 = sand.u32 1, %s21861_s11  }
  0x46   : > { %s19081_s14 = sshll.u32 %s21865_s12, 9  ;;  %s19084_s17 = smul.u32 4800, %s23447_s13 }
  0x47   : > { %s23472_s29 = scalar_select %p22044_p4, 1, 0 }
  0x48   : > { %s23473_s7 = sld [smem:[#allocation30_spill]]  ;;  %p22057_p11 = pnand %p19160_p3, %p192_p5 }
  0x49   : > { %s359_s1 = scalar_lea.vmem [#allocation15], %s19084_s17  ;;  %s22063_s5 = scalar_lea.sflag [#allocation16], %s355_s25 }
  0x4a   : > { %s23474_s18 = scalar_select %p22057_p11, 1, 0 }
  0x4b   : > { %s366_s3 = sshll.u32 %s359_s1, 4  ;;  %p23455_p13 = pneg %p22057_p11  ;;  %s22061_s3 = int_to_ptr.vmem [resolvable:$true] %s366_s3 }
  0x4e   : > { %s22055_s27 = scalar_lea.hbm %s23473_s7, %s19081_s14  ;;  %s21630_s26 = scalar_lea.hbm %s23473_s7, 307200 }
  0x4f   : > { %s21625_s13 = scalar_lea.hbm %s22055_s27, 76800  ;;  %p21631_p3 = scmp.lt.s32.totalorder %s22055_s27, %s23473_s7 }
  0x50   : > { %p21626_p12 = scmp.ne.s32.totalorder %s22055_s27, %s21625_s13  ;;  %p21632_p5 = scmp.lt.s32.totalorder %s21630_s26, %s21625_s13 }
  0x52   : > { %p21628_p0 = pnand %p23455_p13, %p21626_p12  ;;  %p21633_p10 = por %p21632_p5, %p21631_p3 }
  0x54   : > { %p21629_p2 = pneg %p21628_p0 }
  0x56   : > { %p21634_p1 = pnand %p21633_p10, %p21629_p2 }
  0x58   : > { %21637 = shalt.err (!%p21634_p1)
}
  0x59   : > { %s21638_s1 = scalar_lea.vmem %s22061_s3, 76800  ;;  %s21872_s25 = smov [#allocation15]  }
  0x5a   : > { %p21639_p4 = scmp.ne.s32.totalorder %s22061_s3, %s21638_s1  ;;  %s21643_s17 = sshll.u32 %s21872_s25, 4  ;;  %s21644_s17 = int_to_ptr.vmem [resolvable:$false] %s21643_s17 }
  0x5b   : > { %s21645_s14 = scalar_lea.vmem %s21644_s17, 153600  ;;  %p21646_p9 = scmp.lt.s32.totalorder %s22061_s3, %s21644_s17 }
  0x5c   : > { %p21641_p12 = pnand %p21639_p4, %p23455_p13  ;;  %p21647_p8 = scmp.lt.s32.totalorder %s21645_s14, %s21638_s1 }
  0x5e   : > { %p21642_p0 = pneg %p21641_p12  ;;  %p21648_p6 = por %p21647_p8, %p21646_p9 }
  0x60   : > { %p21649_p3 = pnand %p21648_p6, %p21642_p0 }
  0x62   : > { %21652 = shalt.err (!%p21649_p3)
}
  0x63   : > { %s21873_s23 = smov 2048   ;;  %s21874_s28 = smov 512  }
  0x64   : > { %s21875_s13 = smov 32   ;;  %s21876_s20 = smov [#allocation3]  }
  0x65   : > { %19145 = dma.hbm_to_vmem [thread:$0]  (!%p22057_p11), %s22055_s27, 76800, %s22061_s3, %s22063_s5, %s21873_s23, %s21874_s28, %s21875_s13  }
  0x66   : > { %s272_s26 = sshll.u32 %s21876_s20, 4  ;;  %s21877_s25 = smov [#allocation8]   ;;  %s273_s26 = int_to_ptr.vmem [resolvable:$true] %s272_s26 }
  0x67   : > { %s296_s7 = sshll.u32 %s21877_s25, 4  ;;  %s21664_s1 = scalar_lea.vmem %s273_s26, 32  ;;  %s297_s7 = int_to_ptr.vmem [resolvable:$true] %s296_s7 }
  0x68   : > { %p21665_p1 = scmp.ne.s32.totalorder %s273_s26, %s21664_s1  ;;  %p21672_p8 = scmp.lt.s32.totalorder %s273_s26, %s273_s26 }
  0x69   : > { %p21673_p9 = scmp.lt.s32.totalorder %s21664_s1, %s21664_s1 }
  0x6a   : > { %p21667_p4 = pnand %p21665_p1, %p21981_p7 }
  0x6b   : > { %p21674_p2 = por %p21673_p9, %p21672_p8 }
  0x6c   : > { %p21668_p6 = pneg %p21667_p4 }
  0x6e   : > { %p21675_p5 = pnand %p21674_p2, %p21668_p6 }
  0x70   : > { %21678 = shalt.err (!%p21675_p5)
}
  0x71   : > { %p23475_p10 = scmp.ne.s32.totalorder %s23463_s19, 0  ;;  %s21690_s27 = scalar_lea.vmem %s297_s7, 160 }
  0x72   : > { %p21691_p12 = scmp.ne.s32.totalorder %s297_s7, %s21690_s27  ;;  %p21698_p13 = scmp.lt.s32.totalorder %s297_s7, %s297_s7 }
  0x73   : > { %19123 = dma.hbm_to_vmem [thread:$0]  (!%p23475_p10), %s23436_s0, 32, %s273_s26, [#allocation4]  }
  0x74   : > { %p21693_p0 = pnand %p21691_p12, %p21981_p7  ;;  %p21699_p1 = scmp.lt.s32.totalorder %s21690_s27, %s21690_s27 }
  0x76   : > { %p21694_p3 = pneg %p21693_p0  ;;  %p21700_p4 = por %p21699_p1, %p21698_p13 }
  0x78   : > { %p21701_p11 = pnand %p21700_p4, %p21694_p3 }
  0x7a   : > { %21704 = shalt.err (!%p21701_p11)
}
  0x7b   : > { %19129 = dma.hbm_to_vmem [thread:$0]  (!%p23475_p10), %s23438_s2, 160, %s297_s7, [#allocation7]  }
  0x7c   : > { %s21878_s28 = smov [#allocation11]   ;;  %s21879_s20 = smov [#allocation14]  }
  0x7d   : > { %s320_s13 = sshll.u32 %s21878_s28, 4  ;;  %s344_s26 = sshll.u32 %s21879_s20, 4  ;;  %s321_s13 = int_to_ptr.vmem [resolvable:$true] %s320_s13  ;;  %s345_s26 = int_to_ptr.vmem [resolvable:$true] %s344_s26 }
  0x7e   : > { %s21716_s25 = scalar_lea.vmem %s321_s13, 160  ;;  %p21724_p9 = scmp.lt.s32.totalorder %s321_s13, %s321_s13 }
  0x7f   : > { %p21717_p6 = scmp.ne.s32.totalorder %s321_s13, %s21716_s25  ;;  %p21725_p11 = scmp.lt.s32.totalorder %s21716_s25, %s21716_s25 }
  0x81   : > { %p21719_p8 = pnand %p21717_p6, %p21981_p7  ;;  %p21726_p2 = por %p21725_p11, %p21724_p9 }
  0x83   : > { %p21720_p13 = pneg %p21719_p8 }
  0x85   : > { %p21727_p5 = pnand %p21726_p2, %p21720_p13 }
  0x87   : > { %21730 = shalt.err (!%p21727_p5)
}
  0x88   : > { %19135 = dma.hbm_to_vmem [thread:$0]  (!%p23475_p10), %s23440_s4, 160, %s321_s13, [#allocation10]  }
  0x89   : > { %s21742_s17 = scalar_lea.vmem %s345_s26, 160  ;;  %p21750_p1 = scmp.lt.s32.totalorder %s345_s26, %s345_s26 }
  0x8a   : > { %p21743_p12 = scmp.ne.s32.totalorder %s345_s26, %s21742_s17  ;;  %p21751_p4 = scmp.lt.s32.totalorder %s21742_s17, %s21742_s17 }
  0x8c   : > { %p21745_p0 = pnand %p21743_p12, %p21981_p7  ;;  %p21752_p6 = por %p21751_p4, %p21750_p1 }
  0x8e   : > { %p21746_p3 = pneg %p21745_p0 }
  0x90   : > { %p21753_p8 = pnand %p21752_p6, %p21746_p3 }
  0x92   : > { %21756 = shalt.err (!%p21753_p8)
}
  0x93   : > { %19141 = dma.hbm_to_vmem [thread:$0]  (!%p23475_p10), %s23442_s6, 160, %s345_s26, [#allocation13]  }
  0x94   : > { %s23476_s14 = sand.u32 1, %s21861_s11   ;;  %s19082_s28 = sshll.u32 %s21865_s12, 7 }
  0x95   : > { %s16922_s23 = sshll.u32 %s23476_s14, 3  ;;  %s386_s20 = scalar_lea.hbm %s23444_s8, %s19082_s28 }
  0x96   : > { %s380_s25 = scalar_lea.vmem [#allocation17], %s16922_s23  ;;  %s21757_s7 = scalar_lea.hbm %s386_s20, 128 }
  0x97   : > { %s388_s1 = sshll.u32 %s380_s25, 4  ;;  %p21758_p7 = scmp.ne.s32.totalorder %s386_s20, %s21757_s7  ;;  %s389_s1 = int_to_ptr.vmem [resolvable:$true] %s388_s1 }
  0x98   : > { %p23477_p13 = scmp.ne.s32.totalorder %s23474_s18, 0  ;;  %s21762_s26 = scalar_lea.hbm %s23444_s8, 512 }
  0x99   : > { %p21763_p10 = scmp.lt.s32.totalorder %s386_s20, %s23444_s8  ;;  %p21764_p5 = scmp.lt.s32.totalorder %s21762_s26, %s21757_s7 }
  0x9a   : > { %p23478_p9 = pneg %p23477_p13 }
  0x9b   : > { %p21765_p12 = por %p21764_p5, %p21763_p10 }
  0x9c   : > { %p21760_p11 = pnand %p21758_p7, %p23478_p9 }
  0x9e   : > { %p21761_p2 = pneg %p21760_p11 }
  0xa0   : > { %p21766_p0 = pnand %p21765_p12, %p21761_p2 }
  0xa2   : > { %21769 = shalt.err (!%p21766_p0)
}
  0xa3   : > { %s21770_s14 = scalar_lea.vmem %s389_s1, 128  ;;  %p23479_p1 = pmov %p23478_p9 }
  0xa4   : > { %p21771_p3 = scmp.ne.s32.totalorder %s389_s1, %s21770_s14  ;;  %s21880_s23 = smov [#allocation17]  }
  0xa5   : > { %s21775_s28 = sshll.u32 %s21880_s23, 4  ;;  %s21776_s28 = int_to_ptr.vmem [resolvable:$false] %s21775_s28 }
  0xa6   : > { %p21773_p4 = pnand %p21771_p3, %p23479_p1  ;;  %s21777_s22 = scalar_lea.vmem %s21776_s28, 256 }
  0xa7   : > { %p21778_p8 = scmp.lt.s32.totalorder %s389_s1, %s21776_s28  ;;  %p21779_p7 = scmp.lt.s32.totalorder %s21777_s22, %s21770_s14 }
  0xa8   : > { %p21774_p6 = pneg %p21773_p4 }
  0xa9   : > { %p21780_p9 = por %p21779_p7, %p21778_p8 }
  0xab   : > { %p21781_p11 = pnand %p21780_p9, %p21774_p6 }
  0xad   : > { %21784 = shalt.err (!%p21781_p11)
}
  0xae   : > { %19148 = dma.hbm_to_vmem [thread:$0]  (!%p23477_p13), %s386_s20, 128, %s389_s1, %s22063_s5  }
  0xaf   : > { %p23480_p2 = scmp.ne.s32.totalorder %s23462_s16, 0 }
  0xb0   : > { %p23481_p10 = scmp.eq.s32.totalorder (!%p23480_p2), %s21957_s15, 0 }
  0xb1   : > { %397 = sbr.rel (%p23480_p2) target bundleno = 2991 (0xbaf), region = 56 }
  0xb6   : > { %21828 = dma.done.wait (%p23481_p10), [#allocation4], 32   ;;  %p23482_p5 = pmov %p23481_p10 }
  0xb8   : > { %21830 = vsyncadd (%p23482_p5), [#allocation4], 4294967264  ;;  %p23483_p12 = pmov %p23482_p5 }
  0xb9   : > { %p23484_p0 = pmov %p23482_p5 }
  0xba   : > { %21832 = dma.done.wait (%p23483_p12), [#allocation7], 1440  }
  0xbb   : > { %21834 = vsyncadd (%p23484_p0), [#allocation7], 4294965856  ;;  %p23485_p3 = pmov %p23484_p0 }
  0xbc   : > { %p23486_p13 = pmov %p23484_p0 }
  0xbd   : > { %21836 = dma.done.wait (%p23485_p3), [#allocation10], 96160  }
  0xbe   : > { %21838 = vsyncadd (%p23486_p13), [#allocation10], 4294871136  ;;  %p23487_p1 = pmov %p23484_p0 }
  0xbf   : > { %p23488_p4 = pmov %p23484_p0 }
  0xc0   : > { %21840 = dma.done.wait (%p23487_p1), [#allocation13], 96160  }
  0xc1   : > { %21842 = vsyncadd (%p23488_p4), [#allocation13], 4294871136  ;;  %s427_s5 = sand.u32 1, %s21957_s15   ;;  %s22159_s16 = sand.u32 1, %s21857_s10  }
  0xc2   : > { %s19085_s18 = smul.u32 4800, %s22159_s16  ;;  %s428_s13 = scalar_lea.sflag [#allocation16], %s427_s5 }
  0xc3   : > { %p23489_p6 = scmp.ne.s32.totalorder %s23470_s21, 0 }
  0xc4   : > { %s22162_s20 = scalar_lea.vmem [#allocation15], %s19085_s18 }
  0xc5   : > { %21844 = dma.done.wait (%p23489_p6), %s428_s13, 76928  }
  0xc6   : > { %21846 = vsyncadd (%p23489_p6), %s428_s13, 4294890368  ;;  %s16933_s25 = sshll.u32 %s22159_s16, 3  ;;  %s16934_s1 = sshll.u32 %s22159_s16, 4 }
  0xc7   : > { %s22170_s7 = scalar_lea.vmem [#allocation17], %s16933_s25  ;;  %s22172_s19 = scalar_lea.vmem [#allocation18], %s16934_s1 }
  0xc8   : > { %p23490_p8 = scmp.ne.s32.totalorder %s21957_s15, 0 }
  0xca   : > { %487 = sbr.rel (%p23490_p8) target bundleno = 2167 (0x877), region = 96 }
  0xcf   : > { %v19217_v0 = vld [vmem:[#allocation6 + $0x4] ss:$40 sps:$4 sm:$0x1f]   ;;  %vm598_vm0 = vcmask 1044480   ;;  %vm594_vm1 = vcmask 80896   ;;  %v21881_v3 = vmov 0  }
  0xd0   : > { %16946 = vmatprep.subr.msk.bf16.mxu0 %vm598_vm0, %v19217_v0  ;;  %v19219_v1 = vld [vmem:[#allocation6 + $0xc] ss:$40 sps:$4 sm:$0x1f]   ;;  %v19221_v2 = vld [vmem:[#allocation6] ss:$40 sps:$4 sm:$0x1f]   ;;  %661 = vmatprep.mubr.bf16.mxu0 %v21881_v3 }
  0xd1   : > { %v19222_v4 = vld [vmem:[#allocation6 + $0x8] ss:$40 sps:$4 sm:$0x1f]   ;;  %702 = vmatprep.mubr.bf16.mxu1 %v21881_v3  ;;  %v488_v5 = vld [vmem:[#allocation3] sm:$0x3]  ;;  %16948 = vmatprep.subr.msk.bf16.mxu1 %vm598_vm0, %v19219_v1  ;;  %v600_v6 = vsel %vm598_vm0, %v19221_v2, 0 }
  0xd2   : > { %v489_v7 = vpack.c.bf16 %v488_v5, %v488_v5  ;;  %v19223_v8 = vld [vmem:[#allocation6 + $0x14] ss:$40 sps:$4 sm:$0x1f]   ;;  %644 = vmatpush1.bf16.msra.mxu0 %v600_v6  ;;  %v606_v9 = vsel %vm598_vm0, %v19222_v4, 0  ;;  %v19240_v21 = vld [vmem:[#allocation9 + $0x1e4] ss:$40 sps:$4 sm:$0xff]  }
  0xd3   : > { %v19225_v10 = vld [vmem:[#allocation6 + $0x10] ss:$40 sps:$4 sm:$0x1f]   ;;  %685 = vmatpush1.bf16.msra.mxu1 %v606_v9  ;;  %16950 = vmatprep.subr.msk.bf16.mxu0 %vm598_vm0, %v19223_v8  ;;  %v19226_v11 = vld [vmem:[#allocation6 + $0x1c] ss:$40 sps:$4 sm:$0x1f]  }
  0xd4   : > { %v612_v12 = vsel %vm598_vm0, %v19225_v10, 0  ;;  %v19228_v13 = vld [vmem:[#allocation6 + $0x18] ss:$40 sps:$4 sm:$0x1f]   ;;  %16952 = vmatprep.subr.msk.bf16.mxu1 %vm598_vm0, %v19226_v11  ;;  %v19232_v20 = vld [vmem:[#allocation9 + $0x230] ss:$40 sps:$4 sm:$0xff]  }
  0xd5   : > { %16947 = vmatmul.mubr.msk.bf16.vlgmr.msra.gmra.mxu0 %vm594_vm1, %v489_v7  ;;  %v19229_v14 = vld [vmem:[#allocation6 + $0x24] ss:$40 sps:$4 sm:$0x1f]   ;;  %v618_v15 = vsel %vm598_vm0, %v19228_v13, 0  ;;  %v19234_v16 = vld [vmem:[#allocation9 + $0x234] ss:$40 sps:$4 sm:$0xff]  }
  0xd6   : > { %16949 = vmatmul.mubr.msk.bf16.vlgmr.msra.gmra.mxu1 %vm594_vm1, %v489_v7  ;;  %726 = vmatpush1.bf16.msra.mxu0 %v612_v12  ;;  %v19231_v17 = vld [vmem:[#allocation6 + $0x20] ss:$40 sps:$4 sm:$0x1f]   ;;  %v19237_v19 = vld [vmem:[#allocation9 + $0x734] ss:$40 sps:$4 sm:$0xff]   ;;  %vm5408_vm2 = vcmask 392192  }
  0xd7   : > { %743 = vmatprep.mubr.bf16.mxu0 %v21881_v3  ;;  %767 = vmatpush1.bf16.msra.mxu1 %v618_v15  ;;  %v624_v18 = vsel %vm598_vm0, %v19231_v17, 0  ;;  %v19238_v22 = vld [vmem:[#allocation9 + $0x1e0] ss:$40 sps:$4 sm:$0xff]   ;;  %v19246_v23 = vld [vmem:[#allocation9 + $0x194] ss:$40 sps:$4 sm:$0xff]   ;;  %vm12136_vm3 = vcmask 1040384  }
  0xd8   : > { %784 = vmatprep.mubr.bf16.mxu1 %v21881_v3  ;;  %16954 = vmatprep.subr.msk.bf16.mxu0 %vm598_vm0, %v19229_v14  ;;  %v19235_v24 = vld [vmem:[#allocation9 + $0x730] ss:$40 sps:$4 sm:$0xff]   ;;  %v19243_v25 = vld [vmem:[#allocation9 + $0x6e4] ss:$40 sps:$4 sm:$0xff]   ;;  %v19241_v28 = vld [vmem:[#allocation9 + $0x6e0] ss:$40 sps:$4 sm:$0xff]  }
  0xd9   : > { %5412 = vmatprep.subr.bf16.mxu1 %v19234_v16  ;;  %v19244_v26 = vld [vmem:[#allocation9 + $0x190] ss:$40 sps:$4 sm:$0xff]   ;;  %v19252_v27 = vld [vmem:[#allocation9 + $0x144] ss:$40 sps:$4 sm:$0xff]   ;;  %v19249_v29 = vld [vmem:[#allocation9 + $0x694] ss:$40 sps:$4 sm:$0xff]  }
  0xda   : > { %v19250_v30 = vld [vmem:[#allocation9 + $0x140] ss:$40 sps:$4 sm:$0xff]   ;;  %v19258_v31 = vld [vmem:[#allocation9 + $0xf4] ss:$40 sps:$4 sm:$0xff]   ;;  %v19247_v32 = vld [vmem:[#allocation9 + $0x690] ss:$40 sps:$4 sm:$0xff]  }
  0xdb   : > { %v19255_v33 = vld [vmem:[#allocation9 + $0x644] ss:$40 sps:$4 sm:$0xff]   ;;  %v19256_v34 = vld [vmem:[#allocation9 + $0xf0] ss:$40 sps:$4 sm:$0xff]   ;;  %v19253_v36 = vld [vmem:[#allocation9 + $0x640] ss:$40 sps:$4 sm:$0xff]  }
  0xdc   : > { %v19264_v35 = vld [vmem:[#allocation9 + $0xa4] ss:$40 sps:$4 sm:$0xff]   ;;  %v19261_v37 = vld [vmem:[#allocation9 + $0x5f4] ss:$40 sps:$4 sm:$0xff]   ;;  %v19262_v38 = vld [vmem:[#allocation9 + $0xa0] ss:$40 sps:$4 sm:$0xff]  }
  0xdd   : > { %16951 = vmatmul.mubr.msk.bf16.vlgmr.msra.gmra.mxu0 %vm594_vm1, %v489_v7  ;;  %v19259_v39 = vld [vmem:[#allocation9 + $0x5f0] ss:$40 sps:$4 sm:$0xff]   ;;  %v19270_v40 = vld [vmem:[#allocation9 + $0x54] ss:$40 sps:$4 sm:$0xff]   ;;  %v19267_v41 = vld [vmem:[#allocation9 + $0x5a4] ss:$40 sps:$4 sm:$0xff]  }
  0xde   : > { %16953 = vmatmul.mubr.msk.bf16.vlgmr.msra.gmra.mxu1 %vm594_vm1, %v489_v7  ;;  %808 = vmatpush1.bf16.msra.mxu0 %v624_v18  ;;  %v19268_v42 = vld [vmem:[#allocation9 + $0x50] ss:$40 sps:$4 sm:$0xff]   ;;  %v19276_v43 = vld [vmem:[#allocation9 + $0x4] ss:$40 sps:$4 sm:$0xff]   ;;  %v19265_v44 = vld [vmem:[#allocation9 + $0x5a0] ss:$40 sps:$4 sm:$0xff]  }
  0xdf   : > { %825 = vmatprep.mubr.bf16.mxu0 %v21881_v3  ;;  %5453 = vmatprep.subr.bf16.mxu0 %v19237_v19  ;;  %v19273_v45 = vld [vmem:[#allocation9 + $0x554] ss:$40 sps:$4 sm:$0xff]   ;;  %v19274_v46 = vld [vmem:[#allocation9] ss:$40 sps:$4 sm:$0xff]   ;;  %v19271_v48 = vld [vmem:[#allocation9 + $0x550] ss:$40 sps:$4 sm:$0xff]  }
  0xe0   : > { %5413 = vmatpush1.bf16.msra.mxu1 %v19232_v20  ;;  %v19282_v47 = vld [vmem:[#allocation9 + $0x4b4] ss:$40 sps:$4 sm:$0xff]   ;;  %v19279_v49 = vld [vmem:[#allocation9 + $0x504] ss:$40 sps:$4 sm:$0xff]   ;;  %v19280_v50 = vld [vmem:[#allocation9 + $0x4b0] ss:$40 sps:$4 sm:$0xff]   ;;  %v504_v20 = vlaneseq }
  0xe1   : > { %5414 = vmatprep.subr.bf16.mxu1 %v19240_v21  ;;  %v19288_v51 = vld [vmem:[#allocation9 + $0x464] ss:$40 sps:$4 sm:$0xff]   ;;  %v19277_v52 = vld [vmem:[#allocation9 + $0x500] ss:$40 sps:$4 sm:$0xff]   ;;  %v19285_v53 = vld [vmem:[#allocation9 + $0x9b4] ss:$40 sps:$4 sm:$0xff]  }
  0xe2   : > { %v19286_v54 = vld [vmem:[#allocation9 + $0x460] ss:$40 sps:$4 sm:$0xff]   ;;  %v19294_v55 = vld [vmem:[#allocation9 + $0x414] ss:$40 sps:$4 sm:$0xff]   ;;  %v19283_v56 = vld [vmem:[#allocation9 + $0x9b0] ss:$40 sps:$4 sm:$0xff]  }
  0xe3   : > { %v19291_v57 = vld [vmem:[#allocation9 + $0x964] ss:$40 sps:$4 sm:$0xff]   ;;  %v19292_v58 = vld [vmem:[#allocation9 + $0x410] ss:$40 sps:$4 sm:$0xff]   ;;  %v19289_v59 = vld [vmem:[#allocation9 + $0x960] ss:$40 sps:$4 sm:$0xff]  }
  0xe4   : > { %5415 = vmatpush1.bf16.msra.mxu1 %v19238_v22  ;;  %v19297_v60 = vld [vmem:[#allocation9 + $0x914] ss:$40 sps:$4 sm:$0xff]   ;;  %v19295_v61 = vld [vmem:[#allocation9 + $0x910] ss:$40 sps:$4 sm:$0xff]   ;;  %v19300_v62 = vld [vmem:[#allocation9 + $0x3c4] ss:$40 sps:$4 sm:$0xff]  }
  0xe5   : > { %16955 = vmatmul.mubr.msk.bf16.vlgmr.msra.gmra.mxu0 %vm594_vm1, %v489_v7  ;;  %5416 = vmatprep.subr.bf16.mxu1 %v19246_v23  ;;  %v19303_v63 = vld [vmem:[#allocation9 + $0x8c4] ss:$40 sps:$4 sm:$0xff]   ;;  %v19298_v0 = vld [vmem:[#allocation9 + $0x3c0] ss:$40 sps:$4 sm:$0xff]   ;;  %v19306_v2 = vld [vmem:[#allocation9 + $0x374] ss:$40 sps:$4 sm:$0xff]  }
  0xe6   : > { %5454 = vmatpush1.bf16.msra.mxu0 %v19235_v24  ;;  %v19301_v1 = vld [vmem:[#allocation9 + $0x8c0] ss:$40 sps:$4 sm:$0xff]   ;;  %v19309_v3 = vld [vmem:[#allocation9 + $0x874] ss:$40 sps:$4 sm:$0xff]   ;;  %v19304_v4 = vld [vmem:[#allocation9 + $0x370] ss:$40 sps:$4 sm:$0xff]  }
  0xe7   : > { %5455 = vmatprep.subr.bf16.mxu0 %v19243_v25  ;;  %v19307_v5 = vld [vmem:[#allocation9 + $0x870] ss:$40 sps:$4 sm:$0xff]   ;;  %v19312_v6 = vld [vmem:[#allocation9 + $0x324] ss:$40 sps:$4 sm:$0xff]   ;;  %v19310_v8 = vld [vmem:[#allocation9 + $0x320] ss:$40 sps:$4 sm:$0xff]  }
  0xe8   : > { %5417 = vmatpush1.bf16.msra.mxu1 %v19244_v26  ;;  %v19315_v7 = vld [vmem:[#allocation9 + $0x824] ss:$40 sps:$4 sm:$0xff]   ;;  %v19313_v9 = vld [vmem:[#allocation9 + $0x820] ss:$40 sps:$4 sm:$0xff]   ;;  %v19318_v10 = vld [vmem:[#allocation9 + $0x2d4] ss:$40 sps:$4 sm:$0xff]  }
  0xe9   : > { %5418 = vmatprep.subr.bf16.mxu1 %v19252_v27  ;;  %v19321_v11 = vld [vmem:[#allocation9 + $0x7d4] ss:$40 sps:$4 sm:$0xff]   ;;  %v19316_v12 = vld [vmem:[#allocation9 + $0x2d0] ss:$40 sps:$4 sm:$0xff]   ;;  %v19324_v14 = vld [vmem:[#allocation9 + $0x284] ss:$40 sps:$4 sm:$0xff]  }
  0xea   : > { %5456 = vmatpush1.bf16.msra.mxu0 %v19241_v28  ;;  %v19319_v13 = vld [vmem:[#allocation9 + $0x7d0] ss:$40 sps:$4 sm:$0xff]   ;;  %v19327_v15 = vld [vmem:[#allocation9 + $0x784] ss:$40 sps:$4 sm:$0xff]   ;;  %v19322_v16 = vld [vmem:[#allocation9 + $0x280] ss:$40 sps:$4 sm:$0xff]  }
  0xeb   : > { %5457 = vmatprep.subr.bf16.mxu0 %v19249_v29  ;;  %v19325_v17 = vld [vmem:[#allocation9 + $0x780] ss:$40 sps:$4 sm:$0xff]   ;;  %v19330_v18 = vld [vmem:[#allocation9 + $0xc34] ss:$40 sps:$4 sm:$0xff]   ;;  %v22191_v21 = vshrl.u32 %v504_v20, 7  ;;  %vm12137_vm4 = vcmask 386049  }
  0xec   : > { %5419 = vmatpush1.bf16.msra.mxu1 %v19250_v30  ;;  %v19333_v19 = vld [vmem:[#allocation9 + $0x1134] ss:$40 sps:$4 sm:$0xff]   ;;  %v19346_v20 = vld [vmem:[#allocation9 + $0xb40] ss:$40 sps:$4 sm:$0xff]   ;;  %vm12138_vm5 = vmor %vm12137_vm4, %vm12136_vm3 }
  0xed   : > { %5420 = vmatprep.subr.bf16.mxu1 %v19258_v31  ;;  %v22193_v22 = vld [vmem:[#allocation8] sm:$0xff]  ;;  %v22196_v23 = vsub.s32 0, %v22191_v21  ;;  %v22199_v24 = vsub.s32 2, %v22191_v21  ;;  %v22202_v25 = vsub.s32 1, %v22191_v21  ;;  %v22205_v26 = vsub.s32 3, %v22191_v21 }
  0xee   : > { %5458 = vmatpush1.bf16.msra.mxu0 %v19247_v32 }
  0xef   : > { %5459 = vmatprep.subr.bf16.mxu0 %v19255_v33  ;;  %v507_v27 = vrot.slane %v22193_v22, %v22196_v23  ;;  %v515_v28 = vrot.slane %v22193_v22, %v22199_v24  ;;  %v511_v29 = vrot.slane %v22193_v22, %v22202_v25  ;;  %v519_v31 = vrot.slane %v22193_v22, %v22205_v26 }
  0xf0   : > { %5421 = vmatpush1.bf16.msra.mxu1 %v19256_v34 }
  0xf1   : > { %5422 = vmatprep.subr.bf16.mxu1 %v19264_v35 }
  0xf2   : > { %5460 = vmatpush1.bf16.msra.mxu0 %v19253_v36 }
  0xf3   : > { %5461 = vmatprep.subr.bf16.mxu0 %v19261_v37 }
  0xf4   : > { %5423 = vmatpush1.bf16.msra.mxu1 %v19262_v38  ;;  %v22216_v38 = vsub.s32 5, %v22191_v21 }
  0xf5   : > { %5424 = vmatprep.subr.bf16.mxu1 %v19270_v40 }
  0xf6   : > { %5462 = vmatpush1.bf16.msra.mxu0 %v19259_v39 }
  0xf7   : > { %5463 = vmatprep.subr.bf16.mxu0 %v19267_v41  ;;  %v22219_v41 = vsub.s32 7, %v22191_v21 }
  0xf8   : > { %5425 = vmatpush1.bf16.msra.mxu1 %v19268_v42 }
  0xf9   : > { %5426 = vmatprep.subr.bf16.mxu1 %v19276_v43 }
  0xfa   : > { %5464 = vmatpush1.bf16.msra.mxu0 %v19265_v44 }
  0xfb   : > { %5465 = vmatprep.subr.bf16.mxu0 %v19273_v45  ;;  %v527_v45 = vrot.slane %v22193_v22, %v22216_v38 }
  0xfc   : > { %5427 = vmatpush1.bf16.msra.mxu1 %v19274_v46 }
  0xfd   : > { %5428 = vmatprep.subr.bf16.mxu1 %v19282_v47  ;;  %v535_v47 = vrot.slane %v22193_v22, %v22219_v41 }
  0xfe   : > { %5466 = vmatpush1.bf16.msra.mxu0 %v19271_v48 }
  0xff   : > { %5467 = vmatprep.subr.bf16.mxu0 %v19279_v49 }
 0x100   : > { %5429 = vmatpush2.bf16.msra.mxu1 %v19280_v50 }
 0x101   : > { %5430 = vmatprep.subr.bf16.mxu1 %v19288_v51 }
 0x102   : > { %5468 = vmatpush1.bf16.msra.mxu0 %v19277_v52 }
 0x103   : > { %5469 = vmatprep.subr.bf16.mxu0 %v19285_v53 }
 0x104   : > { %5431 = vmatpush2.bf16.msra.mxu1 %v19286_v54 }
 0x105   : > { %5432 = vmatprep.subr.bf16.mxu1 %v19294_v55 }
 0x106   : > { %5470 = vmatpush2.bf16.msra.mxu0 %v19283_v56 }
 0x107   : > { %5471 = vmatprep.subr.bf16.mxu0 %v19291_v57 }
 0x108   : > { %5433 = vmatpush2.bf16.msra.mxu1 %v19292_v58 }
 0x109   : > { %5434 = vmatprep.subr.bf16.mxu1 %v19300_v62  ;;  %v19331_v62 = vld [vmem:[#allocation9 + $0x1130] ss:$40 sps:$4 sm:$0xff]  }
 0x10a   : > { %5472 = vmatpush2.bf16.msra.mxu0 %v19289_v59 }
 0x10b   : > { %5473 = vmatprep.subr.bf16.mxu0 %v19297_v60  ;;  %v19328_v60 = vld [vmem:[#allocation9 + $0xc30] ss:$40 sps:$4 sm:$0xff]  }
 0x10c   : > { %5435 = vmatpush2.bf16.msra.mxu1 %v19298_v0 }
 0x10d   : > { %5436 = vmatprep.subr.bf16.mxu1 %v19306_v2 }
 0x10e   : > { %5474 = vmatpush2.bf16.msra.mxu0 %v19295_v61 }
 0x10f   : > { %5475 = vmatprep.subr.bf16.mxu0 %v19303_v63  ;;  %v19336_v63 = vld [vmem:[#allocation9 + $0xbe4] ss:$40 sps:$4 sm:$0xff]  }
 0x110   : > { %5437 = vmatpush2.bf16.msra.mxu1 %v19304_v4 }
 0x111   : > { %5438 = vmatprep.subr.bf16.mxu1 %v19312_v6 }
 0x112   : > { %5476 = vmatpush2.bf16.msra.mxu0 %v19301_v1 }
 0x113   : > { %5477 = vmatprep.subr.bf16.mxu0 %v19309_v3 }
 0x114   : > { %5439 = vmatpush2.bf16.msra.mxu1 %v19310_v8  ;;  %v19334_v8 = vld [vmem:[#allocation9 + $0xbe0] ss:$40 sps:$4 sm:$0xff]  }
 0x115   : > { %5440 = vmatprep.subr.bf16.mxu1 %v19318_v10  ;;  %v19337_v10 = vld [vmem:[#allocation9 + $0x10e0] ss:$40 sps:$4 sm:$0xff]  }
 0x116   : > { %5478 = vmatpush2.bf16.msra.mxu0 %v19307_v5 }
 0x117   : > { %5479 = vmatprep.subr.bf16.mxu0 %v19315_v7  ;;  %v19339_v7 = vld [vmem:[#allocation9 + $0x10e4] ss:$40 sps:$4 sm:$0xff]  }
 0x118   : > { %5441 = vmatpush2.bf16.msra.mxu1 %v19316_v12  ;;  %v19340_v12 = vld [vmem:[#allocation9 + $0xb90] ss:$40 sps:$4 sm:$0xff]  }
 0x119   : > { %5442 = vmatprep.subr.bf16.mxu1 %v19324_v14 }
 0x11a   : > { %5480 = vmatpush2.bf16.msra.mxu0 %v19313_v9 }
 0x11b   : > { %5481 = vmatprep.subr.bf16.mxu0 %v19321_v11  ;;  %v19342_v11 = vld [vmem:[#allocation9 + $0xb94] ss:$40 sps:$4 sm:$0xff]  }
 0x11c   : > { %5443 = vmatpush2.bf16.msra.mxu1 %v19322_v16 }
 0x11d   : > { %5494 = vmatprep.subr.bf16.mxu1 %v19330_v18  ;;  %v19348_v18 = vld [vmem:[#allocation9 + $0xb44] ss:$40 sps:$4 sm:$0xff]  }
 0x11e   : > { %5482 = vmatpush2.bf16.msra.mxu0 %v19319_v13  ;;  %v19345_v13 = vld [vmem:[#allocation9 + $0x1094] ss:$40 sps:$4 sm:$0xff]  }
 0x11f   : > { %5483 = vmatprep.subr.bf16.mxu0 %v19327_v15 }
 0x122   : > { %5484 = vmatpush2.bf16.msra.mxu0 %v19325_v17  ;;  %v19343_v17 = vld [vmem:[#allocation9 + $0x1090] ss:$40 sps:$4 sm:$0xff]  }
 0x123   : > { %5535 = vmatprep.subr.bf16.mxu0 %v19333_v19 }
 0x195   : > { %v663_v30 = vpop.f32.mrf.mxu0 }
 0x196   : > { %v664_v32 = vadd.f32 %v663_v30, %v507_v27  ;;  %v704_v33 = vpop.f32.mrf.mxu1  ;;  %v19351_v27 = vld [vmem:[#allocation9 + $0x1044] ss:$40 sps:$4 sm:$0xff]   ;;  %v19352_v30 = vld [vmem:[#allocation9 + $0xaf0] ss:$40 sps:$4 sm:$0xff]  }
 0x197   : > { %v705_v34 = vadd.f32 %v704_v33, %v515_v28  ;;  %v665_v35 = vpop.f32.mrf.mxu0  ;;  %v19349_v28 = vld [vmem:[#allocation9 + $0x1040] ss:$40 sps:$4 sm:$0xff]   ;;  %v19360_v33 = vld [vmem:[#allocation9 + $0xaa4] ss:$40 sps:$4 sm:$0xff]  }
 0x198   : > { %21482 = vtanh.f32 %v664_v32  ;;  %v666_v36 = vadd.f32 %v665_v35, %v511_v29  ;;  %v706_v37 = vpop.f32.mrf.mxu1  ;;  %v19354_v29 = vld [vmem:[#allocation9 + $0xaf4] ss:$40 sps:$4 sm:$0xff]   ;;  %v19355_v32 = vld [vmem:[#allocation9 + $0xff0] ss:$40 sps:$4 sm:$0xff]   ;;  %v19363_v35 = vld [vmem:[#allocation9 + $0xfa4] ss:$40 sps:$4 sm:$0xff]  }
 0x199   : > { %21484 = vtanh.f32 %v705_v34  ;;  %v707_v39 = vadd.f32 %v706_v37, %v519_v31  ;;  %v667_v40 = vpop.f32.mrf.mxu0  ;;  %v19357_v31 = vld [vmem:[#allocation9 + $0xff4] ss:$40 sps:$4 sm:$0xff]   ;;  %v19358_v34 = vld [vmem:[#allocation9 + $0xaa0] ss:$40 sps:$4 sm:$0xff]  }
 0x19a   : > { %21486 = vtanh.f32 %v666_v36  ;;  %v708_v42 = vpop.f32.mrf.mxu1  ;;  %v19361_v36 = vld [vmem:[#allocation9 + $0xfa0] ss:$40 sps:$4 sm:$0xff]   ;;  %v19366_v37 = vld [vmem:[#allocation9 + $0xa54] ss:$40 sps:$4 sm:$0xff]  }
 0x19b   : > { %21488 = vtanh.f32 %v707_v39  ;;  %v668_v43 = vpop.f32.mrf.mxu0  ;;  %v19364_v39 = vld [vmem:[#allocation9 + $0xa50] ss:$40 sps:$4 sm:$0xff]   ;;  %v19369_v40 = vld [vmem:[#allocation9 + $0xf54] ss:$40 sps:$4 sm:$0xff]  }
 0x19c   : > { %v709_v44 = vpop.f32.mrf.mxu1  ;;  %v19367_v42 = vld [vmem:[#allocation9 + $0xf50] ss:$40 sps:$4 sm:$0xff]   ;;  %v19372_v43 = vld [vmem:[#allocation9 + $0xa04] ss:$40 sps:$4 sm:$0xff]  }
 0x19d   : > { %v22223_v46 = vpop.f32.mrf.mxu0  ;;  %v19370_v44 = vld [vmem:[#allocation9 + $0xa00] ss:$40 sps:$4 sm:$0xff]  }
 0x19e   : > { %v22227_v48 = vpop.f32.mrf.mxu1 }
 0x19f   : > { %v747_v49 = vpop.f32.mrf.mxu0 }
 0x1a0   : > { %v748_v50 = vadd.f32 %v747_v49, %v527_v45  ;;  %v788_v51 = vpop.f32.mrf.mxu1  ;;  %v19375_v45 = vld [vmem:[#allocation9 + $0xf04] ss:$40 sps:$4 sm:$0xff]   ;;  %v19378_v49 = vld [vmem:[#allocation9 + $0xeb4] ss:$40 sps:$4 sm:$0xff]  }
 0x1a1   : > { %v749_v52 = vpop.f32.mrf.mxu0  ;;  %v789_v53 = vadd.f32 %v788_v51, %v535_v47  ;;  %v19373_v47 = vld [vmem:[#allocation9 + $0xf00] ss:$40 sps:$4 sm:$0xff]   ;;  %v19381_v51 = vld [vmem:[#allocation9 + $0x13b4] ss:$40 sps:$4 sm:$0xff]  }
 0x1a2   : > { %21490 = vtanh.f32 %v748_v50  ;;  %v790_v54 = vpop.f32.mrf.mxu1  ;;  %v19376_v50 = vld [vmem:[#allocation9 + $0xeb0] ss:$40 sps:$4 sm:$0xff]  }
 0x1a3   : > { %v750_v55 = vpop.f32.mrf.mxu0  ;;  %21492 = vtanh.f32 %v789_v53  ;;  %v19379_v52 = vld [vmem:[#allocation9 + $0x13b0] ss:$40 sps:$4 sm:$0xff]   ;;  %v19384_v53 = vld [vmem:[#allocation9 + $0xe64] ss:$40 sps:$4 sm:$0xff]   ;;  %v19382_v54 = vld [vmem:[#allocation9 + $0xe60] ss:$40 sps:$4 sm:$0xff]  }
 0x1a4   : > { %v791_v56 = vpop.f32.mrf.mxu1  ;;  %v19387_v55 = vld [vmem:[#allocation9 + $0x1364] ss:$40 sps:$4 sm:$0xff]  }
 0x1a5   : > { %v21483_v57 = vpop.eup %21482  ;;  %v22229_v58 = vpop.f32.mrf.mxu0  ;;  %v19385_v56 = vld [vmem:[#allocation9 + $0x1360] ss:$40 sps:$4 sm:$0xff]  }
 0x1a6   : > { %v21485_v59 = vpop.eup %21484  ;;  %v22237_v4 = vpack.c.bf16 %v21483_v57, %v21483_v57  ;;  %v22252_v57 = vsub.s32 6, %v22191_v21 }
 0x1a7   : > { %v21487_v61 = vpop.eup %21486  ;;  %v22231_v0 = vpop.f32.mrf.mxu0  ;;  %v22233_v2 = vpack.c.bf16 %v21485_v59, %v21485_v59  ;;  %v22255_v59 = vsub.s32 4, %v22191_v21 }
 0x1a8   : > { %v21489_v1 = vpop.eup %21488  ;;  %v22235_v3 = vpack.c.bf16 %v21487_v61, %v21487_v61  ;;  %v19393_v61 = vld [vmem:[#allocation9 + $0x1314] ss:$40 sps:$4 sm:$0xff]  }
 0x1a9   : > { %v22239_v5 = vpack.c.bf16 %v21489_v1, %v21489_v1  ;;  %v831_v6 = vpop.f32.mrf.mxu0  ;;  %v531_v1 = vrot.slane %v22193_v22, %v22252_v57 }
 0x1aa   : > { %5444 = vmatprep.mubr.bf16.mxu1 %v22235_v3  ;;  %v523_v6 = vrot.slane %v22193_v22, %v22255_v59  ;;  %v19405_v22 = vld [vmem:[#allocation9 + $0x1274] ss:$40 sps:$4 sm:$0xff]  }
 0x1ab   : > { %5485 = vmatprep.mubr.bf16.mxu0 %v22239_v5  ;;  %5445 = vmatmul.mubr.bf16.vlgmr.msra.gmra.mxu1 %v22237_v4  ;;  %v832_v9 = vpop.f32.mrf.mxu0 }
 0x1ac   : > { %5486 = vmatmul.mubr.bf16.vlgmr.msra.gmra.mxu0 %v22233_v2  ;;  %5495 = vmatpush1.bf16.msra.mxu1 %v19328_v60  ;;  %v19390_v60 = vld [vmem:[#allocation9 + $0xe14] ss:$40 sps:$4 sm:$0xff]   ;;  %v19394_v9 = vld [vmem:[#allocation9 + $0xdc0] ss:$40 sps:$4 sm:$0xff]  }
 0x1ad   : > { %5536 = vmatpush1.bf16.msra.mxu0 %v19331_v62  ;;  %5496 = vmatprep.subr.bf16.mxu1 %v19336_v63  ;;  %v19388_v62 = vld [vmem:[#allocation9 + $0xe10] ss:$40 sps:$4 sm:$0xff]   ;;  %v22257_v63 = vld [vmem:[#allocation8 + $0x8] sm:$0x3] }
 0x1ae   : > { %5537 = vmatprep.subr.bf16.mxu0 %v19339_v7  ;;  %v19391_v7 = vld [vmem:[#allocation9 + $0x1310] ss:$40 sps:$4 sm:$0xff]  }
 0x1af   : > { %v21491_v14 = vpop.eup %21490 }
 0x1b0   : > { %v21493_v15 = vpop.eup %21492  ;;  %5497 = vmatpush1.bf16.msra.mxu1 %v19334_v8  ;;  %v22245_v16 = vpack.c.bf16 %v21491_v14, %v21491_v14  ;;  %v19396_v8 = vld [vmem:[#allocation9 + $0xdc4] ss:$40 sps:$4 sm:$0xff]   ;;  %v787_v14 = vadd.f32 %v22227_v48, %v531_v1  ;;  %v19414_v48 = vld [vmem:[#allocation9 + $0xcd4] ss:$40 sps:$4 sm:$0xff]  }
 0x1b1   : > { %5538 = vmatpush1.bf16.msra.mxu0 %v19337_v10  ;;  %5498 = vmatprep.subr.bf16.mxu1 %v19342_v11  ;;  %v22247_v19 = vpack.c.bf16 %v21493_v15, %v21493_v15  ;;  %v19399_v10 = vld [vmem:[#allocation9 + $0x12c4] ss:$40 sps:$4 sm:$0xff]   ;;  %v19397_v11 = vld [vmem:[#allocation9 + $0x12c0] ss:$40 sps:$4 sm:$0xff]   ;;  %v746_v15 = vadd.f32 %v22223_v46, %v523_v6 }
 0x1b2   : > { %5539 = vmatprep.subr.bf16.mxu0 %v19345_v13  ;;  %5526 = vmatprep.mubr.bf16.mxu1 %v22245_v16  ;;  %v543_v13 = vrot.slane %v22257_v63, %v22202_v25  ;;  %21494 = vtanh.f32 %v787_v14  ;;  %v19409_v46 = vld [vmem:[#allocation9 + $0x1220] ss:$40 sps:$4 sm:$0xff]   ;;  %v19447_v1 = vld [vmem:[#allocation9 + $0x14c] ss:$40 sps:$4 sm:$0xff]   ;;  %v539_v14 = vrot.slane %v22257_v63, %v22196_v23 }
 0x1b3   : > { %5567 = vmatprep.mubr.bf16.mxu0 %v22247_v19  ;;  %21496 = vtanh.f32 %v746_v15  ;;  %v19445_v6 = vld [vmem:[#allocation9 + $0x148] ss:$40 sps:$4 sm:$0xff]  }
 0x1b4   : > { %5499 = vmatpush1.bf16.msra.mxu1 %v19340_v12  ;;  %v19402_v12 = vld [vmem:[#allocation9 + $0xd74] ss:$40 sps:$4 sm:$0xff]   ;;  %v19457_v15 = vld [vmem:[#allocation9 + $0xa8] ss:$40 sps:$4 sm:$0xff]  }
 0x1b5   : > { %5540 = vmatpush1.bf16.msra.mxu0 %v19343_v17  ;;  %5500 = vmatprep.subr.bf16.mxu1 %v19348_v18  ;;  %v19400_v17 = vld [vmem:[#allocation9 + $0xd70] ss:$40 sps:$4 sm:$0xff]   ;;  %v830_v18 = vadd.f32 %v22231_v0, %v543_v13  ;;  %v19459_v13 = vld [vmem:[#allocation9 + $0xac] ss:$40 sps:$4 sm:$0xff]  }
 0x1b6   : > { %5541 = vmatprep.subr.bf16.mxu0 %v19351_v27  ;;  %v19408_v27 = vld [vmem:[#allocation9 + $0xd24] ss:$40 sps:$4 sm:$0xff]   ;;  %v19415_v0 = vld [vmem:[#allocation9 + $0x11d0] ss:$40 sps:$4 sm:$0xff]  }
 0x1b7   : > { %21498 = vtanh.f32 %v830_v18  ;;  %v19465_v18 = vld [vmem:[#allocation9 + $0x5c] ss:$40 sps:$4 sm:$0xff]   ;;  %v19469_v63 = vld [vmem:[#allocation9 + $0x8] ss:$40 sps:$4 sm:$0xff]  }
 0x1b8   : > { %5501 = vmatpush1.bf16.msra.mxu1 %v19346_v20  ;;  %v19403_v20 = vld [vmem:[#allocation9 + $0x1270] ss:$40 sps:$4 sm:$0xff]  }
 0x1b9   : > { %5542 = vmatpush1.bf16.msra.mxu0 %v19349_v28  ;;  %5502 = vmatprep.subr.bf16.mxu1 %v19354_v29  ;;  %v19406_v28 = vld [vmem:[#allocation9 + $0xd20] ss:$40 sps:$4 sm:$0xff]   ;;  %v19411_v29 = vld [vmem:[#allocation9 + $0x1224] ss:$40 sps:$4 sm:$0xff]  }
 0x1ba   : > { %5543 = vmatprep.subr.bf16.mxu0 %v19357_v31  ;;  %v19417_v31 = vld [vmem:[#allocation9 + $0x11d4] ss:$40 sps:$4 sm:$0xff]  }
 0x1bc   : > { %5503 = vmatpush1.bf16.msra.mxu1 %v19352_v30  ;;  %v19412_v30 = vld [vmem:[#allocation9 + $0xcd0] ss:$40 sps:$4 sm:$0xff]  }
 0x1bd   : > { %5544 = vmatpush1.bf16.msra.mxu0 %v19355_v32  ;;  %5504 = vmatprep.subr.bf16.mxu1 %v19360_v33  ;;  %v19420_v32 = vld [vmem:[#allocation9 + $0xc84] ss:$40 sps:$4 sm:$0xff]   ;;  %v19418_v33 = vld [vmem:[#allocation9 + $0xc80] ss:$40 sps:$4 sm:$0xff]  }
 0x1be   : > { %5545 = vmatprep.subr.bf16.mxu0 %v19363_v35 }
 0x1bf   : > { %v21495_v35 = vpop.eup %21494 }
 0x1c0   : > { %5505 = vmatpush1.bf16.msra.mxu1 %v19358_v34  ;;  %v19423_v34 = vld [vmem:[#allocation9 + $0x1184] ss:$40 sps:$4 sm:$0xff]  }
 0x1c1   : > { %5546 = vmatpush1.bf16.msra.mxu0 %v19361_v36  ;;  %5506 = vmatprep.subr.bf16.mxu1 %v19366_v37  ;;  %v19421_v36 = vld [vmem:[#allocation9 + $0x1180] ss:$40 sps:$4 sm:$0xff]   ;;  %v19426_v37 = vld [vmem:[#allocation9 + $0x1634] ss:$40 sps:$4 sm:$0xff]  }
 0x1c2   : > { %5547 = vmatprep.subr.bf16.mxu0 %v19369_v40  ;;  %v19424_v40 = vld [vmem:[#allocation9 + $0x1630] ss:$40 sps:$4 sm:$0xff]  }
 0x1c4   : > { %5507 = vmatpush1.bf16.msra.mxu1 %v19364_v39  ;;  %v21497_v39 = vpop.eup %21496 }
 0x1c5   : > { %5548 = vmatpush1.bf16.msra.mxu0 %v19367_v42  ;;  %5508 = vmatprep.subr.bf16.mxu1 %v19372_v43  ;;  %v19429_v42 = vld [vmem:[#allocation9 + $0x23c] ss:$40 sps:$4 sm:$0xff]   ;;  %v19427_v43 = vld [vmem:[#allocation9 + $0x238] ss:$40 sps:$4 sm:$0xff]  }
 0x1c6   : > { %5549 = vmatprep.subr.bf16.mxu0 %v19375_v45  ;;  %v22268_v45 = vpack.c.bf16 %v21495_v35, %v21495_v35  ;;  %v19486_v35 = vld [vmem:[#allocation9 + $0x1684] ss:$40 sps:$4 sm:$0xff]  }
 0x1c8   : > { %5509 = vmatpush1.bf16.msra.mxu1 %v19370_v44  ;;  %v21499_v44 = vpop.eup %21498 }
 0x1c9   : > { %5550 = vmatpush1.bf16.msra.mxu0 %v19373_v47  ;;  %5510 = vmatprep.subr.bf16.mxu1 %v19378_v49  ;;  %v22270_v47 = vpack.c.bf16 %v21497_v39, %v21497_v39  ;;  %v19432_v49 = vld [vmem:[#allocation9 + $0x15e4] ss:$40 sps:$4 sm:$0xff]   ;;  %v19487_v39 = vld [vmem:[#allocation9 + $0x418] ss:$40 sps:$4 sm:$0xff]  }
 0x1ca   : > { %5551 = vmatprep.subr.bf16.mxu0 %v19381_v51  ;;  %v19430_v51 = vld [vmem:[#allocation9 + $0x15e0] ss:$40 sps:$4 sm:$0xff]  }
 0x1cc   : > { %5511 = vmatpush2.bf16.msra.mxu1 %v19376_v50  ;;  %v19435_v50 = vld [vmem:[#allocation9 + $0x1ec] ss:$40 sps:$4 sm:$0xff]  }
 0x1cd   : > { %5552 = vmatpush2.bf16.msra.mxu0 %v19379_v52  ;;  %5512 = vmatprep.subr.bf16.mxu1 %v19384_v53  ;;  %v19433_v52 = vld [vmem:[#allocation9 + $0x1e8] ss:$40 sps:$4 sm:$0xff]   ;;  %v19438_v53 = vld [vmem:[#allocation9 + $0x1594] ss:$40 sps:$4 sm:$0xff]  }
 0x1ce   : > { %5553 = vmatprep.subr.bf16.mxu0 %v19387_v55  ;;  %v19441_v55 = vld [vmem:[#allocation9 + $0x19c] ss:$40 sps:$4 sm:$0xff]  }
 0x1d0   : > { %5513 = vmatpush2.bf16.msra.mxu1 %v19382_v54  ;;  %v22273_v54 = vpack.c.bf16 %v21499_v44, %v21499_v44  ;;  %v19493_v44 = vld [vmem:[#allocation9 + $0x738] ss:$40 sps:$4 sm:$0xff]  }
 0x1d1   : > { %5554 = vmatpush2.bf16.msra.mxu0 %v19385_v56  ;;  %5514 = vmatprep.subr.bf16.mxu1 %v19390_v60  ;;  %v19436_v56 = vld [vmem:[#allocation9 + $0x1590] ss:$40 sps:$4 sm:$0xff]  }
 0x1d2   : > { %5555 = vmatprep.subr.bf16.mxu0 %v19393_v61  ;;  %v19439_v60 = vld [vmem:[#allocation9 + $0x198] ss:$40 sps:$4 sm:$0xff]   ;;  %v19444_v61 = vld [vmem:[#allocation9 + $0x1544] ss:$40 sps:$4 sm:$0xff]  }
 0x1d4   : > { %5515 = vmatpush2.bf16.msra.mxu1 %v19388_v62  ;;  %v19442_v62 = vld [vmem:[#allocation9 + $0x1540] ss:$40 sps:$4 sm:$0xff]  }
 0x1d5   : > { %5556 = vmatpush2.bf16.msra.mxu0 %v19391_v7  ;;  %5516 = vmatprep.subr.bf16.mxu1 %v19396_v8  ;;  %v19450_v7 = vld [vmem:[#allocation9 + $0x14f4] ss:$40 sps:$4 sm:$0xff]   ;;  %v19448_v8 = vld [vmem:[#allocation9 + $0x14f0] ss:$40 sps:$4 sm:$0xff]  }
 0x1d6   : > { %5557 = vmatprep.subr.bf16.mxu0 %v19399_v10  ;;  %v19451_v10 = vld [vmem:[#allocation9 + $0xf8] ss:$40 sps:$4 sm:$0xff]  }
 0x1d8   : > { %5517 = vmatpush2.bf16.msra.mxu1 %v19394_v9  ;;  %v19453_v9 = vld [vmem:[#allocation9 + $0xfc] ss:$40 sps:$4 sm:$0xff]  }
 0x1d9   : > { %5558 = vmatpush2.bf16.msra.mxu0 %v19397_v11  ;;  %5518 = vmatprep.subr.bf16.mxu1 %v19402_v12  ;;  %v19456_v11 = vld [vmem:[#allocation9 + $0x14a4] ss:$40 sps:$4 sm:$0xff]   ;;  %v19454_v12 = vld [vmem:[#allocation9 + $0x14a0] ss:$40 sps:$4 sm:$0xff]  }
 0x1da   : > { %5559 = vmatprep.subr.bf16.mxu0 %v19405_v22  ;;  %v19462_v22 = vld [vmem:[#allocation9 + $0x1454] ss:$40 sps:$4 sm:$0xff]  }
 0x1dc   : > { %5519 = vmatpush2.bf16.msra.mxu1 %v19400_v17  ;;  %v19460_v17 = vld [vmem:[#allocation9 + $0x1450] ss:$40 sps:$4 sm:$0xff]  }
 0x1dd   : > { %5560 = vmatpush2.bf16.msra.mxu0 %v19403_v20  ;;  %5520 = vmatprep.subr.bf16.mxu1 %v19408_v27  ;;  %v828_v20 = vadd.f32 %v22229_v58, %v539_v14  ;;  %v19463_v27 = vld [vmem:[#allocation9 + $0x58] ss:$40 sps:$4 sm:$0xff]   ;;  %v19525_v14 = vld [vmem:[#allocation9 + $0xc3c] ss:$40 sps:$4 sm:$0xff]  }
 0x1de   : > { %5561 = vmatprep.subr.bf16.mxu0 %v19411_v29  ;;  %v19466_v29 = vld [vmem:[#allocation9 + $0x1400] ss:$40 sps:$4 sm:$0xff]  }
 0x1df   : > { %21500 = vtanh.f32 %v828_v20  ;;  %v19475_v58 = vld [vmem:[#allocation9 + $0x4b8] ss:$40 sps:$4 sm:$0xff]  }
 0x1e0   : > { %5521 = vmatpush2.bf16.msra.mxu1 %v19406_v28  ;;  %v19468_v28 = vld [vmem:[#allocation9 + $0x1404] ss:$40 sps:$4 sm:$0xff]   ;;  %v19526_v20 = vld [vmem:[#allocation9 + $0x558] ss:$40 sps:$4 sm:$0xff]  }
 0x1e1   : > { %5562 = vmatpush2.bf16.msra.mxu0 %v19409_v46  ;;  %5522 = vmatprep.subr.bf16.mxu1 %v19414_v48  ;;  %v19471_v46 = vld [vmem:[#allocation9 + $0xc] ss:$40 sps:$4 sm:$0xff]  }
 0x1e2   : > { %5563 = vmatprep.subr.bf16.mxu0 %v19417_v31  ;;  %v19474_v48 = vld [vmem:[#allocation9 + $0x1724] ss:$40 sps:$4 sm:$0xff]  }
 0x1e3   : > { %v19477_v31 = vld [vmem:[#allocation9 + $0x4bc] ss:$40 sps:$4 sm:$0xff]  }
 0x1e4   : > { %5523 = vmatpush2.bf16.msra.mxu1 %v19412_v30  ;;  %v19472_v30 = vld [vmem:[#allocation9 + $0x1720] ss:$40 sps:$4 sm:$0xff]  }
 0x1e5   : > { %5564 = vmatpush2.bf16.msra.mxu0 %v19415_v0  ;;  %5524 = vmatprep.subr.bf16.mxu1 %v19420_v32  ;;  %v19480_v0 = vld [vmem:[#allocation9 + $0x16d4] ss:$40 sps:$4 sm:$0xff]   ;;  %v19478_v32 = vld [vmem:[#allocation9 + $0x16d0] ss:$40 sps:$4 sm:$0xff]  }
 0x1e6   : > { %5565 = vmatprep.subr.bf16.mxu0 %v19423_v34  ;;  %v19481_v34 = vld [vmem:[#allocation9 + $0x468] ss:$40 sps:$4 sm:$0xff]  }
 0x1e8   : > { %5525 = vmatpush2.bf16.msra.mxu1 %v19418_v33  ;;  %v19483_v33 = vld [vmem:[#allocation9 + $0x46c] ss:$40 sps:$4 sm:$0xff]  }
 0x1e9   : > { %5566 = vmatpush2.bf16.msra.mxu0 %v19421_v36  ;;  %5576 = vmatprep.subr.bf16.mxu1 %v19426_v37  ;;  %v19484_v36 = vld [vmem:[#allocation9 + $0x1680] ss:$40 sps:$4 sm:$0xff]   ;;  %v19489_v37 = vld [vmem:[#allocation9 + $0x41c] ss:$40 sps:$4 sm:$0xff]  }
 0x1ea   : > { %5617 = vmatprep.subr.bf16.mxu0 %v19429_v42  ;;  %v19495_v42 = vld [vmem:[#allocation9 + $0x73c] ss:$40 sps:$4 sm:$0xff]  }
 0x1eb   : > { %5527 = vmatmul.mubr.bf16.vlgmr.msra.gmra.mxu1 %v22270_v47 }
 0x1ec   : > { %5568 = vmatmul.mubr.bf16.vlgmr.msra.gmra.mxu0 %v22268_v45  ;;  %5577 = vmatpush1.bf16.msra.mxu1 %v19424_v40  ;;  %v19492_v40 = vld [vmem:[#allocation9 + $0x3cc] ss:$40 sps:$4 sm:$0xff]  }
 0x1ed   : > { %5618 = vmatpush1.bf16.msra.mxu0 %v19427_v43  ;;  %5649 = vmatprep.mubr.bf16.mxu0 %v22235_v3  ;;  %v21501_v43 = vpop.eup %21500 }
 0x1ee   : > { %5578 = vmatprep.subr.bf16.mxu1 %v19432_v49  ;;  %5619 = vmatprep.subr.bf16.mxu0 %v19435_v50  ;;  %v19490_v49 = vld [vmem:[#allocation9 + $0x3c8] ss:$40 sps:$4 sm:$0xff]   ;;  %v19501_v50 = vld [vmem:[#allocation9 + $0x6ec] ss:$40 sps:$4 sm:$0xff]  }
 0x1ef   : > { %17706 = vmatprep.mubr.msk.bf16.mxu1 %vm5408_vm2, %v22273_v54 }
 0x1f0   : > { %5579 = vmatpush1.bf16.msra.mxu1 %v19430_v51  ;;  %v22282_v51 = vpack.c.bf16 %v21501_v43, %v21501_v43  ;;  %v19561_v43 = vld [vmem:[#allocation9 + $0xa5c] ss:$40 sps:$4 sm:$0xff]  }
 0x1f1   : > { %5620 = vmatpush1.bf16.msra.mxu0 %v19433_v52  ;;  %5580 = vmatprep.subr.bf16.mxu1 %v19438_v53  ;;  %v19498_v52 = vld [vmem:[#allocation9 + $0x37c] ss:$40 sps:$4 sm:$0xff]   ;;  %v19496_v53 = vld [vmem:[#allocation9 + $0x378] ss:$40 sps:$4 sm:$0xff]  }
 0x1f2   : > { %5621 = vmatprep.subr.bf16.mxu0 %v19441_v55  ;;  %v19499_v55 = vld [vmem:[#allocation9 + $0x6e8] ss:$40 sps:$4 sm:$0xff]  }
 0x1f4   : > { %5581 = vmatpush1.bf16.msra.mxu1 %v19436_v56  ;;  %v19507_v56 = vld [vmem:[#allocation9 + $0x69c] ss:$40 sps:$4 sm:$0xff]  }
 0x1f5   : > { %5622 = vmatpush1.bf16.msra.mxu0 %v19439_v60  ;;  %5582 = vmatprep.subr.bf16.mxu1 %v19444_v61  ;;  %v19504_v60 = vld [vmem:[#allocation9 + $0x32c] ss:$40 sps:$4 sm:$0xff]   ;;  %v19505_v61 = vld [vmem:[#allocation9 + $0x698] ss:$40 sps:$4 sm:$0xff]  }
 0x1f6   : > { %5623 = vmatprep.subr.bf16.mxu0 %v19447_v1  ;;  %v19510_v1 = vld [vmem:[#allocation9 + $0x2dc] ss:$40 sps:$4 sm:$0xff]  }
 0x1f8   : > { %5583 = vmatpush1.bf16.msra.mxu1 %v19442_v62  ;;  %v19502_v62 = vld [vmem:[#allocation9 + $0x328] ss:$40 sps:$4 sm:$0xff]  }
 0x1f9   : > { %5624 = vmatpush1.bf16.msra.mxu0 %v19445_v6  ;;  %5584 = vmatprep.subr.bf16.mxu1 %v19450_v7  ;;  %v19513_v6 = vld [vmem:[#allocation9 + $0x64c] ss:$40 sps:$4 sm:$0xff]   ;;  %v19511_v7 = vld [vmem:[#allocation9 + $0x648] ss:$40 sps:$4 sm:$0xff]  }
 0x1fa   : > { %5625 = vmatprep.subr.bf16.mxu0 %v19453_v9  ;;  %v19516_v9 = vld [vmem:[#allocation9 + $0x28c] ss:$40 sps:$4 sm:$0xff]  }
 0x1fc   : > { %5585 = vmatpush1.bf16.msra.mxu1 %v19448_v8  ;;  %v19508_v8 = vld [vmem:[#allocation9 + $0x2d8] ss:$40 sps:$4 sm:$0xff]  }
 0x1fd   : > { %5626 = vmatpush1.bf16.msra.mxu0 %v19451_v10  ;;  %5586 = vmatprep.subr.bf16.mxu1 %v19456_v11  ;;  %v19519_v10 = vld [vmem:[#allocation9 + $0x5fc] ss:$40 sps:$4 sm:$0xff]   ;;  %v19517_v11 = vld [vmem:[#allocation9 + $0x5f8] ss:$40 sps:$4 sm:$0xff]  }
 0x1fe   : > { %5627 = vmatprep.subr.bf16.mxu0 %v19459_v13  ;;  %v19522_v13 = vld [vmem:[#allocation9 + $0x5ac] ss:$40 sps:$4 sm:$0xff]  }
 0x200   : > { %5587 = vmatpush1.bf16.msra.mxu1 %v19454_v12  ;;  %v19514_v12 = vld [vmem:[#allocation9 + $0x288] ss:$40 sps:$4 sm:$0xff]  }
 0x201   : > { %5628 = vmatpush1.bf16.msra.mxu0 %v19457_v15  ;;  %5588 = vmatprep.subr.bf16.mxu1 %v19462_v22  ;;  %v19520_v15 = vld [vmem:[#allocation9 + $0x5a8] ss:$40 sps:$4 sm:$0xff]   ;;  %v19523_v22 = vld [vmem:[#allocation9 + $0xc38] ss:$40 sps:$4 sm:$0xff]  }
 0x202   : > { %5629 = vmatprep.subr.bf16.mxu0 %v19465_v18  ;;  %v19531_v18 = vld [vmem:[#allocation9 + $0xbec] ss:$40 sps:$4 sm:$0xff]  }
 0x204   : > { %5589 = vmatpush1.bf16.msra.mxu1 %v19460_v17  ;;  %v19528_v17 = vld [vmem:[#allocation9 + $0x55c] ss:$40 sps:$4 sm:$0xff]  }
 0x205   : > { %5630 = vmatpush1.bf16.msra.mxu0 %v19463_v27  ;;  %5590 = vmatprep.subr.bf16.mxu1 %v19468_v28  ;;  %v19529_v27 = vld [vmem:[#allocation9 + $0xbe8] ss:$40 sps:$4 sm:$0xff]   ;;  %v19534_v28 = vld [vmem:[#allocation9 + $0x50c] ss:$40 sps:$4 sm:$0xff]  }
 0x206   : > { %5631 = vmatprep.subr.bf16.mxu0 %v19471_v46  ;;  %v19532_v46 = vld [vmem:[#allocation9 + $0x508] ss:$40 sps:$4 sm:$0xff]  }
 0x208   : > { %5591 = vmatpush1.bf16.msra.mxu1 %v19466_v29  ;;  %v19537_v29 = vld [vmem:[#allocation9 + $0xb9c] ss:$40 sps:$4 sm:$0xff]  }
 0x209   : > { %5632 = vmatpush1.bf16.msra.mxu0 %v19469_v63  ;;  %5602 = vmatprep.subr.bf16.mxu1 %v19474_v48  ;;  %v19535_v63 = vld [vmem:[#allocation9 + $0xb98] ss:$40 sps:$4 sm:$0xff]   ;;  %v19540_v48 = vld [vmem:[#allocation9 + $0x9bc] ss:$40 sps:$4 sm:$0xff]  }
 0x20a   : > { %5633 = vmatprep.subr.bf16.mxu0 %v19477_v31  ;;  %v19543_v31 = vld [vmem:[#allocation9 + $0xb4c] ss:$40 sps:$4 sm:$0xff]  }
 0x20c   : > { %5603 = vmatpush2.bf16.msra.mxu1 %v19472_v30  ;;  %v19538_v30 = vld [vmem:[#allocation9 + $0x9b8] ss:$40 sps:$4 sm:$0xff]  }
 0x20d   : > { %5634 = vmatpush2.bf16.msra.mxu0 %v19475_v58  ;;  %5604 = vmatprep.subr.bf16.mxu1 %v19480_v0  ;;  %v19541_v58 = vld [vmem:[#allocation9 + $0xb48] ss:$40 sps:$4 sm:$0xff]   ;;  %v19546_v0 = vld [vmem:[#allocation9 + $0x96c] ss:$40 sps:$4 sm:$0xff]  }
 0x20e   : > { %5635 = vmatprep.subr.bf16.mxu0 %v19483_v33  ;;  %v19549_v33 = vld [vmem:[#allocation9 + $0xafc] ss:$40 sps:$4 sm:$0xff]  }
 0x210   : > { %5605 = vmatpush2.bf16.msra.mxu1 %v19478_v32  ;;  %v19544_v32 = vld [vmem:[#allocation9 + $0x968] ss:$40 sps:$4 sm:$0xff]  }
 0x211   : > { %5636 = vmatpush2.bf16.msra.mxu0 %v19481_v34  ;;  %5606 = vmatprep.subr.bf16.mxu1 %v19486_v35  ;;  %v19547_v34 = vld [vmem:[#allocation9 + $0xaf8] ss:$40 sps:$4 sm:$0xff]   ;;  %v19552_v35 = vld [vmem:[#allocation9 + $0x91c] ss:$40 sps:$4 sm:$0xff]  }
 0x212   : > { %5637 = vmatprep.subr.bf16.mxu0 %v19489_v37  ;;  %v19555_v37 = vld [vmem:[#allocation9 + $0xaac] ss:$40 sps:$4 sm:$0xff]  }
 0x214   : > { %5607 = vmatpush2.bf16.msra.mxu1 %v19484_v36  ;;  %v19550_v36 = vld [vmem:[#allocation9 + $0x918] ss:$40 sps:$4 sm:$0xff]  }
 0x215   : > { %5638 = vmatpush2.bf16.msra.mxu0 %v19487_v39  ;;  %5658 = vmatprep.subr.bf16.mxu1 %v19495_v42  ;;  %v19553_v39 = vld [vmem:[#allocation9 + $0xaa8] ss:$40 sps:$4 sm:$0xff]  }
 0x216   : > { %5639 = vmatprep.subr.bf16.mxu0 %v19492_v40  ;;  %v19558_v40 = vld [vmem:[#allocation9 + $0x8cc] ss:$40 sps:$4 sm:$0xff]   ;;  %v19556_v42 = vld [vmem:[#allocation9 + $0x8c8] ss:$40 sps:$4 sm:$0xff]  }
 0x217   : > { %5609 = vmatmul.mubr.bf16.vlgmr.msra.gmra.mxu1 %v22282_v51 }
 0x218   : > { %5659 = vmatpush1.bf16.msra.mxu1 %v19493_v44  ;;  %5690 = vmatprep.mubr.bf16.mxu1 %v22239_v5  ;;  %v19559_v44 = vld [vmem:[#allocation9 + $0xa58] ss:$40 sps:$4 sm:$0xff]  }
 0x219   : > { %5640 = vmatpush2.bf16.msra.mxu0 %v19490_v49  ;;  %5660 = vmatprep.subr.bf16.mxu1 %v19501_v50  ;;  %v19564_v49 = vld [vmem:[#allocation9 + $0x87c] ss:$40 sps:$4 sm:$0xff]   ;;  %v19562_v50 = vld [vmem:[#allocation9 + $0x878] ss:$40 sps:$4 sm:$0xff]  }
 0x21a   : > { %5641 = vmatprep.subr.bf16.mxu0 %v19498_v52  ;;  %v19567_v52 = vld [vmem:[#allocation9 + $0xa0c] ss:$40 sps:$4 sm:$0xff]  }
 0x21c   : > { %5661 = vmatpush1.bf16.msra.mxu1 %v19499_v55  ;;  %v19570_v55 = vld [vmem:[#allocation9 + $0x82c] ss:$40 sps:$4 sm:$0xff]  }
 0x21d   : > { %5642 = vmatpush2.bf16.msra.mxu0 %v19496_v53  ;;  %5662 = vmatprep.subr.bf16.mxu1 %v19507_v56  ;;  %v19565_v53 = vld [vmem:[#allocation9 + $0xa08] ss:$40 sps:$4 sm:$0xff]  }
 0x21e   : > { %5643 = vmatprep.subr.bf16.mxu0 %v19504_v60  ;;  %v19568_v56 = vld [vmem:[#allocation9 + $0x828] ss:$40 sps:$4 sm:$0xff]   ;;  %v19573_v60 = vld [vmem:[#allocation9 + $0xebc] ss:$40 sps:$4 sm:$0xff]  }
 0x220   : > { %5663 = vmatpush1.bf16.msra.mxu1 %v19505_v61  ;;  %v19571_v61 = vld [vmem:[#allocation9 + $0xeb8] ss:$40 sps:$4 sm:$0xff]  }
 0x221   : > { %5644 = vmatpush2.bf16.msra.mxu0 %v19502_v62  ;;  %5664 = vmatprep.subr.bf16.mxu1 %v19513_v6  ;;  %v19576_v62 = vld [vmem:[#allocation9 + $0x7dc] ss:$40 sps:$4 sm:$0xff]   ;;  %v19579_v6 = vld [vmem:[#allocation9 + $0xe6c] ss:$40 sps:$4 sm:$0xff]  }
 0x222   : > { %5645 = vmatprep.subr.bf16.mxu0 %v19510_v1  ;;  %v19574_v1 = vld [vmem:[#allocation9 + $0x7d8] ss:$40 sps:$4 sm:$0xff]  }
 0x224   : > { %5665 = vmatpush1.bf16.msra.mxu1 %v19511_v7  ;;  %v19577_v7 = vld [vmem:[#allocation9 + $0xe68] ss:$40 sps:$4 sm:$0xff]  }
 0x225   : > { %5646 = vmatpush2.bf16.msra.mxu0 %v19508_v8  ;;  %5666 = vmatprep.subr.bf16.mxu1 %v19519_v10  ;;  %v19582_v8 = vld [vmem:[#allocation9 + $0x78c] ss:$40 sps:$4 sm:$0xff]   ;;  %v19585_v10 = vld [vmem:[#allocation9 + $0xe1c] ss:$40 sps:$4 sm:$0xff]  }
 0x226   : > { %5647 = vmatprep.subr.bf16.mxu0 %v19516_v9  ;;  %v19580_v9 = vld [vmem:[#allocation9 + $0x788] ss:$40 sps:$4 sm:$0xff]  }
 0x228   : > { %5667 = vmatpush1.bf16.msra.mxu1 %v19517_v11  ;;  %v19583_v11 = vld [vmem:[#allocation9 + $0xe18] ss:$40 sps:$4 sm:$0xff]  }
 0x229   : > { %5648 = vmatpush2.bf16.msra.mxu0 %v19514_v12  ;;  %5668 = vmatprep.subr.bf16.mxu1 %v19522_v13  ;;  %v19588_v12 = vld [vmem:[#allocation9 + $0xdcc] ss:$40 sps:$4 sm:$0xff]   ;;  %v19591_v13 = vld [vmem:[#allocation9 + $0x113c] ss:$40 sps:$4 sm:$0xff]  }
 0x22a   : > { %5699 = vmatprep.subr.bf16.mxu0 %v19525_v14  ;;  %v19589_v14 = vld [vmem:[#allocation9 + $0x1138] ss:$40 sps:$4 sm:$0xff]  }
 0x22c   : > { %5650 = vmatmul.mubr.bf16.vlgmr.msra.gmra.mxu0 %v22237_v4  ;;  %5669 = vmatpush1.bf16.msra.mxu1 %v19520_v15  ;;  %v19586_v15 = vld [vmem:[#allocation9 + $0xdc8] ss:$40 sps:$4 sm:$0xff]  }
 0x22d   : > { %5700 = vmatpush1.bf16.msra.mxu0 %v19523_v22  ;;  %5731 = vmatprep.mubr.bf16.mxu0 %v22245_v16  ;;  %v19597_v22 = vld [vmem:[#allocation9 + $0x10ec] ss:$40 sps:$4 sm:$0xff]  }
 0x22e   : > { %5670 = vmatprep.subr.bf16.mxu1 %v19528_v17  ;;  %5701 = vmatprep.subr.bf16.mxu0 %v19531_v18  ;;  %v19594_v17 = vld [vmem:[#allocation9 + $0xd7c] ss:$40 sps:$4 sm:$0xff]   ;;  %v19592_v18 = vld [vmem:[#allocation9 + $0xd78] ss:$40 sps:$4 sm:$0xff]  }
 0x230   : > { %5671 = vmatpush1.bf16.msra.mxu1 %v19526_v20  ;;  %v19595_v20 = vld [vmem:[#allocation9 + $0x10e8] ss:$40 sps:$4 sm:$0xff]  }
 0x231   : > { %5702 = vmatpush1.bf16.msra.mxu0 %v19529_v27  ;;  %5672 = vmatprep.subr.bf16.mxu1 %v19534_v28  ;;  %v19600_v27 = vld [vmem:[#allocation9 + $0xd2c] ss:$40 sps:$4 sm:$0xff]   ;;  %v19603_v28 = vld [vmem:[#allocation9 + $0x109c] ss:$40 sps:$4 sm:$0xff]  }
 0x232   : > { %5703 = vmatprep.subr.bf16.mxu0 %v19537_v29  ;;  %v19598_v29 = vld [vmem:[#allocation9 + $0xd28] ss:$40 sps:$4 sm:$0xff]  }
 0x234   : > { %5673 = vmatpush1.bf16.msra.mxu1 %v19532_v46  ;;  %v19601_v46 = vld [vmem:[#allocation9 + $0x1098] ss:$40 sps:$4 sm:$0xff]  }
 0x235   : > { %5704 = vmatpush1.bf16.msra.mxu0 %v19535_v63  ;;  %5674 = vmatprep.subr.bf16.mxu1 %v19540_v48  ;;  %v19606_v63 = vld [vmem:[#allocation9 + $0xcdc] ss:$40 sps:$4 sm:$0xff]   ;;  %v19609_v48 = vld [vmem:[#allocation9 + $0x104c] ss:$40 sps:$4 sm:$0xff]  }
 0x236   : > { %5705 = vmatprep.subr.bf16.mxu0 %v19543_v31  ;;  %v19607_v31 = vld [vmem:[#allocation9 + $0x1048] ss:$40 sps:$4 sm:$0xff]  }
 0x238   : > { %5675 = vmatpush2.bf16.msra.mxu1 %v19538_v30  ;;  %v19604_v30 = vld [vmem:[#allocation9 + $0xcd8] ss:$40 sps:$4 sm:$0xff]  }
 0x239   : > { %5706 = vmatpush1.bf16.msra.mxu0 %v19541_v58  ;;  %5676 = vmatprep.subr.bf16.mxu1 %v19546_v0  ;;  %v19612_v58 = vld [vmem:[#allocation9 + $0xc8c] ss:$40 sps:$4 sm:$0xff]   ;;  %v19615_v0 = vld [vmem:[#allocation9 + $0xffc] ss:$40 sps:$4 sm:$0xff]  }
 0x23a   : > { %5707 = vmatprep.subr.bf16.mxu0 %v19549_v33  ;;  %v19613_v33 = vld [vmem:[#allocation9 + $0xff8] ss:$40 sps:$4 sm:$0xff]  }
 0x23c   : > { %5677 = vmatpush2.bf16.msra.mxu1 %v19544_v32  ;;  %v19610_v32 = vld [vmem:[#allocation9 + $0xc88] ss:$40 sps:$4 sm:$0xff]  }
 0x23d   : > { %5708 = vmatpush1.bf16.msra.mxu0 %v19547_v34  ;;  %5678 = vmatprep.subr.bf16.mxu1 %v19552_v35  ;;  %v19618_v34 = vld [vmem:[#allocation9 + $0xfac] ss:$40 sps:$4 sm:$0xff]   ;;  %v19621_v35 = vld [vmem:[#allocation9 + $0x163c] ss:$40 sps:$4 sm:$0xff]  }
 0x23e   : > { %5709 = vmatprep.subr.bf16.mxu0 %v19555_v37  ;;  %v19616_v37 = vld [vmem:[#allocation9 + $0xfa8] ss:$40 sps:$4 sm:$0xff]  }
 0x240   : > { %5679 = vmatpush2.bf16.msra.mxu1 %v19550_v36  ;;  %v1604_v36 = vld [vmem:[#allocation11] sm:$0xff] }
 0x241   : > { %5710 = vmatpush1.bf16.msra.mxu0 %v19553_v39  ;;  %5680 = vmatprep.subr.bf16.mxu1 %v19558_v40  ;;  %v19619_v39 = vld [vmem:[#allocation9 + $0x1638] ss:$40 sps:$4 sm:$0xff]   ;;  %v1611_v40 = vrot.slane %v1604_v36, %v22196_v23 }
 0x242   : > { %5711 = vmatprep.subr.bf16.mxu0 %v19561_v43  ;;  %v19627_v43 = vld [vmem:[#allocation9 + $0x15ec] ss:$40 sps:$4 sm:$0xff]  }
 0x244   : > { %5681 = vmatpush2.bf16.msra.mxu1 %v19556_v42  ;;  %v19624_v42 = vld [vmem:[#allocation9 + $0xf5c] ss:$40 sps:$4 sm:$0xff]  }
 0x245   : > { %5712 = vmatpush1.bf16.msra.mxu0 %v19559_v44  ;;  %5682 = vmatprep.subr.bf16.mxu1 %v19564_v49  ;;  %v1615_v44 = vrot.slane %v1604_v36, %v22202_v25  ;;  %v19666_v36 = vld [vmem:[#allocation9 + $0x122c] ss:$40 sps:$4 sm:$0xff]  }
 0x246   : > { %5713 = vmatprep.subr.bf16.mxu0 %v19567_v52  ;;  %v19625_v52 = vld [vmem:[#allocation9 + $0x15e8] ss:$40 sps:$4 sm:$0xff]  }
 0x248   : > { %5683 = vmatpush2.bf16.msra.mxu1 %v19562_v50  ;;  %v19622_v50 = vld [vmem:[#allocation9 + $0xf58] ss:$40 sps:$4 sm:$0xff]  }
 0x249   : > { %5714 = vmatpush1.bf16.msra.mxu0 %v19565_v53  ;;  %5684 = vmatprep.subr.bf16.mxu1 %v19570_v55 }
 0x24a   : > { %5715 = vmatprep.subr.bf16.mxu0 %v19573_v60  ;;  %v19633_v60 = vld [vmem:[#allocation9 + $0x159c] ss:$40 sps:$4 sm:$0xff]  }
 0x24c   : > { %5685 = vmatpush2.bf16.msra.mxu1 %v19568_v56  ;;  %v19630_v56 = vld [vmem:[#allocation9 + $0xf0c] ss:$40 sps:$4 sm:$0xff]  }
 0x24d   : > { %5716 = vmatpush2.bf16.msra.mxu0 %v19571_v61  ;;  %5686 = vmatprep.subr.bf16.mxu1 %v19576_v62 }
 0x24e   : > { %5717 = vmatprep.subr.bf16.mxu0 %v19579_v6 }
 0x250   : > { %5687 = vmatpush2.bf16.msra.mxu1 %v19574_v1 }
 0x251   : > { %5718 = vmatpush2.bf16.msra.mxu0 %v19577_v7  ;;  %5688 = vmatprep.subr.bf16.mxu1 %v19582_v8  ;;  %v19628_v8 = vld [vmem:[#allocation9 + $0xf08] ss:$40 sps:$4 sm:$0xff]  }
 0x252   : > { %5719 = vmatprep.subr.bf16.mxu0 %v19585_v10  ;;  %v19631_v10 = vld [vmem:[#allocation9 + $0x1598] ss:$40 sps:$4 sm:$0xff]  }
 0x254   : > { %5689 = vmatpush2.bf16.msra.mxu1 %v19580_v9 }
 0x255   : > { %5720 = vmatpush2.bf16.msra.mxu0 %v19583_v11  ;;  %5740 = vmatprep.subr.bf16.mxu1 %v19591_v13  ;;  %v19636_v11 = vld [vmem:[#allocation9 + $0x13bc] ss:$40 sps:$4 sm:$0xff]  }
 0x256   : > { %5721 = vmatprep.subr.bf16.mxu0 %v19588_v12 }
 0x257   : > { %5691 = vmatmul.mubr.bf16.vlgmr.msra.gmra.mxu1 %v22233_v2 }
 0x258   : > { %5741 = vmatpush1.bf16.msra.mxu1 %v19589_v14  ;;  %5772 = vmatprep.mubr.bf16.mxu1 %v22247_v19  ;;  %v19639_v14 = vld [vmem:[#allocation9 + $0x154c] ss:$40 sps:$4 sm:$0xff]  }
 0x259   : > { %5722 = vmatpush2.bf16.msra.mxu0 %v19586_v15  ;;  %5742 = vmatprep.subr.bf16.mxu1 %v19597_v22  ;;  %v19634_v22 = vld [vmem:[#allocation9 + $0x13b8] ss:$40 sps:$4 sm:$0xff]  }
 0x25a   : > { %5723 = vmatprep.subr.bf16.mxu0 %v19594_v17  ;;  %v19637_v17 = vld [vmem:[#allocation9 + $0x1548] ss:$40 sps:$4 sm:$0xff]  }
 0x25c   : > { %5743 = vmatpush1.bf16.msra.mxu1 %v19595_v20  ;;  %v19640_v20 = vld [vmem:[#allocation9 + $0x1368] ss:$40 sps:$4 sm:$0xff]  }
 0x25d   : > { %5724 = vmatpush2.bf16.msra.mxu0 %v19592_v18  ;;  %5744 = vmatprep.subr.bf16.mxu1 %v19603_v28  ;;  %v19642_v18 = vld [vmem:[#allocation9 + $0x136c] ss:$40 sps:$4 sm:$0xff]   ;;  %v19643_v28 = vld [vmem:[#allocation9 + $0x14f8] ss:$40 sps:$4 sm:$0xff]  }
 0x25e   : > { %5725 = vmatprep.subr.bf16.mxu0 %v19600_v27  ;;  %v19645_v27 = vld [vmem:[#allocation9 + $0x14fc] ss:$40 sps:$4 sm:$0xff]  }
 0x260   : > { %5745 = vmatpush1.bf16.msra.mxu1 %v19601_v46  ;;  %v19646_v46 = vld [vmem:[#allocation9 + $0x1318] ss:$40 sps:$4 sm:$0xff]  }
 0x261   : > { %5726 = vmatpush2.bf16.msra.mxu0 %v19598_v29  ;;  %5746 = vmatprep.subr.bf16.mxu1 %v19609_v48  ;;  %v19648_v29 = vld [vmem:[#allocation9 + $0x131c] ss:$40 sps:$4 sm:$0xff]   ;;  %v19649_v48 = vld [vmem:[#allocation9 + $0x14a8] ss:$40 sps:$4 sm:$0xff]  }
 0x262   : > { %5727 = vmatprep.subr.bf16.mxu0 %v19606_v63  ;;  %v19651_v63 = vld [vmem:[#allocation9 + $0x14ac] ss:$40 sps:$4 sm:$0xff]  }
 0x264   : > { %5747 = vmatpush1.bf16.msra.mxu1 %v19607_v31  ;;  %v19652_v31 = vld [vmem:[#allocation9 + $0x12c8] ss:$40 sps:$4 sm:$0xff]  }
 0x265   : > { %5728 = vmatpush2.bf16.msra.mxu0 %v19604_v30  ;;  %5748 = vmatprep.subr.bf16.mxu1 %v19615_v0  ;;  %v19654_v30 = vld [vmem:[#allocation9 + $0x12cc] ss:$40 sps:$4 sm:$0xff]   ;;  %v19655_v0 = vld [vmem:[#allocation9 + $0x1458] ss:$40 sps:$4 sm:$0xff]  }
 0x266   : > { %5729 = vmatprep.subr.bf16.mxu0 %v19612_v58  ;;  %v19657_v58 = vld [vmem:[#allocation9 + $0x145c] ss:$40 sps:$4 sm:$0xff]  }
 0x268   : > { %5749 = vmatpush1.bf16.msra.mxu1 %v19613_v33  ;;  %v19658_v33 = vld [vmem:[#allocation9 + $0x1278] ss:$40 sps:$4 sm:$0xff]  }
 0x269   : > { %5730 = vmatpush2.bf16.msra.mxu0 %v19610_v32  ;;  %5750 = vmatprep.subr.bf16.mxu1 %v19618_v34  ;;  %v19660_v32 = vld [vmem:[#allocation9 + $0x127c] ss:$40 sps:$4 sm:$0xff]   ;;  %v19663_v34 = vld [vmem:[#allocation9 + $0x140c] ss:$40 sps:$4 sm:$0xff]  }
 0x26a   : > { %5781 = vmatprep.subr.bf16.mxu0 %v19621_v35  ;;  %v19661_v35 = vld [vmem:[#allocation9 + $0x1408] ss:$40 sps:$4 sm:$0xff]  }
 0x26b   : > { %v5446_v49 = vpop.f32.mrf.mxu1 }
 0x26c   : > { %5732 = vmatmul.mubr.bf16.vlgmr.msra.gmra.mxu0 %v22270_v47  ;;  %v5447_v53 = vadd.f32 %v5446_v49, %v1611_v40  ;;  %5751 = vmatpush1.bf16.msra.mxu1 %v19616_v37  ;;  %v5487_v55 = vpop.f32.mrf.mxu0  ;;  %v19664_v37 = vld [vmem:[#allocation9 + $0x1228] ss:$40 sps:$4 sm:$0xff]   ;;  %v19673_v49 = vld [vmem:[#allocation9 + $0x16d8] ss:$40 sps:$4 sm:$0xff]  }
 0x26d   : > { %5782 = vmatpush1.bf16.msra.mxu0 %v19619_v39  ;;  %17707 = vmatprep.mubr.msk.bf16.mxu0 %vm5408_vm2, %v22273_v54  ;;  %v5448_v61 = vpop.f32.mrf.mxu1  ;;  %v19669_v39 = vld [vmem:[#allocation9 + $0x172c] ss:$40 sps:$4 sm:$0xff]   ;;  %v19667_v40 = vld [vmem:[#allocation9 + $0x1728] ss:$40 sps:$4 sm:$0xff]  }
 0x26e   : > { %v5449_v62 = vadd.f32 %v5448_v61, %v1615_v44  ;;  %v22295_v1 = vadd.f32 %v5487_v55, %v5447_v53  ;;  %5752 = vmatprep.subr.bf16.mxu1 %v19624_v42  ;;  %5783 = vmatprep.subr.bf16.mxu0 %v19627_v43  ;;  %v5489_v6 = vpop.f32.mrf.mxu0  ;;  %v19672_v42 = vld [vmem:[#allocation9 + $0x11dc] ss:$40 sps:$4 sm:$0xff]   ;;  %v19670_v43 = vld [vmem:[#allocation9 + $0x11d8] ss:$40 sps:$4 sm:$0xff]   ;;  %v19681_v53 = vld [vmem:[#allocation9 + $0x168c] ss:$40 sps:$4 sm:$0xff]  }
 0x26f   : > { %v5450_v7 = vpop.f32.mrf.mxu1  ;;  %v19675_v44 = vld [vmem:[#allocation9 + $0x16dc] ss:$40 sps:$4 sm:$0xff]   ;;  %v19679_v55 = vld [vmem:[#allocation9 + $0x1688] ss:$40 sps:$4 sm:$0xff]  }
 0x270   : > { %v22297_v9 = vadd.f32 %v5489_v6, %v5449_v62  ;;  %5753 = vmatpush1.bf16.msra.mxu1 %v19622_v50  ;;  %v5491_v12 = vpop.f32.mrf.mxu0  ;;  %v19678_v50 = vld [vmem:[#allocation9 + $0x118c] ss:$40 sps:$4 sm:$0xff]   ;;  %v19682_v61 = vld [vmem:[#allocation9 + $0x240] ss:$40 sps:$4 sm:$0xff]   ;;  %v19688_v7 = vld [vmem:[#allocation9 + $0x1f0] ss:$40 sps:$4 sm:$0xff]  }
 0x271   : > { %5784 = vmatpush1.bf16.msra.mxu0 %v19625_v52  ;;  %v5451_v13 = vpop.f32.mrf.mxu1  ;;  %5754 = vmatprep.subr.bf16.mxu1 %v19630_v56  ;;  %v19676_v52 = vld [vmem:[#allocation9 + $0x1188] ss:$40 sps:$4 sm:$0xff]   ;;  %v19684_v56 = vld [vmem:[#allocation9 + $0x244] ss:$40 sps:$4 sm:$0xff]   ;;  %v19690_v6 = vld [vmem:[#allocation9 + $0x1f4] ss:$40 sps:$4 sm:$0xff]  }
 0x272   : > { %5785 = vmatprep.subr.bf16.mxu0 %v19633_v60  ;;  %v5492_v15 = vpop.f32.mrf.mxu0  ;;  %v19687_v60 = vld [vmem:[#allocation9 + $0x744] ss:$40 sps:$4 sm:$0xff]   ;;  %v19685_v62 = vld [vmem:[#allocation9 + $0x740] ss:$40 sps:$4 sm:$0xff]  }
 0x273   : > { %v19699_v12 = vld [vmem:[#allocation9 + $0x6a4] ss:$40 sps:$4 sm:$0xff]   ;;  %v19694_v13 = vld [vmem:[#allocation9 + $0x1a0] ss:$40 sps:$4 sm:$0xff]   ;;  %v19702_v15 = vld [vmem:[#allocation9 + $0x154] ss:$40 sps:$4 sm:$0xff]  }
 0x274   : > { %5755 = vmatpush1.bf16.msra.mxu1 %v19628_v8  ;;  %v19691_v8 = vld [vmem:[#allocation9 + $0x6f0] ss:$40 sps:$4 sm:$0xff]  }
 0x275   : > { %5786 = vmatpush1.bf16.msra.mxu0 %v19631_v10  ;;  %5756 = vmatprep.subr.bf16.mxu1 %v19636_v11  ;;  %v19693_v10 = vld [vmem:[#allocation9 + $0x6f4] ss:$40 sps:$4 sm:$0xff]   ;;  %v19696_v11 = vld [vmem:[#allocation9 + $0x1a4] ss:$40 sps:$4 sm:$0xff]  }
 0x276   : > { %5787 = vmatprep.subr.bf16.mxu0 %v19639_v14  ;;  %v19697_v14 = vld [vmem:[#allocation9 + $0x6a0] ss:$40 sps:$4 sm:$0xff]  }
 0x278   : > { %5757 = vmatpush2.bf16.msra.mxu1 %v19634_v22  ;;  %v19700_v22 = vld [vmem:[#allocation9 + $0x150] ss:$40 sps:$4 sm:$0xff]  }
 0x279   : > { %5788 = vmatpush1.bf16.msra.mxu0 %v19637_v17  ;;  %5758 = vmatprep.subr.bf16.mxu1 %v19642_v18  ;;  %v19705_v17 = vld [vmem:[#allocation9 + $0x654] ss:$40 sps:$4 sm:$0xff]   ;;  %v19703_v18 = vld [vmem:[#allocation9 + $0x650] ss:$40 sps:$4 sm:$0xff]  }
 0x27a   : > { %5789 = vmatprep.subr.bf16.mxu0 %v19645_v27  ;;  %v19706_v27 = vld [vmem:[#allocation9 + $0x100] ss:$40 sps:$4 sm:$0xff]  }
 0x27c   : > { %5759 = vmatpush2.bf16.msra.mxu1 %v19640_v20  ;;  %v19708_v20 = vld [vmem:[#allocation9 + $0x104] ss:$40 sps:$4 sm:$0xff]  }
 0x27d   : > { %5790 = vmatpush1.bf16.msra.mxu0 %v19643_v28  ;;  %5760 = vmatprep.subr.bf16.mxu1 %v19648_v29  ;;  %v19711_v28 = vld [vmem:[#allocation9 + $0x604] ss:$40 sps:$4 sm:$0xff]   ;;  %v19709_v29 = vld [vmem:[#allocation9 + $0x600] ss:$40 sps:$4 sm:$0xff]  }
 0x27e   : > { %5791 = vmatprep.subr.bf16.mxu0 %v19651_v63  ;;  %v19717_v63 = vld [vmem:[#allocation9 + $0x5b4] ss:$40 sps:$4 sm:$0xff]  }
 0x280   : > { %5761 = vmatpush2.bf16.msra.mxu1 %v19646_v46  ;;  %v19714_v46 = vld [vmem:[#allocation9 + $0xb4] ss:$40 sps:$4 sm:$0xff]  }
 0x281   : > { %5792 = vmatpush1.bf16.msra.mxu0 %v19649_v48  ;;  %5762 = vmatprep.subr.bf16.mxu1 %v19654_v30  ;;  %v19712_v48 = vld [vmem:[#allocation9 + $0xb0] ss:$40 sps:$4 sm:$0xff]  }
 0x282   : > { %5793 = vmatprep.subr.bf16.mxu0 %v19657_v58  ;;  %v19715_v30 = vld [vmem:[#allocation9 + $0x5b0] ss:$40 sps:$4 sm:$0xff]   ;;  %v19723_v58 = vld [vmem:[#allocation9 + $0x564] ss:$40 sps:$4 sm:$0xff]  }
 0x284   : > { %5763 = vmatpush2.bf16.msra.mxu1 %v19652_v31  ;;  %v19720_v31 = vld [vmem:[#allocation9 + $0x64] ss:$40 sps:$4 sm:$0xff]  }
 0x285   : > { %5794 = vmatpush1.bf16.msra.mxu0 %v19655_v0  ;;  %5764 = vmatprep.subr.bf16.mxu1 %v19660_v32  ;;  %v19718_v32 = vld [vmem:[#allocation9 + $0x60] ss:$40 sps:$4 sm:$0xff]  }
 0x286   : > { %5795 = vmatprep.subr.bf16.mxu0 %v19663_v34 }
 0x288   : > { %5765 = vmatpush2.bf16.msra.mxu1 %v19658_v33  ;;  %v19721_v33 = vld [vmem:[#allocation9 + $0x560] ss:$40 sps:$4 sm:$0xff]  }
 0x289   : > { %5796 = vmatpush1.bf16.msra.mxu0 %v19661_v35  ;;  %5766 = vmatprep.subr.bf16.mxu1 %v19666_v36  ;;  %v19726_v36 = vld [vmem:[#allocation9 + $0x14] ss:$40 sps:$4 sm:$0xff]  }
 0x28a   : > { %5807 = vmatprep.subr.bf16.mxu0 %v19669_v39 }
 0x28c   : > { %5767 = vmatpush2.bf16.msra.mxu1 %v19664_v37  ;;  %v19729_v37 = vld [vmem:[#allocation9 + $0x514] ss:$40 sps:$4 sm:$0xff]  }
 0x28d   : > { %5808 = vmatpush2.bf16.msra.mxu0 %v19667_v40  ;;  %5768 = vmatprep.subr.bf16.mxu1 %v19672_v42 }
 0x28e   : > { %5809 = vmatprep.subr.bf16.mxu0 %v19675_v44 }
 0x290   : > { %5769 = vmatpush2.bf16.msra.mxu1 %v19670_v43 }
 0x291   : > { %5810 = vmatpush2.bf16.msra.mxu0 %v19673_v49  ;;  %5770 = vmatprep.subr.bf16.mxu1 %v19678_v50  ;;  %v19724_v49 = vld [vmem:[#allocation9 + $0x10] ss:$40 sps:$4 sm:$0xff]  }
 0x292   : > { %5811 = vmatprep.subr.bf16.mxu0 %v19681_v53 }
 0x294   : > { %5771 = vmatpush2.bf16.msra.mxu1 %v19676_v52  ;;  %v19727_v52 = vld [vmem:[#allocation9 + $0x510] ss:$40 sps:$4 sm:$0xff]  }
 0x295   : > { %5812 = vmatpush2.bf16.msra.mxu0 %v19679_v55  ;;  %5822 = vmatprep.subr.bf16.mxu1 %v19684_v56  ;;  %v19735_v56 = vld [vmem:[#allocation9 + $0x9c4] ss:$40 sps:$4 sm:$0xff]  }
 0x296   : > { %5863 = vmatprep.subr.bf16.mxu0 %v19687_v60 }
 0x297   : > { %5773 = vmatmul.mubr.bf16.vlgmr.msra.gmra.mxu1 %v22268_v45 }
 0x298   : > { %5814 = vmatmul.mubr.bf16.vlgmr.msra.gmra.mxu0 %v22282_v51  ;;  %5823 = vmatpush1.bf16.msra.mxu1 %v19682_v61  ;;  %v19730_v61 = vld [vmem:[#allocation9 + $0x4c0] ss:$40 sps:$4 sm:$0xff]  }
 0x299   : > { %5854 = vmatprep.mubr.bf16.mxu1 %v22235_v3  ;;  %5864 = vmatpush1.bf16.msra.mxu0 %v19685_v62  ;;  %v19738_v62 = vld [vmem:[#allocation9 + $0x474] ss:$40 sps:$4 sm:$0xff]  }
 0x29a   : > { %5895 = vmatprep.mubr.bf16.mxu0 %v22239_v5  ;;  %5824 = vmatprep.subr.bf16.mxu1 %v19690_v6  ;;  %v19736_v6 = vld [vmem:[#allocation9 + $0x470] ss:$40 sps:$4 sm:$0xff]  }
 0x29b   : > { %5865 = vmatprep.subr.bf16.mxu0 %v19693_v10  ;;  %v19744_v10 = vld [vmem:[#allocation9 + $0x424] ss:$40 sps:$4 sm:$0xff]  }
 0x29c   : > { %5825 = vmatpush1.bf16.msra.mxu1 %v19688_v7  ;;  %v19741_v7 = vld [vmem:[#allocation9 + $0x974] ss:$40 sps:$4 sm:$0xff]  }
 0x29d   : > { %5866 = vmatpush1.bf16.msra.mxu0 %v19691_v8  ;;  %5826 = vmatprep.subr.bf16.mxu1 %v19696_v11  ;;  %v19739_v8 = vld [vmem:[#allocation9 + $0x970] ss:$40 sps:$4 sm:$0xff]   ;;  %v19742_v11 = vld [vmem:[#allocation9 + $0x420] ss:$40 sps:$4 sm:$0xff]  }
 0x29e   : > { %5867 = vmatprep.subr.bf16.mxu0 %v19699_v12  ;;  %v19747_v12 = vld [vmem:[#allocation9 + $0x924] ss:$40 sps:$4 sm:$0xff]  }
 0x2a0   : > { %5827 = vmatpush1.bf16.msra.mxu1 %v19694_v13  ;;  %v19745_v13 = vld [vmem:[#allocation9 + $0x920] ss:$40 sps:$4 sm:$0xff]  }
 0x2a1   : > { %5868 = vmatpush1.bf16.msra.mxu0 %v19697_v14  ;;  %5828 = vmatprep.subr.bf16.mxu1 %v19702_v15  ;;  %v19750_v14 = vld [vmem:[#allocation9 + $0x3d4] ss:$40 sps:$4 sm:$0xff]   ;;  %v19748_v15 = vld [vmem:[#allocation9 + $0x3d0] ss:$40 sps:$4 sm:$0xff]  }
 0x2a2   : > { %5869 = vmatprep.subr.bf16.mxu0 %v19705_v17  ;;  %v19751_v17 = vld [vmem:[#allocation9 + $0x8d0] ss:$40 sps:$4 sm:$0xff]  }
 0x2a4   : > { %5829 = vmatpush1.bf16.msra.mxu1 %v19700_v22  ;;  %v19753_v22 = vld [vmem:[#allocation9 + $0x8d4] ss:$40 sps:$4 sm:$0xff]  }
 0x2a5   : > { %5870 = vmatpush1.bf16.msra.mxu0 %v19703_v18  ;;  %5830 = vmatprep.subr.bf16.mxu1 %v19708_v20  ;;  %v19756_v18 = vld [vmem:[#allocation9 + $0x384] ss:$40 sps:$4 sm:$0xff]  }
 0x2a6   : > { %5871 = vmatprep.subr.bf16.mxu0 %v19711_v28  ;;  %v19759_v20 = vld [vmem:[#allocation9 + $0x884] ss:$40 sps:$4 sm:$0xff]   ;;  %v19757_v28 = vld [vmem:[#allocation9 + $0x880] ss:$40 sps:$4 sm:$0xff]  }
 0x2a8   : > { %5831 = vmatpush1.bf16.msra.mxu1 %v19706_v27  ;;  %v19754_v27 = vld [vmem:[#allocation9 + $0x380] ss:$40 sps:$4 sm:$0xff]  }
 0x2a9   : > { %5872 = vmatpush1.bf16.msra.mxu0 %v19709_v29  ;;  %5832 = vmatprep.subr.bf16.mxu1 %v19714_v46  ;;  %v19762_v29 = vld [vmem:[#allocation9 + $0x334] ss:$40 sps:$4 sm:$0xff]   ;;  %v19760_v46 = vld [vmem:[#allocation9 + $0x330] ss:$40 sps:$4 sm:$0xff]  }
 0x2aa   : > { %5873 = vmatprep.subr.bf16.mxu0 %v19717_v63  ;;  %v19765_v63 = vld [vmem:[#allocation9 + $0x834] ss:$40 sps:$4 sm:$0xff]  }
 0x2ab   : > { %v5528_v0 = vpop.f32.mrf.mxu1 }
 0x2ac   : > { %v5529_v34 = vadd.f32 %v5528_v0, %v22295_v1  ;;  %5833 = vmatpush1.bf16.msra.mxu1 %v19712_v48  ;;  %v5569_v35 = vpop.f32.mrf.mxu0  ;;  %v19732_v1 = vld [vmem:[#allocation9 + $0x4c4] ss:$40 sps:$4 sm:$0xff]   ;;  %v19763_v48 = vld [vmem:[#allocation9 + $0x830] ss:$40 sps:$4 sm:$0xff]   ;;  %v19769_v0 = vld [vmem:[#allocation9 + $0x7e0] ss:$40 sps:$4 sm:$0xff]  }
 0x2ad   : > { %5874 = vmatpush1.bf16.msra.mxu0 %v19715_v30  ;;  %v5530_v39 = vpop.f32.mrf.mxu1  ;;  %5834 = vmatprep.subr.bf16.mxu1 %v19720_v31  ;;  %v19768_v30 = vld [vmem:[#allocation9 + $0x2e4] ss:$40 sps:$4 sm:$0xff]   ;;  %v19766_v31 = vld [vmem:[#allocation9 + $0x2e0] ss:$40 sps:$4 sm:$0xff]  }
 0x2ae   : > { %v5531_v40 = vadd.f32 %v5530_v39, %v22297_v9  ;;  %v22305_v42 = vadd.f32 %v5569_v35, %v5529_v34  ;;  %v5571_v43 = vpop.f32.mrf.mxu0  ;;  %5875 = vmatprep.subr.bf16.mxu0 %v19723_v58  ;;  %v19733_v9 = vld [vmem:[#allocation9 + $0x9c0] ss:$40 sps:$4 sm:$0xff]   ;;  %v19771_v58 = vld [vmem:[#allocation9 + $0x7e4] ss:$40 sps:$4 sm:$0xff]   ;;  %v19777_v34 = vld [vmem:[#allocation9 + $0x794] ss:$40 sps:$4 sm:$0xff]  }
 0x2af   : > { %v5532_v44 = vpop.f32.mrf.mxu1  ;;  %v19775_v35 = vld [vmem:[#allocation9 + $0x790] ss:$40 sps:$4 sm:$0xff]   ;;  %v19783_v39 = vld [vmem:[#allocation9 + $0x1144] ss:$40 sps:$4 sm:$0xff]  }
 0x2b0   : > { %v22307_v50 = vadd.f32 %v5571_v43, %v5531_v40  ;;  %5835 = vmatpush1.bf16.msra.mxu1 %v19718_v32  ;;  %v5573_v53 = vpop.f32.mrf.mxu0  ;;  %v19774_v32 = vld [vmem:[#allocation9 + $0x294] ss:$40 sps:$4 sm:$0xff]   ;;  %v19781_v40 = vld [vmem:[#allocation9 + $0x1140] ss:$40 sps:$4 sm:$0xff]  }
 0x2b1   : > { %5876 = vmatpush1.bf16.msra.mxu0 %v19721_v33  ;;  %v5533_v55 = vpop.f32.mrf.mxu1  ;;  %5836 = vmatprep.subr.bf16.mxu1 %v19726_v36  ;;  %v19772_v33 = vld [vmem:[#allocation9 + $0x290] ss:$40 sps:$4 sm:$0xff]   ;;  %v19780_v36 = vld [vmem:[#allocation9 + $0xc44] ss:$40 sps:$4 sm:$0xff]   ;;  %v19786_v43 = vld [vmem:[#allocation9 + $0xbf4] ss:$40 sps:$4 sm:$0xff]  }
 0x2b2   : > { %5877 = vmatprep.subr.bf16.mxu0 %v19729_v37  ;;  %v5574_v60 = vpop.f32.mrf.mxu0  ;;  %v19778_v37 = vld [vmem:[#allocation9 + $0xc40] ss:$40 sps:$4 sm:$0xff]   ;;  %v19789_v44 = vld [vmem:[#allocation9 + $0x10f4] ss:$40 sps:$4 sm:$0xff]   ;;  %v19792_v55 = vld [vmem:[#allocation9 + $0xba4] ss:$40 sps:$4 sm:$0xff]  }
 0x2b4   : > { %5837 = vmatpush1.bf16.msra.mxu1 %v19724_v49 }
 0x2b5   : > { %5878 = vmatpush1.bf16.msra.mxu0 %v19727_v52  ;;  %5838 = vmatprep.subr.bf16.mxu1 %v19732_v1  ;;  %v19784_v52 = vld [vmem:[#allocation9 + $0xbf0] ss:$40 sps:$4 sm:$0xff]  }
 0x2b6   : > { %5879 = vmatprep.subr.bf16.mxu0 %v19735_v56  ;;  %v19787_v1 = vld [vmem:[#allocation9 + $0x10f0] ss:$40 sps:$4 sm:$0xff]   ;;  %v19795_v56 = vld [vmem:[#allocation9 + $0x10a4] ss:$40 sps:$4 sm:$0xff]  }
 0x2b8   : > { %5839 = vmatpush2.bf16.msra.mxu1 %v19730_v61 }
 0x2b9   : > { %5880 = vmatpush2.bf16.msra.mxu0 %v19733_v9  ;;  %5840 = vmatprep.subr.bf16.mxu1 %v19738_v62  ;;  %v19790_v62 = vld [vmem:[#allocation9 + $0xba0] ss:$40 sps:$4 sm:$0xff]  }
 0x2ba   : > { %5881 = vmatprep.subr.bf16.mxu0 %v19741_v7  ;;  %v19801_v7 = vld [vmem:[#allocation9 + $0x1054] ss:$40 sps:$4 sm:$0xff]  }
 0x2bc   : > { %5841 = vmatpush2.bf16.msra.mxu1 %v19736_v6  ;;  %v19798_v6 = vld [vmem:[#allocation9 + $0xb54] ss:$40 sps:$4 sm:$0xff]  }
 0x2bd   : > { %5882 = vmatpush2.bf16.msra.mxu0 %v19739_v8  ;;  %5842 = vmatprep.subr.bf16.mxu1 %v19744_v10  ;;  %v19796_v10 = vld [vmem:[#allocation9 + $0xb50] ss:$40 sps:$4 sm:$0xff]  }
 0x2be   : > { %5883 = vmatprep.subr.bf16.mxu0 %v19747_v12  ;;  %v19804_v12 = vld [vmem:[#allocation9 + $0xb04] ss:$40 sps:$4 sm:$0xff]  }
 0x2c0   : > { %5843 = vmatpush2.bf16.msra.mxu1 %v19742_v11  ;;  %v19799_v11 = vld [vmem:[#allocation9 + $0x1050] ss:$40 sps:$4 sm:$0xff]  }
 0x2c1   : > { %5884 = vmatpush2.bf16.msra.mxu0 %v19745_v13  ;;  %5844 = vmatprep.subr.bf16.mxu1 %v19750_v14  ;;  %v19807_v13 = vld [vmem:[#allocation9 + $0x1004] ss:$40 sps:$4 sm:$0xff]   ;;  %v19805_v14 = vld [vmem:[#allocation9 + $0x1000] ss:$40 sps:$4 sm:$0xff]  }
 0x2c2   : > { %5885 = vmatprep.subr.bf16.mxu0 %v19753_v22  ;;  %v19813_v22 = vld [vmem:[#allocation9 + $0xfb4] ss:$40 sps:$4 sm:$0xff]  }
 0x2c4   : > { %5845 = vmatpush2.bf16.msra.mxu1 %v19748_v15  ;;  %v19810_v15 = vld [vmem:[#allocation9 + $0xab4] ss:$40 sps:$4 sm:$0xff]  }
 0x2c5   : > { %5886 = vmatpush2.bf16.msra.mxu0 %v19751_v17  ;;  %5846 = vmatprep.subr.bf16.mxu1 %v19756_v18  ;;  %v19808_v17 = vld [vmem:[#allocation9 + $0xab0] ss:$40 sps:$4 sm:$0xff]  }
 0x2c6   : > { %5887 = vmatprep.subr.bf16.mxu0 %v19759_v20  ;;  %v19811_v18 = vld [vmem:[#allocation9 + $0xfb0] ss:$40 sps:$4 sm:$0xff]   ;;  %v19816_v20 = vld [vmem:[#allocation9 + $0xa64] ss:$40 sps:$4 sm:$0xff]  }
 0x2c8   : > { %5847 = vmatpush2.bf16.msra.mxu1 %v19754_v27  ;;  %v19819_v27 = vld [vmem:[#allocation9 + $0xf64] ss:$40 sps:$4 sm:$0xff]  }
 0x2c9   : > { %5888 = vmatpush2.bf16.msra.mxu0 %v19757_v28  ;;  %5848 = vmatprep.subr.bf16.mxu1 %v19762_v29  ;;  %v19814_v29 = vld [vmem:[#allocation9 + $0xa60] ss:$40 sps:$4 sm:$0xff]  }
 0x2ca   : > { %5889 = vmatprep.subr.bf16.mxu0 %v19765_v63  ;;  %v19822_v63 = vld [vmem:[#allocation9 + $0xa14] ss:$40 sps:$4 sm:$0xff]  }
 0x2cc   : > { %5849 = vmatpush2.bf16.msra.mxu1 %v19760_v46  ;;  %v19817_v46 = vld [vmem:[#allocation9 + $0xf60] ss:$40 sps:$4 sm:$0xff]  }
 0x2cd   : > { %5890 = vmatpush2.bf16.msra.mxu0 %v19763_v48  ;;  %5850 = vmatprep.subr.bf16.mxu1 %v19768_v30  ;;  %v19820_v30 = vld [vmem:[#allocation9 + $0xa10] ss:$40 sps:$4 sm:$0xff]  }
 0x2ce   : > { %5891 = vmatprep.subr.bf16.mxu0 %v19771_v58 }
 0x2d0   : > { %5851 = vmatpush2.bf16.msra.mxu1 %v19766_v31  ;;  %v19825_v31 = vld [vmem:[#allocation9 + $0xf14] ss:$40 sps:$4 sm:$0xff]  }
 0x2d1   : > { %5892 = vmatpush2.bf16.msra.mxu0 %v19769_v0  ;;  %5852 = vmatprep.subr.bf16.mxu1 %v19774_v32  ;;  %v19823_v0 = vld [vmem:[#allocation9 + $0xf10] ss:$40 sps:$4 sm:$0xff]   ;;  %v19828_v32 = vld [vmem:[#allocation9 + $0xec4] ss:$40 sps:$4 sm:$0xff]  }
 0x2d2   : > { %5893 = vmatprep.subr.bf16.mxu0 %v19777_v34  ;;  %v19826_v34 = vld [vmem:[#allocation9 + $0xec0] ss:$40 sps:$4 sm:$0xff]  }
 0x2d4   : > { %5853 = vmatpush2.bf16.msra.mxu1 %v19772_v33 }
 0x2d5   : > { %5894 = vmatpush2.bf16.msra.mxu0 %v19775_v35  ;;  %5904 = vmatprep.subr.bf16.mxu1 %v19780_v36  ;;  %v19831_v35 = vld [vmem:[#allocation9 + $0x13c4] ss:$40 sps:$4 sm:$0xff]   ;;  %v19829_v36 = vld [vmem:[#allocation9 + $0x13c0] ss:$40 sps:$4 sm:$0xff]  }
 0x2d6   : > { %5945 = vmatprep.subr.bf16.mxu0 %v19783_v39  ;;  %v19832_v39 = vld [vmem:[#allocation9 + $0xe70] ss:$40 sps:$4 sm:$0xff]  }
 0x2d7   : > { %v5610_v49 = vpop.f32.mrf.mxu1  ;;  %5855 = vmatmul.mubr.bf16.vlgmr.msra.gmra.mxu1 %v22237_v4 }
 0x2d8   : > { %v22311_v53 = vadd.f32 %v5610_v49, %v22305_v42  ;;  %5896 = vmatmul.mubr.bf16.vlgmr.msra.gmra.mxu0 %v22233_v2  ;;  %5905 = vmatpush1.bf16.msra.mxu1 %v19778_v37  ;;  %v19793_v42 = vld [vmem:[#allocation9 + $0x10a0] ss:$40 sps:$4 sm:$0xff]   ;;  %v19834_v37 = vld [vmem:[#allocation9 + $0xe74] ss:$40 sps:$4 sm:$0xff]  }
 0x2d9   : > { %5936 = vmatprep.mubr.bf16.mxu1 %v22245_v16  ;;  %5946 = vmatpush1.bf16.msra.mxu0 %v19781_v40  ;;  %v5612_v60 = vpop.f32.mrf.mxu1  ;;  %v19837_v40 = vld [vmem:[#allocation9 + $0x1374] ss:$40 sps:$4 sm:$0xff]   ;;  %v19838_v49 = vld [vmem:[#allocation9 + $0xe20] ss:$40 sps:$4 sm:$0xff]  }
 0x2da   : > { %5977 = vmatprep.mubr.bf16.mxu0 %v22247_v19  ;;  %v22317_v61 = vadd.f32 %v5612_v60, %v22307_v50  ;;  %5906 = vmatprep.subr.bf16.mxu1 %v19786_v43  ;;  %v19802_v50 = vld [vmem:[#allocation9 + $0xb00] ss:$40 sps:$4 sm:$0xff]   ;;  %v19835_v43 = vld [vmem:[#allocation9 + $0x1370] ss:$40 sps:$4 sm:$0xff]   ;;  %v19849_v60 = vld [vmem:[#allocation9 + $0x12d4] ss:$40 sps:$4 sm:$0xff]  }
 0x2db   : > { %v5614_v9 = vpop.f32.mrf.mxu1  ;;  %5947 = vmatprep.subr.bf16.mxu0 %v19789_v44  ;;  %v19840_v44 = vld [vmem:[#allocation9 + $0xe24] ss:$40 sps:$4 sm:$0xff]  }
 0x2dc   : > { %5907 = vmatpush1.bf16.msra.mxu1 %v19784_v52  ;;  %v19843_v52 = vld [vmem:[#allocation9 + $0x1324] ss:$40 sps:$4 sm:$0xff]   ;;  %v19847_v9 = vld [vmem:[#allocation9 + $0x12d0] ss:$40 sps:$4 sm:$0xff]   ;;  %21502 = vtanh.f32 %v22317_v61  ;;  %v20321_v61 = vld [vmem:[#allocation9 + $0x11a0] ss:$40 sps:$4 sm:$0xff]  }
 0x2dd   : > { %5948 = vmatpush1.bf16.msra.mxu0 %v19787_v1  ;;  %v5615_v8 = vpop.f32.mrf.mxu1  ;;  %5908 = vmatprep.subr.bf16.mxu1 %v19792_v55  ;;  %v19841_v1 = vld [vmem:[#allocation9 + $0x1320] ss:$40 sps:$4 sm:$0xff]   ;;  %v19846_v55 = vld [vmem:[#allocation9 + $0xdd4] ss:$40 sps:$4 sm:$0xff]  }
 0x2de   : > { %5949 = vmatprep.subr.bf16.mxu0 %v19795_v56  ;;  %v19844_v56 = vld [vmem:[#allocation9 + $0xdd0] ss:$40 sps:$4 sm:$0xff]   ;;  %v19858_v8 = vld [vmem:[#allocation9 + $0xd34] ss:$40 sps:$4 sm:$0xff]  }
 0x2e0   : > { %5909 = vmatpush1.bf16.msra.mxu1 %v19790_v62  ;;  %v19852_v62 = vld [vmem:[#allocation9 + $0xd84] ss:$40 sps:$4 sm:$0xff]  }
 0x2e1   : > { %5950 = vmatpush1.bf16.msra.mxu0 %v19793_v42  ;;  %5910 = vmatprep.subr.bf16.mxu1 %v19798_v6  ;;  %v19855_v42 = vld [vmem:[#allocation9 + $0x1284] ss:$40 sps:$4 sm:$0xff]   ;;  %v19850_v6 = vld [vmem:[#allocation9 + $0xd80] ss:$40 sps:$4 sm:$0xff]  }
 0x2e2   : > { %5951 = vmatprep.subr.bf16.mxu0 %v19801_v7  ;;  %v19853_v7 = vld [vmem:[#allocation9 + $0x1280] ss:$40 sps:$4 sm:$0xff]  }
 0x2e4   : > { %5911 = vmatpush1.bf16.msra.mxu1 %v19796_v10  ;;  %v19856_v10 = vld [vmem:[#allocation9 + $0xd30] ss:$40 sps:$4 sm:$0xff]  }
 0x2e5   : > { %5952 = vmatpush1.bf16.msra.mxu0 %v19799_v11  ;;  %5912 = vmatprep.subr.bf16.mxu1 %v19804_v12  ;;  %v19861_v11 = vld [vmem:[#allocation9 + $0x1234] ss:$40 sps:$4 sm:$0xff]   ;;  %v19859_v12 = vld [vmem:[#allocation9 + $0x1230] ss:$40 sps:$4 sm:$0xff]  }
 0x2e6   : > { %5953 = vmatprep.subr.bf16.mxu0 %v19807_v13  ;;  %v19864_v13 = vld [vmem:[#allocation9 + $0xce4] ss:$40 sps:$4 sm:$0xff]  }
 0x2e8   : > { %5913 = vmatpush1.bf16.msra.mxu1 %v19802_v50  ;;  %v19862_v50 = vld [vmem:[#allocation9 + $0xce0] ss:$40 sps:$4 sm:$0xff]  }
 0x2e9   : > { %5954 = vmatpush1.bf16.msra.mxu0 %v19805_v14  ;;  %5914 = vmatprep.subr.bf16.mxu1 %v19810_v15  ;;  %v19867_v14 = vld [vmem:[#allocation9 + $0x11e4] ss:$40 sps:$4 sm:$0xff]   ;;  %v19865_v15 = vld [vmem:[#allocation9 + $0x11e0] ss:$40 sps:$4 sm:$0xff]  }
 0x2ea   : > { %5955 = vmatprep.subr.bf16.mxu0 %v19813_v22  ;;  %v19870_v22 = vld [vmem:[#allocation9 + $0xc94] ss:$40 sps:$4 sm:$0xff]  }
 0x2ec   : > { %v22319_v28 = vpop.f32.mrf.mxu0  ;;  %5915 = vmatpush1.bf16.msra.mxu1 %v19808_v17  ;;  %v19868_v17 = vld [vmem:[#allocation9 + $0xc90] ss:$40 sps:$4 sm:$0xff]  }
 0x2ed   : > { %5956 = vmatpush1.bf16.msra.mxu0 %v19811_v18  ;;  %5916 = vmatprep.subr.bf16.mxu1 %v19816_v20  ;;  %v19873_v18 = vld [vmem:[#allocation9 + $0x1194] ss:$40 sps:$4 sm:$0xff]   ;;  %v19871_v20 = vld [vmem:[#allocation9 + $0x1190] ss:$40 sps:$4 sm:$0xff]  }
 0x2ee   : > { %v22321_v48 = vpop.f32.mrf.mxu0  ;;  %5957 = vmatprep.subr.bf16.mxu0 %v19819_v27  ;;  %v19876_v27 = vld [vmem:[#allocation9 + $0x1644] ss:$40 sps:$4 sm:$0xff]  }
 0x2f0   : > { %v5655_v58 = vpop.f32.mrf.mxu0  ;;  %5917 = vmatpush1.bf16.msra.mxu1 %v19814_v29  ;;  %v21542_v29 = vld [vmem:[#allocation11] sm:$0xff] }
 0x2f1   : > { %5958 = vmatpush1.bf16.msra.mxu0 %v19817_v46  ;;  %5918 = vmatprep.subr.bf16.mxu1 %v19822_v63  ;;  %v1619_v46 = vrot.slane %v21542_v29, %v22199_v24  ;;  %v19874_v63 = vld [vmem:[#allocation9 + $0x1640] ss:$40 sps:$4 sm:$0xff]   ;;  %v1623_v58 = vrot.slane %v21542_v29, %v22205_v26  ;;  %v19921_v29 = vld [vmem:[#allocation9 + $0x1c] ss:$40 sps:$4 sm:$0xff]  }
 0x2f2   : > { %v5656_v33 = vpop.f32.mrf.mxu0  ;;  %5959 = vmatprep.subr.bf16.mxu0 %v19825_v31  ;;  %v19877_v31 = vld [vmem:[#allocation9 + $0x248] ss:$40 sps:$4 sm:$0xff]  }
 0x2f3   : > { %v19880_v33 = vld [vmem:[#allocation9 + $0x15f0] ss:$40 sps:$4 sm:$0xff]  }
 0x2f4   : > { %5919 = vmatpush1.bf16.msra.mxu1 %v19820_v30  ;;  %v19879_v30 = vld [vmem:[#allocation9 + $0x24c] ss:$40 sps:$4 sm:$0xff]  }
 0x2f5   : > { %5960 = vmatpush1.bf16.msra.mxu0 %v19823_v0  ;;  %5920 = vmatprep.subr.bf16.mxu1 %v19828_v32  ;;  %v19882_v0 = vld [vmem:[#allocation9 + $0x15f4] ss:$40 sps:$4 sm:$0xff]   ;;  %v5652_v32 = vadd.f32 %v22319_v28, %v1619_v46 }
 0x2f6   : > { %5961 = vmatprep.subr.bf16.mxu0 %v19831_v35  ;;  %v19883_v35 = vld [vmem:[#allocation9 + $0x1f8] ss:$40 sps:$4 sm:$0xff]  }
 0x2f8   : > { %5921 = vmatpush2.bf16.msra.mxu1 %v19826_v34 }
 0x2f9   : > { %5962 = vmatpush2.bf16.msra.mxu0 %v19829_v36  ;;  %5922 = vmatprep.subr.bf16.mxu1 %v19834_v37  ;;  %v19885_v36 = vld [vmem:[#allocation9 + $0x1fc] ss:$40 sps:$4 sm:$0xff]   ;;  %v5654_v37 = vadd.f32 %v22321_v48, %v1623_v58  ;;  %v19889_v48 = vld [vmem:[#allocation9 + $0x1a8] ss:$40 sps:$4 sm:$0xff]  }
 0x2fa   : > { %5963 = vmatprep.subr.bf16.mxu0 %v19837_v40  ;;  %v19888_v40 = vld [vmem:[#allocation9 + $0x15a4] ss:$40 sps:$4 sm:$0xff]  }
 0x2fc   : > { %5923 = vmatpush2.bf16.msra.mxu1 %v19832_v39 }
 0x2fd   : > { %5964 = vmatpush2.bf16.msra.mxu0 %v19835_v43  ;;  %5924 = vmatprep.subr.bf16.mxu1 %v19840_v44  ;;  %v19891_v43 = vld [vmem:[#allocation9 + $0x1ac] ss:$40 sps:$4 sm:$0xff]  }
 0x2fe   : > { %5965 = vmatprep.subr.bf16.mxu0 %v19843_v52  ;;  %v19886_v52 = vld [vmem:[#allocation9 + $0x15a0] ss:$40 sps:$4 sm:$0xff]  }
 0x300   : > { %5925 = vmatpush2.bf16.msra.mxu1 %v19838_v49 }
 0x301   : > { %5966 = vmatpush2.bf16.msra.mxu0 %v19841_v1  ;;  %5926 = vmatprep.subr.bf16.mxu1 %v19846_v55  ;;  %v19894_v1 = vld [vmem:[#allocation9 + $0x1554] ss:$40 sps:$4 sm:$0xff]  }
 0x302   : > { %5967 = vmatprep.subr.bf16.mxu0 %v19849_v60  ;;  %v19892_v60 = vld [vmem:[#allocation9 + $0x1550] ss:$40 sps:$4 sm:$0xff]  }
 0x304   : > { %5927 = vmatpush2.bf16.msra.mxu1 %v19844_v56  ;;  %v19897_v56 = vld [vmem:[#allocation9 + $0x15c] ss:$40 sps:$4 sm:$0xff]  }
 0x305   : > { %5968 = vmatpush2.bf16.msra.mxu0 %v19847_v9  ;;  %5928 = vmatprep.subr.bf16.mxu1 %v19852_v62  ;;  %v19895_v9 = vld [vmem:[#allocation9 + $0x158] ss:$40 sps:$4 sm:$0xff]   ;;  %v19900_v62 = vld [vmem:[#allocation9 + $0x1504] ss:$40 sps:$4 sm:$0xff]  }
 0x306   : > { %5969 = vmatprep.subr.bf16.mxu0 %v19855_v42  ;;  %v19898_v42 = vld [vmem:[#allocation9 + $0x1500] ss:$40 sps:$4 sm:$0xff]  }
 0x308   : > { %5929 = vmatpush2.bf16.msra.mxu1 %v19850_v6  ;;  %v19903_v6 = vld [vmem:[#allocation9 + $0x10c] ss:$40 sps:$4 sm:$0xff]  }
 0x309   : > { %5970 = vmatpush2.bf16.msra.mxu0 %v19853_v7  ;;  %5930 = vmatprep.subr.bf16.mxu1 %v19858_v8  ;;  %v19901_v7 = vld [vmem:[#allocation9 + $0x108] ss:$40 sps:$4 sm:$0xff]   ;;  %v19906_v8 = vld [vmem:[#allocation9 + $0x14b4] ss:$40 sps:$4 sm:$0xff]  }
 0x30a   : > { %5971 = vmatprep.subr.bf16.mxu0 %v19861_v11  ;;  %v19904_v11 = vld [vmem:[#allocation9 + $0x14b0] ss:$40 sps:$4 sm:$0xff]  }
 0x30c   : > { %5931 = vmatpush2.bf16.msra.mxu1 %v19856_v10  ;;  %v19909_v10 = vld [vmem:[#allocation9 + $0xbc] ss:$40 sps:$4 sm:$0xff]  }
 0x30d   : > { %5972 = vmatpush2.bf16.msra.mxu0 %v19859_v12  ;;  %5932 = vmatprep.subr.bf16.mxu1 %v19864_v13  ;;  %v19907_v12 = vld [vmem:[#allocation9 + $0xb8] ss:$40 sps:$4 sm:$0xff]   ;;  %v19912_v13 = vld [vmem:[#allocation9 + $0x1464] ss:$40 sps:$4 sm:$0xff]  }
 0x30e   : > { %5973 = vmatprep.subr.bf16.mxu0 %v19867_v14  ;;  %v19910_v14 = vld [vmem:[#allocation9 + $0x1460] ss:$40 sps:$4 sm:$0xff]  }
 0x310   : > { %5933 = vmatpush2.bf16.msra.mxu1 %v19862_v50  ;;  %v19915_v50 = vld [vmem:[#allocation9 + $0x6c] ss:$40 sps:$4 sm:$0xff]  }
 0x311   : > { %5974 = vmatpush2.bf16.msra.mxu0 %v19865_v15  ;;  %5934 = vmatprep.subr.bf16.mxu1 %v19870_v22 }
 0x312   : > { %5975 = vmatprep.subr.bf16.mxu0 %v19873_v18  ;;  %v19918_v18 = vld [vmem:[#allocation9 + $0x1414] ss:$40 sps:$4 sm:$0xff]  }
 0x314   : > { %5935 = vmatpush2.bf16.msra.mxu1 %v19868_v17  ;;  %v19913_v17 = vld [vmem:[#allocation9 + $0x68] ss:$40 sps:$4 sm:$0xff]  }
 0x315   : > { %5976 = vmatpush2.bf16.msra.mxu0 %v19871_v20  ;;  %5986 = vmatprep.subr.bf16.mxu1 %v19876_v27  ;;  %v19916_v27 = vld [vmem:[#allocation9 + $0x1410] ss:$40 sps:$4 sm:$0xff]  }
 0x316   : > { %6027 = vmatprep.subr.bf16.mxu0 %v19879_v30  ;;  %v19919_v30 = vld [vmem:[#allocation9 + $0x18] ss:$40 sps:$4 sm:$0xff]  }
 0x317   : > { %v5692_v34 = vpop.f32.mrf.mxu1  ;;  %5937 = vmatmul.mubr.bf16.vlgmr.msra.gmra.mxu1 %v22270_v47 }
 0x318   : > { %v5693_v39 = vadd.f32 %v5692_v34, %v5652_v32  ;;  %5978 = vmatmul.mubr.bf16.vlgmr.msra.gmra.mxu0 %v22268_v45  ;;  %5987 = vmatpush1.bf16.msra.mxu1 %v19874_v63  ;;  %v19927_v32 = vld [vmem:[#allocation9 + $0x4cc] ss:$40 sps:$4 sm:$0xff]  }
 0x319   : > { %17708 = vmatprep.mubr.msk.bf16.mxu1 %vm5408_vm2, %v22273_v54  ;;  %6028 = vmatpush1.bf16.msra.mxu0 %v19877_v31  ;;  %v5694_v28 = vpop.f32.mrf.mxu1  ;;  %v19924_v31 = vld [vmem:[#allocation9 + $0x1734] ss:$40 sps:$4 sm:$0xff]   ;;  %v19930_v34 = vld [vmem:[#allocation9 + $0x16e4] ss:$40 sps:$4 sm:$0xff]  }
 0x31a   : > { %6059 = vmatprep.mubr.bf16.mxu0 %v22235_v3  ;;  %v5695_v44 = vadd.f32 %v5694_v28, %v5654_v37  ;;  %5988 = vmatprep.subr.bf16.mxu1 %v19882_v0  ;;  %v19922_v0 = vld [vmem:[#allocation9 + $0x1730] ss:$40 sps:$4 sm:$0xff]  }
 0x31b   : > { %v5696_v49 = vpop.f32.mrf.mxu1  ;;  %6029 = vmatprep.subr.bf16.mxu0 %v19885_v36  ;;  %v19933_v36 = vld [vmem:[#allocation9 + $0x47c] ss:$40 sps:$4 sm:$0xff]   ;;  %v19931_v37 = vld [vmem:[#allocation9 + $0x478] ss:$40 sps:$4 sm:$0xff]   ;;  %v19937_v28 = vld [vmem:[#allocation9 + $0x428] ss:$40 sps:$4 sm:$0xff]  }
 0x31c   : > { %5989 = vmatpush1.bf16.msra.mxu1 %v19880_v33  ;;  %v19925_v33 = vld [vmem:[#allocation9 + $0x4c8] ss:$40 sps:$4 sm:$0xff]   ;;  %v19945_v49 = vld [vmem:[#allocation9 + $0x74c] ss:$40 sps:$4 sm:$0xff]  }
 0x31d   : > { %6030 = vmatpush1.bf16.msra.mxu0 %v19883_v35  ;;  %v5697_v55 = vpop.f32.mrf.mxu1  ;;  %5990 = vmatprep.subr.bf16.mxu1 %v19888_v40  ;;  %v19928_v35 = vld [vmem:[#allocation9 + $0x16e0] ss:$40 sps:$4 sm:$0xff]   ;;  %v19934_v40 = vld [vmem:[#allocation9 + $0x1690] ss:$40 sps:$4 sm:$0xff]  }
 0x31e   : > { %6031 = vmatprep.subr.bf16.mxu0 %v19891_v43  ;;  %v19939_v43 = vld [vmem:[#allocation9 + $0x42c] ss:$40 sps:$4 sm:$0xff]  }
 0x31f   : > { %v19948_v55 = vld [vmem:[#allocation9 + $0x38c] ss:$40 sps:$4 sm:$0xff]  }
 0x320   : > { %5991 = vmatpush1.bf16.msra.mxu1 %v19886_v52  ;;  %v19943_v52 = vld [vmem:[#allocation9 + $0x748] ss:$40 sps:$4 sm:$0xff]  }
 0x321   : > { %6032 = vmatpush1.bf16.msra.mxu0 %v19889_v48  ;;  %5992 = vmatprep.subr.bf16.mxu1 %v19894_v1  ;;  %v19940_v48 = vld [vmem:[#allocation9 + $0x3d8] ss:$40 sps:$4 sm:$0xff]   ;;  %v19951_v1 = vld [vmem:[#allocation9 + $0x6fc] ss:$40 sps:$4 sm:$0xff]  }
 0x322   : > { %6033 = vmatprep.subr.bf16.mxu0 %v19897_v56  ;;  %v19946_v56 = vld [vmem:[#allocation9 + $0x388] ss:$40 sps:$4 sm:$0xff]  }
 0x324   : > { %5993 = vmatpush1.bf16.msra.mxu1 %v19892_v60  ;;  %v19949_v60 = vld [vmem:[#allocation9 + $0x6f8] ss:$40 sps:$4 sm:$0xff]  }
 0x325   : > { %6034 = vmatpush1.bf16.msra.mxu0 %v19895_v9  ;;  %5994 = vmatprep.subr.bf16.mxu1 %v19900_v62  ;;  %v19957_v9 = vld [vmem:[#allocation9 + $0x6ac] ss:$40 sps:$4 sm:$0xff]   ;;  %v19954_v62 = vld [vmem:[#allocation9 + $0x33c] ss:$40 sps:$4 sm:$0xff]  }
 0x326   : > { %6035 = vmatprep.subr.bf16.mxu0 %v19903_v6  ;;  %v19952_v6 = vld [vmem:[#allocation9 + $0x338] ss:$40 sps:$4 sm:$0xff]  }
 0x328   : > { %5995 = vmatpush1.bf16.msra.mxu1 %v19898_v42  ;;  %v19955_v42 = vld [vmem:[#allocation9 + $0x6a8] ss:$40 sps:$4 sm:$0xff]  }
 0x329   : > { %6036 = vmatpush1.bf16.msra.mxu0 %v19901_v7  ;;  %5996 = vmatprep.subr.bf16.mxu1 %v19906_v8  ;;  %v19960_v7 = vld [vmem:[#allocation9 + $0x2ec] ss:$40 sps:$4 sm:$0xff]   ;;  %v19963_v8 = vld [vmem:[#allocation9 + $0x65c] ss:$40 sps:$4 sm:$0xff]  }
 0x32a   : > { %6037 = vmatprep.subr.bf16.mxu0 %v19909_v10  ;;  %v19961_v10 = vld [vmem:[#allocation9 + $0x658] ss:$40 sps:$4 sm:$0xff]  }
 0x32c   : > { %v5733_v15 = vpop.f32.mrf.mxu0  ;;  %5997 = vmatpush1.bf16.msra.mxu1 %v19904_v11  ;;  %v19958_v11 = vld [vmem:[#allocation9 + $0x2e8] ss:$40 sps:$4 sm:$0xff]  }
 0x32d   : > { %v22332_v22 = vadd.f32 %v5733_v15, %v5693_v39  ;;  %6038 = vmatpush1.bf16.msra.mxu0 %v19907_v12  ;;  %5998 = vmatprep.subr.bf16.mxu1 %v19912_v13  ;;  %v19936_v39 = vld [vmem:[#allocation9 + $0x1694] ss:$40 sps:$4 sm:$0xff]  }
 0x32e   : > { %v5735_v20 = vpop.f32.mrf.mxu0  ;;  %6039 = vmatprep.subr.bf16.mxu0 %v19915_v50  ;;  %v19966_v12 = vld [vmem:[#allocation9 + $0x29c] ss:$40 sps:$4 sm:$0xff]   ;;  %v19969_v13 = vld [vmem:[#allocation9 + $0x60c] ss:$40 sps:$4 sm:$0xff]   ;;  %v19967_v50 = vld [vmem:[#allocation9 + $0x608] ss:$40 sps:$4 sm:$0xff]  }
 0x32f   : > { %v22334_v46 = vadd.f32 %v5735_v20, %v5695_v44  ;;  %v19942_v44 = vld [vmem:[#allocation9 + $0x3dc] ss:$40 sps:$4 sm:$0xff]   ;;  %v19973_v20 = vld [vmem:[#allocation9 + $0xc48] ss:$40 sps:$4 sm:$0xff]  }
 0x330   : > { %v5737_v63 = vpop.f32.mrf.mxu0  ;;  %5999 = vmatpush1.bf16.msra.mxu1 %v19910_v14  ;;  %v19964_v14 = vld [vmem:[#allocation9 + $0x298] ss:$40 sps:$4 sm:$0xff]   ;;  %v19972_v15 = vld [vmem:[#allocation9 + $0x5bc] ss:$40 sps:$4 sm:$0xff]  }
 0x331   : > { %6040 = vmatpush1.bf16.msra.mxu0 %v19913_v17  ;;  %6000 = vmatprep.subr.bf16.mxu1 %v19918_v18  ;;  %v19975_v17 = vld [vmem:[#allocation9 + $0xc4c] ss:$40 sps:$4 sm:$0xff]   ;;  %v19970_v18 = vld [vmem:[#allocation9 + $0x5b8] ss:$40 sps:$4 sm:$0xff]  }
 0x332   : > { %v5738_v58 = vpop.f32.mrf.mxu0  ;;  %6041 = vmatprep.subr.bf16.mxu0 %v19921_v29  ;;  %v19981_v29 = vld [vmem:[#allocation9 + $0xbfc] ss:$40 sps:$4 sm:$0xff]  }
 0x334   : > { %6001 = vmatpush1.bf16.msra.mxu1 %v19916_v27  ;;  %v19978_v27 = vld [vmem:[#allocation9 + $0x56c] ss:$40 sps:$4 sm:$0xff]  }
 0x335   : > { %6042 = vmatpush1.bf16.msra.mxu0 %v19919_v30  ;;  %6012 = vmatprep.subr.bf16.mxu1 %v19924_v31  ;;  %v19976_v30 = vld [vmem:[#allocation9 + $0x568] ss:$40 sps:$4 sm:$0xff]   ;;  %v19979_v31 = vld [vmem:[#allocation9 + $0xbf8] ss:$40 sps:$4 sm:$0xff]  }
 0x336   : > { %6043 = vmatprep.subr.bf16.mxu0 %v19927_v32  ;;  %v19984_v32 = vld [vmem:[#allocation9 + $0x51c] ss:$40 sps:$4 sm:$0xff]  }
 0x338   : > { %6013 = vmatpush2.bf16.msra.mxu1 %v19922_v0 }
 0x339   : > { %6044 = vmatpush2.bf16.msra.mxu0 %v19925_v33  ;;  %6014 = vmatprep.subr.bf16.mxu1 %v19930_v34  ;;  %v19987_v33 = vld [vmem:[#allocation9 + $0xbac] ss:$40 sps:$4 sm:$0xff]  }
 0x33a   : > { %6045 = vmatprep.subr.bf16.mxu0 %v19933_v36 }
 0x33c   : > { %6015 = vmatpush2.bf16.msra.mxu1 %v19928_v35 }
 0x33d   : > { %6046 = vmatpush2.bf16.msra.mxu0 %v19931_v37  ;;  %6016 = vmatprep.subr.bf16.mxu1 %v19936_v39 }
 0x33e   : > { %6047 = vmatprep.subr.bf16.mxu0 %v19939_v43 }
 0x340   : > { %6017 = vmatpush2.bf16.msra.mxu1 %v19934_v40  ;;  %v19982_v40 = vld [vmem:[#allocation9 + $0x518] ss:$40 sps:$4 sm:$0xff]  }
 0x341   : > { %6048 = vmatpush2.bf16.msra.mxu0 %v19937_v28  ;;  %6068 = vmatprep.subr.bf16.mxu1 %v19945_v49  ;;  %v19985_v28 = vld [vmem:[#allocation9 + $0xba8] ss:$40 sps:$4 sm:$0xff]  }
 0x342   : > { %6049 = vmatprep.subr.bf16.mxu0 %v19942_v44  ;;  %v19990_v44 = vld [vmem:[#allocation9 + $0x9cc] ss:$40 sps:$4 sm:$0xff]  }
 0x343   : > { %6019 = vmatmul.mubr.bf16.vlgmr.msra.gmra.mxu1 %v22282_v51 }
 0x344   : > { %6069 = vmatpush1.bf16.msra.mxu1 %v19943_v52  ;;  %6100 = vmatprep.mubr.bf16.mxu1 %v22239_v5 }
 0x345   : > { %6050 = vmatpush2.bf16.msra.mxu0 %v19940_v48  ;;  %6070 = vmatprep.subr.bf16.mxu1 %v19951_v1  ;;  %v19993_v48 = vld [vmem:[#allocation9 + $0xb5c] ss:$40 sps:$4 sm:$0xff]   ;;  %v19988_v1 = vld [vmem:[#allocation9 + $0x9c8] ss:$40 sps:$4 sm:$0xff]  }
 0x346   : > { %6051 = vmatprep.subr.bf16.mxu0 %v19948_v55  ;;  %v19996_v55 = vld [vmem:[#allocation9 + $0x97c] ss:$40 sps:$4 sm:$0xff]  }
 0x348   : > { %6071 = vmatpush1.bf16.msra.mxu1 %v19949_v60  ;;  %v19994_v60 = vld [vmem:[#allocation9 + $0x978] ss:$40 sps:$4 sm:$0xff]  }
 0x349   : > { %6052 = vmatpush2.bf16.msra.mxu0 %v19946_v56  ;;  %6072 = vmatprep.subr.bf16.mxu1 %v19957_v9  ;;  %v19999_v56 = vld [vmem:[#allocation9 + $0xb0c] ss:$40 sps:$4 sm:$0xff]   ;;  %v19997_v9 = vld [vmem:[#allocation9 + $0xb08] ss:$40 sps:$4 sm:$0xff]  }
 0x34a   : > { %6053 = vmatprep.subr.bf16.mxu0 %v19954_v62  ;;  %v20002_v62 = vld [vmem:[#allocation9 + $0x92c] ss:$40 sps:$4 sm:$0xff]  }
 0x34c   : > { %6073 = vmatpush1.bf16.msra.mxu1 %v19955_v42  ;;  %v20005_v42 = vld [vmem:[#allocation9 + $0xabc] ss:$40 sps:$4 sm:$0xff]  }
 0x34d   : > { %6054 = vmatpush2.bf16.msra.mxu0 %v19952_v6  ;;  %6074 = vmatprep.subr.bf16.mxu1 %v19963_v8  ;;  %v20000_v6 = vld [vmem:[#allocation9 + $0x928] ss:$40 sps:$4 sm:$0xff]   ;;  %v20008_v8 = vld [vmem:[#allocation9 + $0x8dc] ss:$40 sps:$4 sm:$0xff]  }
 0x34e   : > { %6055 = vmatprep.subr.bf16.mxu0 %v19960_v7  ;;  %v20003_v7 = vld [vmem:[#allocation9 + $0xab8] ss:$40 sps:$4 sm:$0xff]  }
 0x350   : > { %6075 = vmatpush1.bf16.msra.mxu1 %v19961_v10  ;;  %v20006_v10 = vld [vmem:[#allocation9 + $0x8d8] ss:$40 sps:$4 sm:$0xff]  }
 0x351   : > { %6056 = vmatpush2.bf16.msra.mxu0 %v19958_v11  ;;  %6076 = vmatprep.subr.bf16.mxu1 %v19969_v13  ;;  %v20011_v11 = vld [vmem:[#allocation9 + $0xa6c] ss:$40 sps:$4 sm:$0xff]  }
 0x352   : > { %6057 = vmatprep.subr.bf16.mxu0 %v19966_v12  ;;  %v20009_v12 = vld [vmem:[#allocation9 + $0xa68] ss:$40 sps:$4 sm:$0xff]   ;;  %v20014_v13 = vld [vmem:[#allocation9 + $0x88c] ss:$40 sps:$4 sm:$0xff]  }
 0x354   : > { %6077 = vmatpush1.bf16.msra.mxu1 %v19967_v50  ;;  %v20012_v50 = vld [vmem:[#allocation9 + $0x888] ss:$40 sps:$4 sm:$0xff]  }
 0x355   : > { %6058 = vmatpush2.bf16.msra.mxu0 %v19964_v14  ;;  %6078 = vmatprep.subr.bf16.mxu1 %v19972_v15  ;;  %v20017_v14 = vld [vmem:[#allocation9 + $0xa1c] ss:$40 sps:$4 sm:$0xff]   ;;  %v20015_v15 = vld [vmem:[#allocation9 + $0xa18] ss:$40 sps:$4 sm:$0xff]  }
 0x356   : > { %6109 = vmatprep.subr.bf16.mxu0 %v19975_v17  ;;  %v20020_v17 = vld [vmem:[#allocation9 + $0x83c] ss:$40 sps:$4 sm:$0xff]  }
 0x357   : > { %v5774_v63 = vpop.f32.mrf.mxu1 }
 0x358   : > { %v5775_v58 = vadd.f32 %v5774_v63, %v22332_v22  ;;  %v5815_v0 = vpop.f32.mrf.mxu0  ;;  %6060 = vmatmul.mubr.bf16.vlgmr.msra.gmra.mxu0 %v22237_v4  ;;  %6079 = vmatpush1.bf16.msra.mxu1 %v19970_v18  ;;  %v20018_v18 = vld [vmem:[#allocation9 + $0x838] ss:$40 sps:$4 sm:$0xff]   ;;  %v20024_v63 = vld [vmem:[#allocation9 + $0x7e8] ss:$40 sps:$4 sm:$0xff]  }
 0x359   : > { %6110 = vmatpush1.bf16.msra.mxu0 %v19973_v20  ;;  %6141 = vmatprep.mubr.bf16.mxu0 %v22245_v16  ;;  %v5776_v34 = vpop.f32.mrf.mxu1  ;;  %v20023_v20 = vld [vmem:[#allocation9 + $0xecc] ss:$40 sps:$4 sm:$0xff]  }
 0x35a   : > { %v22341_v35 = vadd.f32 %v5815_v0, %v5775_v58  ;;  %v5777_v36 = vadd.f32 %v5776_v34, %v22334_v46  ;;  %v5817_v37 = vpop.f32.mrf.mxu0  ;;  %6080 = vmatprep.subr.bf16.mxu1 %v19978_v27  ;;  %6111 = vmatprep.subr.bf16.mxu0 %v19981_v29  ;;  %v19991_v46 = vld [vmem:[#allocation9 + $0xb58] ss:$40 sps:$4 sm:$0xff]   ;;  %v20021_v27 = vld [vmem:[#allocation9 + $0xec8] ss:$40 sps:$4 sm:$0xff]   ;;  %v20026_v29 = vld [vmem:[#allocation9 + $0x7ec] ss:$40 sps:$4 sm:$0xff]  }
 0x35b   : > { %v5778_v39 = vpop.f32.mrf.mxu1  ;;  %v20032_v58 = vld [vmem:[#allocation9 + $0x79c] ss:$40 sps:$4 sm:$0xff]   ;;  %v20030_v0 = vld [vmem:[#allocation9 + $0x798] ss:$40 sps:$4 sm:$0xff]  }
 0x35c   : > { %v22344_v22 = vadd.f32 %v5817_v37, %v5777_v36  ;;  %v5819_v43 = vpop.f32.mrf.mxu0  ;;  %6081 = vmatpush1.bf16.msra.mxu1 %v19976_v30  ;;  %v20029_v30 = vld [vmem:[#allocation9 + $0xe7c] ss:$40 sps:$4 sm:$0xff]   ;;  %v20041_v36 = vld [vmem:[#allocation9 + $0x114c] ss:$40 sps:$4 sm:$0xff]   ;;  %v20039_v37 = vld [vmem:[#allocation9 + $0x1148] ss:$40 sps:$4 sm:$0xff]  }
 0x35d   : > { %6112 = vmatpush1.bf16.msra.mxu0 %v19979_v31  ;;  %v5779_v49 = vpop.f32.mrf.mxu1  ;;  %6082 = vmatprep.subr.bf16.mxu1 %v19984_v32  ;;  %v20027_v31 = vld [vmem:[#allocation9 + $0xe78] ss:$40 sps:$4 sm:$0xff]   ;;  %v20035_v32 = vld [vmem:[#allocation9 + $0xe2c] ss:$40 sps:$4 sm:$0xff]   ;;  %v20038_v34 = vld [vmem:[#allocation9 + $0xddc] ss:$40 sps:$4 sm:$0xff]  }
 0x35e   : > { %v5820_v52 = vpop.f32.mrf.mxu0  ;;  %6113 = vmatprep.subr.bf16.mxu0 %v19987_v33  ;;  %v20033_v33 = vld [vmem:[#allocation9 + $0xe28] ss:$40 sps:$4 sm:$0xff]   ;;  %v20036_v39 = vld [vmem:[#allocation9 + $0xdd8] ss:$40 sps:$4 sm:$0xff]   ;;  %v20044_v43 = vld [vmem:[#allocation9 + $0xd8c] ss:$40 sps:$4 sm:$0xff]   ;;  %21504 = vtanh.f32 %v22344_v22 }
 0x35f   : > { %v20050_v49 = vld [vmem:[#allocation9 + $0xd3c] ss:$40 sps:$4 sm:$0xff]   ;;  %v20053_v52 = vld [vmem:[#allocation9 + $0x10ac] ss:$40 sps:$4 sm:$0xff]   ;;  %v20384_v22 = vld [vmem:[#allocation9 + $0x16a0] ss:$40 sps:$4 sm:$0xff]   ;;  %21506 = vtanh.f32 %v22311_v53 }
 0x360   : > { %6083 = vmatpush1.bf16.msra.mxu1 %v19982_v40  ;;  %v20047_v40 = vld [vmem:[#allocation9 + $0x10fc] ss:$40 sps:$4 sm:$0xff]  }
 0x361   : > { %6114 = vmatpush1.bf16.msra.mxu0 %v19985_v28  ;;  %6084 = vmatprep.subr.bf16.mxu1 %v19990_v44  ;;  %v20042_v28 = vld [vmem:[#allocation9 + $0xd88] ss:$40 sps:$4 sm:$0xff]   ;;  %v20045_v44 = vld [vmem:[#allocation9 + $0x10f8] ss:$40 sps:$4 sm:$0xff]  }
 0x362   : > { %6115 = vmatprep.subr.bf16.mxu0 %v19993_v48  ;;  %v20048_v48 = vld [vmem:[#allocation9 + $0xd38] ss:$40 sps:$4 sm:$0xff]  }
 0x363   : > { %v20416_v53 = vld [vmem:[#allocation12 + $0x284] ss:$40 sps:$4 sm:$0xff]  }
 0x364   : > { %6085 = vmatpush2.bf16.msra.mxu1 %v19988_v1  ;;  %v20051_v1 = vld [vmem:[#allocation9 + $0x10a8] ss:$40 sps:$4 sm:$0xff]  }
 0x365   : > { %6116 = vmatpush1.bf16.msra.mxu0 %v19991_v46  ;;  %6086 = vmatprep.subr.bf16.mxu1 %v19996_v55  ;;  %v20056_v46 = vld [vmem:[#allocation9 + $0xcec] ss:$40 sps:$4 sm:$0xff]   ;;  %v20059_v55 = vld [vmem:[#allocation9 + $0x105c] ss:$40 sps:$4 sm:$0xff]  }
 0x366   : > { %6117 = vmatprep.subr.bf16.mxu0 %v19999_v56  ;;  %v20054_v56 = vld [vmem:[#allocation9 + $0xce8] ss:$40 sps:$4 sm:$0xff]  }
 0x368   : > { %6087 = vmatpush2.bf16.msra.mxu1 %v19994_v60  ;;  %v20057_v60 = vld [vmem:[#allocation9 + $0x1058] ss:$40 sps:$4 sm:$0xff]  }
 0x369   : > { %6118 = vmatpush1.bf16.msra.mxu0 %v19997_v9  ;;  %6088 = vmatprep.subr.bf16.mxu1 %v20002_v62  ;;  %v20062_v9 = vld [vmem:[#allocation9 + $0xc9c] ss:$40 sps:$4 sm:$0xff]   ;;  %v20065_v62 = vld [vmem:[#allocation9 + $0x100c] ss:$40 sps:$4 sm:$0xff]  }
 0x36a   : > { %6119 = vmatprep.subr.bf16.mxu0 %v20005_v42  ;;  %v20060_v42 = vld [vmem:[#allocation9 + $0xc98] ss:$40 sps:$4 sm:$0xff]  }
 0x36c   : > { %6089 = vmatpush2.bf16.msra.mxu1 %v20000_v6  ;;  %v20063_v6 = vld [vmem:[#allocation9 + $0x1008] ss:$40 sps:$4 sm:$0xff]  }
 0x36d   : > { %6120 = vmatpush1.bf16.msra.mxu0 %v20003_v7  ;;  %6090 = vmatprep.subr.bf16.mxu1 %v20008_v8  ;;  %v20068_v7 = vld [vmem:[#allocation9 + $0xfbc] ss:$40 sps:$4 sm:$0xff]   ;;  %v20071_v8 = vld [vmem:[#allocation9 + $0x164c] ss:$40 sps:$4 sm:$0xff]  }
 0x36e   : > { %6121 = vmatprep.subr.bf16.mxu0 %v20011_v11  ;;  %v20069_v11 = vld [vmem:[#allocation9 + $0x1648] ss:$40 sps:$4 sm:$0xff]  }
 0x370   : > { %6091 = vmatpush2.bf16.msra.mxu1 %v20006_v10  ;;  %v20066_v10 = vld [vmem:[#allocation9 + $0xfb8] ss:$40 sps:$4 sm:$0xff]  }
 0x371   : > { %6122 = vmatpush1.bf16.msra.mxu0 %v20009_v12  ;;  %6092 = vmatprep.subr.bf16.mxu1 %v20014_v13  ;;  %v22348_v12 = vld [vmem:[#allocation11] sm:$0xff] }
 0x372   : > { %6123 = vmatprep.subr.bf16.mxu0 %v20017_v14  ;;  %v1627_v13 = vrot.slane %v22348_v12, %v22255_v59  ;;  %v20077_v14 = vld [vmem:[#allocation9 + $0x15fc] ss:$40 sps:$4 sm:$0xff]  }
 0x374   : > { %6093 = vmatpush2.bf16.msra.mxu1 %v20012_v50  ;;  %v20074_v50 = vld [vmem:[#allocation9 + $0xf6c] ss:$40 sps:$4 sm:$0xff]  }
 0x375   : > { %6124 = vmatpush1.bf16.msra.mxu0 %v20015_v15  ;;  %6094 = vmatprep.subr.bf16.mxu1 %v20020_v17  ;;  %v1631_v15 = vrot.slane %v22348_v12, %v22216_v38 }
 0x376   : > { %6125 = vmatprep.subr.bf16.mxu0 %v20023_v20  ;;  %v20075_v20 = vld [vmem:[#allocation9 + $0x15f8] ss:$40 sps:$4 sm:$0xff]  }
 0x378   : > { %6095 = vmatpush2.bf16.msra.mxu1 %v20018_v18  ;;  %v20072_v18 = vld [vmem:[#allocation9 + $0xf68] ss:$40 sps:$4 sm:$0xff]  }
 0x379   : > { %6126 = vmatpush2.bf16.msra.mxu0 %v20021_v27  ;;  %6096 = vmatprep.subr.bf16.mxu1 %v20026_v29 }
 0x37a   : > { %6127 = vmatprep.subr.bf16.mxu0 %v20029_v30  ;;  %v20083_v30 = vld [vmem:[#allocation9 + $0x15ac] ss:$40 sps:$4 sm:$0xff]  }
 0x37c   : > { %6097 = vmatpush2.bf16.msra.mxu1 %v20024_v63  ;;  %v20080_v63 = vld [vmem:[#allocation9 + $0xf1c] ss:$40 sps:$4 sm:$0xff]  }
 0x37d   : > { %6128 = vmatpush2.bf16.msra.mxu0 %v20027_v31  ;;  %6098 = vmatprep.subr.bf16.mxu1 %v20032_v58 }
 0x37e   : > { %6129 = vmatprep.subr.bf16.mxu0 %v20035_v32 }
 0x380   : > { %6099 = vmatpush2.bf16.msra.mxu1 %v20030_v0 }
 0x381   : > { %6130 = vmatpush2.bf16.msra.mxu0 %v20033_v33  ;;  %6150 = vmatprep.subr.bf16.mxu1 %v20041_v36 }
 0x382   : > { %6131 = vmatprep.subr.bf16.mxu0 %v20038_v34  ;;  %v20078_v34 = vld [vmem:[#allocation9 + $0xf18] ss:$40 sps:$4 sm:$0xff]  }
 0x383   : > { %6101 = vmatmul.mubr.bf16.vlgmr.msra.gmra.mxu1 %v22233_v2 }
 0x384   : > { %6151 = vmatpush1.bf16.msra.mxu1 %v20039_v37  ;;  %6182 = vmatprep.mubr.bf16.mxu1 %v22247_v19 }
 0x385   : > { %6132 = vmatpush2.bf16.msra.mxu0 %v20036_v39  ;;  %6152 = vmatprep.subr.bf16.mxu1 %v20047_v40  ;;  %v20081_v39 = vld [vmem:[#allocation9 + $0x15a8] ss:$40 sps:$4 sm:$0xff]   ;;  %v20086_v40 = vld [vmem:[#allocation9 + $0x13cc] ss:$40 sps:$4 sm:$0xff]  }
 0x386   : > { %6133 = vmatprep.subr.bf16.mxu0 %v20044_v43 }
 0x388   : > { %6153 = vmatpush1.bf16.msra.mxu1 %v20045_v44  ;;  %v20089_v44 = vld [vmem:[#allocation9 + $0x155c] ss:$40 sps:$4 sm:$0xff]  }
 0x389   : > { %6134 = vmatpush2.bf16.msra.mxu0 %v20042_v28  ;;  %6154 = vmatprep.subr.bf16.mxu1 %v20053_v52  ;;  %v20087_v52 = vld [vmem:[#allocation9 + $0x1558] ss:$40 sps:$4 sm:$0xff]  }
 0x38a   : > { %6135 = vmatprep.subr.bf16.mxu0 %v20050_v49  ;;  %v20084_v49 = vld [vmem:[#allocation9 + $0x13c8] ss:$40 sps:$4 sm:$0xff]  }
 0x38c   : > { %6155 = vmatpush1.bf16.msra.mxu1 %v20051_v1  ;;  %v20090_v1 = vld [vmem:[#allocation9 + $0x1378] ss:$40 sps:$4 sm:$0xff]  }
 0x38d   : > { %6136 = vmatpush2.bf16.msra.mxu0 %v20048_v48  ;;  %6156 = vmatprep.subr.bf16.mxu1 %v20059_v55  ;;  %v20092_v48 = vld [vmem:[#allocation9 + $0x137c] ss:$40 sps:$4 sm:$0xff]   ;;  %v20093_v55 = vld [vmem:[#allocation9 + $0x1508] ss:$40 sps:$4 sm:$0xff]  }
 0x38e   : > { %6137 = vmatprep.subr.bf16.mxu0 %v20056_v46  ;;  %v20095_v46 = vld [vmem:[#allocation9 + $0x150c] ss:$40 sps:$4 sm:$0xff]  }
 0x390   : > { %6157 = vmatpush1.bf16.msra.mxu1 %v20057_v60  ;;  %v20096_v60 = vld [vmem:[#allocation9 + $0x1328] ss:$40 sps:$4 sm:$0xff]  }
 0x391   : > { %6138 = vmatpush2.bf16.msra.mxu0 %v20054_v56  ;;  %6158 = vmatprep.subr.bf16.mxu1 %v20065_v62  ;;  %v20098_v56 = vld [vmem:[#allocation9 + $0x132c] ss:$40 sps:$4 sm:$0xff]   ;;  %v20099_v62 = vld [vmem:[#allocation9 + $0x14b8] ss:$40 sps:$4 sm:$0xff]  }
 0x392   : > { %6139 = vmatprep.subr.bf16.mxu0 %v20062_v9  ;;  %v20101_v9 = vld [vmem:[#allocation9 + $0x14bc] ss:$40 sps:$4 sm:$0xff]  }
 0x394   : > { %6159 = vmatpush1.bf16.msra.mxu1 %v20063_v6  ;;  %v20102_v6 = vld [vmem:[#allocation9 + $0x12d8] ss:$40 sps:$4 sm:$0xff]  }
 0x395   : > { %6140 = vmatpush2.bf16.msra.mxu0 %v20060_v42  ;;  %6160 = vmatprep.subr.bf16.mxu1 %v20068_v7  ;;  %v20104_v42 = vld [vmem:[#allocation9 + $0x12dc] ss:$40 sps:$4 sm:$0xff]   ;;  %v20107_v7 = vld [vmem:[#allocation9 + $0x146c] ss:$40 sps:$4 sm:$0xff]  }
 0x396   : > { %6191 = vmatprep.subr.bf16.mxu0 %v20071_v8  ;;  %v20105_v8 = vld [vmem:[#allocation9 + $0x1468] ss:$40 sps:$4 sm:$0xff]  }
 0x397   : > { %v5856_v17 = vpop.f32.mrf.mxu1 }
 0x398   : > { %v5857_v27 = vadd.f32 %v5856_v17, %v1627_v13  ;;  %v5897_v29 = vpop.f32.mrf.mxu0  ;;  %6142 = vmatmul.mubr.bf16.vlgmr.msra.gmra.mxu0 %v22270_v47  ;;  %6161 = vmatpush1.bf16.msra.mxu1 %v20066_v10  ;;  %v20110_v10 = vld [vmem:[#allocation9 + $0x128c] ss:$40 sps:$4 sm:$0xff]   ;;  %v20113_v13 = vld [vmem:[#allocation9 + $0x141c] ss:$40 sps:$4 sm:$0xff]  }
 0x399   : > { %6192 = vmatpush1.bf16.msra.mxu0 %v20069_v11  ;;  %17709 = vmatprep.mubr.msk.bf16.mxu0 %vm5408_vm2, %v22273_v54  ;;  %v5858_v31 = vpop.f32.mrf.mxu1  ;;  %v20108_v11 = vld [vmem:[#allocation9 + $0x1288] ss:$40 sps:$4 sm:$0xff]   ;;  %v20119_v17 = vld [vmem:[#allocation9 + $0x173c] ss:$40 sps:$4 sm:$0xff]  }
 0x39a   : > { %v22357_v58 = vadd.f32 %v5897_v29, %v5857_v27  ;;  %v5859_v0 = vadd.f32 %v5858_v31, %v1631_v15  ;;  %v5899_v32 = vpop.f32.mrf.mxu0  ;;  %6162 = vmatprep.subr.bf16.mxu1 %v20074_v50  ;;  %6193 = vmatprep.subr.bf16.mxu0 %v20077_v14  ;;  %v20111_v50 = vld [vmem:[#allocation9 + $0x1418] ss:$40 sps:$4 sm:$0xff]   ;;  %v20116_v14 = vld [vmem:[#allocation9 + $0x123c] ss:$40 sps:$4 sm:$0xff]   ;;  %v20120_v27 = vld [vmem:[#allocation9 + $0x11e8] ss:$40 sps:$4 sm:$0xff]  }
 0x39b   : > { %v5860_v33 = vpop.f32.mrf.mxu1  ;;  %v20114_v15 = vld [vmem:[#allocation9 + $0x1238] ss:$40 sps:$4 sm:$0xff]   ;;  %v20125_v29 = vld [vmem:[#allocation9 + $0x16ec] ss:$40 sps:$4 sm:$0xff]   ;;  %v20131_v31 = vld [vmem:[#allocation9 + $0x169c] ss:$40 sps:$4 sm:$0xff]  }
 0x39c   : > { %v22359_v36 = vadd.f32 %v5899_v32, %v5859_v0  ;;  %v5901_v37 = vpop.f32.mrf.mxu0  ;;  %6163 = vmatpush1.bf16.msra.mxu1 %v20072_v18  ;;  %v20117_v18 = vld [vmem:[#allocation9 + $0x1738] ss:$40 sps:$4 sm:$0xff]   ;;  %v20134_v33 = vld [vmem:[#allocation9 + $0x254] ss:$40 sps:$4 sm:$0xff]  }
 0x39d   : > { %6194 = vmatpush1.bf16.msra.mxu0 %v20075_v20  ;;  %v5861_v43 = vpop.f32.mrf.mxu1  ;;  %6164 = vmatprep.subr.bf16.mxu1 %v20080_v63  ;;  %v20122_v20 = vld [vmem:[#allocation9 + $0x11ec] ss:$40 sps:$4 sm:$0xff]   ;;  %v20123_v63 = vld [vmem:[#allocation9 + $0x16e8] ss:$40 sps:$4 sm:$0xff]   ;;  %v20126_v0 = vld [vmem:[#allocation9 + $0x1198] ss:$40 sps:$4 sm:$0xff]  }
 0x39e   : > { %v5902_v28 = vpop.f32.mrf.mxu0  ;;  %6195 = vmatprep.subr.bf16.mxu0 %v20083_v30  ;;  %v20128_v30 = vld [vmem:[#allocation9 + $0x119c] ss:$40 sps:$4 sm:$0xff]   ;;  %v20129_v32 = vld [vmem:[#allocation9 + $0x1698] ss:$40 sps:$4 sm:$0xff]  }
 0x39f   : > { %v20132_v37 = vld [vmem:[#allocation9 + $0x250] ss:$40 sps:$4 sm:$0xff]   ;;  %v20143_v43 = vld [vmem:[#allocation9 + $0x704] ss:$40 sps:$4 sm:$0xff]   ;;  %v20138_v28 = vld [vmem:[#allocation9 + $0x200] ss:$40 sps:$4 sm:$0xff]  }
 0x3a0   : > { %6165 = vmatpush1.bf16.msra.mxu1 %v20078_v34  ;;  %v20137_v34 = vld [vmem:[#allocation9 + $0x754] ss:$40 sps:$4 sm:$0xff]  }
 0x3a1   : > { %6196 = vmatpush1.bf16.msra.mxu0 %v20081_v39  ;;  %6166 = vmatprep.subr.bf16.mxu1 %v20086_v40  ;;  %v20135_v39 = vld [vmem:[#allocation9 + $0x750] ss:$40 sps:$4 sm:$0xff]   ;;  %v20140_v40 = vld [vmem:[#allocation9 + $0x204] ss:$40 sps:$4 sm:$0xff]  }
 0x3a2   : > { %6197 = vmatprep.subr.bf16.mxu0 %v20089_v44  ;;  %v20141_v44 = vld [vmem:[#allocation9 + $0x700] ss:$40 sps:$4 sm:$0xff]  }
 0x3a4   : > { %6167 = vmatpush2.bf16.msra.mxu1 %v20084_v49  ;;  %v20146_v49 = vld [vmem:[#allocation9 + $0x1b4] ss:$40 sps:$4 sm:$0xff]  }
 0x3a5   : > { %6198 = vmatpush1.bf16.msra.mxu0 %v20087_v52  ;;  %6168 = vmatprep.subr.bf16.mxu1 %v20092_v48  ;;  %v20149_v52 = vld [vmem:[#allocation9 + $0x6b4] ss:$40 sps:$4 sm:$0xff]   ;;  %v20144_v48 = vld [vmem:[#allocation9 + $0x1b0] ss:$40 sps:$4 sm:$0xff]  }
 0x3a6   : > { %6199 = vmatprep.subr.bf16.mxu0 %v20095_v46  ;;  %v20152_v46 = vld [vmem:[#allocation9 + $0x164] ss:$40 sps:$4 sm:$0xff]  }
 0x3a8   : > { %6169 = vmatpush2.bf16.msra.mxu1 %v20090_v1  ;;  %v20147_v1 = vld [vmem:[#allocation9 + $0x6b0] ss:$40 sps:$4 sm:$0xff]  }
 0x3a9   : > { %6200 = vmatpush1.bf16.msra.mxu0 %v20093_v55  ;;  %6170 = vmatprep.subr.bf16.mxu1 %v20098_v56  ;;  %v20155_v55 = vld [vmem:[#allocation9 + $0x664] ss:$40 sps:$4 sm:$0xff]   ;;  %v20150_v56 = vld [vmem:[#allocation9 + $0x160] ss:$40 sps:$4 sm:$0xff]  }
 0x3aa   : > { %6201 = vmatprep.subr.bf16.mxu0 %v20101_v9  ;;  %v20161_v9 = vld [vmem:[#allocation9 + $0x614] ss:$40 sps:$4 sm:$0xff]  }
 0x3ac   : > { %6171 = vmatpush2.bf16.msra.mxu1 %v20096_v60  ;;  %v20158_v60 = vld [vmem:[#allocation9 + $0x114] ss:$40 sps:$4 sm:$0xff]  }
 0x3ad   : > { %6202 = vmatpush1.bf16.msra.mxu0 %v20099_v62  ;;  %6172 = vmatprep.subr.bf16.mxu1 %v20104_v42  ;;  %v20159_v62 = vld [vmem:[#allocation9 + $0x610] ss:$40 sps:$4 sm:$0xff]   ;;  %v20164_v42 = vld [vmem:[#allocation9 + $0xc4] ss:$40 sps:$4 sm:$0xff]  }
 0x3ae   : > { %6203 = vmatprep.subr.bf16.mxu0 %v20107_v7  ;;  %v20162_v7 = vld [vmem:[#allocation9 + $0xc0] ss:$40 sps:$4 sm:$0xff]  }
 0x3b0   : > { %6173 = vmatpush2.bf16.msra.mxu1 %v20102_v6  ;;  %v20167_v6 = vld [vmem:[#allocation9 + $0x5c4] ss:$40 sps:$4 sm:$0xff]  }
 0x3b1   : > { %6204 = vmatpush1.bf16.msra.mxu0 %v20105_v8  ;;  %6174 = vmatprep.subr.bf16.mxu1 %v20110_v10  ;;  %v20165_v8 = vld [vmem:[#allocation9 + $0x5c0] ss:$40 sps:$4 sm:$0xff]   ;;  %v20170_v10 = vld [vmem:[#allocation9 + $0x74] ss:$40 sps:$4 sm:$0xff]  }
 0x3b2   : > { %6205 = vmatprep.subr.bf16.mxu0 %v20113_v13 }
 0x3b4   : > { %6175 = vmatpush2.bf16.msra.mxu1 %v20108_v11  ;;  %v20173_v11 = vld [vmem:[#allocation9 + $0x574] ss:$40 sps:$4 sm:$0xff]  }
 0x3b5   : > { %6206 = vmatpush1.bf16.msra.mxu0 %v20111_v50  ;;  %6176 = vmatprep.subr.bf16.mxu1 %v20116_v14 }
 0x3b6   : > { %6217 = vmatprep.subr.bf16.mxu0 %v20119_v17 }
 0x3b8   : > { %6177 = vmatpush2.bf16.msra.mxu1 %v20114_v15  ;;  %v20168_v15 = vld [vmem:[#allocation9 + $0x70] ss:$40 sps:$4 sm:$0xff]  }
 0x3b9   : > { %6218 = vmatpush2.bf16.msra.mxu0 %v20117_v18  ;;  %6178 = vmatprep.subr.bf16.mxu1 %v20122_v20  ;;  %v20171_v18 = vld [vmem:[#allocation9 + $0x570] ss:$40 sps:$4 sm:$0xff]   ;;  %v20176_v20 = vld [vmem:[#allocation9 + $0x24] ss:$40 sps:$4 sm:$0xff]  }
 0x3ba   : > { %6219 = vmatprep.subr.bf16.mxu0 %v20125_v29 }
 0x3bc   : > { %6179 = vmatpush2.bf16.msra.mxu1 %v20120_v27 }
 0x3bd   : > { %6220 = vmatpush2.bf16.msra.mxu0 %v20123_v63  ;;  %6180 = vmatprep.subr.bf16.mxu1 %v20128_v30  ;;  %v20179_v30 = vld [vmem:[#allocation9 + $0x524] ss:$40 sps:$4 sm:$0xff]  }
 0x3be   : > { %6221 = vmatprep.subr.bf16.mxu0 %v20131_v31 }
 0x3c0   : > { %6181 = vmatpush2.bf16.msra.mxu1 %v20126_v0 }
 0x3c1   : > { %6222 = vmatpush2.bf16.msra.mxu0 %v20129_v32  ;;  %6232 = vmatprep.subr.bf16.mxu1 %v20134_v33 }
 0x3c2   : > { %6273 = vmatprep.subr.bf16.mxu0 %v20137_v34  ;;  %v20177_v34 = vld [vmem:[#allocation9 + $0x520] ss:$40 sps:$4 sm:$0xff]  }
 0x3c3   : > { %6183 = vmatmul.mubr.bf16.vlgmr.msra.gmra.mxu1 %v22268_v45 }
 0x3c4   : > { %6224 = vmatmul.mubr.bf16.vlgmr.msra.gmra.mxu0 %v22282_v51  ;;  %6233 = vmatpush1.bf16.msra.mxu1 %v20132_v37  ;;  %v20182_v37 = vld [vmem:[#allocation9 + $0x4d4] ss:$40 sps:$4 sm:$0xff]  }
 0x3c5   : > { %6264 = vmatprep.mubr.bf16.mxu1 %v22235_v3  ;;  %6274 = vmatpush1.bf16.msra.mxu0 %v20135_v39  ;;  %v20153_v3 = vld [vmem:[#allocation9 + $0x660] ss:$40 sps:$4 sm:$0xff]  }
 0x3c6   : > { %6305 = vmatprep.mubr.bf16.mxu0 %v22239_v5  ;;  %6234 = vmatprep.subr.bf16.mxu1 %v20140_v40  ;;  %v20156_v5 = vld [vmem:[#allocation9 + $0x110] ss:$40 sps:$4 sm:$0xff]   ;;  %v20185_v40 = vld [vmem:[#allocation9 + $0x9d4] ss:$40 sps:$4 sm:$0xff]  }
 0x3c7   : > { %6275 = vmatprep.subr.bf16.mxu0 %v20143_v43  ;;  %v20180_v43 = vld [vmem:[#allocation9 + $0x4d0] ss:$40 sps:$4 sm:$0xff]  }
 0x3c8   : > { %6235 = vmatpush1.bf16.msra.mxu1 %v20138_v28  ;;  %v20188_v28 = vld [vmem:[#allocation9 + $0x484] ss:$40 sps:$4 sm:$0xff]  }
 0x3c9   : > { %6276 = vmatpush1.bf16.msra.mxu0 %v20141_v44  ;;  %6236 = vmatprep.subr.bf16.mxu1 %v20146_v49  ;;  %v20191_v44 = vld [vmem:[#allocation9 + $0x984] ss:$40 sps:$4 sm:$0xff]   ;;  %v20186_v49 = vld [vmem:[#allocation9 + $0x480] ss:$40 sps:$4 sm:$0xff]  }
 0x3ca   : > { %6277 = vmatprep.subr.bf16.mxu0 %v20149_v52  ;;  %v20189_v52 = vld [vmem:[#allocation9 + $0x980] ss:$40 sps:$4 sm:$0xff]  }
 0x3cc   : > { %6237 = vmatpush1.bf16.msra.mxu1 %v20144_v48  ;;  %v20194_v48 = vld [vmem:[#allocation9 + $0x434] ss:$40 sps:$4 sm:$0xff]  }
 0x3cd   : > { %6278 = vmatpush1.bf16.msra.mxu0 %v20147_v1  ;;  %6238 = vmatprep.subr.bf16.mxu1 %v20152_v46  ;;  %v20197_v1 = vld [vmem:[#allocation9 + $0x934] ss:$40 sps:$4 sm:$0xff]   ;;  %v20192_v46 = vld [vmem:[#allocation9 + $0x430] ss:$40 sps:$4 sm:$0xff]  }
 0x3ce   : > { %6279 = vmatprep.subr.bf16.mxu0 %v20155_v55  ;;  %v20195_v55 = vld [vmem:[#allocation9 + $0x930] ss:$40 sps:$4 sm:$0xff]  }
 0x3d0   : > { %6239 = vmatpush1.bf16.msra.mxu1 %v20150_v56  ;;  %v20200_v56 = vld [vmem:[#allocation9 + $0x3e4] ss:$40 sps:$4 sm:$0xff]  }
 0x3d1   : > { %6280 = vmatpush1.bf16.msra.mxu0 %v20153_v3  ;;  %6240 = vmatprep.subr.bf16.mxu1 %v20158_v60  ;;  %v20203_v3 = vld [vmem:[#allocation9 + $0x8e4] ss:$40 sps:$4 sm:$0xff]   ;;  %v20198_v60 = vld [vmem:[#allocation9 + $0x3e0] ss:$40 sps:$4 sm:$0xff]  }
 0x3d2   : > { %6281 = vmatprep.subr.bf16.mxu0 %v20161_v9  ;;  %v20201_v9 = vld [vmem:[#allocation9 + $0x8e0] ss:$40 sps:$4 sm:$0xff]  }
 0x3d4   : > { %6241 = vmatpush1.bf16.msra.mxu1 %v20156_v5  ;;  %v20206_v5 = vld [vmem:[#allocation9 + $0x394] ss:$40 sps:$4 sm:$0xff]  }
 0x3d5   : > { %6282 = vmatpush1.bf16.msra.mxu0 %v20159_v62  ;;  %6242 = vmatprep.subr.bf16.mxu1 %v20164_v42  ;;  %v20209_v62 = vld [vmem:[#allocation9 + $0x894] ss:$40 sps:$4 sm:$0xff]   ;;  %v20204_v42 = vld [vmem:[#allocation9 + $0x390] ss:$40 sps:$4 sm:$0xff]  }
 0x3d6   : > { %6283 = vmatprep.subr.bf16.mxu0 %v20167_v6  ;;  %v20207_v6 = vld [vmem:[#allocation9 + $0x890] ss:$40 sps:$4 sm:$0xff]  }
 0x3d7   : > { %v5938_v13 = vpop.f32.mrf.mxu1 }
 0x3d8   : > { %v5939_v50 = vadd.f32 %v5938_v13, %v22357_v58  ;;  %v5979_v14 = vpop.f32.mrf.mxu0  ;;  %6243 = vmatpush1.bf16.msra.mxu1 %v20162_v7  ;;  %v20174_v58 = vld [vmem:[#allocation9 + $0x20] ss:$40 sps:$4 sm:$0xff]   ;;  %v20212_v7 = vld [vmem:[#allocation9 + $0x344] ss:$40 sps:$4 sm:$0xff]   ;;  %v20218_v13 = vld [vmem:[#allocation9 + $0x2f4] ss:$40 sps:$4 sm:$0xff]  }
 0x3d9   : > { %6284 = vmatpush1.bf16.msra.mxu0 %v20165_v8  ;;  %v5940_v17 = vpop.f32.mrf.mxu1  ;;  %6244 = vmatprep.subr.bf16.mxu1 %v20170_v10  ;;  %v20215_v8 = vld [vmem:[#allocation9 + $0x844] ss:$40 sps:$4 sm:$0xff]   ;;  %v20210_v10 = vld [vmem:[#allocation9 + $0x340] ss:$40 sps:$4 sm:$0xff]  }
 0x3da   : > { %v22366_v27 = vadd.f32 %v5979_v14, %v5939_v50  ;;  %v5941_v29 = vadd.f32 %v5940_v17, %v22359_v36  ;;  %v5981_v63 = vpop.f32.mrf.mxu0  ;;  %6285 = vmatprep.subr.bf16.mxu0 %v20173_v11  ;;  %v20183_v36 = vld [vmem:[#allocation9 + $0x9d0] ss:$40 sps:$4 sm:$0xff]   ;;  %v20213_v11 = vld [vmem:[#allocation9 + $0x840] ss:$40 sps:$4 sm:$0xff]   ;;  %v20221_v50 = vld [vmem:[#allocation9 + $0x7f4] ss:$40 sps:$4 sm:$0xff]  }
 0x3db   : > { %v5942_v31 = vpop.f32.mrf.mxu1  ;;  %v20216_v14 = vld [vmem:[#allocation9 + $0x2f0] ss:$40 sps:$4 sm:$0xff]   ;;  %v20224_v17 = vld [vmem:[#allocation9 + $0x2a4] ss:$40 sps:$4 sm:$0xff]  }
 0x3dc   : > { %v22369_v0 = vadd.f32 %v5981_v63, %v5941_v29  ;;  %v5983_v32 = vpop.f32.mrf.mxu0  ;;  %6245 = vmatpush1.bf16.msra.mxu1 %v20168_v15  ;;  %v20219_v15 = vld [vmem:[#allocation9 + $0x7f0] ss:$40 sps:$4 sm:$0xff]   ;;  %v20225_v29 = vld [vmem:[#allocation9 + $0x7a0] ss:$40 sps:$4 sm:$0xff]   ;;  %v20230_v63 = vld [vmem:[#allocation9 + $0xc54] ss:$40 sps:$4 sm:$0xff]  }
 0x3dd   : > { %6286 = vmatpush1.bf16.msra.mxu0 %v20171_v18  ;;  %v5943_v33 = vpop.f32.mrf.mxu1  ;;  %6246 = vmatprep.subr.bf16.mxu1 %v20176_v20  ;;  %v20227_v18 = vld [vmem:[#allocation9 + $0x7a4] ss:$40 sps:$4 sm:$0xff]   ;;  %v20222_v20 = vld [vmem:[#allocation9 + $0x2a0] ss:$40 sps:$4 sm:$0xff]   ;;  %v20228_v31 = vld [vmem:[#allocation9 + $0xc50] ss:$40 sps:$4 sm:$0xff]  }
 0x3de   : > { %v5984_v39 = vpop.f32.mrf.mxu0  ;;  %6287 = vmatprep.subr.bf16.mxu0 %v20179_v30  ;;  %v20233_v30 = vld [vmem:[#allocation9 + $0x1154] ss:$40 sps:$4 sm:$0xff]   ;;  %v20231_v32 = vld [vmem:[#allocation9 + $0x1150] ss:$40 sps:$4 sm:$0xff]  }
 0x3df   : > { %v20234_v39 = vld [vmem:[#allocation9 + $0xc00] ss:$40 sps:$4 sm:$0xff]  }
 0x3e0   : > { %6247 = vmatpush1.bf16.msra.mxu1 %v20174_v58  ;;  %v20236_v58 = vld [vmem:[#allocation9 + $0xc04] ss:$40 sps:$4 sm:$0xff]  }
 0x3e1   : > { %6288 = vmatpush1.bf16.msra.mxu0 %v20177_v34  ;;  %6248 = vmatprep.subr.bf16.mxu1 %v20182_v37  ;;  %v20239_v34 = vld [vmem:[#allocation9 + $0x1104] ss:$40 sps:$4 sm:$0xff]  }
 0x3e2   : > { %6289 = vmatprep.subr.bf16.mxu0 %v20185_v40 }
 0x3e4   : > { %6249 = vmatpush2.bf16.msra.mxu1 %v20180_v43  ;;  %v20237_v43 = vld [vmem:[#allocation9 + $0x1100] ss:$40 sps:$4 sm:$0xff]  }
 0x3e5   : > { %6290 = vmatpush2.bf16.msra.mxu0 %v20183_v36  ;;  %6250 = vmatprep.subr.bf16.mxu1 %v20188_v28  ;;  %v20242_v36 = vld [vmem:[#allocation9 + $0xbb4] ss:$40 sps:$4 sm:$0xff]  }
 0x3e6   : > { %6291 = vmatprep.subr.bf16.mxu0 %v20191_v44 }
 0x3e8   : > { %6251 = vmatpush2.bf16.msra.mxu1 %v20186_v49  ;;  %v20243_v49 = vld [vmem:[#allocation9 + $0x10b0] ss:$40 sps:$4 sm:$0xff]  }
 0x3e9   : > { %6292 = vmatpush2.bf16.msra.mxu0 %v20189_v52  ;;  %6252 = vmatprep.subr.bf16.mxu1 %v20194_v48  ;;  %v20251_v52 = vld [vmem:[#allocation9 + $0x1064] ss:$40 sps:$4 sm:$0xff]   ;;  %v20246_v48 = vld [vmem:[#allocation9 + $0xb60] ss:$40 sps:$4 sm:$0xff]  }
 0x3ea   : > { %6293 = vmatprep.subr.bf16.mxu0 %v20197_v1  ;;  %v20257_v1 = vld [vmem:[#allocation9 + $0x1014] ss:$40 sps:$4 sm:$0xff]  }
 0x3ec   : > { %6253 = vmatpush2.bf16.msra.mxu1 %v20192_v46  ;;  %v20252_v46 = vld [vmem:[#allocation9 + $0xb10] ss:$40 sps:$4 sm:$0xff]  }
 0x3ed   : > { %6294 = vmatpush2.bf16.msra.mxu0 %v20195_v55  ;;  %6254 = vmatprep.subr.bf16.mxu1 %v20200_v56  ;;  %v20255_v55 = vld [vmem:[#allocation9 + $0x1010] ss:$40 sps:$4 sm:$0xff]   ;;  %v20260_v56 = vld [vmem:[#allocation9 + $0xac4] ss:$40 sps:$4 sm:$0xff]  }
 0x3ee   : > { %6295 = vmatprep.subr.bf16.mxu0 %v20203_v3  ;;  %v20263_v3 = vld [vmem:[#allocation9 + $0xfc4] ss:$40 sps:$4 sm:$0xff]  }
 0x3f0   : > { %6255 = vmatpush2.bf16.msra.mxu1 %v20198_v60  ;;  %v20258_v60 = vld [vmem:[#allocation9 + $0xac0] ss:$40 sps:$4 sm:$0xff]  }
 0x3f1   : > { %6296 = vmatpush2.bf16.msra.mxu0 %v20201_v9  ;;  %6256 = vmatprep.subr.bf16.mxu1 %v20206_v5  ;;  %v20261_v9 = vld [vmem:[#allocation9 + $0xfc0] ss:$40 sps:$4 sm:$0xff]   ;;  %v20266_v5 = vld [vmem:[#allocation9 + $0xa74] ss:$40 sps:$4 sm:$0xff]  }
 0x3f2   : > { %6297 = vmatprep.subr.bf16.mxu0 %v20209_v62  ;;  %v20269_v62 = vld [vmem:[#allocation9 + $0xf74] ss:$40 sps:$4 sm:$0xff]  }
 0x3f4   : > { %6257 = vmatpush2.bf16.msra.mxu1 %v20204_v42 }
 0x3f5   : > { %6298 = vmatpush2.bf16.msra.mxu0 %v20207_v6  ;;  %6258 = vmatprep.subr.bf16.mxu1 %v20212_v7  ;;  %v20264_v6 = vld [vmem:[#allocation9 + $0xa70] ss:$40 sps:$4 sm:$0xff]  }
 0x3f6   : > { %6299 = vmatprep.subr.bf16.mxu0 %v20215_v8  ;;  %v20267_v7 = vld [vmem:[#allocation9 + $0xf70] ss:$40 sps:$4 sm:$0xff]   ;;  %v20272_v8 = vld [vmem:[#allocation9 + $0xa24] ss:$40 sps:$4 sm:$0xff]  }
 0x3f8   : > { %6259 = vmatpush2.bf16.msra.mxu1 %v20210_v10 }
 0x3f9   : > { %6300 = vmatpush2.bf16.msra.mxu0 %v20213_v11  ;;  %6260 = vmatprep.subr.bf16.mxu1 %v20218_v13  ;;  %v20275_v11 = vld [vmem:[#allocation9 + $0xf24] ss:$40 sps:$4 sm:$0xff]  }
 0x3fa   : > { %6301 = vmatprep.subr.bf16.mxu0 %v20221_v50  ;;  %v20270_v50 = vld [vmem:[#allocation9 + $0xa20] ss:$40 sps:$4 sm:$0xff]  }
 0x3fc   : > { %6261 = vmatpush2.bf16.msra.mxu1 %v20216_v14  ;;  %v20273_v14 = vld [vmem:[#allocation9 + $0xf20] ss:$40 sps:$4 sm:$0xff]  }
 0x3fd   : > { %6302 = vmatpush2.bf16.msra.mxu0 %v20219_v15  ;;  %6262 = vmatprep.subr.bf16.mxu1 %v20224_v17  ;;  %v20278_v15 = vld [vmem:[#allocation9 + $0xed4] ss:$40 sps:$4 sm:$0xff]  }
 0x3fe   : > { %6303 = vmatprep.subr.bf16.mxu0 %v20227_v18  ;;  %v20281_v18 = vld [vmem:[#allocation9 + $0x13d4] ss:$40 sps:$4 sm:$0xff]  }
 0x400   : > { %6263 = vmatpush2.bf16.msra.mxu1 %v20222_v20  ;;  %v20276_v20 = vld [vmem:[#allocation9 + $0xed0] ss:$40 sps:$4 sm:$0xff]  }
 0x401   : > { %6304 = vmatpush2.bf16.msra.mxu0 %v20225_v29  ;;  %6314 = vmatprep.subr.bf16.mxu1 %v20230_v63  ;;  %v20279_v29 = vld [vmem:[#allocation9 + $0x13d0] ss:$40 sps:$4 sm:$0xff]   ;;  %v20284_v63 = vld [vmem:[#allocation9 + $0xe84] ss:$40 sps:$4 sm:$0xff]  }
 0x402   : > { %6355 = vmatprep.subr.bf16.mxu0 %v20233_v30  ;;  %v20287_v30 = vld [vmem:[#allocation9 + $0x1384] ss:$40 sps:$4 sm:$0xff]  }
 0x403   : > { %v6020_v33 = vpop.f32.mrf.mxu1  ;;  %6265 = vmatmul.mubr.bf16.vlgmr.msra.gmra.mxu1 %v22237_v4  ;;  %v20245_v4 = vld [vmem:[#allocation9 + $0x10b4] ss:$40 sps:$4 sm:$0xff]  }
 0x404   : > { %v22373_v37 = vadd.f32 %v6020_v33, %v22366_v27  ;;  %6306 = vmatmul.mubr.bf16.vlgmr.msra.gmra.mxu0 %v22233_v2  ;;  %6315 = vmatpush1.bf16.msra.mxu1 %v20228_v31  ;;  %v20240_v27 = vld [vmem:[#allocation9 + $0xbb0] ss:$40 sps:$4 sm:$0xff]   ;;  %v20282_v31 = vld [vmem:[#allocation9 + $0xe80] ss:$40 sps:$4 sm:$0xff]   ;;  %v20293_v33 = vld [vmem:[#allocation9 + $0x1334] ss:$40 sps:$4 sm:$0xff]  }
 0x405   : > { %6346 = vmatprep.mubr.bf16.mxu1 %v22245_v16  ;;  %6356 = vmatpush1.bf16.msra.mxu0 %v20231_v32  ;;  %v6022_v40 = vpop.f32.mrf.mxu1  ;;  %v20248_v16 = vld [vmem:[#allocation9 + $0xb64] ss:$40 sps:$4 sm:$0xff]   ;;  %v20285_v32 = vld [vmem:[#allocation9 + $0x1380] ss:$40 sps:$4 sm:$0xff]  }
 0x406   : > { %6387 = vmatprep.mubr.bf16.mxu0 %v22247_v19  ;;  %v22379_v28 = vadd.f32 %v6022_v40, %v22369_v0  ;;  %6316 = vmatprep.subr.bf16.mxu1 %v20236_v58  ;;  %v20249_v19 = vld [vmem:[#allocation9 + $0x1060] ss:$40 sps:$4 sm:$0xff]   ;;  %v20254_v0 = vld [vmem:[#allocation9 + $0xb14] ss:$40 sps:$4 sm:$0xff]   ;;  %v20296_v40 = vld [vmem:[#allocation9 + $0xde4] ss:$40 sps:$4 sm:$0xff]  }
 0x407   : > { %v6024_v44 = vpop.f32.mrf.mxu1  ;;  %6357 = vmatprep.subr.bf16.mxu0 %v20239_v34  ;;  %v20290_v58 = vld [vmem:[#allocation9 + $0xe34] ss:$40 sps:$4 sm:$0xff]   ;;  %v20288_v34 = vld [vmem:[#allocation9 + $0xe30] ss:$40 sps:$4 sm:$0xff]  }
 0x408   : > { %6317 = vmatpush1.bf16.msra.mxu1 %v20234_v39  ;;  %v20291_v39 = vld [vmem:[#allocation9 + $0x1330] ss:$40 sps:$4 sm:$0xff]   ;;  %v20302_v44 = vld [vmem:[#allocation9 + $0xd94] ss:$40 sps:$4 sm:$0xff]   ;;  %21508 = vtanh.f32 %v22379_v28 }
 0x409   : > { %6358 = vmatpush1.bf16.msra.mxu0 %v20237_v43  ;;  %v6025_v2 = vpop.f32.mrf.mxu1  ;;  %6318 = vmatprep.subr.bf16.mxu1 %v20242_v36  ;;  %v20299_v43 = vld [vmem:[#allocation9 + $0x12e4] ss:$40 sps:$4 sm:$0xff]   ;;  %v20294_v36 = vld [vmem:[#allocation9 + $0xde0] ss:$40 sps:$4 sm:$0xff]   ;;  %21510 = vtanh.f32 %v22341_v35 }
 0x40a   : > { %6359 = vmatprep.subr.bf16.mxu0 %v20245_v4  ;;  %v20297_v4 = vld [vmem:[#allocation9 + $0x12e0] ss:$40 sps:$4 sm:$0xff]   ;;  %v20300_v2 = vld [vmem:[#allocation9 + $0xd90] ss:$40 sps:$4 sm:$0xff]  }
 0x40b   : > { %v20414_v28 = vld [vmem:[#allocation12 + $0x280] ss:$40 sps:$4 sm:$0xff]  }
 0x40c   : > { %6319 = vmatpush1.bf16.msra.mxu1 %v20240_v27  ;;  %v20305_v27 = vld [vmem:[#allocation9 + $0x1294] ss:$40 sps:$4 sm:$0xff]  }
 0x40d   : > { %6360 = vmatpush1.bf16.msra.mxu0 %v20243_v49  ;;  %6320 = vmatprep.subr.bf16.mxu1 %v20248_v16  ;;  %v20303_v49 = vld [vmem:[#allocation9 + $0x1290] ss:$40 sps:$4 sm:$0xff]   ;;  %v20308_v16 = vld [vmem:[#allocation9 + $0xd44] ss:$40 sps:$4 sm:$0xff]  }
 0x40e   : > { %6361 = vmatprep.subr.bf16.mxu0 %v20251_v52  ;;  %v20311_v52 = vld [vmem:[#allocation9 + $0x1244] ss:$40 sps:$4 sm:$0xff]  }
 0x40f   : > { %v20477_v35 = vld [vmem:[#allocation12 + $0xe60] ss:$40 sps:$4 sm:$0xff]  }
 0x410   : > { %6321 = vmatpush1.bf16.msra.mxu1 %v20246_v48  ;;  %v20306_v48 = vld [vmem:[#allocation9 + $0xd40] ss:$40 sps:$4 sm:$0xff]  }
 0x411   : > { %6362 = vmatpush1.bf16.msra.mxu0 %v20249_v19  ;;  %6322 = vmatprep.subr.bf16.mxu1 %v20254_v0  ;;  %v20309_v19 = vld [vmem:[#allocation9 + $0x1240] ss:$40 sps:$4 sm:$0xff]   ;;  %v20314_v0 = vld [vmem:[#allocation9 + $0xcf4] ss:$40 sps:$4 sm:$0xff]  }
 0x412   : > { %6363 = vmatprep.subr.bf16.mxu0 %v20257_v1  ;;  %v20317_v1 = vld [vmem:[#allocation9 + $0x11f4] ss:$40 sps:$4 sm:$0xff]  }
 0x414   : > { %6323 = vmatpush1.bf16.msra.mxu1 %v20252_v46  ;;  %v20312_v46 = vld [vmem:[#allocation9 + $0xcf0] ss:$40 sps:$4 sm:$0xff]  }
 0x415   : > { %6364 = vmatpush1.bf16.msra.mxu0 %v20255_v55  ;;  %6324 = vmatprep.subr.bf16.mxu1 %v20260_v56  ;;  %v20315_v55 = vld [vmem:[#allocation9 + $0x11f0] ss:$40 sps:$4 sm:$0xff]   ;;  %v20320_v56 = vld [vmem:[#allocation9 + $0xca4] ss:$40 sps:$4 sm:$0xff]  }
 0x416   : > { %6365 = vmatprep.subr.bf16.mxu0 %v20263_v3  ;;  %v20323_v3 = vld [vmem:[#allocation9 + $0x11a4] ss:$40 sps:$4 sm:$0xff]  }
 0x418   : > { %v22381_v42 = vpop.f32.mrf.mxu0  ;;  %6325 = vmatpush1.bf16.msra.mxu1 %v20258_v60  ;;  %v20318_v60 = vld [vmem:[#allocation9 + $0xca0] ss:$40 sps:$4 sm:$0xff]  }
 0x419   : > { %6366 = vmatpush1.bf16.msra.mxu0 %v20261_v9  ;;  %6326 = vmatprep.subr.bf16.mxu1 %v20266_v5  ;;  %v20326_v9 = vld [vmem:[#allocation9 + $0x1654] ss:$40 sps:$4 sm:$0xff]   ;;  %v1635_v5 = vrot.slane %v22348_v12, %v22252_v57 }
 0x41a   : > { %v22383_v10 = vpop.f32.mrf.mxu0  ;;  %6367 = vmatprep.subr.bf16.mxu0 %v20269_v62  ;;  %v20329_v62 = vld [vmem:[#allocation12 + $0x234] ss:$40 sps:$4 sm:$0xff]  }
 0x41c   : > { %v6065_v13 = vpop.f32.mrf.mxu0  ;;  %6327 = vmatpush1.bf16.msra.mxu1 %v20264_v6  ;;  %v1639_v6 = vrot.slane %v22348_v12, %v22219_v41  ;;  %v20330_v12 = vld [vmem:[#allocation9 + $0x1600] ss:$40 sps:$4 sm:$0xff]  }
 0x41d   : > { %6368 = vmatpush1.bf16.msra.mxu0 %v20267_v7  ;;  %6328 = vmatprep.subr.bf16.mxu1 %v20272_v8  ;;  %v20324_v7 = vld [vmem:[#allocation9 + $0x1650] ss:$40 sps:$4 sm:$0xff]   ;;  %v21503_v8 = vpop.eup %21502  ;;  %v6062_v13 = vadd.f32 %v22381_v42, %v1635_v5 }
 0x41e   : > { %v6066_v17 = vpop.f32.mrf.mxu0  ;;  %6369 = vmatprep.subr.bf16.mxu0 %v20275_v11  ;;  %v20327_v11 = vld [vmem:[#allocation12 + $0x230] ss:$40 sps:$4 sm:$0xff]   ;;  %v20377_v5 = vld [vmem:[#allocation12 + $0x4b4] ss:$40 sps:$4 sm:$0xff]  }
 0x41f   : > { %v22392_v17 = vpack.c.bf16 %v21503_v8, %v21503_v8  ;;  %v20383_v8 = vld [vmem:[#allocation12 + $0x464] ss:$40 sps:$4 sm:$0xff]  }
 0x420   : > { %6329 = vmatpush1.bf16.msra.mxu1 %v20270_v50  ;;  %v20332_v50 = vld [vmem:[#allocation9 + $0x1604] ss:$40 sps:$4 sm:$0xff]  }
 0x421   : > { %6370 = vmatpush1.bf16.msra.mxu0 %v20273_v14  ;;  %6330 = vmatprep.subr.bf16.mxu1 %v20278_v15  ;;  %v20335_v15 = vld [vmem:[#allocation12 + $0x1e4] ss:$40 sps:$4 sm:$0xff]  }
 0x422   : > { %6371 = vmatprep.subr.bf16.mxu0 %v20281_v18  ;;  %v6064_v18 = vadd.f32 %v22383_v10, %v1639_v6  ;;  %v20336_v10 = vld [vmem:[#allocation9 + $0x15b0] ss:$40 sps:$4 sm:$0xff]  }
 0x423   : > { %v20375_v6 = vld [vmem:[#allocation12 + $0x4b0] ss:$40 sps:$4 sm:$0xff]  }
 0x424   : > { %6331 = vmatpush2.bf16.msra.mxu1 %v20276_v20 }
 0x425   : > { %6372 = vmatpush2.bf16.msra.mxu0 %v20279_v29  ;;  %6332 = vmatprep.subr.bf16.mxu1 %v20284_v63  ;;  %v20333_v29 = vld [vmem:[#allocation12 + $0x1e0] ss:$40 sps:$4 sm:$0xff]  }
 0x426   : > { %6373 = vmatprep.subr.bf16.mxu0 %v20287_v30  ;;  %v20338_v63 = vld [vmem:[#allocation9 + $0x15b4] ss:$40 sps:$4 sm:$0xff]  }
 0x427   : > { %v20341_v30 = vld [vmem:[#allocation12 + $0x194] ss:$40 sps:$4 sm:$0xff]  }
 0x428   : > { %6333 = vmatpush2.bf16.msra.mxu1 %v20282_v31 }
 0x429   : > { %6374 = vmatpush2.bf16.msra.mxu0 %v20285_v32  ;;  %6334 = vmatprep.subr.bf16.mxu1 %v20290_v58  ;;  %v20339_v32 = vld [vmem:[#allocation12 + $0x190] ss:$40 sps:$4 sm:$0xff]  }
 0x42a   : > { %6375 = vmatprep.subr.bf16.mxu0 %v20293_v33  ;;  %v20344_v58 = vld [vmem:[#allocation9 + $0x1564] ss:$40 sps:$4 sm:$0xff]   ;;  %v20342_v33 = vld [vmem:[#allocation9 + $0x1560] ss:$40 sps:$4 sm:$0xff]  }
 0x42c   : > { %6335 = vmatpush2.bf16.msra.mxu1 %v20288_v34  ;;  %v20345_v34 = vld [vmem:[#allocation12 + $0x140] ss:$40 sps:$4 sm:$0xff]  }
 0x42d   : > { %6376 = vmatpush2.bf16.msra.mxu0 %v20291_v39  ;;  %6336 = vmatprep.subr.bf16.mxu1 %v20296_v40  ;;  %v20350_v39 = vld [vmem:[#allocation9 + $0x1514] ss:$40 sps:$4 sm:$0xff]  }
 0x42e   : > { %6377 = vmatprep.subr.bf16.mxu0 %v20299_v43  ;;  %v20353_v40 = vld [vmem:[#allocation12 + $0xf4] ss:$40 sps:$4 sm:$0xff]  }
 0x42f   : > { %v20348_v43 = vld [vmem:[#allocation9 + $0x1510] ss:$40 sps:$4 sm:$0xff]  }
 0x430   : > { %6337 = vmatpush2.bf16.msra.mxu1 %v20294_v36  ;;  %v20351_v36 = vld [vmem:[#allocation12 + $0xf0] ss:$40 sps:$4 sm:$0xff]  }
 0x431   : > { %6378 = vmatpush2.bf16.msra.mxu0 %v20297_v4  ;;  %6338 = vmatprep.subr.bf16.mxu1 %v20302_v44  ;;  %v20356_v4 = vld [vmem:[#allocation9 + $0x14c4] ss:$40 sps:$4 sm:$0xff]  }
 0x432   : > { %6379 = vmatprep.subr.bf16.mxu0 %v20305_v27  ;;  %v20359_v44 = vld [vmem:[#allocation12 + $0xa4] ss:$40 sps:$4 sm:$0xff]  }
 0x433   : > { %v20354_v27 = vld [vmem:[#allocation9 + $0x14c0] ss:$40 sps:$4 sm:$0xff]  }
 0x434   : > { %6339 = vmatpush2.bf16.msra.mxu1 %v20300_v2  ;;  %v20357_v2 = vld [vmem:[#allocation12 + $0xa0] ss:$40 sps:$4 sm:$0xff]  }
 0x435   : > { %6380 = vmatpush2.bf16.msra.mxu0 %v20303_v49  ;;  %6340 = vmatprep.subr.bf16.mxu1 %v20308_v16  ;;  %v20362_v49 = vld [vmem:[#allocation9 + $0x1474] ss:$40 sps:$4 sm:$0xff]  }
 0x436   : > { %6381 = vmatprep.subr.bf16.mxu0 %v20311_v52  ;;  %v20365_v16 = vld [vmem:[#allocation12 + $0x54] ss:$40 sps:$4 sm:$0xff]  }
 0x438   : > { %6341 = vmatpush2.bf16.msra.mxu1 %v20306_v48  ;;  %v20360_v48 = vld [vmem:[#allocation9 + $0x1470] ss:$40 sps:$4 sm:$0xff]  }
 0x439   : > { %6382 = vmatpush2.bf16.msra.mxu0 %v20309_v19  ;;  %6342 = vmatprep.subr.bf16.mxu1 %v20314_v0  ;;  %v20363_v0 = vld [vmem:[#allocation12 + $0x50] ss:$40 sps:$4 sm:$0xff]  }
 0x43a   : > { %6383 = vmatprep.subr.bf16.mxu0 %v20317_v1  ;;  %v20368_v1 = vld [vmem:[#allocation9 + $0x1424] ss:$40 sps:$4 sm:$0xff]  }
 0x43c   : > { %6343 = vmatpush2.bf16.msra.mxu1 %v20312_v46 }
 0x43d   : > { %6384 = vmatpush2.bf16.msra.mxu0 %v20315_v55  ;;  %6344 = vmatprep.subr.bf16.mxu1 %v20320_v56  ;;  %v20371_v55 = vld [vmem:[#allocation12 + $0x4] ss:$40 sps:$4 sm:$0xff]  }
 0x43e   : > { %6385 = vmatprep.subr.bf16.mxu0 %v20323_v3  ;;  %v20366_v3 = vld [vmem:[#allocation9 + $0x1420] ss:$40 sps:$4 sm:$0xff]  }
 0x440   : > { %6345 = vmatpush2.bf16.msra.mxu1 %v20318_v60  ;;  %v20369_v60 = vld [vmem:[#allocation12] ss:$40 sps:$4 sm:$0xff]  }
 0x441   : > { %6386 = vmatpush2.bf16.msra.mxu0 %v20321_v61  ;;  %6396 = vmatprep.subr.bf16.mxu1 %v20326_v9  ;;  %v20374_v61 = vld [vmem:[#allocation9 + $0x1744] ss:$40 sps:$4 sm:$0xff]  }
 0x442   : > { %11014 = vmatprep.subr.bf16.mxu0 %v20329_v62  ;;  %v20372_v62 = vld [vmem:[#allocation9 + $0x1740] ss:$40 sps:$4 sm:$0xff]  }
 0x443   : > { %v6102_v14 = vpop.f32.mrf.mxu1  ;;  %6347 = vmatmul.mubr.bf16.vlgmr.msra.gmra.mxu1 %v22270_v47 }
 0x444   : > { %v6103_v20 = vadd.f32 %v6102_v14, %v6062_v13  ;;  %6388 = vmatmul.mubr.bf16.vlgmr.msra.gmra.mxu0 %v22268_v45  ;;  %6397 = vmatpush1.bf16.msra.mxu1 %v20324_v7  ;;  %v20380_v7 = vld [vmem:[#allocation9 + $0x16f4] ss:$40 sps:$4 sm:$0xff]  }
 0x445   : > { %17710 = vmatprep.mubr.msk.bf16.mxu1 %vm5408_vm2, %v22273_v54  ;;  %11015 = vmatpush1.bf16.msra.mxu0 %v20327_v11  ;;  %v6104_v42 = vpop.f32.mrf.mxu1  ;;  %v20347_v54 = vld [vmem:[#allocation12 + $0x144] ss:$40 sps:$4 sm:$0xff]   ;;  %v20378_v11 = vld [vmem:[#allocation9 + $0x16f0] ss:$40 sps:$4 sm:$0xff]  }
 0x446   : > { %11046 = vmatprep.mubr.bf16.mxu0 %v22392_v17  ;;  %v22399_v47 = vadd.f32 %v6104_v42, %v6064_v18  ;;  %6398 = vmatprep.subr.bf16.mxu1 %v20332_v50  ;;  %v20381_v13 = vld [vmem:[#allocation12 + $0x460] ss:$40 sps:$4 sm:$0xff]   ;;  %v20389_v14 = vld [vmem:[#allocation12 + $0x414] ss:$40 sps:$4 sm:$0xff]   ;;  %v20393_v42 = vld [vmem:[#allocation12 + $0x730] ss:$40 sps:$4 sm:$0xff]  }
 0x447   : > { %v6106_v31 = vpop.f32.mrf.mxu1  ;;  %11016 = vmatprep.subr.bf16.mxu0 %v20335_v15  ;;  %v20386_v50 = vld [vmem:[#allocation9 + $0x16a4] ss:$40 sps:$4 sm:$0xff]  }
 0x448   : > { %6399 = vmatpush1.bf16.msra.mxu1 %v20330_v12  ;;  %v20387_v15 = vld [vmem:[#allocation12 + $0x410] ss:$40 sps:$4 sm:$0xff]   ;;  %v20395_v18 = vld [vmem:[#allocation12 + $0x734] ss:$40 sps:$4 sm:$0xff]   ;;  %v21505_v12 = vpop.eup %21504 }
 0x449   : > { %11017 = vmatpush1.bf16.msra.mxu0 %v20333_v29  ;;  %v6107_v45 = vpop.f32.mrf.mxu1  ;;  %6400 = vmatprep.subr.bf16.mxu1 %v20338_v63  ;;  %v20390_v29 = vld [vmem:[#allocation12 + $0x3c0] ss:$40 sps:$4 sm:$0xff]   ;;  %v20401_v63 = vld [vmem:[#allocation12 + $0x6e4] ss:$40 sps:$4 sm:$0xff]   ;;  %v20398_v31 = vld [vmem:[#allocation12 + $0x374] ss:$40 sps:$4 sm:$0xff]  }
 0x44a   : > { %11018 = vmatprep.subr.bf16.mxu0 %v20341_v30  ;;  %v22406_v30 = vpack.c.bf16 %v21505_v12, %v21505_v12  ;;  %v20396_v45 = vld [vmem:[#allocation12 + $0x370] ss:$40 sps:$4 sm:$0xff]   ;;  %v20446_v12 = vld [vmem:[#allocation12 + $0x964] ss:$40 sps:$4 sm:$0xff]  }
 0x44c   : > { %6401 = vmatpush1.bf16.msra.mxu1 %v20336_v10  ;;  %v20399_v10 = vld [vmem:[#allocation12 + $0x6e0] ss:$40 sps:$4 sm:$0xff]  }
 0x44d   : > { %11019 = vmatpush1.bf16.msra.mxu0 %v20339_v32  ;;  %6402 = vmatprep.subr.bf16.mxu1 %v20344_v58  ;;  %v20407_v32 = vld [vmem:[#allocation12 + $0x694] ss:$40 sps:$4 sm:$0xff]   ;;  %v20404_v58 = vld [vmem:[#allocation12 + $0x324] ss:$40 sps:$4 sm:$0xff]  }
 0x44e   : > { %11020 = vmatprep.subr.bf16.mxu0 %v20347_v54  ;;  %v20405_v54 = vld [vmem:[#allocation12 + $0x690] ss:$40 sps:$4 sm:$0xff]  }
 0x450   : > { %6403 = vmatpush1.bf16.msra.mxu1 %v20342_v33  ;;  %v20402_v33 = vld [vmem:[#allocation12 + $0x320] ss:$40 sps:$4 sm:$0xff]  }
 0x451   : > { %11021 = vmatpush1.bf16.msra.mxu0 %v20345_v34  ;;  %6404 = vmatprep.subr.bf16.mxu1 %v20350_v39  ;;  %v20410_v34 = vld [vmem:[#allocation12 + $0x2d4] ss:$40 sps:$4 sm:$0xff]   ;;  %v20411_v39 = vld [vmem:[#allocation12 + $0x640] ss:$40 sps:$4 sm:$0xff]  }
 0x452   : > { %11022 = vmatprep.subr.bf16.mxu0 %v20353_v40  ;;  %v20408_v40 = vld [vmem:[#allocation12 + $0x2d0] ss:$40 sps:$4 sm:$0xff]  }
 0x454   : > { %6405 = vmatpush1.bf16.msra.mxu1 %v20348_v43  ;;  %v20419_v43 = vld [vmem:[#allocation12 + $0x5f4] ss:$40 sps:$4 sm:$0xff]  }
 0x455   : > { %11023 = vmatpush1.bf16.msra.mxu0 %v20351_v36  ;;  %6406 = vmatprep.subr.bf16.mxu1 %v20356_v4  ;;  %v20417_v36 = vld [vmem:[#allocation12 + $0x5f0] ss:$40 sps:$4 sm:$0xff]   ;;  %v20422_v4 = vld [vmem:[#allocation12 + $0x5a4] ss:$40 sps:$4 sm:$0xff]  }
 0x456   : > { %11024 = vmatprep.subr.bf16.mxu0 %v20359_v44  ;;  %v20425_v44 = vld [vmem:[#allocation12 + $0xc34] ss:$40 sps:$4 sm:$0xff]  }
 0x458   : > { %v6143_v52 = vpop.f32.mrf.mxu0  ;;  %6407 = vmatpush1.bf16.msra.mxu1 %v20354_v27  ;;  %v21507_v27 = vpop.eup %21506 }
 0x459   : > { %v22401_v19 = vadd.f32 %v6143_v52, %v6103_v20  ;;  %11025 = vmatpush1.bf16.msra.mxu0 %v20357_v2  ;;  %6408 = vmatprep.subr.bf16.mxu1 %v20362_v49  ;;  %v20392_v20 = vld [vmem:[#allocation12 + $0x3c4] ss:$40 sps:$4 sm:$0xff]   ;;  %v21509_v2 = vpop.eup %21508  ;;  %v20420_v49 = vld [vmem:[#allocation12 + $0x5a0] ss:$40 sps:$4 sm:$0xff]   ;;  %v22412_v52 = vpack.c.bf16 %v21507_v27, %v21507_v27  ;;  %v20476_v27 = vld [vmem:[#allocation12 + $0x7d4] ss:$40 sps:$4 sm:$0xff]  }
 0x45a   : > { %v22403_v46 = vpop.f32.mrf.mxu0  ;;  %11026 = vmatprep.subr.bf16.mxu0 %v20365_v16  ;;  %v20423_v16 = vld [vmem:[#allocation12 + $0xc30] ss:$40 sps:$4 sm:$0xff]  }
 0x45c   : > { %v6147_v56 = vpop.f32.mrf.mxu0  ;;  %6409 = vmatpush1.bf16.msra.mxu1 %v20360_v48  ;;  %v20428_v48 = vld [vmem:[#allocation12 + $0x554] ss:$40 sps:$4 sm:$0xff]  }
 0x45d   : > { %11027 = vmatpush1.bf16.msra.mxu0 %v20363_v0  ;;  %6410 = vmatprep.subr.bf16.mxu1 %v20368_v1  ;;  %v20431_v0 = vld [vmem:[#allocation12 + $0xbe4] ss:$40 sps:$4 sm:$0xff]   ;;  %v22414_v1 = vpack.c.bf16 %v21509_v2, %v21509_v2 }
 0x45e   : > { %v6148_v9 = vpop.f32.mrf.mxu0  ;;  %11028 = vmatprep.subr.bf16.mxu0 %v20371_v55  ;;  %v20479_v2 = vld [vmem:[#allocation12 + $0xe64] ss:$40 sps:$4 sm:$0xff]  }
 0x45f   : > { %v20429_v9 = vld [vmem:[#allocation12 + $0xbe0] ss:$40 sps:$4 sm:$0xff]  }
 0x460   : > { %6411 = vmatpush1.bf16.msra.mxu1 %v20366_v3 }
 0x461   : > { %11029 = vmatpush1.bf16.msra.mxu0 %v20369_v60  ;;  %6422 = vmatprep.subr.bf16.mxu1 %v20374_v61  ;;  %v20426_v60 = vld [vmem:[#allocation12 + $0x550] ss:$40 sps:$4 sm:$0xff]  }
 0x462   : > { %11030 = vmatprep.subr.bf16.mxu0 %v20377_v5  ;;  %v20434_v5 = vld [vmem:[#allocation12 + $0x504] ss:$40 sps:$4 sm:$0xff]  }
 0x464   : > { %6423 = vmatpush2.bf16.msra.mxu1 %v20372_v62 }
 0x465   : > { %11031 = vmatpush2.bf16.msra.mxu0 %v20375_v6  ;;  %6424 = vmatprep.subr.bf16.mxu1 %v20380_v7  ;;  %v20437_v7 = vld [vmem:[#allocation12 + $0xb94] ss:$40 sps:$4 sm:$0xff]  }
 0x466   : > { %11032 = vmatprep.subr.bf16.mxu0 %v20383_v8 }
 0x468   : > { %6425 = vmatpush2.bf16.msra.mxu1 %v20378_v11 }
 0x469   : > { %11033 = vmatpush2.bf16.msra.mxu0 %v20381_v13  ;;  %6426 = vmatprep.subr.bf16.mxu1 %v20386_v50  ;;  %v20435_v50 = vld [vmem:[#allocation12 + $0xb90] ss:$40 sps:$4 sm:$0xff]  }
 0x46a   : > { %11034 = vmatprep.subr.bf16.mxu0 %v20389_v14  ;;  %v20440_v14 = vld [vmem:[#allocation12 + $0x9b4] ss:$40 sps:$4 sm:$0xff]  }
 0x46c   : > { %6427 = vmatpush2.bf16.msra.mxu1 %v20384_v22 }
 0x46d   : > { %11035 = vmatpush2.bf16.msra.mxu0 %v20387_v15  ;;  %11055 = vmatprep.subr.bf16.mxu1 %v20395_v18  ;;  %v20443_v15 = vld [vmem:[#allocation12 + $0xb44] ss:$40 sps:$4 sm:$0xff]   ;;  %v20438_v18 = vld [vmem:[#allocation12 + $0x9b0] ss:$40 sps:$4 sm:$0xff]  }
 0x46e   : > { %11036 = vmatprep.subr.bf16.mxu0 %v20392_v20  ;;  %v20441_v20 = vld [vmem:[#allocation12 + $0xb40] ss:$40 sps:$4 sm:$0xff]  }
 0x46f   : > { %6429 = vmatmul.mubr.bf16.vlgmr.msra.gmra.mxu1 %v22282_v51  ;;  %v20413_v51 = vld [vmem:[#allocation12 + $0x644] ss:$40 sps:$4 sm:$0xff]  }
 0x470   : > { %11056 = vmatpush1.bf16.msra.mxu1 %v20393_v42  ;;  %11087 = vmatprep.mubr.bf16.mxu1 %v22406_v30  ;;  %v20449_v42 = vld [vmem:[#allocation12 + $0xaf4] ss:$40 sps:$4 sm:$0xff]  }
 0x471   : > { %11037 = vmatpush2.bf16.msra.mxu0 %v20390_v29  ;;  %11057 = vmatprep.subr.bf16.mxu1 %v20401_v63  ;;  %v20444_v29 = vld [vmem:[#allocation12 + $0x960] ss:$40 sps:$4 sm:$0xff]   ;;  %v20447_v63 = vld [vmem:[#allocation12 + $0xaf0] ss:$40 sps:$4 sm:$0xff]  }
 0x472   : > { %11038 = vmatprep.subr.bf16.mxu0 %v20398_v31  ;;  %v20452_v31 = vld [vmem:[#allocation12 + $0x914] ss:$40 sps:$4 sm:$0xff]  }
 0x474   : > { %11058 = vmatpush1.bf16.msra.mxu1 %v20399_v10  ;;  %v20455_v10 = vld [vmem:[#allocation12 + $0xaa4] ss:$40 sps:$4 sm:$0xff]  }
 0x475   : > { %11039 = vmatpush2.bf16.msra.mxu0 %v20396_v45  ;;  %11059 = vmatprep.subr.bf16.mxu1 %v20407_v32  ;;  %v6146_v45 = vadd.f32 %v22403_v46, %v22399_v47  ;;  %v20450_v32 = vld [vmem:[#allocation12 + $0x910] ss:$40 sps:$4 sm:$0xff]   ;;  %v20465_v46 = vld [vmem:[#allocation12 + $0xa00] ss:$40 sps:$4 sm:$0xff]  }
 0x476   : > { %11040 = vmatprep.subr.bf16.mxu0 %v20404_v58  ;;  %v20453_v58 = vld [vmem:[#allocation12 + $0xaa0] ss:$40 sps:$4 sm:$0xff]   ;;  %v20462_v47 = vld [vmem:[#allocation12 + $0x870] ss:$40 sps:$4 sm:$0xff]  }
 0x478   : > { %11060 = vmatpush1.bf16.msra.mxu1 %v20405_v54  ;;  %v20458_v54 = vld [vmem:[#allocation12 + $0x8c4] ss:$40 sps:$4 sm:$0xff]  }
 0x479   : > { %11041 = vmatpush2.bf16.msra.mxu0 %v20402_v33  ;;  %11061 = vmatprep.subr.bf16.mxu1 %v20413_v51  ;;  %v20461_v51 = vld [vmem:[#allocation12 + $0xa54] ss:$40 sps:$4 sm:$0xff]  }
 0x47a   : > { %11042 = vmatprep.subr.bf16.mxu0 %v20410_v34  ;;  %v20456_v34 = vld [vmem:[#allocation12 + $0x8c0] ss:$40 sps:$4 sm:$0xff]  }
 0x47c   : > { %11062 = vmatpush1.bf16.msra.mxu1 %v20411_v39  ;;  %v20459_v39 = vld [vmem:[#allocation12 + $0xa50] ss:$40 sps:$4 sm:$0xff]  }
 0x47d   : > { %11043 = vmatpush2.bf16.msra.mxu0 %v20408_v40  ;;  %11063 = vmatprep.subr.bf16.mxu1 %v20419_v43  ;;  %v20464_v40 = vld [vmem:[#allocation12 + $0x874] ss:$40 sps:$4 sm:$0xff]  }
 0x47e   : > { %11044 = vmatprep.subr.bf16.mxu0 %v20416_v53  ;;  %v20467_v53 = vld [vmem:[#allocation12 + $0xa04] ss:$40 sps:$4 sm:$0xff]  }
 0x480   : > { %11064 = vmatpush1.bf16.msra.mxu1 %v20417_v36  ;;  %v20470_v36 = vld [vmem:[#allocation12 + $0x824] ss:$40 sps:$4 sm:$0xff]  }
 0x481   : > { %11045 = vmatpush2.bf16.msra.mxu0 %v20414_v28  ;;  %11065 = vmatprep.subr.bf16.mxu1 %v20422_v4  ;;  %v20473_v28 = vld [vmem:[#allocation12 + $0xeb4] ss:$40 sps:$4 sm:$0xff]   ;;  %v20468_v4 = vld [vmem:[#allocation12 + $0x820] ss:$40 sps:$4 sm:$0xff]  }
 0x482   : > { %11096 = vmatprep.subr.bf16.mxu0 %v20425_v44  ;;  %v20471_v44 = vld [vmem:[#allocation12 + $0xeb0] ss:$40 sps:$4 sm:$0xff]  }
 0x483   : > { %v6184_v55 = vpop.f32.mrf.mxu1 }
 0x484   : > { %v6185_v56 = vadd.f32 %v6184_v55, %v22401_v19  ;;  %v6225_v3 = vpop.f32.mrf.mxu0  ;;  %11047 = vmatmul.mubr.bf16.vlgmr.msra.gmra.mxu0 %v22412_v52  ;;  %11066 = vmatpush1.bf16.msra.mxu1 %v20420_v49  ;;  %v20432_v19 = vld [vmem:[#allocation12 + $0x500] ss:$40 sps:$4 sm:$0xff]   ;;  %v20474_v49 = vld [vmem:[#allocation12 + $0x7d0] ss:$40 sps:$4 sm:$0xff]  }
 0x485   : > { %11097 = vmatpush1.bf16.msra.mxu0 %v20423_v16  ;;  %11128 = vmatprep.mubr.bf16.mxu0 %v22414_v1  ;;  %v6186_v61 = vpop.f32.mrf.mxu1  ;;  %v20482_v16 = vld [vmem:[#allocation12 + $0x784] ss:$40 sps:$4 sm:$0xff]   ;;  %v20483_v55 = vld [vmem:[#allocation12 + $0xe10] ss:$40 sps:$4 sm:$0xff]  }
 0x486   : > { %v22419_v62 = vadd.f32 %v6225_v3, %v6185_v56  ;;  %v6227_v6 = vpop.f32.mrf.mxu0  ;;  %11067 = vmatprep.subr.bf16.mxu1 %v20428_v48  ;;  %11098 = vmatprep.subr.bf16.mxu0 %v20431_v0  ;;  %v6187_v33 = vadd.f32 %v6186_v61, %v6146_v45  ;;  %v20485_v48 = vld [vmem:[#allocation12 + $0xe14] ss:$40 sps:$4 sm:$0xff]   ;;  %v20480_v0 = vld [vmem:[#allocation12 + $0x780] ss:$40 sps:$4 sm:$0xff]   ;;  %v21511_v3 = vpop.eup %21510  ;;  %v20518_v45 = vld [vmem:[#allocation12 + $0xfa4] ss:$40 sps:$4 sm:$0xff]  }
 0x487   : > { %v6188_v8 = vpop.f32.mrf.mxu1  ;;  %v20491_v56 = vld [vmem:[#allocation12 + $0x1134] ss:$40 sps:$4 sm:$0xff]  }
 0x488   : > { %v6229_v11 = vpop.f32.mrf.mxu0  ;;  %11068 = vmatpush1.bf16.msra.mxu1 %v20426_v60  ;;  %v6228_v43 = vadd.f32 %v6227_v6, %v6187_v33  ;;  %v20488_v60 = vld [vmem:[#allocation12 + $0xdc4] ss:$40 sps:$4 sm:$0xff]   ;;  %v20486_v6 = vld [vmem:[#allocation12 + $0xdc0] ss:$40 sps:$4 sm:$0xff]  }
 0x489   : > { %11099 = vmatpush1.bf16.msra.mxu0 %v20429_v9  ;;  %v6189_v13 = vpop.f32.mrf.mxu1  ;;  %11069 = vmatprep.subr.bf16.mxu1 %v20434_v5  ;;  %v20489_v9 = vld [vmem:[#allocation12 + $0x1130] ss:$40 sps:$4 sm:$0xff]   ;;  %v22424_v5 = vpack.c.bf16 %v21511_v3, %v21511_v3  ;;  %v20494_v11 = vld [vmem:[#allocation12 + $0xd74] ss:$40 sps:$4 sm:$0xff]   ;;  %v20516_v33 = vld [vmem:[#allocation12 + $0xfa0] ss:$40 sps:$4 sm:$0xff]  }
 0x48a   : > { %v6230_v22 = vpop.f32.mrf.mxu0  ;;  %11100 = vmatprep.subr.bf16.mxu0 %v20437_v7  ;;  %21512 = vtanh.f32 %v6228_v43  ;;  %v20497_v7 = vld [vmem:[#allocation12 + $0x10e4] ss:$40 sps:$4 sm:$0xff]   ;;  %v20492_v13 = vld [vmem:[#allocation12 + $0xd70] ss:$40 sps:$4 sm:$0xff]   ;;  %v20527_v3 = vld [vmem:[#allocation12 + $0x13b4] ss:$40 sps:$4 sm:$0xff]  }
 0x48b   : > { %21514 = vtanh.f32 %v22373_v37  ;;  %v20501_v22 = vld [vmem:[#allocation12 + $0x1090] ss:$40 sps:$4 sm:$0xff]   ;;  %v20590_v43 = vld [vmem:[#allocation12 + $0x15e4] ss:$40 sps:$4 sm:$0xff]  }
 0x48c   : > { %11070 = vmatpush1.bf16.msra.mxu1 %v20432_v19  ;;  %v20495_v19 = vld [vmem:[#allocation12 + $0x10e0] ss:$40 sps:$4 sm:$0xff]   ;;  %v20513_v37 = vld [vmem:[#allocation12 + $0xff0] ss:$40 sps:$4 sm:$0xff]   ;;  %21516 = vtanh.f32 %v22419_v62 }
 0x48d   : > { %11101 = vmatpush1.bf16.msra.mxu0 %v20435_v50  ;;  %11071 = vmatprep.subr.bf16.mxu1 %v20440_v14  ;;  %v20503_v50 = vld [vmem:[#allocation12 + $0x1094] ss:$40 sps:$4 sm:$0xff]   ;;  %v20500_v14 = vld [vmem:[#allocation12 + $0xd24] ss:$40 sps:$4 sm:$0xff]   ;;  %v20636_v62 = vld [vmem:[#allocation12 + $0x16d0] ss:$40 sps:$4 sm:$0xff]  }
 0x48e   : > { %11102 = vmatprep.subr.bf16.mxu0 %v20443_v15  ;;  %v20498_v15 = vld [vmem:[#allocation12 + $0xd20] ss:$40 sps:$4 sm:$0xff]  }
 0x490   : > { %11072 = vmatpush2.bf16.msra.mxu1 %v20438_v18  ;;  %v20509_v18 = vld [vmem:[#allocation12 + $0x1044] ss:$40 sps:$4 sm:$0xff]  }
 0x491   : > { %11103 = vmatpush1.bf16.msra.mxu0 %v20441_v20  ;;  %11073 = vmatprep.subr.bf16.mxu1 %v20446_v12  ;;  %v20506_v20 = vld [vmem:[#allocation12 + $0xcd4] ss:$40 sps:$4 sm:$0xff]   ;;  %v20507_v12 = vld [vmem:[#allocation12 + $0x1040] ss:$40 sps:$4 sm:$0xff]  }
 0x492   : > { %11104 = vmatprep.subr.bf16.mxu0 %v20449_v42  ;;  %v20504_v42 = vld [vmem:[#allocation12 + $0xcd0] ss:$40 sps:$4 sm:$0xff]  }
 0x494   : > { %11074 = vmatpush2.bf16.msra.mxu1 %v20444_v29  ;;  %v20515_v29 = vld [vmem:[#allocation12 + $0xff4] ss:$40 sps:$4 sm:$0xff]  }
 0x495   : > { %11105 = vmatpush1.bf16.msra.mxu0 %v20447_v63  ;;  %11075 = vmatprep.subr.bf16.mxu1 %v20452_v31  ;;  %v20512_v63 = vld [vmem:[#allocation12 + $0xc84] ss:$40 sps:$4 sm:$0xff]   ;;  %v20510_v31 = vld [vmem:[#allocation12 + $0xc80] ss:$40 sps:$4 sm:$0xff]  }
 0x496   : > { %11106 = vmatprep.subr.bf16.mxu0 %v20455_v10  ;;  %v1605_v10 = vld [vmem:[#allocation11 + $0x8] sm:$0x3] }
 0x497   : > { %v21513_v61 = vpop.eup %21512 }
 0x498   : > { %11076 = vmatpush2.bf16.msra.mxu1 %v20450_v32  ;;  %v22426_v8 = vpack.c.bf16 %v21513_v61, %v21513_v61  ;;  %v20584_v32 = vld [vmem:[#allocation12 + $0x1634] ss:$40 sps:$4 sm:$0xff]  }
 0x499   : > { %11107 = vmatpush1.bf16.msra.mxu0 %v20453_v58  ;;  %11077 = vmatprep.subr.bf16.mxu1 %v20458_v54  ;;  %v21515_v58 = vpop.eup %21514  ;;  %v1643_v54 = vrot.slane %v1605_v10, %v22196_v23 }
 0x49a   : > { %11108 = vmatprep.subr.bf16.mxu0 %v20461_v51  ;;  %v20521_v51 = vld [vmem:[#allocation12 + $0xf54] ss:$40 sps:$4 sm:$0xff]  }
 0x49c   : > { %11078 = vmatpush2.bf16.msra.mxu1 %v20456_v34  ;;  %v20582_v34 = vld [vmem:[#allocation12 + $0x1630] ss:$40 sps:$4 sm:$0xff]  }
 0x49d   : > { %11109 = vmatpush1.bf16.msra.mxu0 %v20459_v39  ;;  %11079 = vmatprep.subr.bf16.mxu1 %v20464_v40  ;;  %v22432_v39 = vpack.c.bf16 %v21515_v58, %v21515_v58  ;;  %v1647_v40 = vrot.slane %v1605_v10, %v22202_v25  ;;  %v20542_v10 = vld [vmem:[#allocation12 + $0x1224] ss:$40 sps:$4 sm:$0xff]   ;;  %v20540_v58 = vld [vmem:[#allocation12 + $0x1220] ss:$40 sps:$4 sm:$0xff]  }
 0x49e   : > { %11110 = vmatprep.subr.bf16.mxu0 %v20467_v53 }
 0x4a0   : > { %11080 = vmatpush2.bf16.msra.mxu1 %v20462_v47 }
 0x4a1   : > { %11111 = vmatpush1.bf16.msra.mxu0 %v20465_v46  ;;  %11081 = vmatprep.subr.bf16.mxu1 %v20470_v36  ;;  %v20519_v36 = vld [vmem:[#allocation12 + $0xf50] ss:$40 sps:$4 sm:$0xff]  }
 0x4a2   : > { %11112 = vmatprep.subr.bf16.mxu0 %v20473_v28 }
 0x4a4   : > { %11082 = vmatpush2.bf16.msra.mxu1 %v20468_v4  ;;  %v20524_v4 = vld [vmem:[#allocation12 + $0xf04] ss:$40 sps:$4 sm:$0xff]  }
 0x4a5   : > { %11113 = vmatpush2.bf16.msra.mxu0 %v20471_v44  ;;  %11083 = vmatprep.subr.bf16.mxu1 %v20476_v27  ;;  %v20588_v44 = vld [vmem:[#allocation12 + $0x15e0] ss:$40 sps:$4 sm:$0xff]  }
 0x4a6   : > { %11114 = vmatprep.subr.bf16.mxu0 %v20479_v2 }
 0x4a8   : > { %11084 = vmatpush2.bf16.msra.mxu1 %v20474_v49 }
 0x4a9   : > { %11115 = vmatpush2.bf16.msra.mxu0 %v20477_v35  ;;  %11085 = vmatprep.subr.bf16.mxu1 %v20482_v16  ;;  %v20596_v35 = vld [vmem:[#allocation12 + $0x1594] ss:$40 sps:$4 sm:$0xff]  }
 0x4aa   : > { %11116 = vmatprep.subr.bf16.mxu0 %v20485_v48 }
 0x4ac   : > { %11086 = vmatpush2.bf16.msra.mxu1 %v20480_v0 }
 0x4ad   : > { %11117 = vmatpush2.bf16.msra.mxu0 %v20483_v55  ;;  %11137 = vmatprep.subr.bf16.mxu1 %v20491_v56  ;;  %v20522_v55 = vld [vmem:[#allocation12 + $0xf00] ss:$40 sps:$4 sm:$0xff]  }
 0x4ae   : > { %11118 = vmatprep.subr.bf16.mxu0 %v20488_v60  ;;  %v20594_v60 = vld [vmem:[#allocation12 + $0x1590] ss:$40 sps:$4 sm:$0xff]  }
 0x4af   : > { %11088 = vmatmul.mubr.bf16.vlgmr.msra.gmra.mxu1 %v22424_v5 }
 0x4b0   : > { %11138 = vmatpush1.bf16.msra.mxu1 %v20489_v9  ;;  %11169 = vmatprep.mubr.bf16.mxu1 %v22426_v8  ;;  %v20602_v9 = vld [vmem:[#allocation12 + $0x1544] ss:$40 sps:$4 sm:$0xff]  }
 0x4b1   : > { %11119 = vmatpush2.bf16.msra.mxu0 %v20486_v6  ;;  %11139 = vmatprep.subr.bf16.mxu1 %v20497_v7  ;;  %v20525_v6 = vld [vmem:[#allocation12 + $0x13b0] ss:$40 sps:$4 sm:$0xff]   ;;  %v20530_v7 = vld [vmem:[#allocation12 + $0x1364] ss:$40 sps:$4 sm:$0xff]  }
 0x4b2   : > { %11120 = vmatprep.subr.bf16.mxu0 %v20494_v11  ;;  %v20600_v11 = vld [vmem:[#allocation12 + $0x1540] ss:$40 sps:$4 sm:$0xff]  }
 0x4b4   : > { %11140 = vmatpush1.bf16.msra.mxu1 %v20495_v19  ;;  %v20608_v19 = vld [vmem:[#allocation12 + $0x14f4] ss:$40 sps:$4 sm:$0xff]  }
 0x4b5   : > { %11121 = vmatpush2.bf16.msra.mxu0 %v20492_v13  ;;  %11141 = vmatprep.subr.bf16.mxu1 %v20503_v50  ;;  %v20528_v13 = vld [vmem:[#allocation12 + $0x1360] ss:$40 sps:$4 sm:$0xff]   ;;  %v20533_v50 = vld [vmem:[#allocation12 + $0x1314] ss:$40 sps:$4 sm:$0xff]  }
 0x4b6   : > { %11122 = vmatprep.subr.bf16.mxu0 %v20500_v14  ;;  %v20606_v14 = vld [vmem:[#allocation12 + $0x14f0] ss:$40 sps:$4 sm:$0xff]  }
 0x4b8   : > { %11142 = vmatpush1.bf16.msra.mxu1 %v20501_v22  ;;  %v20614_v22 = vld [vmem:[#allocation12 + $0x14a4] ss:$40 sps:$4 sm:$0xff]  }
 0x4b9   : > { %11123 = vmatpush2.bf16.msra.mxu0 %v20498_v15  ;;  %11143 = vmatprep.subr.bf16.mxu1 %v20509_v18  ;;  %v20531_v15 = vld [vmem:[#allocation12 + $0x1310] ss:$40 sps:$4 sm:$0xff]   ;;  %v20536_v18 = vld [vmem:[#allocation12 + $0x12c4] ss:$40 sps:$4 sm:$0xff]  }
 0x4ba   : > { %11124 = vmatprep.subr.bf16.mxu0 %v20506_v20  ;;  %v20612_v20 = vld [vmem:[#allocation12 + $0x14a0] ss:$40 sps:$4 sm:$0xff]  }
 0x4bc   : > { %11144 = vmatpush1.bf16.msra.mxu1 %v20507_v12  ;;  %v20620_v12 = vld [vmem:[#allocation12 + $0x1454] ss:$40 sps:$4 sm:$0xff]  }
 0x4bd   : > { %11125 = vmatpush2.bf16.msra.mxu0 %v20504_v42  ;;  %11145 = vmatprep.subr.bf16.mxu1 %v20515_v29  ;;  %v20534_v42 = vld [vmem:[#allocation12 + $0x12c0] ss:$40 sps:$4 sm:$0xff]   ;;  %v20539_v29 = vld [vmem:[#allocation12 + $0x1274] ss:$40 sps:$4 sm:$0xff]  }
 0x4be   : > { %11126 = vmatprep.subr.bf16.mxu0 %v20512_v63  ;;  %v20618_v63 = vld [vmem:[#allocation12 + $0x1450] ss:$40 sps:$4 sm:$0xff]  }
 0x4c0   : > { %11146 = vmatpush1.bf16.msra.mxu1 %v20513_v37  ;;  %v20626_v37 = vld [vmem:[#allocation12 + $0x1404] ss:$40 sps:$4 sm:$0xff]  }
 0x4c1   : > { %11127 = vmatpush2.bf16.msra.mxu0 %v20510_v31  ;;  %11147 = vmatprep.subr.bf16.mxu1 %v20518_v45  ;;  %v20537_v31 = vld [vmem:[#allocation12 + $0x1270] ss:$40 sps:$4 sm:$0xff]   ;;  %v20624_v45 = vld [vmem:[#allocation12 + $0x1400] ss:$40 sps:$4 sm:$0xff]  }
 0x4c2   : > { %11178 = vmatprep.subr.bf16.mxu0 %v20584_v32  ;;  %v20632_v32 = vld [vmem:[#allocation12 + $0x1724] ss:$40 sps:$4 sm:$0xff]  }
 0x4c3   : > { %v6266_v53 = vpop.f32.mrf.mxu1 }
 0x4c4   : > { %v6267_v47 = vadd.f32 %v6266_v53, %v1643_v54  ;;  %v6307_v46 = vpop.f32.mrf.mxu0  ;;  %11129 = vmatmul.mubr.bf16.vlgmr.msra.gmra.mxu0 %v22432_v39  ;;  %11148 = vmatpush1.bf16.msra.mxu1 %v20516_v33  ;;  %v20545_v54 = vld [vmem:[#allocation12 + $0x11d4] ss:$40 sps:$4 sm:$0xff]   ;;  %v20630_v33 = vld [vmem:[#allocation12 + $0x1720] ss:$40 sps:$4 sm:$0xff]  }
 0x4c5   : > { %v6268_v28 = vpop.f32.mrf.mxu1  ;;  %11149 = vmatprep.subr.bf16.mxu1 %v20521_v51  ;;  %11179 = vmatpush1.bf16.msra.mxu0 %v20582_v34  ;;  %v20638_v51 = vld [vmem:[#allocation12 + $0x16d4] ss:$40 sps:$4 sm:$0xff]   ;;  %v20543_v34 = vld [vmem:[#allocation12 + $0x11d0] ss:$40 sps:$4 sm:$0xff]   ;;  %v20546_v53 = vld [vmem:[#allocation12 + $0x1180] ss:$40 sps:$4 sm:$0xff]  }
 0x4c6   : > { %v22436_v27 = vadd.f32 %v6307_v46, %v6267_v47  ;;  %v6269_v2 = vadd.f32 %v6268_v28, %v1647_v40  ;;  %v6309_v49 = vpop.f32.mrf.mxu0  ;;  %11180 = vmatprep.subr.bf16.mxu0 %v20590_v43  ;;  %v20548_v40 = vld [vmem:[#allocation12 + $0x1184] ss:$40 sps:$4 sm:$0xff]   ;;  %v20642_v46 = vld [vmem:[#allocation12 + $0x1680] ss:$40 sps:$4 sm:$0xff]  }
 0x4c7   : > { %v6270_v16 = vpop.f32.mrf.mxu1  ;;  %v20644_v43 = vld [vmem:[#allocation12 + $0x1684] ss:$40 sps:$4 sm:$0xff]  }
 0x4c8   : > { %v22438_v48 = vadd.f32 %v6309_v49, %v6269_v2  ;;  %v6311_v0 = vpop.f32.mrf.mxu0  ;;  %11150 = vmatpush1.bf16.msra.mxu1 %v20519_v36  ;;  %v20551_v47 = vld [vmem:[#allocation12 + $0x23c] ss:$40 sps:$4 sm:$0xff]   ;;  %v21517_v36 = vpop.eup %21516  ;;  %v20554_v2 = vld [vmem:[#allocation12 + $0x1ec] ss:$40 sps:$4 sm:$0xff]   ;;  %v20552_v49 = vld [vmem:[#allocation12 + $0x1e8] ss:$40 sps:$4 sm:$0xff]  }
 0x4c9   : > { %v6271_v56 = vpop.f32.mrf.mxu1  ;;  %11151 = vmatprep.subr.bf16.mxu1 %v20524_v4  ;;  %11181 = vmatpush1.bf16.msra.mxu0 %v20588_v44  ;;  %v20650_v28 = vld [vmem:[#allocation12 + $0x73c] ss:$40 sps:$4 sm:$0xff]   ;;  %v20549_v4 = vld [vmem:[#allocation12 + $0x238] ss:$40 sps:$4 sm:$0xff]   ;;  %v22441_v44 = vpack.c.bf16 %v21517_v36, %v21517_v36  ;;  %v20560_v0 = vld [vmem:[#allocation12 + $0x14c] ss:$40 sps:$4 sm:$0xff]  }
 0x4ca   : > { %v6312_v61 = vpop.f32.mrf.mxu0  ;;  %11182 = vmatprep.subr.bf16.mxu0 %v20596_v35  ;;  %v20557_v35 = vld [vmem:[#allocation12 + $0x19c] ss:$40 sps:$4 sm:$0xff]   ;;  %v20555_v16 = vld [vmem:[#allocation12 + $0x198] ss:$40 sps:$4 sm:$0xff]   ;;  %v20623_v36 = vld [vmem:[#allocation12 + $0xbec] ss:$40 sps:$4 sm:$0xff]  }
 0x4cb   : > { %v20563_v56 = vld [vmem:[#allocation12 + $0xfc] ss:$40 sps:$4 sm:$0xff]   ;;  %v20564_v61 = vld [vmem:[#allocation12 + $0xa8] ss:$40 sps:$4 sm:$0xff]  }
 0x4cc   : > { %11152 = vmatpush1.bf16.msra.mxu1 %v20522_v55  ;;  %v20558_v55 = vld [vmem:[#allocation12 + $0x148] ss:$40 sps:$4 sm:$0xff]  }
 0x4cd   : > { %11153 = vmatprep.subr.bf16.mxu1 %v20527_v3  ;;  %11183 = vmatpush1.bf16.msra.mxu0 %v20594_v60  ;;  %v20561_v3 = vld [vmem:[#allocation12 + $0xf8] ss:$40 sps:$4 sm:$0xff]   ;;  %v20566_v60 = vld [vmem:[#allocation12 + $0xac] ss:$40 sps:$4 sm:$0xff]  }
 0x4ce   : > { %11184 = vmatprep.subr.bf16.mxu0 %v20602_v9  ;;  %v20569_v9 = vld [vmem:[#allocation12 + $0x5c] ss:$40 sps:$4 sm:$0xff]  }
 0x4d0   : > { %11154 = vmatpush2.bf16.msra.mxu1 %v20525_v6 }
 0x4d1   : > { %11155 = vmatprep.subr.bf16.mxu1 %v20530_v7  ;;  %11185 = vmatpush1.bf16.msra.mxu0 %v20600_v11  ;;  %v20567_v11 = vld [vmem:[#allocation12 + $0x58] ss:$40 sps:$4 sm:$0xff]  }
 0x4d2   : > { %11186 = vmatprep.subr.bf16.mxu0 %v20608_v19 }
 0x4d4   : > { %11156 = vmatpush2.bf16.msra.mxu1 %v20528_v13  ;;  %v20572_v13 = vld [vmem:[#allocation12 + $0xc] ss:$40 sps:$4 sm:$0xff]  }
 0x4d5   : > { %11157 = vmatprep.subr.bf16.mxu1 %v20533_v50  ;;  %11187 = vmatpush1.bf16.msra.mxu0 %v20606_v14 }
 0x4d6   : > { %11188 = vmatprep.subr.bf16.mxu0 %v20614_v22 }
 0x4d8   : > { %11158 = vmatpush2.bf16.msra.mxu1 %v20531_v15  ;;  %v20570_v15 = vld [vmem:[#allocation12 + $0x8] ss:$40 sps:$4 sm:$0xff]  }
 0x4d9   : > { %11159 = vmatprep.subr.bf16.mxu1 %v20536_v18  ;;  %11189 = vmatpush1.bf16.msra.mxu0 %v20612_v20  ;;  %v20575_v20 = vld [vmem:[#allocation12 + $0x4bc] ss:$40 sps:$4 sm:$0xff]  }
 0x4da   : > { %11190 = vmatprep.subr.bf16.mxu0 %v20620_v12 }
 0x4dc   : > { %11160 = vmatpush2.bf16.msra.mxu1 %v20534_v42  ;;  %v20573_v42 = vld [vmem:[#allocation12 + $0x4b8] ss:$40 sps:$4 sm:$0xff]  }
 0x4dd   : > { %11161 = vmatprep.subr.bf16.mxu1 %v20539_v29  ;;  %11191 = vmatpush1.bf16.msra.mxu0 %v20618_v63  ;;  %v20578_v29 = vld [vmem:[#allocation12 + $0x46c] ss:$40 sps:$4 sm:$0xff]   ;;  %v20576_v63 = vld [vmem:[#allocation12 + $0x468] ss:$40 sps:$4 sm:$0xff]  }
 0x4de   : > { %11192 = vmatprep.subr.bf16.mxu0 %v20626_v37  ;;  %v20581_v37 = vld [vmem:[#allocation12 + $0x41c] ss:$40 sps:$4 sm:$0xff]  }
 0x4e0   : > { %11162 = vmatpush2.bf16.msra.mxu1 %v20537_v31  ;;  %v20579_v31 = vld [vmem:[#allocation12 + $0x418] ss:$40 sps:$4 sm:$0xff]  }
 0x4e1   : > { %11163 = vmatprep.subr.bf16.mxu1 %v20542_v10  ;;  %11193 = vmatpush1.bf16.msra.mxu0 %v20624_v45  ;;  %v20587_v10 = vld [vmem:[#allocation12 + $0x3cc] ss:$40 sps:$4 sm:$0xff]   ;;  %v20585_v45 = vld [vmem:[#allocation12 + $0x3c8] ss:$40 sps:$4 sm:$0xff]  }
 0x4e2   : > { %11204 = vmatprep.subr.bf16.mxu0 %v20632_v32  ;;  %v20593_v32 = vld [vmem:[#allocation12 + $0x37c] ss:$40 sps:$4 sm:$0xff]  }
 0x4e4   : > { %11164 = vmatpush2.bf16.msra.mxu1 %v20540_v58  ;;  %v20591_v58 = vld [vmem:[#allocation12 + $0x378] ss:$40 sps:$4 sm:$0xff]  }
 0x4e5   : > { %11165 = vmatprep.subr.bf16.mxu1 %v20545_v54  ;;  %11205 = vmatpush2.bf16.msra.mxu0 %v20630_v33  ;;  %v20599_v54 = vld [vmem:[#allocation12 + $0x32c] ss:$40 sps:$4 sm:$0xff]   ;;  %v20597_v33 = vld [vmem:[#allocation12 + $0x328] ss:$40 sps:$4 sm:$0xff]  }
 0x4e6   : > { %11206 = vmatprep.subr.bf16.mxu0 %v20638_v51  ;;  %v20605_v51 = vld [vmem:[#allocation12 + $0x2dc] ss:$40 sps:$4 sm:$0xff]  }
 0x4e8   : > { %11166 = vmatpush2.bf16.msra.mxu1 %v20543_v34  ;;  %v20603_v34 = vld [vmem:[#allocation12 + $0x2d8] ss:$40 sps:$4 sm:$0xff]  }
 0x4e9   : > { %11167 = vmatprep.subr.bf16.mxu1 %v20548_v40  ;;  %11207 = vmatpush2.bf16.msra.mxu0 %v20636_v62  ;;  %v20611_v40 = vld [vmem:[#allocation12 + $0x28c] ss:$40 sps:$4 sm:$0xff]   ;;  %v20609_v62 = vld [vmem:[#allocation12 + $0x288] ss:$40 sps:$4 sm:$0xff]  }
 0x4ea   : > { %11208 = vmatprep.subr.bf16.mxu0 %v20644_v43  ;;  %v20617_v43 = vld [vmem:[#allocation12 + $0xc3c] ss:$40 sps:$4 sm:$0xff]  }
 0x4ec   : > { %11168 = vmatpush2.bf16.msra.mxu1 %v20546_v53 }
 0x4ed   : > { %11219 = vmatprep.subr.bf16.mxu1 %v20551_v47  ;;  %11209 = vmatpush2.bf16.msra.mxu0 %v20642_v46  ;;  %v20615_v46 = vld [vmem:[#allocation12 + $0xc38] ss:$40 sps:$4 sm:$0xff]  }
 0x4ee   : > { %11260 = vmatprep.subr.bf16.mxu0 %v20650_v28 }
 0x4ef   : > { %11170 = vmatmul.mubr.bf16.vlgmr.msra.gmra.mxu1 %v22441_v44 }
 0x4f0   : > { %11220 = vmatpush1.bf16.msra.mxu1 %v20549_v4  ;;  %11251 = vmatprep.mubr.bf16.mxu1 %v22392_v17 }
 0x4f1   : > { %11221 = vmatprep.subr.bf16.mxu1 %v20554_v2 }
 0x4f4   : > { %11222 = vmatpush1.bf16.msra.mxu1 %v20552_v49 }
 0x4f5   : > { %11223 = vmatprep.subr.bf16.mxu1 %v20557_v35  ;;  %v20621_v35 = vld [vmem:[#allocation12 + $0xbe8] ss:$40 sps:$4 sm:$0xff]  }
 0x4f8   : > { %11224 = vmatpush1.bf16.msra.mxu1 %v20555_v16 }
 0x4f9   : > { %11225 = vmatprep.subr.bf16.mxu1 %v20560_v0  ;;  %v20629_v0 = vld [vmem:[#allocation12 + $0xb9c] ss:$40 sps:$4 sm:$0xff]  }
 0x4fc   : > { %11226 = vmatpush1.bf16.msra.mxu1 %v20558_v55  ;;  %v20627_v55 = vld [vmem:[#allocation12 + $0xb98] ss:$40 sps:$4 sm:$0xff]  }
 0x4fd   : > { %11227 = vmatprep.subr.bf16.mxu1 %v20563_v56 }
 0x500   : > { %11228 = vmatpush1.bf16.msra.mxu1 %v20561_v3  ;;  %v20635_v3 = vld [vmem:[#allocation12 + $0xb4c] ss:$40 sps:$4 sm:$0xff]  }
 0x501   : > { %11229 = vmatprep.subr.bf16.mxu1 %v20566_v60  ;;  %v20633_v60 = vld [vmem:[#allocation12 + $0xb48] ss:$40 sps:$4 sm:$0xff]  }
 0x503   : > { %v6348_v6 = vpop.f32.mrf.mxu1 }
 0x504   : > { %v6389_v7 = vpop.f32.mrf.mxu0  ;;  %11230 = vmatpush1.bf16.msra.mxu1 %v20564_v61  ;;  %v6349_v53 = vadd.f32 %v6348_v6, %v22436_v27  ;;  %v20641_v61 = vld [vmem:[#allocation12 + $0xafc] ss:$40 sps:$4 sm:$0xff]   ;;  %v20647_v6 = vld [vmem:[#allocation12 + $0xaac] ss:$40 sps:$4 sm:$0xff]  }
 0x505   : > { %v6350_v19 = vpop.f32.mrf.mxu1  ;;  %11231 = vmatprep.subr.bf16.mxu1 %v20569_v9  ;;  %v20639_v9 = vld [vmem:[#allocation12 + $0xaf8] ss:$40 sps:$4 sm:$0xff]  }
 0x506   : > { %v6391_v50 = vpop.f32.mrf.mxu0  ;;  %v6351_v47 = vadd.f32 %v6350_v19, %v22438_v48  ;;  %v6390_v28 = vadd.f32 %v6389_v7, %v6349_v53  ;;  %v20680_v53 = vld [vmem:[#allocation12 + $0x5ac] ss:$40 sps:$4 sm:$0xff]  }
 0x507   : > { %v6352_v14 = vpop.f32.mrf.mxu1 }
 0x508   : > { %v6393_v22 = vpop.f32.mrf.mxu0  ;;  %11232 = vmatpush1.bf16.msra.mxu1 %v20567_v11  ;;  %v6392_v2 = vadd.f32 %v6391_v50, %v6351_v47  ;;  %v20645_v11 = vld [vmem:[#allocation12 + $0xaa8] ss:$40 sps:$4 sm:$0xff]   ;;  %v20648_v14 = vld [vmem:[#allocation12 + $0x738] ss:$40 sps:$4 sm:$0xff]  }
 0x509   : > { %v6353_v18 = vpop.f32.mrf.mxu1  ;;  %11233 = vmatprep.subr.bf16.mxu1 %v20572_v13  ;;  %v20653_v13 = vld [vmem:[#allocation12 + $0xa5c] ss:$40 sps:$4 sm:$0xff]   ;;  %v20675_v47 = vld [vmem:[#allocation12 + $0xe18] ss:$40 sps:$4 sm:$0xff]  }
 0x50a   : > { %v6394_v12 = vpop.f32.mrf.mxu0 }
 0x50b   : > { %v20659_v12 = vld [vmem:[#allocation12 + $0xa0c] ss:$40 sps:$4 sm:$0xff]  }
 0x50c   : > { %11234 = vmatpush1.bf16.msra.mxu1 %v20570_v15  ;;  %v20656_v15 = vld [vmem:[#allocation12 + $0x6ec] ss:$40 sps:$4 sm:$0xff]  }
 0x50d   : > { %11235 = vmatprep.subr.bf16.mxu1 %v20575_v20  ;;  %v20651_v20 = vld [vmem:[#allocation12 + $0xa58] ss:$40 sps:$4 sm:$0xff]  }
 0x510   : > { %11236 = vmatpush2.bf16.msra.mxu1 %v20573_v42 }
 0x511   : > { %11237 = vmatprep.subr.bf16.mxu1 %v20578_v29  ;;  %v20654_v29 = vld [vmem:[#allocation12 + $0x6e8] ss:$40 sps:$4 sm:$0xff]  }
 0x514   : > { %11238 = vmatpush2.bf16.msra.mxu1 %v20576_v63  ;;  %v20662_v63 = vld [vmem:[#allocation12 + $0x69c] ss:$40 sps:$4 sm:$0xff]  }
 0x515   : > { %11239 = vmatprep.subr.bf16.mxu1 %v20581_v37 }
 0x518   : > { %11240 = vmatpush2.bf16.msra.mxu1 %v20579_v31  ;;  %v20657_v31 = vld [vmem:[#allocation12 + $0xa08] ss:$40 sps:$4 sm:$0xff]  }
 0x519   : > { %11241 = vmatprep.subr.bf16.mxu1 %v20587_v10  ;;  %v20665_v10 = vld [vmem:[#allocation12 + $0xebc] ss:$40 sps:$4 sm:$0xff]  }
 0x51c   : > { %11242 = vmatpush2.bf16.msra.mxu1 %v20585_v45 }
 0x51d   : > { %11243 = vmatprep.subr.bf16.mxu1 %v20593_v32  ;;  %v20660_v32 = vld [vmem:[#allocation12 + $0x698] ss:$40 sps:$4 sm:$0xff]  }
 0x520   : > { %11244 = vmatpush2.bf16.msra.mxu1 %v20591_v58  ;;  %v20668_v58 = vld [vmem:[#allocation12 + $0x64c] ss:$40 sps:$4 sm:$0xff]  }
 0x521   : > { %11245 = vmatprep.subr.bf16.mxu1 %v20599_v54  ;;  %v20663_v54 = vld [vmem:[#allocation12 + $0xeb8] ss:$40 sps:$4 sm:$0xff]  }
 0x524   : > { %11246 = vmatpush2.bf16.msra.mxu1 %v20597_v33  ;;  %v20671_v33 = vld [vmem:[#allocation12 + $0xe6c] ss:$40 sps:$4 sm:$0xff]  }
 0x525   : > { %11247 = vmatprep.subr.bf16.mxu1 %v20605_v51  ;;  %v20666_v51 = vld [vmem:[#allocation12 + $0x648] ss:$40 sps:$4 sm:$0xff]  }
 0x528   : > { %11248 = vmatpush2.bf16.msra.mxu1 %v20603_v34  ;;  %v20674_v34 = vld [vmem:[#allocation12 + $0x5fc] ss:$40 sps:$4 sm:$0xff]  }
 0x529   : > { %11249 = vmatprep.subr.bf16.mxu1 %v20611_v40  ;;  %v20669_v40 = vld [vmem:[#allocation12 + $0xe68] ss:$40 sps:$4 sm:$0xff]  }
 0x52c   : > { %11250 = vmatpush2.bf16.msra.mxu1 %v20609_v62  ;;  %v20677_v62 = vld [vmem:[#allocation12 + $0xe1c] ss:$40 sps:$4 sm:$0xff]  }
 0x52d   : > { %11301 = vmatprep.subr.bf16.mxu1 %v20617_v43  ;;  %v20672_v43 = vld [vmem:[#allocation12 + $0x5f8] ss:$40 sps:$4 sm:$0xff]  }
 0x52f   : > { %v6430_v4 = vpop.f32.mrf.mxu1  ;;  %11252 = vmatmul.mubr.bf16.vlgmr.msra.gmra.mxu1 %v22412_v52 }
 0x530   : > { %v6431_v49 = vadd.f32 %v6430_v4, %v6390_v28  ;;  %11302 = vmatpush1.bf16.msra.mxu1 %v20615_v46  ;;  %11333 = vmatprep.mubr.bf16.mxu1 %v22414_v1  ;;  %v20683_v46 = vld [vmem:[#allocation12 + $0xdcc] ss:$40 sps:$4 sm:$0xff]   ;;  %v20686_v28 = vld [vmem:[#allocation12 + $0x55c] ss:$40 sps:$4 sm:$0xff]   ;;  %v20681_v4 = vld [vmem:[#allocation12 + $0xdc8] ss:$40 sps:$4 sm:$0xff]  }
 0x531   : > { %v6432_v16 = vpop.f32.mrf.mxu1  ;;  %11303 = vmatprep.subr.bf16.mxu1 %v20623_v36  ;;  %v20678_v36 = vld [vmem:[#allocation12 + $0x5a8] ss:$40 sps:$4 sm:$0xff]  }
 0x532   : > { %v6433_v27 = vadd.f32 %v6432_v16, %v6392_v2  ;;  %21518 = vtanh.f32 %v6431_v49  ;;  %v20689_v2 = vld [vmem:[#allocation12 + $0xd7c] ss:$40 sps:$4 sm:$0xff]   ;;  %v20684_v49 = vld [vmem:[#allocation12 + $0x558] ss:$40 sps:$4 sm:$0xff]  }
 0x533   : > { %v6434_v48 = vpop.f32.mrf.mxu1  ;;  %v20687_v16 = vld [vmem:[#allocation12 + $0xd78] ss:$40 sps:$4 sm:$0xff]  }
 0x534   : > { %21520 = vtanh.f32 %v6433_v27  ;;  %11304 = vmatpush1.bf16.msra.mxu1 %v20621_v35  ;;  %v20692_v35 = vld [vmem:[#allocation12 + $0x50c] ss:$40 sps:$4 sm:$0xff]   ;;  %v20690_v27 = vld [vmem:[#allocation12 + $0x508] ss:$40 sps:$4 sm:$0xff]   ;;  %v20698_v48 = vld [vmem:[#allocation12 + $0x9bc] ss:$40 sps:$4 sm:$0xff]  }
 0x535   : > { %v6435_v56 = vpop.f32.mrf.mxu1  ;;  %11305 = vmatprep.subr.bf16.mxu1 %v20629_v0  ;;  %v20695_v0 = vld [vmem:[#allocation12 + $0xd2c] ss:$40 sps:$4 sm:$0xff]  }
 0x536   : > { %v20701_v56 = vld [vmem:[#allocation12 + $0xcdc] ss:$40 sps:$4 sm:$0xff]  }
 0x538   : > { %11306 = vmatpush1.bf16.msra.mxu1 %v20627_v55  ;;  %v20693_v55 = vld [vmem:[#allocation12 + $0xd28] ss:$40 sps:$4 sm:$0xff]  }
 0x539   : > { %11307 = vmatprep.subr.bf16.mxu1 %v20635_v3  ;;  %v20696_v3 = vld [vmem:[#allocation12 + $0x9b8] ss:$40 sps:$4 sm:$0xff]  }
 0x53c   : > { %11308 = vmatpush1.bf16.msra.mxu1 %v20633_v60  ;;  %v20704_v60 = vld [vmem:[#allocation12 + $0x96c] ss:$40 sps:$4 sm:$0xff]  }
 0x53d   : > { %11309 = vmatprep.subr.bf16.mxu1 %v20641_v61  ;;  %v20699_v61 = vld [vmem:[#allocation12 + $0xcd8] ss:$40 sps:$4 sm:$0xff]  }
 0x53f   : > { %v21519_v7 = vpop.eup %21518 }
 0x540   : > { %11310 = vmatpush1.bf16.msra.mxu1 %v20639_v9  ;;  %v22451_v22 = vpack.c.bf16 %v21519_v7, %v21519_v7  ;;  %v20707_v9 = vld [vmem:[#allocation12 + $0xc8c] ss:$40 sps:$4 sm:$0xff]  }
 0x541   : > { %v21521_v19 = vpop.eup %21520  ;;  %11311 = vmatprep.subr.bf16.mxu1 %v20647_v6  ;;  %v20702_v6 = vld [vmem:[#allocation12 + $0x968] ss:$40 sps:$4 sm:$0xff]  }
 0x542   : > { %v22449_v50 = vpack.c.bf16 %v21521_v19, %v21521_v19  ;;  %v22461_v7 = vld [vmem:[#allocation14] sm:$0xff] }
 0x543   : > { %v20705_v19 = vld [vmem:[#allocation12 + $0xc88] ss:$40 sps:$4 sm:$0xff]  }
 0x544   : > { %v22453_v18 = vpop.f32.mrf.mxu0  ;;  %18461 = vmatprep.mubr.msk.bf16.mxu0 %vm5408_vm2, %v22449_v50  ;;  %11312 = vmatpush1.bf16.msra.mxu1 %v20645_v11  ;;  %v20710_v11 = vld [vmem:[#allocation12 + $0x91c] ss:$40 sps:$4 sm:$0xff]  }
 0x545   : > { %11211 = vmatmul.mubr.bf16.vlgmr.msra.gmra.mxu0 %v22451_v22  ;;  %11313 = vmatprep.subr.bf16.mxu1 %v20653_v13  ;;  %v20713_v13 = vld [vmem:[#allocation12 + $0x163c] ss:$40 sps:$4 sm:$0xff]  }
 0x546   : > { %v22458_v42 = vpop.f32.mrf.mxu0  ;;  %11261 = vmatpush1.bf16.msra.mxu0 %v20648_v14  ;;  %11292 = vmatprep.mubr.bf16.mxu0 %v22406_v30  ;;  %v7214_v14 = vrot.slane %v22461_v7, %v22196_v23 }
 0x547   : > { %11262 = vmatprep.subr.bf16.mxu0 %v20656_v15  ;;  %v20708_v15 = vld [vmem:[#allocation12 + $0x918] ss:$40 sps:$4 sm:$0xff]  }
 0x548   : > { %v11052_v37 = vpop.f32.mrf.mxu0  ;;  %11314 = vmatpush1.bf16.msra.mxu1 %v20651_v20  ;;  %v20716_v20 = vld [vmem:[#allocation12 + $0x8cc] ss:$40 sps:$4 sm:$0xff]  }
 0x549   : > { %11315 = vmatprep.subr.bf16.mxu1 %v20659_v12  ;;  %v7218_v12 = vrot.slane %v22461_v7, %v22202_v25  ;;  %v11049_v37 = vadd.f32 %v22453_v18, %v7214_v14  ;;  %v20720_v18 = vld [vmem:[#allocation12 + $0x878] ss:$40 sps:$4 sm:$0xff]  }
 0x54a   : > { %v11053_v45 = vpop.f32.mrf.mxu0  ;;  %11263 = vmatpush1.bf16.msra.mxu0 %v20654_v29  ;;  %v20711_v29 = vld [vmem:[#allocation12 + $0x1638] ss:$40 sps:$4 sm:$0xff]  }
 0x54b   : > { %11264 = vmatprep.subr.bf16.mxu0 %v20662_v63  ;;  %v20719_v63 = vld [vmem:[#allocation12 + $0x15ec] ss:$40 sps:$4 sm:$0xff]   ;;  %v20722_v45 = vld [vmem:[#allocation12 + $0x87c] ss:$40 sps:$4 sm:$0xff]  }
 0x54c   : > { %11316 = vmatpush1.bf16.msra.mxu1 %v20657_v31  ;;  %v20714_v31 = vld [vmem:[#allocation12 + $0x8c8] ss:$40 sps:$4 sm:$0xff]  }
 0x54d   : > { %11317 = vmatprep.subr.bf16.mxu1 %v20665_v10 }
 0x54e   : > { %11265 = vmatpush1.bf16.msra.mxu0 %v20660_v32  ;;  %v11051_v32 = vadd.f32 %v22458_v42, %v7218_v12  ;;  %v20731_v42 = vld [vmem:[#allocation12 + $0x154c] ss:$40 sps:$4 sm:$0xff]  }
 0x54f   : > { %11266 = vmatprep.subr.bf16.mxu0 %v20668_v58 }
 0x550   : > { %11318 = vmatpush2.bf16.msra.mxu1 %v20663_v54  ;;  %v20717_v54 = vld [vmem:[#allocation12 + $0x15e8] ss:$40 sps:$4 sm:$0xff]  }
 0x551   : > { %11319 = vmatprep.subr.bf16.mxu1 %v20671_v33 }
 0x552   : > { %11267 = vmatpush1.bf16.msra.mxu0 %v20666_v51  ;;  %v20725_v51 = vld [vmem:[#allocation12 + $0x159c] ss:$40 sps:$4 sm:$0xff]  }
 0x553   : > { %11268 = vmatprep.subr.bf16.mxu0 %v20674_v34 }
 0x554   : > { %11320 = vmatpush2.bf16.msra.mxu1 %v20669_v40 }
 0x555   : > { %11321 = vmatprep.subr.bf16.mxu1 %v20677_v62  ;;  %v20728_v62 = vld [vmem:[#allocation12 + $0x82c] ss:$40 sps:$4 sm:$0xff]  }
 0x556   : > { %11269 = vmatpush1.bf16.msra.mxu0 %v20672_v43  ;;  %v20723_v43 = vld [vmem:[#allocation12 + $0x1598] ss:$40 sps:$4 sm:$0xff]  }
 0x557   : > { %11270 = vmatprep.subr.bf16.mxu0 %v20680_v53 }
 0x558   : > { %11322 = vmatpush2.bf16.msra.mxu1 %v20675_v47  ;;  %v20726_v47 = vld [vmem:[#allocation12 + $0x828] ss:$40 sps:$4 sm:$0xff]  }
 0x559   : > { %11323 = vmatprep.subr.bf16.mxu1 %v20683_v46  ;;  %v20734_v46 = vld [vmem:[#allocation12 + $0x7dc] ss:$40 sps:$4 sm:$0xff]  }
 0x55a   : > { %11271 = vmatpush1.bf16.msra.mxu0 %v20678_v36  ;;  %v20729_v36 = vld [vmem:[#allocation12 + $0x1548] ss:$40 sps:$4 sm:$0xff]  }
 0x55b   : > { %11272 = vmatprep.subr.bf16.mxu0 %v20686_v28  ;;  %v20737_v28 = vld [vmem:[#allocation12 + $0x14fc] ss:$40 sps:$4 sm:$0xff]  }
 0x55c   : > { %11324 = vmatpush2.bf16.msra.mxu1 %v20681_v4  ;;  %v20732_v4 = vld [vmem:[#allocation12 + $0x7d8] ss:$40 sps:$4 sm:$0xff]  }
 0x55d   : > { %11325 = vmatprep.subr.bf16.mxu1 %v20689_v2  ;;  %v20740_v2 = vld [vmem:[#allocation12 + $0x78c] ss:$40 sps:$4 sm:$0xff]  }
 0x55e   : > { %11273 = vmatpush1.bf16.msra.mxu0 %v20684_v49  ;;  %v20735_v49 = vld [vmem:[#allocation12 + $0x14f8] ss:$40 sps:$4 sm:$0xff]  }
 0x55f   : > { %11274 = vmatprep.subr.bf16.mxu0 %v20692_v35  ;;  %v20743_v35 = vld [vmem:[#allocation12 + $0x14ac] ss:$40 sps:$4 sm:$0xff]  }
 0x560   : > { %11326 = vmatpush2.bf16.msra.mxu1 %v20687_v16  ;;  %v20738_v16 = vld [vmem:[#allocation12 + $0x788] ss:$40 sps:$4 sm:$0xff]  }
 0x561   : > { %11327 = vmatprep.subr.bf16.mxu1 %v20695_v0  ;;  %v20746_v0 = vld [vmem:[#allocation12 + $0x113c] ss:$40 sps:$4 sm:$0xff]  }
 0x562   : > { %11275 = vmatpush1.bf16.msra.mxu0 %v20690_v27  ;;  %v20741_v27 = vld [vmem:[#allocation12 + $0x14a8] ss:$40 sps:$4 sm:$0xff]  }
 0x563   : > { %11276 = vmatprep.subr.bf16.mxu0 %v20698_v48  ;;  %v20749_v48 = vld [vmem:[#allocation12 + $0x145c] ss:$40 sps:$4 sm:$0xff]  }
 0x564   : > { %11328 = vmatpush2.bf16.msra.mxu1 %v20693_v55  ;;  %v20744_v55 = vld [vmem:[#allocation12 + $0x1138] ss:$40 sps:$4 sm:$0xff]  }
 0x565   : > { %11329 = vmatprep.subr.bf16.mxu1 %v20701_v56  ;;  %v20752_v56 = vld [vmem:[#allocation12 + $0x10ec] ss:$40 sps:$4 sm:$0xff]  }
 0x566   : > { %11277 = vmatpush2.bf16.msra.mxu0 %v20696_v3 }
 0x567   : > { %11278 = vmatprep.subr.bf16.mxu0 %v20704_v60  ;;  %v20747_v60 = vld [vmem:[#allocation12 + $0x1458] ss:$40 sps:$4 sm:$0xff]  }
 0x568   : > { %11330 = vmatpush2.bf16.msra.mxu1 %v20699_v61 }
 0x569   : > { %11331 = vmatprep.subr.bf16.mxu1 %v20707_v9  ;;  %v20755_v9 = vld [vmem:[#allocation12 + $0x140c] ss:$40 sps:$4 sm:$0xff]  }
 0x56a   : > { %11279 = vmatpush2.bf16.msra.mxu0 %v20702_v6 }
 0x56b   : > { %11280 = vmatprep.subr.bf16.mxu0 %v20710_v11  ;;  %v20750_v11 = vld [vmem:[#allocation12 + $0x10e8] ss:$40 sps:$4 sm:$0xff]  }
 0x56c   : > { %11332 = vmatpush2.bf16.msra.mxu1 %v20705_v19 }
 0x56d   : > { %11383 = vmatprep.subr.bf16.mxu1 %v20713_v13  ;;  %v20758_v13 = vld [vmem:[#allocation12 + $0x109c] ss:$40 sps:$4 sm:$0xff]  }
 0x56e   : > { %11281 = vmatpush2.bf16.msra.mxu0 %v20708_v15  ;;  %v20753_v15 = vld [vmem:[#allocation12 + $0x1408] ss:$40 sps:$4 sm:$0xff]  }
 0x56f   : > { %v11089_v10 = vpop.f32.mrf.mxu1  ;;  %11334 = vmatmul.mubr.bf16.vlgmr.msra.gmra.mxu1 %v22432_v39  ;;  %11282 = vmatprep.subr.bf16.mxu0 %v20716_v20  ;;  %v20761_v20 = vld [vmem:[#allocation12 + $0x172c] ss:$40 sps:$4 sm:$0xff]  }
 0x570   : > { %v11090_v58 = vadd.f32 %v11089_v10, %v11049_v37  ;;  %11384 = vmatpush1.bf16.msra.mxu1 %v20711_v29  ;;  %18462 = vmatprep.mubr.msk.bf16.mxu1 %vm5408_vm2, %v22449_v50  ;;  %v20756_v29 = vld [vmem:[#allocation12 + $0x1098] ss:$40 sps:$4 sm:$0xff]   ;;  %v20759_v37 = vld [vmem:[#allocation12 + $0x1728] ss:$40 sps:$4 sm:$0xff]  }
 0x571   : > { %v11091_v33 = vpop.f32.mrf.mxu1  ;;  %11385 = vmatprep.subr.bf16.mxu1 %v20719_v63  ;;  %v20764_v63 = vld [vmem:[#allocation12 + $0x104c] ss:$40 sps:$4 sm:$0xff]   ;;  %v20762_v10 = vld [vmem:[#allocation12 + $0x1048] ss:$40 sps:$4 sm:$0xff]  }
 0x572   : > { %v11092_v34 = vadd.f32 %v11091_v33, %v11051_v32  ;;  %11283 = vmatpush2.bf16.msra.mxu0 %v20714_v31  ;;  %v20767_v31 = vld [vmem:[#allocation12 + $0x16dc] ss:$40 sps:$4 sm:$0xff]   ;;  %v20765_v32 = vld [vmem:[#allocation12 + $0x16d8] ss:$40 sps:$4 sm:$0xff]   ;;  %v20776_v33 = vld [vmem:[#allocation12 + $0xfac] ss:$40 sps:$4 sm:$0xff]  }
 0x573   : > { %v11093_v40 = vpop.f32.mrf.mxu1  ;;  %11284 = vmatprep.subr.bf16.mxu0 %v20722_v45  ;;  %v20770_v45 = vld [vmem:[#allocation12 + $0xffc] ss:$40 sps:$4 sm:$0xff]  }
 0x574   : > { %11386 = vmatpush1.bf16.msra.mxu1 %v20717_v54  ;;  %v20768_v54 = vld [vmem:[#allocation12 + $0xff8] ss:$40 sps:$4 sm:$0xff]   ;;  %v20782_v40 = vld [vmem:[#allocation12 + $0xf5c] ss:$40 sps:$4 sm:$0xff]  }
 0x575   : > { %v11094_v53 = vpop.f32.mrf.mxu1  ;;  %11387 = vmatprep.subr.bf16.mxu1 %v20725_v51  ;;  %v20771_v51 = vld [vmem:[#allocation12 + $0x1688] ss:$40 sps:$4 sm:$0xff]  }
 0x576   : > { %11285 = vmatpush2.bf16.msra.mxu0 %v20720_v18  ;;  %v20774_v18 = vld [vmem:[#allocation12 + $0xfa8] ss:$40 sps:$4 sm:$0xff]   ;;  %v20780_v53 = vld [vmem:[#allocation12 + $0xf58] ss:$40 sps:$4 sm:$0xff]  }
 0x577   : > { %11286 = vmatprep.subr.bf16.mxu0 %v20728_v62  ;;  %v20777_v62 = vld [vmem:[#allocation12 + $0x740] ss:$40 sps:$4 sm:$0xff]  }
 0x578   : > { %11388 = vmatpush1.bf16.msra.mxu1 %v20723_v43  ;;  %v20785_v43 = vld [vmem:[#allocation12 + $0x6f4] ss:$40 sps:$4 sm:$0xff]  }
 0x579   : > { %11389 = vmatprep.subr.bf16.mxu1 %v20731_v42  ;;  %v20788_v42 = vld [vmem:[#allocation12 + $0xf0c] ss:$40 sps:$4 sm:$0xff]  }
 0x57a   : > { %11287 = vmatpush2.bf16.msra.mxu0 %v20726_v47  ;;  %v20783_v47 = vld [vmem:[#allocation12 + $0x6f0] ss:$40 sps:$4 sm:$0xff]  }
 0x57b   : > { %11288 = vmatprep.subr.bf16.mxu0 %v20734_v46  ;;  %v20791_v46 = vld [vmem:[#allocation12 + $0x6a4] ss:$40 sps:$4 sm:$0xff]  }
 0x57c   : > { %11390 = vmatpush1.bf16.msra.mxu1 %v20729_v36  ;;  %v20786_v36 = vld [vmem:[#allocation12 + $0xf08] ss:$40 sps:$4 sm:$0xff]  }
 0x57d   : > { %11391 = vmatprep.subr.bf16.mxu1 %v20737_v28  ;;  %v20794_v28 = vld [vmem:[#allocation12 + $0x13bc] ss:$40 sps:$4 sm:$0xff]  }
 0x57e   : > { %11289 = vmatpush2.bf16.msra.mxu0 %v20732_v4  ;;  %v20789_v4 = vld [vmem:[#allocation12 + $0x6a0] ss:$40 sps:$4 sm:$0xff]  }
 0x57f   : > { %11290 = vmatprep.subr.bf16.mxu0 %v20740_v2  ;;  %v20797_v2 = vld [vmem:[#allocation12 + $0x654] ss:$40 sps:$4 sm:$0xff]  }
 0x580   : > { %11392 = vmatpush1.bf16.msra.mxu1 %v20735_v49  ;;  %v20792_v49 = vld [vmem:[#allocation12 + $0x13b8] ss:$40 sps:$4 sm:$0xff]  }
 0x581   : > { %11393 = vmatprep.subr.bf16.mxu1 %v20743_v35  ;;  %v20800_v35 = vld [vmem:[#allocation12 + $0x136c] ss:$40 sps:$4 sm:$0xff]  }
 0x582   : > { %11291 = vmatpush2.bf16.msra.mxu0 %v20738_v16  ;;  %v20795_v16 = vld [vmem:[#allocation12 + $0x650] ss:$40 sps:$4 sm:$0xff]  }
 0x583   : > { %11342 = vmatprep.subr.bf16.mxu0 %v20746_v0  ;;  %v20803_v0 = vld [vmem:[#allocation12 + $0x604] ss:$40 sps:$4 sm:$0xff]  }
 0x584   : > { %v11130_v3 = vpop.f32.mrf.mxu0  ;;  %11394 = vmatpush1.bf16.msra.mxu1 %v20741_v27  ;;  %v20798_v27 = vld [vmem:[#allocation12 + $0x1368] ss:$40 sps:$4 sm:$0xff]  }
 0x585   : > { %v22472_v61 = vadd.f32 %v11130_v3, %v11090_v58  ;;  %11293 = vmatmul.mubr.bf16.vlgmr.msra.gmra.mxu0 %v22424_v5  ;;  %11395 = vmatprep.subr.bf16.mxu1 %v20749_v48  ;;  %v20773_v58 = vld [vmem:[#allocation12 + $0x168c] ss:$40 sps:$4 sm:$0xff]   ;;  %v20806_v48 = vld [vmem:[#allocation12 + $0x131c] ss:$40 sps:$4 sm:$0xff]   ;;  %v20804_v3 = vld [vmem:[#allocation12 + $0x1318] ss:$40 sps:$4 sm:$0xff]  }
 0x586   : > { %v11132_v6 = vpop.f32.mrf.mxu0  ;;  %11343 = vmatpush1.bf16.msra.mxu0 %v20744_v55  ;;  %11374 = vmatprep.mubr.bf16.mxu0 %v22426_v8  ;;  %v20801_v55 = vld [vmem:[#allocation12 + $0x600] ss:$40 sps:$4 sm:$0xff]  }
 0x587   : > { %v22476_v19 = vadd.f32 %v11132_v6, %v11092_v34  ;;  %11344 = vmatprep.subr.bf16.mxu0 %v20752_v56  ;;  %v20779_v34 = vld [vmem:[#allocation12 + $0x744] ss:$40 sps:$4 sm:$0xff]   ;;  %v20809_v56 = vld [vmem:[#allocation12 + $0x5b4] ss:$40 sps:$4 sm:$0xff]  }
 0x588   : > { %v11134_v14 = vpop.f32.mrf.mxu0  ;;  %11396 = vmatpush1.bf16.msra.mxu1 %v20747_v60  ;;  %v20812_v60 = vld [vmem:[#allocation12 + $0x12cc] ss:$40 sps:$4 sm:$0xff]  }
 0x589   : > { %11397 = vmatprep.subr.bf16.mxu1 %v20755_v9  ;;  %v20807_v9 = vld [vmem:[#allocation12 + $0x5b0] ss:$40 sps:$4 sm:$0xff]   ;;  %v20815_v6 = vld [vmem:[#allocation12 + $0x564] ss:$40 sps:$4 sm:$0xff]  }
 0x58a   : > { %v11135_v12 = vpop.f32.mrf.mxu0  ;;  %11345 = vmatpush1.bf16.msra.mxu0 %v20750_v11  ;;  %v20810_v11 = vld [vmem:[#allocation12 + $0x12c8] ss:$40 sps:$4 sm:$0xff]   ;;  %v20818_v14 = vld [vmem:[#allocation12 + $0x127c] ss:$40 sps:$4 sm:$0xff]  }
 0x58b   : > { %11346 = vmatprep.subr.bf16.mxu0 %v20758_v13 }
 0x58c   : > { %11398 = vmatpush1.bf16.msra.mxu1 %v20753_v15 }
 0x58d   : > { %11409 = vmatprep.subr.bf16.mxu1 %v20761_v20  ;;  %v20813_v20 = vld [vmem:[#allocation12 + $0x560] ss:$40 sps:$4 sm:$0xff]  }
 0x58e   : > { %11347 = vmatpush1.bf16.msra.mxu0 %v20756_v29  ;;  %v20821_v29 = vld [vmem:[#allocation12 + $0x514] ss:$40 sps:$4 sm:$0xff]  }
 0x58f   : > { %11348 = vmatprep.subr.bf16.mxu0 %v20764_v63 }
 0x590   : > { %11410 = vmatpush2.bf16.msra.mxu1 %v20759_v37  ;;  %v20816_v37 = vld [vmem:[#allocation12 + $0x1278] ss:$40 sps:$4 sm:$0xff]  }
 0x591   : > { %11411 = vmatprep.subr.bf16.mxu1 %v20767_v31 }
 0x592   : > { %11349 = vmatpush1.bf16.msra.mxu0 %v20762_v10  ;;  %v20824_v10 = vld [vmem:[#allocation12 + $0x122c] ss:$40 sps:$4 sm:$0xff]  }
 0x593   : > { %11350 = vmatprep.subr.bf16.mxu0 %v20770_v45  ;;  %v20819_v45 = vld [vmem:[#allocation12 + $0x510] ss:$40 sps:$4 sm:$0xff]  }
 0x594   : > { %11412 = vmatpush2.bf16.msra.mxu1 %v20765_v32 }
 0x595   : > { %11413 = vmatprep.subr.bf16.mxu1 %v20773_v58  ;;  %v20827_v58 = vld [vmem:[#allocation12 + $0x9c4] ss:$40 sps:$4 sm:$0xff]  }
 0x596   : > { %11351 = vmatpush1.bf16.msra.mxu0 %v20768_v54  ;;  %v20830_v54 = vld [vmem:[#allocation12 + $0x11dc] ss:$40 sps:$4 sm:$0xff]  }
 0x597   : > { %11352 = vmatprep.subr.bf16.mxu0 %v20776_v33  ;;  %v20825_v33 = vld [vmem:[#allocation12 + $0x9c0] ss:$40 sps:$4 sm:$0xff]  }
 0x598   : > { %11414 = vmatpush2.bf16.msra.mxu1 %v20771_v51  ;;  %v20833_v51 = vld [vmem:[#allocation12 + $0x974] ss:$40 sps:$4 sm:$0xff]  }
 0x599   : > { %11465 = vmatprep.subr.bf16.mxu1 %v20779_v34  ;;  %v20836_v34 = vld [vmem:[#allocation12 + $0x118c] ss:$40 sps:$4 sm:$0xff]  }
 0x59a   : > { %11353 = vmatpush1.bf16.msra.mxu0 %v20774_v18  ;;  %v20831_v18 = vld [vmem:[#allocation12 + $0x970] ss:$40 sps:$4 sm:$0xff]  }
 0x59b   : > { %11416 = vmatmul.mubr.bf16.vlgmr.msra.gmra.mxu1 %v22451_v22  ;;  %11354 = vmatprep.subr.bf16.mxu0 %v20782_v40  ;;  %v20839_v40 = vld [vmem:[#allocation12 + $0x924] ss:$40 sps:$4 sm:$0xff]  }
 0x59c   : > { %11466 = vmatpush1.bf16.msra.mxu1 %v20777_v62  ;;  %11497 = vmatprep.mubr.bf16.mxu1 %v22406_v30  ;;  %v20834_v62 = vld [vmem:[#allocation12 + $0x1188] ss:$40 sps:$4 sm:$0xff]  }
 0x59d   : > { %11467 = vmatprep.subr.bf16.mxu1 %v20785_v43  ;;  %v20842_v43 = vld [vmem:[#allocation12 + $0x244] ss:$40 sps:$4 sm:$0xff]  }
 0x59e   : > { %11355 = vmatpush1.bf16.msra.mxu0 %v20780_v53  ;;  %v20837_v53 = vld [vmem:[#allocation12 + $0x920] ss:$40 sps:$4 sm:$0xff]  }
 0x59f   : > { %11356 = vmatprep.subr.bf16.mxu0 %v20788_v42  ;;  %v20845_v42 = vld [vmem:[#allocation12 + $0x8d4] ss:$40 sps:$4 sm:$0xff]  }
 0x5a0   : > { %11468 = vmatpush1.bf16.msra.mxu1 %v20783_v47  ;;  %v20840_v47 = vld [vmem:[#allocation12 + $0x240] ss:$40 sps:$4 sm:$0xff]  }
 0x5a1   : > { %11469 = vmatprep.subr.bf16.mxu1 %v20791_v46  ;;  %v20848_v46 = vld [vmem:[#allocation12 + $0x1f4] ss:$40 sps:$4 sm:$0xff]  }
 0x5a2   : > { %11357 = vmatpush1.bf16.msra.mxu0 %v20786_v36  ;;  %v20843_v36 = vld [vmem:[#allocation12 + $0x8d0] ss:$40 sps:$4 sm:$0xff]  }
 0x5a3   : > { %11358 = vmatprep.subr.bf16.mxu0 %v20794_v28  ;;  %v20851_v28 = vld [vmem:[#allocation12 + $0x884] ss:$40 sps:$4 sm:$0xff]  }
 0x5a4   : > { %11470 = vmatpush1.bf16.msra.mxu1 %v20789_v4  ;;  %v20846_v4 = vld [vmem:[#allocation12 + $0x1f0] ss:$40 sps:$4 sm:$0xff]  }
 0x5a5   : > { %11471 = vmatprep.subr.bf16.mxu1 %v20797_v2  ;;  %v20854_v2 = vld [vmem:[#allocation12 + $0x1a4] ss:$40 sps:$4 sm:$0xff]  }
 0x5a6   : > { %11359 = vmatpush2.bf16.msra.mxu0 %v20792_v49  ;;  %v20849_v49 = vld [vmem:[#allocation12 + $0x880] ss:$40 sps:$4 sm:$0xff]  }
 0x5a7   : > { %11360 = vmatprep.subr.bf16.mxu0 %v20800_v35  ;;  %v20857_v35 = vld [vmem:[#allocation12 + $0x834] ss:$40 sps:$4 sm:$0xff]  }
 0x5a8   : > { %11472 = vmatpush1.bf16.msra.mxu1 %v20795_v16  ;;  %v20852_v16 = vld [vmem:[#allocation12 + $0x1a0] ss:$40 sps:$4 sm:$0xff]  }
 0x5a9   : > { %11473 = vmatprep.subr.bf16.mxu1 %v20803_v0  ;;  %v20860_v0 = vld [vmem:[#allocation12 + $0x154] ss:$40 sps:$4 sm:$0xff]  }
 0x5aa   : > { %11361 = vmatpush2.bf16.msra.mxu0 %v20798_v27  ;;  %v20855_v27 = vld [vmem:[#allocation12 + $0x830] ss:$40 sps:$4 sm:$0xff]  }
 0x5ab   : > { %11362 = vmatprep.subr.bf16.mxu0 %v20806_v48  ;;  %v20863_v48 = vld [vmem:[#allocation12 + $0x7e4] ss:$40 sps:$4 sm:$0xff]  }
 0x5ac   : > { %11474 = vmatpush1.bf16.msra.mxu1 %v20801_v55  ;;  %v20858_v55 = vld [vmem:[#allocation12 + $0x150] ss:$40 sps:$4 sm:$0xff]  }
 0x5ad   : > { %11475 = vmatprep.subr.bf16.mxu1 %v20809_v56  ;;  %v20866_v56 = vld [vmem:[#allocation12 + $0x104] ss:$40 sps:$4 sm:$0xff]  }
 0x5ae   : > { %11363 = vmatpush2.bf16.msra.mxu0 %v20804_v3  ;;  %v20861_v3 = vld [vmem:[#allocation12 + $0x7e0] ss:$40 sps:$4 sm:$0xff]  }
 0x5af   : > { %v11171_v13 = vpop.f32.mrf.mxu1  ;;  %11364 = vmatprep.subr.bf16.mxu0 %v20812_v60  ;;  %v20869_v60 = vld [vmem:[#allocation12 + $0x794] ss:$40 sps:$4 sm:$0xff]  }
 0x5b0   : > { %v22481_v15 = vadd.f32 %v11171_v13, %v22472_v61  ;;  %11476 = vmatpush1.bf16.msra.mxu1 %v20807_v9  ;;  %v20822_v61 = vld [vmem:[#allocation12 + $0x1228] ss:$40 sps:$4 sm:$0xff]   ;;  %v20875_v13 = vld [vmem:[#allocation12 + $0x1144] ss:$40 sps:$4 sm:$0xff]  }
 0x5b1   : > { %v11173_v12 = vpop.f32.mrf.mxu1  ;;  %11477 = vmatprep.subr.bf16.mxu1 %v20815_v6  ;;  %v20864_v9 = vld [vmem:[#allocation12 + $0x100] ss:$40 sps:$4 sm:$0xff]   ;;  %v20872_v6 = vld [vmem:[#allocation12 + $0xb4] ss:$40 sps:$4 sm:$0xff]  }
 0x5b2   : > { %v22484_v63 = vadd.f32 %v11173_v12, %v22476_v19  ;;  %11365 = vmatpush2.bf16.msra.mxu0 %v20810_v11  ;;  %v20828_v19 = vld [vmem:[#allocation12 + $0x11d8] ss:$40 sps:$4 sm:$0xff]  }
 0x5b3   : > { %v11175_v31 = vpop.f32.mrf.mxu1  ;;  %11366 = vmatprep.subr.bf16.mxu0 %v20818_v14  ;;  %v20867_v11 = vld [vmem:[#allocation12 + $0x790] ss:$40 sps:$4 sm:$0xff]   ;;  %v20873_v12 = vld [vmem:[#allocation12 + $0x1140] ss:$40 sps:$4 sm:$0xff]  }
 0x5b4   : > { %11478 = vmatpush1.bf16.msra.mxu1 %v20813_v20  ;;  %v20870_v14 = vld [vmem:[#allocation12 + $0xb0] ss:$40 sps:$4 sm:$0xff]   ;;  %v20878_v20 = vld [vmem:[#allocation12 + $0x64] ss:$40 sps:$4 sm:$0xff]   ;;  %v20884_v31 = vld [vmem:[#allocation12 + $0x14] ss:$40 sps:$4 sm:$0xff]  }
 0x5b5   : > { %v11176_v32 = vpop.f32.mrf.mxu1  ;;  %11479 = vmatprep.subr.bf16.mxu1 %v20821_v29  ;;  %v20881_v29 = vld [vmem:[#allocation12 + $0x10f4] ss:$40 sps:$4 sm:$0xff]  }
 0x5b6   : > { %11367 = vmatpush2.bf16.msra.mxu0 %v20816_v37  ;;  %v20876_v37 = vld [vmem:[#allocation12 + $0x60] ss:$40 sps:$4 sm:$0xff]   ;;  %v20882_v32 = vld [vmem:[#allocation12 + $0x10] ss:$40 sps:$4 sm:$0xff]  }
 0x5b7   : > { %11368 = vmatprep.subr.bf16.mxu0 %v20824_v10  ;;  %v20879_v10 = vld [vmem:[#allocation12 + $0x10f0] ss:$40 sps:$4 sm:$0xff]  }
 0x5b8   : > { %11480 = vmatpush1.bf16.msra.mxu1 %v20819_v45  ;;  %v20887_v45 = vld [vmem:[#allocation12 + $0x10a4] ss:$40 sps:$4 sm:$0xff]  }
 0x5b9   : > { %11481 = vmatprep.subr.bf16.mxu1 %v20827_v58  ;;  %v20890_v58 = vld [vmem:[#allocation12 + $0x4c4] ss:$40 sps:$4 sm:$0xff]  }
 0x5ba   : > { %11369 = vmatpush2.bf16.msra.mxu0 %v20822_v61  ;;  %v20885_v61 = vld [vmem:[#allocation12 + $0x10a0] ss:$40 sps:$4 sm:$0xff]  }
 0x5bb   : > { %11370 = vmatprep.subr.bf16.mxu0 %v20830_v54  ;;  %v20893_v54 = vld [vmem:[#allocation12 + $0x1054] ss:$40 sps:$4 sm:$0xff]  }
 0x5bc   : > { %11482 = vmatpush2.bf16.msra.mxu1 %v20825_v33  ;;  %v20888_v33 = vld [vmem:[#allocation12 + $0x4c0] ss:$40 sps:$4 sm:$0xff]  }
 0x5bd   : > { %11483 = vmatprep.subr.bf16.mxu1 %v20833_v51  ;;  %v20896_v51 = vld [vmem:[#allocation12 + $0x474] ss:$40 sps:$4 sm:$0xff]  }
 0x5be   : > { %11371 = vmatpush2.bf16.msra.mxu0 %v20828_v19  ;;  %v20891_v19 = vld [vmem:[#allocation12 + $0x1050] ss:$40 sps:$4 sm:$0xff]  }
 0x5bf   : > { %11372 = vmatprep.subr.bf16.mxu0 %v20836_v34  ;;  %v20899_v34 = vld [vmem:[#allocation12 + $0x1004] ss:$40 sps:$4 sm:$0xff]  }
 0x5c0   : > { %11484 = vmatpush2.bf16.msra.mxu1 %v20831_v18  ;;  %v20894_v18 = vld [vmem:[#allocation12 + $0x470] ss:$40 sps:$4 sm:$0xff]  }
 0x5c1   : > { %11485 = vmatprep.subr.bf16.mxu1 %v20839_v40  ;;  %v20902_v40 = vld [vmem:[#allocation12 + $0x424] ss:$40 sps:$4 sm:$0xff]  }
 0x5c2   : > { %11373 = vmatpush2.bf16.msra.mxu0 %v20834_v62  ;;  %v20897_v62 = vld [vmem:[#allocation12 + $0x1000] ss:$40 sps:$4 sm:$0xff]  }
 0x5c3   : > { %11424 = vmatprep.subr.bf16.mxu0 %v20842_v43  ;;  %v20905_v43 = vld [vmem:[#allocation12 + $0xfb4] ss:$40 sps:$4 sm:$0xff]  }
 0x5c4   : > { %11486 = vmatpush2.bf16.msra.mxu1 %v20837_v53  ;;  %v20900_v53 = vld [vmem:[#allocation12 + $0x420] ss:$40 sps:$4 sm:$0xff]  }
 0x5c5   : > { %11375 = vmatmul.mubr.bf16.vlgmr.msra.gmra.mxu0 %v22441_v44  ;;  %11487 = vmatprep.subr.bf16.mxu1 %v20845_v42  ;;  %v20908_v42 = vld [vmem:[#allocation12 + $0x3d4] ss:$40 sps:$4 sm:$0xff]  }
 0x5c6   : > { %11425 = vmatpush1.bf16.msra.mxu0 %v20840_v47  ;;  %11456 = vmatprep.mubr.bf16.mxu0 %v22392_v17  ;;  %v20903_v47 = vld [vmem:[#allocation12 + $0xfb0] ss:$40 sps:$4 sm:$0xff]  }
 0x5c7   : > { %11426 = vmatprep.subr.bf16.mxu0 %v20848_v46  ;;  %v20911_v46 = vld [vmem:[#allocation12 + $0xf64] ss:$40 sps:$4 sm:$0xff]  }
 0x5c8   : > { %11488 = vmatpush2.bf16.msra.mxu1 %v20843_v36  ;;  %v20906_v36 = vld [vmem:[#allocation12 + $0x3d0] ss:$40 sps:$4 sm:$0xff]  }
 0x5c9   : > { %11489 = vmatprep.subr.bf16.mxu1 %v20851_v28 }
 0x5ca   : > { %11427 = vmatpush1.bf16.msra.mxu0 %v20846_v4  ;;  %v20914_v4 = vld [vmem:[#allocation12 + $0x384] ss:$40 sps:$4 sm:$0xff]  }
 0x5cb   : > { %11428 = vmatprep.subr.bf16.mxu0 %v20854_v2  ;;  %v20909_v2 = vld [vmem:[#allocation12 + $0xf60] ss:$40 sps:$4 sm:$0xff]  }
 0x5cc   : > { %11490 = vmatpush2.bf16.msra.mxu1 %v20849_v49 }
 0x5cd   : > { %11491 = vmatprep.subr.bf16.mxu1 %v20857_v35  ;;  %v20917_v35 = vld [vmem:[#allocation12 + $0xf14] ss:$40 sps:$4 sm:$0xff]  }
 0x5ce   : > { %11429 = vmatpush1.bf16.msra.mxu0 %v20852_v16  ;;  %v20912_v16 = vld [vmem:[#allocation12 + $0x380] ss:$40 sps:$4 sm:$0xff]  }
 0x5cf   : > { %11430 = vmatprep.subr.bf16.mxu0 %v20860_v0 }
 0x5d0   : > { %11492 = vmatpush2.bf16.msra.mxu1 %v20855_v27  ;;  %v20920_v27 = vld [vmem:[#allocation12 + $0x334] ss:$40 sps:$4 sm:$0xff]  }
 0x5d1   : > { %11493 = vmatprep.subr.bf16.mxu1 %v20863_v48  ;;  %v20915_v48 = vld [vmem:[#allocation12 + $0xf10] ss:$40 sps:$4 sm:$0xff]  }
 0x5d2   : > { %11431 = vmatpush1.bf16.msra.mxu0 %v20858_v55 }
 0x5d3   : > { %11432 = vmatprep.subr.bf16.mxu0 %v20866_v56  ;;  %v20923_v56 = vld [vmem:[#allocation12 + $0x13c4] ss:$40 sps:$4 sm:$0xff]  }
 0x5d4   : > { %11494 = vmatpush2.bf16.msra.mxu1 %v20861_v3  ;;  %v20918_v3 = vld [vmem:[#allocation12 + $0x330] ss:$40 sps:$4 sm:$0xff]  }
 0x5d5   : > { %11495 = vmatprep.subr.bf16.mxu1 %v20869_v60  ;;  %v20926_v60 = vld [vmem:[#allocation12 + $0x2e4] ss:$40 sps:$4 sm:$0xff]  }
 0x5d6   : > { %11433 = vmatpush1.bf16.msra.mxu0 %v20864_v9  ;;  %v20921_v9 = vld [vmem:[#allocation12 + $0x13c0] ss:$40 sps:$4 sm:$0xff]  }
 0x5d7   : > { %11434 = vmatprep.subr.bf16.mxu0 %v20872_v6  ;;  %v20929_v6 = vld [vmem:[#allocation12 + $0x1374] ss:$40 sps:$4 sm:$0xff]  }
 0x5d8   : > { %11496 = vmatpush2.bf16.msra.mxu1 %v20867_v11  ;;  %v20924_v11 = vld [vmem:[#allocation12 + $0x2e0] ss:$40 sps:$4 sm:$0xff]  }
 0x5d9   : > { %11547 = vmatprep.subr.bf16.mxu1 %v20875_v13  ;;  %v20932_v13 = vld [vmem:[#allocation12 + $0x294] ss:$40 sps:$4 sm:$0xff]  }
 0x5da   : > { %11435 = vmatpush1.bf16.msra.mxu0 %v20870_v14  ;;  %v20927_v14 = vld [vmem:[#allocation12 + $0x1370] ss:$40 sps:$4 sm:$0xff]  }
 0x5db   : > { %11498 = vmatmul.mubr.bf16.vlgmr.msra.gmra.mxu1 %v22424_v5  ;;  %11436 = vmatprep.subr.bf16.mxu0 %v20878_v20  ;;  %v20935_v20 = vld [vmem:[#allocation12 + $0x1324] ss:$40 sps:$4 sm:$0xff]  }
 0x5dc   : > { %11548 = vmatpush1.bf16.msra.mxu1 %v20873_v12  ;;  %11579 = vmatprep.mubr.bf16.mxu1 %v22426_v8  ;;  %v20930_v12 = vld [vmem:[#allocation12 + $0x290] ss:$40 sps:$4 sm:$0xff]  }
 0x5dd   : > { %11549 = vmatprep.subr.bf16.mxu1 %v20881_v29  ;;  %v20938_v29 = vld [vmem:[#allocation12 + $0xc44] ss:$40 sps:$4 sm:$0xff]  }
 0x5de   : > { %11437 = vmatpush1.bf16.msra.mxu0 %v20876_v37  ;;  %v20933_v37 = vld [vmem:[#allocation12 + $0x1320] ss:$40 sps:$4 sm:$0xff]  }
 0x5df   : > { %11438 = vmatprep.subr.bf16.mxu0 %v20884_v31  ;;  %v20941_v31 = vld [vmem:[#allocation12 + $0x12d4] ss:$40 sps:$4 sm:$0xff]  }
 0x5e0   : > { %11550 = vmatpush1.bf16.msra.mxu1 %v20879_v10  ;;  %v20936_v10 = vld [vmem:[#allocation12 + $0xc40] ss:$40 sps:$4 sm:$0xff]  }
 0x5e1   : > { %11551 = vmatprep.subr.bf16.mxu1 %v20887_v45  ;;  %v20944_v45 = vld [vmem:[#allocation12 + $0xbf4] ss:$40 sps:$4 sm:$0xff]  }
 0x5e2   : > { %11439 = vmatpush1.bf16.msra.mxu0 %v20882_v32  ;;  %v20939_v32 = vld [vmem:[#allocation12 + $0x12d0] ss:$40 sps:$4 sm:$0xff]  }
 0x5e3   : > { %11440 = vmatprep.subr.bf16.mxu0 %v20890_v58 }
 0x5e4   : > { %11552 = vmatpush1.bf16.msra.mxu1 %v20885_v61  ;;  %v20947_v61 = vld [vmem:[#allocation12 + $0x1284] ss:$40 sps:$4 sm:$0xff]  }
 0x5e5   : > { %11553 = vmatprep.subr.bf16.mxu1 %v20893_v54 }
 0x5e6   : > { %11441 = vmatpush2.bf16.msra.mxu0 %v20888_v33  ;;  %v20942_v33 = vld [vmem:[#allocation12 + $0xbf0] ss:$40 sps:$4 sm:$0xff]  }
 0x5e7   : > { %11442 = vmatprep.subr.bf16.mxu0 %v20896_v51 }
 0x5e8   : > { %11554 = vmatpush1.bf16.msra.mxu1 %v20891_v19  ;;  %v20950_v19 = vld [vmem:[#allocation12 + $0xba4] ss:$40 sps:$4 sm:$0xff]  }
 0x5e9   : > { %11555 = vmatprep.subr.bf16.mxu1 %v20899_v34 }
 0x5ea   : > { %11443 = vmatpush2.bf16.msra.mxu0 %v20894_v18  ;;  %v20945_v18 = vld [vmem:[#allocation12 + $0x1280] ss:$40 sps:$4 sm:$0xff]  }
 0x5eb   : > { %11444 = vmatprep.subr.bf16.mxu0 %v20902_v40 }
 0x5ec   : > { %11556 = vmatpush1.bf16.msra.mxu1 %v20897_v62  ;;  %v20953_v62 = vld [vmem:[#allocation12 + $0x1234] ss:$40 sps:$4 sm:$0xff]  }
 0x5ed   : > { %11557 = vmatprep.subr.bf16.mxu1 %v20905_v43  ;;  %v20948_v43 = vld [vmem:[#allocation12 + $0xba0] ss:$40 sps:$4 sm:$0xff]  }
 0x5ee   : > { %11445 = vmatpush2.bf16.msra.mxu0 %v20900_v53 }
 0x5ef   : > { %v22490_v28 = vpop.f32.mrf.mxu1  ;;  %11446 = vmatprep.subr.bf16.mxu0 %v20908_v42  ;;  %v20951_v42 = vld [vmem:[#allocation12 + $0x1230] ss:$40 sps:$4 sm:$0xff]  }
 0x5f0   : > { %11558 = vmatpush1.bf16.msra.mxu1 %v20903_v47  ;;  %v20959_v47 = vld [vmem:[#allocation12 + $0x11e4] ss:$40 sps:$4 sm:$0xff]  }
 0x5f1   : > { %v22492_v49 = vpop.f32.mrf.mxu1  ;;  %11559 = vmatprep.subr.bf16.mxu1 %v20911_v46  ;;  %v20954_v46 = vld [vmem:[#allocation12 + $0xb50] ss:$40 sps:$4 sm:$0xff]  }
 0x5f2   : > { %11447 = vmatpush2.bf16.msra.mxu0 %v20906_v36  ;;  %v20957_v36 = vld [vmem:[#allocation12 + $0x11e0] ss:$40 sps:$4 sm:$0xff]  }
 0x5f3   : > { %v11257_v0 = vpop.f32.mrf.mxu1  ;;  %11448 = vmatprep.subr.bf16.mxu0 %v20914_v4  ;;  %v20965_v4 = vld [vmem:[#allocation12 + $0x1194] ss:$40 sps:$4 sm:$0xff]  }
 0x5f4   : > { %11560 = vmatpush1.bf16.msra.mxu1 %v20909_v2  ;;  %v20960_v2 = vld [vmem:[#allocation12 + $0xb00] ss:$40 sps:$4 sm:$0xff]   ;;  %v20971_v0 = vld [vmem:[#allocation12 + $0x24c] ss:$40 sps:$4 sm:$0xff]  }
 0x5f5   : > { %v11258_v55 = vpop.f32.mrf.mxu1  ;;  %11561 = vmatprep.subr.bf16.mxu1 %v20917_v35  ;;  %v20968_v35 = vld [vmem:[#allocation12 + $0xab4] ss:$40 sps:$4 sm:$0xff]  }
 0x5f6   : > { %11449 = vmatpush2.bf16.msra.mxu0 %v20912_v16  ;;  %v20963_v16 = vld [vmem:[#allocation12 + $0x1190] ss:$40 sps:$4 sm:$0xff]  }
 0x5f7   : > { %11450 = vmatprep.subr.bf16.mxu0 %v20920_v27 }
 0x5f8   : > { %11562 = vmatpush1.bf16.msra.mxu1 %v20915_v48  ;;  %v20966_v48 = vld [vmem:[#allocation12 + $0xab0] ss:$40 sps:$4 sm:$0xff]  }
 0x5f9   : > { %11563 = vmatprep.subr.bf16.mxu1 %v20923_v56  ;;  %v20974_v56 = vld [vmem:[#allocation12 + $0xa64] ss:$40 sps:$4 sm:$0xff]  }
 0x5fa   : > { %11451 = vmatpush2.bf16.msra.mxu0 %v20918_v3 }
 0x5fb   : > { %11452 = vmatprep.subr.bf16.mxu0 %v20926_v60  ;;  %v20969_v60 = vld [vmem:[#allocation12 + $0x248] ss:$40 sps:$4 sm:$0xff]  }
 0x5fc   : > { %11564 = vmatpush2.bf16.msra.mxu1 %v20921_v9  ;;  %v20977_v9 = vld [vmem:[#allocation12 + $0x1fc] ss:$40 sps:$4 sm:$0xff]  }
 0x5fd   : > { %11565 = vmatprep.subr.bf16.mxu1 %v20929_v6  ;;  %v20972_v6 = vld [vmem:[#allocation12 + $0xa60] ss:$40 sps:$4 sm:$0xff]  }
 0x5fe   : > { %11453 = vmatpush2.bf16.msra.mxu0 %v20924_v11  ;;  %v20980_v11 = vld [vmem:[#allocation12 + $0xa14] ss:$40 sps:$4 sm:$0xff]  }
 0x5ff   : > { %11454 = vmatprep.subr.bf16.mxu0 %v20932_v13  ;;  %v20975_v13 = vld [vmem:[#allocation12 + $0x1f8] ss:$40 sps:$4 sm:$0xff]  }
 0x600   : > { %11566 = vmatpush2.bf16.msra.mxu1 %v20927_v14  ;;  %v20983_v14 = vld [vmem:[#allocation12 + $0x1ac] ss:$40 sps:$4 sm:$0xff]  }
 0x601   : > { %11567 = vmatprep.subr.bf16.mxu1 %v20935_v20  ;;  %v20978_v20 = vld [vmem:[#allocation12 + $0xa10] ss:$40 sps:$4 sm:$0xff]  }
 0x602   : > { %11455 = vmatpush2.bf16.msra.mxu0 %v20930_v12  ;;  %v20986_v12 = vld [vmem:[#allocation12 + $0xec4] ss:$40 sps:$4 sm:$0xff]  }
 0x603   : > { %11506 = vmatprep.subr.bf16.mxu0 %v20938_v29  ;;  %v20981_v29 = vld [vmem:[#allocation12 + $0x1a8] ss:$40 sps:$4 sm:$0xff]  }
 0x604   : > { %11568 = vmatpush2.bf16.msra.mxu1 %v20933_v37  ;;  %v20989_v37 = vld [vmem:[#allocation12 + $0x15c] ss:$40 sps:$4 sm:$0xff]  }
 0x605   : > { %11457 = vmatmul.mubr.bf16.vlgmr.msra.gmra.mxu0 %v22412_v52  ;;  %v11212_v58 = vpop.f32.mrf.mxu0  ;;  %11569 = vmatprep.subr.bf16.mxu1 %v20941_v31  ;;  %v20984_v31 = vld [vmem:[#allocation12 + $0xec0] ss:$40 sps:$4 sm:$0xff]  }
 0x606   : > { %v11213_v54 = vadd.f32 %v11212_v58, %v22481_v15  ;;  %11507 = vmatpush1.bf16.msra.mxu0 %v20936_v10  ;;  %11538 = vmatprep.mubr.bf16.mxu0 %v22414_v1  ;;  %v20956_v15 = vld [vmem:[#allocation12 + $0xb54] ss:$40 sps:$4 sm:$0xff]   ;;  %v20990_v58 = vld [vmem:[#allocation12 + $0xe70] ss:$40 sps:$4 sm:$0xff]  }
 0x607   : > { %v11214_v51 = vpop.f32.mrf.mxu0  ;;  %11508 = vmatprep.subr.bf16.mxu0 %v20944_v45  ;;  %v20992_v10 = vld [vmem:[#allocation12 + $0xe74] ss:$40 sps:$4 sm:$0xff]   ;;  %v20987_v45 = vld [vmem:[#allocation12 + $0x158] ss:$40 sps:$4 sm:$0xff]  }
 0x608   : > { %v11215_v34 = vadd.f32 %v11214_v51, %v22484_v63  ;;  %11570 = vmatpush2.bf16.msra.mxu1 %v20939_v32  ;;  %21522 = vtanh.f32 %v11213_v54  ;;  %v20962_v63 = vld [vmem:[#allocation12 + $0xb04] ss:$40 sps:$4 sm:$0xff]   ;;  %v20993_v54 = vld [vmem:[#allocation12 + $0x108] ss:$40 sps:$4 sm:$0xff]  }
 0x609   : > { %v11216_v40 = vpop.f32.mrf.mxu0  ;;  %11571 = vmatprep.subr.bf16.mxu1 %v20947_v61  ;;  %v20995_v32 = vld [vmem:[#allocation12 + $0x10c] ss:$40 sps:$4 sm:$0xff]   ;;  %v20996_v51 = vld [vmem:[#allocation12 + $0xe20] ss:$40 sps:$4 sm:$0xff]  }
 0x60a   : > { %21524 = vtanh.f32 %v11215_v34  ;;  %11509 = vmatpush1.bf16.msra.mxu0 %v20942_v33  ;;  %v20998_v61 = vld [vmem:[#allocation12 + $0xe24] ss:$40 sps:$4 sm:$0xff]   ;;  %v20999_v34 = vld [vmem:[#allocation12 + $0xb8] ss:$40 sps:$4 sm:$0xff]  }
 0x60b   : > { %v11217_v53 = vpop.f32.mrf.mxu0  ;;  %11510 = vmatprep.subr.bf16.mxu0 %v20950_v19  ;;  %v21001_v33 = vld [vmem:[#allocation12 + $0xbc] ss:$40 sps:$4 sm:$0xff]   ;;  %v21002_v40 = vld [vmem:[#allocation12 + $0xdd0] ss:$40 sps:$4 sm:$0xff]  }
 0x60c   : > { %11572 = vmatpush2.bf16.msra.mxu1 %v20945_v18  ;;  %v21004_v19 = vld [vmem:[#allocation12 + $0xdd4] ss:$40 sps:$4 sm:$0xff]   ;;  %v21005_v53 = vld [vmem:[#allocation12 + $0x68] ss:$40 sps:$4 sm:$0xff]  }
 0x60d   : > { %11573 = vmatprep.subr.bf16.mxu1 %v20953_v62  ;;  %v21007_v18 = vld [vmem:[#allocation12 + $0x6c] ss:$40 sps:$4 sm:$0xff]  }
 0x60e   : > { %11511 = vmatpush1.bf16.msra.mxu0 %v20948_v43  ;;  %v21010_v43 = vld [vmem:[#allocation12 + $0xd84] ss:$40 sps:$4 sm:$0xff]  }
 0x60f   : > { %11512 = vmatprep.subr.bf16.mxu0 %v20956_v15 }
 0x610   : > { %11574 = vmatpush2.bf16.msra.mxu1 %v20951_v42  ;;  %v21013_v42 = vld [vmem:[#allocation12 + $0x1c] ss:$40 sps:$4 sm:$0xff]  }
 0x611   : > { %11575 = vmatprep.subr.bf16.mxu1 %v20959_v47  ;;  %v21008_v47 = vld [vmem:[#allocation12 + $0xd80] ss:$40 sps:$4 sm:$0xff]  }
 0x612   : > { %11513 = vmatpush1.bf16.msra.mxu0 %v20954_v46 }
 0x613   : > { %11514 = vmatprep.subr.bf16.mxu0 %v20962_v63  ;;  %v21016_v63 = vld [vmem:[#allocation12 + $0xd34] ss:$40 sps:$4 sm:$0xff]  }
 0x614   : > { %11576 = vmatpush2.bf16.msra.mxu1 %v20957_v36  ;;  %v21011_v36 = vld [vmem:[#allocation12 + $0x18] ss:$40 sps:$4 sm:$0xff]  }
 0x615   : > { %11577 = vmatprep.subr.bf16.mxu1 %v20965_v4  ;;  %v22498_v27 = vpop.eup %21522 }
 0x616   : > { %11515 = vmatpush1.bf16.msra.mxu0 %v20960_v2  ;;  %v21019_v2 = vld [vmem:[#allocation12 + $0x4cc] ss:$40 sps:$4 sm:$0xff]  }
 0x617   : > { %v22500_v55 = vpop.eup %21524  ;;  %11516 = vmatprep.subr.bf16.mxu0 %v20968_v35  ;;  %v21014_v35 = vld [vmem:[#allocation12 + $0xd30] ss:$40 sps:$4 sm:$0xff]  }
 0x618   : > { %v18466_v3 = vpack.c.bf16 %v22500_v55, %v22498_v27  ;;  %11578 = vmatpush2.bf16.msra.mxu1 %v20963_v16  ;;  %v21022_v16 = vld [vmem:[#allocation12 + $0xce4] ss:$40 sps:$4 sm:$0xff]  }
 0x619   : > { %11629 = vmatprep.subr.bf16.mxu1 %v20971_v0  ;;  %v21017_v0 = vld [vmem:[#allocation12 + $0x4c8] ss:$40 sps:$4 sm:$0xff]   ;;  %v21178_v55 = vld [vmem:[#allocation12 + $0x83c] ss:$40 sps:$4 sm:$0xff]  }
 0x61a   : > { %11517 = vmatpush1.bf16.msra.mxu0 %v20966_v48  ;;  %v21025_v48 = vld [vmem:[#allocation12 + $0x47c] ss:$40 sps:$4 sm:$0xff]  }
 0x61b   : > { %11580 = vmatmul.mubr.bf16.vlgmr.msra.gmra.mxu1 %v22441_v44  ;;  %11518 = vmatprep.subr.bf16.mxu0 %v20974_v56  ;;  %v21020_v56 = vld [vmem:[#allocation12 + $0xce0] ss:$40 sps:$4 sm:$0xff]  }
 0x61c   : > { %11630 = vmatpush1.bf16.msra.mxu1 %v20969_v60  ;;  %11661 = vmatprep.mubr.bf16.mxu1 %v22392_v17  ;;  %v21028_v60 = vld [vmem:[#allocation12 + $0xc94] ss:$40 sps:$4 sm:$0xff]  }
 0x61d   : > { %11631 = vmatprep.subr.bf16.mxu1 %v20977_v9  ;;  %v21023_v9 = vld [vmem:[#allocation12 + $0x478] ss:$40 sps:$4 sm:$0xff]  }
 0x61e   : > { %11519 = vmatpush1.bf16.msra.mxu0 %v20972_v6  ;;  %v21031_v6 = vld [vmem:[#allocation12 + $0x42c] ss:$40 sps:$4 sm:$0xff]  }
 0x61f   : > { %11520 = vmatprep.subr.bf16.mxu0 %v20980_v11  ;;  %v21026_v11 = vld [vmem:[#allocation12 + $0xc90] ss:$40 sps:$4 sm:$0xff]  }
 0x620   : > { %11632 = vmatpush1.bf16.msra.mxu1 %v20975_v13  ;;  %v21034_v13 = vld [vmem:[#allocation12 + $0x1644] ss:$40 sps:$4 sm:$0xff]  }
 0x621   : > { %11633 = vmatprep.subr.bf16.mxu1 %v20983_v14  ;;  %v7222_v14 = vrot.slane %v22461_v7, %v22199_v24  ;;  %v21043_v24 = vld [vmem:[#allocation12 + $0x38c] ss:$40 sps:$4 sm:$0xff]  }
 0x622   : > { %11521 = vmatpush1.bf16.msra.mxu0 %v20978_v20  ;;  %v21029_v20 = vld [vmem:[#allocation12 + $0x428] ss:$40 sps:$4 sm:$0xff]  }
 0x623   : > { %11522 = vmatprep.subr.bf16.mxu0 %v20986_v12  ;;  %v21037_v12 = vld [vmem:[#allocation12 + $0x3dc] ss:$40 sps:$4 sm:$0xff]  }
 0x624   : > { %11634 = vmatpush1.bf16.msra.mxu1 %v20981_v29  ;;  %v7226_v29 = vrot.slane %v22461_v7, %v22205_v26  ;;  %v21038_v26 = vld [vmem:[#allocation12 + $0x15f0] ss:$40 sps:$4 sm:$0xff]  }
 0x625   : > { %11635 = vmatprep.subr.bf16.mxu1 %v20989_v37  ;;  %v21032_v37 = vld [vmem:[#allocation12 + $0x1640] ss:$40 sps:$4 sm:$0xff]  }
 0x626   : > { %11523 = vmatpush2.bf16.msra.mxu0 %v20984_v31  ;;  %v21040_v31 = vld [vmem:[#allocation12 + $0x15f4] ss:$40 sps:$4 sm:$0xff]  }
 0x627   : > { %11524 = vmatprep.subr.bf16.mxu0 %v20992_v10  ;;  %v11254_v10 = vadd.f32 %v22490_v28, %v7222_v14  ;;  %v21041_v28 = vld [vmem:[#allocation12 + $0x388] ss:$40 sps:$4 sm:$0xff]  }
 0x628   : > { %11636 = vmatpush1.bf16.msra.mxu1 %v20987_v45  ;;  %v21035_v45 = vld [vmem:[#allocation12 + $0x3d8] ss:$40 sps:$4 sm:$0xff]  }
 0x629   : > { %11637 = vmatprep.subr.bf16.mxu1 %v20995_v32  ;;  %v21074_v14 = vld [vmem:[#allocation12 + $0x1410] ss:$40 sps:$4 sm:$0xff]  }
 0x62a   : > { %11525 = vmatpush2.bf16.msra.mxu0 %v20990_v58  ;;  %v11256_v58 = vadd.f32 %v22492_v49, %v7226_v29  ;;  %v21044_v49 = vld [vmem:[#allocation12 + $0x15a0] ss:$40 sps:$4 sm:$0xff]  }
 0x62b   : > { %11526 = vmatprep.subr.bf16.mxu0 %v20998_v61  ;;  %v21077_v29 = vld [vmem:[#allocation12 + $0xba8] ss:$40 sps:$4 sm:$0xff]  }
 0x62c   : > { %11638 = vmatpush1.bf16.msra.mxu1 %v20993_v54  ;;  %v21046_v54 = vld [vmem:[#allocation12 + $0x15a4] ss:$40 sps:$4 sm:$0xff]  }
 0x62d   : > { %11639 = vmatprep.subr.bf16.mxu1 %v21001_v33 }
 0x62e   : > { %11527 = vmatpush2.bf16.msra.mxu0 %v20996_v51 }
 0x62f   : > { %v22506_v62 = vpop.f32.mrf.mxu1  ;;  %11528 = vmatprep.subr.bf16.mxu0 %v21004_v19 }
 0x630   : > { %11640 = vmatpush1.bf16.msra.mxu1 %v20999_v34  ;;  %v21049_v34 = vld [vmem:[#allocation12 + $0x33c] ss:$40 sps:$4 sm:$0xff]  }
 0x631   : > { %v22508_v15 = vpop.f32.mrf.mxu1  ;;  %11641 = vmatprep.subr.bf16.mxu1 %v21007_v18 }
 0x632   : > { %11529 = vmatpush2.bf16.msra.mxu0 %v21002_v40 }
 0x633   : > { %v11339_v46 = vpop.f32.mrf.mxu1  ;;  %11530 = vmatprep.subr.bf16.mxu0 %v21010_v43  ;;  %v21052_v43 = vld [vmem:[#allocation12 + $0x1554] ss:$40 sps:$4 sm:$0xff]  }
 0x634   : > { %11642 = vmatpush1.bf16.msra.mxu1 %v21005_v53  ;;  %v21047_v53 = vld [vmem:[#allocation12 + $0x338] ss:$40 sps:$4 sm:$0xff]   ;;  %v21053_v46 = vld [vmem:[#allocation12 + $0x2e8] ss:$40 sps:$4 sm:$0xff]  }
 0x635   : > { %v11340_v4 = vpop.f32.mrf.mxu1  ;;  %11643 = vmatprep.subr.bf16.mxu1 %v21013_v42  ;;  %v21055_v42 = vld [vmem:[#allocation12 + $0x2ec] ss:$40 sps:$4 sm:$0xff]  }
 0x636   : > { %11531 = vmatpush2.bf16.msra.mxu0 %v21008_v47  ;;  %v21050_v47 = vld [vmem:[#allocation12 + $0x1550] ss:$40 sps:$4 sm:$0xff]  }
 0x637   : > { %11532 = vmatprep.subr.bf16.mxu0 %v21016_v63  ;;  %v21061_v63 = vld [vmem:[#allocation12 + $0x29c] ss:$40 sps:$4 sm:$0xff]   ;;  %v21059_v4 = vld [vmem:[#allocation12 + $0x298] ss:$40 sps:$4 sm:$0xff]  }
 0x638   : > { %11644 = vmatpush1.bf16.msra.mxu1 %v21011_v36  ;;  %v21056_v36 = vld [vmem:[#allocation12 + $0x1500] ss:$40 sps:$4 sm:$0xff]  }
 0x639   : > { %11645 = vmatprep.subr.bf16.mxu1 %v21019_v2  ;;  %v21067_v2 = vld [vmem:[#allocation12 + $0xc4c] ss:$40 sps:$4 sm:$0xff]  }
 0x63a   : > { %11533 = vmatpush2.bf16.msra.mxu0 %v21014_v35  ;;  %v21062_v35 = vld [vmem:[#allocation12 + $0x14b0] ss:$40 sps:$4 sm:$0xff]  }
 0x63b   : > { %11534 = vmatprep.subr.bf16.mxu0 %v21022_v16  ;;  %v21070_v16 = vld [vmem:[#allocation12 + $0x1464] ss:$40 sps:$4 sm:$0xff]  }
 0x63c   : > { %11646 = vmatpush2.bf16.msra.mxu1 %v21017_v0  ;;  %v21065_v0 = vld [vmem:[#allocation12 + $0xc48] ss:$40 sps:$4 sm:$0xff]  }
 0x63d   : > { %11647 = vmatprep.subr.bf16.mxu1 %v21025_v48  ;;  %v21073_v48 = vld [vmem:[#allocation12 + $0xbfc] ss:$40 sps:$4 sm:$0xff]  }
 0x63e   : > { %11535 = vmatpush2.bf16.msra.mxu0 %v21020_v56  ;;  %v21068_v56 = vld [vmem:[#allocation12 + $0x1460] ss:$40 sps:$4 sm:$0xff]  }
 0x63f   : > { %11536 = vmatprep.subr.bf16.mxu0 %v21028_v60 }
 0x640   : > { %11648 = vmatpush2.bf16.msra.mxu1 %v21023_v9  ;;  %v21076_v9 = vld [vmem:[#allocation12 + $0x1414] ss:$40 sps:$4 sm:$0xff]  }
 0x641   : > { %11649 = vmatprep.subr.bf16.mxu1 %v21031_v6  ;;  %v21071_v6 = vld [vmem:[#allocation12 + $0xbf8] ss:$40 sps:$4 sm:$0xff]  }
 0x642   : > { %11537 = vmatpush2.bf16.msra.mxu0 %v21026_v11 }
 0x643   : > { %11588 = vmatprep.subr.bf16.mxu0 %v21034_v13  ;;  %v21079_v13 = vld [vmem:[#allocation12 + $0xbac] ss:$40 sps:$4 sm:$0xff]  }
 0x644   : > { %11650 = vmatpush2.bf16.msra.mxu1 %v21029_v20 }
 0x645   : > { %v11294_v32 = vpop.f32.mrf.mxu0  ;;  %11539 = vmatmul.mubr.bf16.vlgmr.msra.gmra.mxu0 %v22432_v39  ;;  %11651 = vmatprep.subr.bf16.mxu1 %v21037_v12  ;;  %v21082_v12 = vld [vmem:[#allocation12 + $0x1734] ss:$40 sps:$4 sm:$0xff]  }
 0x646   : > { %v11295_v61 = vadd.f32 %v11294_v32, %v11254_v10  ;;  %11589 = vmatpush1.bf16.msra.mxu0 %v21032_v37  ;;  %18463 = vmatprep.mubr.msk.bf16.mxu0 %vm5408_vm2, %v22449_v50  ;;  %v21080_v10 = vld [vmem:[#allocation12 + $0x1730] ss:$40 sps:$4 sm:$0xff]  }
 0x647   : > { %v11296_v7 = vpop.f32.mrf.mxu0  ;;  %11590 = vmatprep.subr.bf16.mxu0 %v21040_v31  ;;  %v21085_v31 = vld [vmem:[#allocation12 + $0xb5c] ss:$40 sps:$4 sm:$0xff]   ;;  %v21083_v32 = vld [vmem:[#allocation12 + $0xb58] ss:$40 sps:$4 sm:$0xff]  }
 0x648   : > { %v11297_v33 = vadd.f32 %v11296_v7, %v11256_v58  ;;  %11652 = vmatpush2.bf16.msra.mxu1 %v21035_v45  ;;  %v22520_v51 = vadd.f32 %v22506_v62, %v11295_v61  ;;  %v21058_v62 = vld [vmem:[#allocation12 + $0x1504] ss:$40 sps:$4 sm:$0xff]   ;;  %v21086_v58 = vld [vmem:[#allocation12 + $0x16e0] ss:$40 sps:$4 sm:$0xff]   ;;  %v21094_v61 = vld [vmem:[#allocation12 + $0x1694] ss:$40 sps:$4 sm:$0xff]  }
 0x649   : > { %v11298_v19 = vpop.f32.mrf.mxu0  ;;  %11653 = vmatprep.subr.bf16.mxu1 %v21043_v24  ;;  %v21088_v45 = vld [vmem:[#allocation12 + $0x16e4] ss:$40 sps:$4 sm:$0xff]  }
 0x64a   : > { %11591 = vmatpush1.bf16.msra.mxu0 %v21038_v26  ;;  %v22523_v18 = vadd.f32 %v22508_v15, %v11297_v33  ;;  %v21064_v15 = vld [vmem:[#allocation12 + $0x14b4] ss:$40 sps:$4 sm:$0xff]   ;;  %v21089_v26 = vld [vmem:[#allocation12 + $0xb08] ss:$40 sps:$4 sm:$0xff]  }
 0x64b   : > { %v11299_v40 = vpop.f32.mrf.mxu0  ;;  %11592 = vmatprep.subr.bf16.mxu0 %v21046_v54  ;;  %v21091_v24 = vld [vmem:[#allocation12 + $0xb0c] ss:$40 sps:$4 sm:$0xff]   ;;  %v21097_v7 = vld [vmem:[#allocation12 + $0xabc] ss:$40 sps:$4 sm:$0xff]   ;;  %v21092_v54 = vld [vmem:[#allocation12 + $0x1690] ss:$40 sps:$4 sm:$0xff]  }
 0x64c   : > { %11654 = vmatpush2.bf16.msra.mxu1 %v21041_v28  ;;  %v21100_v33 = vld [vmem:[#allocation12 + $0x74c] ss:$40 sps:$4 sm:$0xff]   ;;  %v21095_v28 = vld [vmem:[#allocation12 + $0xab8] ss:$40 sps:$4 sm:$0xff]   ;;  %v21101_v40 = vld [vmem:[#allocation12 + $0xa68] ss:$40 sps:$4 sm:$0xff]  }
 0x64d   : > { %11655 = vmatprep.subr.bf16.mxu1 %v21049_v34  ;;  %v21103_v19 = vld [vmem:[#allocation12 + $0xa6c] ss:$40 sps:$4 sm:$0xff]   ;;  %v21098_v34 = vld [vmem:[#allocation12 + $0x748] ss:$40 sps:$4 sm:$0xff]  }
 0x64e   : > { %11593 = vmatpush1.bf16.msra.mxu0 %v21044_v49  ;;  %v21106_v49 = vld [vmem:[#allocation12 + $0x6fc] ss:$40 sps:$4 sm:$0xff]  }
 0x64f   : > { %11594 = vmatprep.subr.bf16.mxu0 %v21052_v43  ;;  %v21109_v43 = vld [vmem:[#allocation12 + $0xa1c] ss:$40 sps:$4 sm:$0xff]  }
 0x650   : > { %11656 = vmatpush2.bf16.msra.mxu1 %v21047_v53  ;;  %v21104_v53 = vld [vmem:[#allocation12 + $0x6f8] ss:$40 sps:$4 sm:$0xff]  }
 0x651   : > { %11657 = vmatprep.subr.bf16.mxu1 %v21055_v42  ;;  %v21112_v42 = vld [vmem:[#allocation12 + $0x6ac] ss:$40 sps:$4 sm:$0xff]  }
 0x652   : > { %11595 = vmatpush1.bf16.msra.mxu0 %v21050_v47  ;;  %v21107_v47 = vld [vmem:[#allocation12 + $0xa18] ss:$40 sps:$4 sm:$0xff]  }
 0x653   : > { %11596 = vmatprep.subr.bf16.mxu0 %v21058_v62  ;;  %v21115_v62 = vld [vmem:[#allocation12 + $0xecc] ss:$40 sps:$4 sm:$0xff]  }
 0x654   : > { %11658 = vmatpush2.bf16.msra.mxu1 %v21053_v46  ;;  %v21110_v46 = vld [vmem:[#allocation12 + $0x6a8] ss:$40 sps:$4 sm:$0xff]  }
 0x655   : > { %11659 = vmatprep.subr.bf16.mxu1 %v21061_v63  ;;  %v21118_v63 = vld [vmem:[#allocation12 + $0x65c] ss:$40 sps:$4 sm:$0xff]  }
 0x656   : > { %11597 = vmatpush1.bf16.msra.mxu0 %v21056_v36  ;;  %v21113_v36 = vld [vmem:[#allocation12 + $0xec8] ss:$40 sps:$4 sm:$0xff]  }
 0x657   : > { %11598 = vmatprep.subr.bf16.mxu0 %v21064_v15  ;;  %v21121_v15 = vld [vmem:[#allocation12 + $0xe7c] ss:$40 sps:$4 sm:$0xff]  }
 0x658   : > { %11660 = vmatpush2.bf16.msra.mxu1 %v21059_v4  ;;  %v21116_v4 = vld [vmem:[#allocation12 + $0x658] ss:$40 sps:$4 sm:$0xff]  }
 0x659   : > { %11711 = vmatprep.subr.bf16.mxu1 %v21067_v2  ;;  %v21124_v2 = vld [vmem:[#allocation12 + $0x60c] ss:$40 sps:$4 sm:$0xff]  }
 0x65a   : > { %11599 = vmatpush1.bf16.msra.mxu0 %v21062_v35  ;;  %v21119_v35 = vld [vmem:[#allocation12 + $0xe78] ss:$40 sps:$4 sm:$0xff]  }
 0x65b   : > { %v22525_v60 = vpop.f32.mrf.mxu1  ;;  %11662 = vmatmul.mubr.bf16.vlgmr.msra.gmra.mxu1 %v22412_v52  ;;  %11600 = vmatprep.subr.bf16.mxu0 %v21070_v16  ;;  %v21127_v16 = vld [vmem:[#allocation12 + $0xe2c] ss:$40 sps:$4 sm:$0xff]  }
 0x65c   : > { %11712 = vmatpush1.bf16.msra.mxu1 %v21065_v0  ;;  %11743 = vmatprep.mubr.bf16.mxu1 %v22414_v1  ;;  %v21122_v0 = vld [vmem:[#allocation12 + $0x608] ss:$40 sps:$4 sm:$0xff]  }
 0x65d   : > { %v22529_v11 = vpop.f32.mrf.mxu1  ;;  %11713 = vmatprep.subr.bf16.mxu1 %v21073_v48  ;;  %v21130_v48 = vld [vmem:[#allocation12 + $0x5bc] ss:$40 sps:$4 sm:$0xff]  }
 0x65e   : > { %11601 = vmatpush1.bf16.msra.mxu0 %v21068_v56  ;;  %v21125_v56 = vld [vmem:[#allocation12 + $0xe28] ss:$40 sps:$4 sm:$0xff]  }
 0x65f   : > { %v11421_v20 = vpop.f32.mrf.mxu1  ;;  %11602 = vmatprep.subr.bf16.mxu0 %v21076_v9  ;;  %v21133_v9 = vld [vmem:[#allocation12 + $0xddc] ss:$40 sps:$4 sm:$0xff]  }
 0x660   : > { %11714 = vmatpush1.bf16.msra.mxu1 %v21071_v6  ;;  %v21128_v6 = vld [vmem:[#allocation12 + $0x5b8] ss:$40 sps:$4 sm:$0xff]  }
 0x661   : > { %v11422_v37 = vpop.f32.mrf.mxu1  ;;  %11715 = vmatprep.subr.bf16.mxu1 %v21079_v13  ;;  %v21136_v13 = vld [vmem:[#allocation12 + $0x56c] ss:$40 sps:$4 sm:$0xff]  }
 0x662   : > { %11603 = vmatpush1.bf16.msra.mxu0 %v21074_v14  ;;  %v21131_v14 = vld [vmem:[#allocation12 + $0xdd8] ss:$40 sps:$4 sm:$0xff]   ;;  %v21134_v37 = vld [vmem:[#allocation12 + $0x568] ss:$40 sps:$4 sm:$0xff]  }
 0x663   : > { %11614 = vmatprep.subr.bf16.mxu0 %v21082_v12  ;;  %v21139_v12 = vld [vmem:[#allocation12 + $0xd8c] ss:$40 sps:$4 sm:$0xff]  }
 0x664   : > { %11716 = vmatpush1.bf16.msra.mxu1 %v21077_v29 }
 0x665   : > { %11717 = vmatprep.subr.bf16.mxu1 %v21085_v31 }
 0x666   : > { %11615 = vmatpush2.bf16.msra.mxu0 %v21080_v10  ;;  %v21142_v10 = vld [vmem:[#allocation12 + $0x51c] ss:$40 sps:$4 sm:$0xff]  }
 0x667   : > { %11616 = vmatprep.subr.bf16.mxu0 %v21088_v45 }
 0x668   : > { %11718 = vmatpush1.bf16.msra.mxu1 %v21083_v32 }
 0x669   : > { %11719 = vmatprep.subr.bf16.mxu1 %v21091_v24  ;;  %v21137_v24 = vld [vmem:[#allocation12 + $0xd88] ss:$40 sps:$4 sm:$0xff]  }
 0x66a   : > { %11617 = vmatpush2.bf16.msra.mxu0 %v21086_v58 }
 0x66b   : > { %11618 = vmatprep.subr.bf16.mxu0 %v21094_v61  ;;  %v21145_v61 = vld [vmem:[#allocation12 + $0xd3c] ss:$40 sps:$4 sm:$0xff]  }
 0x66c   : > { %11720 = vmatpush1.bf16.msra.mxu1 %v21089_v26 }
 0x66d   : > { %11721 = vmatprep.subr.bf16.mxu1 %v21097_v7  ;;  %v21140_v7 = vld [vmem:[#allocation12 + $0x518] ss:$40 sps:$4 sm:$0xff]  }
 0x66e   : > { %11619 = vmatpush2.bf16.msra.mxu0 %v21092_v54  ;;  %v21148_v54 = vld [vmem:[#allocation12 + $0x9cc] ss:$40 sps:$4 sm:$0xff]  }
 0x66f   : > { %11670 = vmatprep.subr.bf16.mxu0 %v21100_v33  ;;  %v21143_v33 = vld [vmem:[#allocation12 + $0xd38] ss:$40 sps:$4 sm:$0xff]  }
 0x670   : > { %11722 = vmatpush1.bf16.msra.mxu1 %v21095_v28  ;;  %v21154_v28 = vld [vmem:[#allocation12 + $0x97c] ss:$40 sps:$4 sm:$0xff]  }
 0x671   : > { %11621 = vmatmul.mubr.bf16.vlgmr.msra.gmra.mxu0 %v22451_v22  ;;  %11723 = vmatprep.subr.bf16.mxu1 %v21103_v19  ;;  %v21882_v19 = vmov 1966171168  }
 0x672   : > { %11671 = vmatpush1.bf16.msra.mxu0 %v21098_v34  ;;  %11702 = vmatprep.mubr.bf16.mxu0 %v22406_v30  ;;  %v12074_v34 = vunpack.c.l.s4 %v21882_v19  ;;  %v21200_v19 = vld [vmem:[#allocation12 + $0x10f8] ss:$40 sps:$4 sm:$0xff]  }
 0x673   : > { %11672 = vmatprep.subr.bf16.mxu0 %v21106_v49  ;;  %v21149_v49 = vld [vmem:[#allocation12 + $0xce8] ss:$40 sps:$4 sm:$0xff]  }
 0x674   : > { %11724 = vmatpush1.bf16.msra.mxu1 %v21101_v40  ;;  %v21152_v40 = vld [vmem:[#allocation12 + $0x978] ss:$40 sps:$4 sm:$0xff]  }
 0x675   : > { %11725 = vmatprep.subr.bf16.mxu1 %v21109_v43  ;;  %v21160_v43 = vld [vmem:[#allocation12 + $0x92c] ss:$40 sps:$4 sm:$0xff]  }
 0x676   : > { %11673 = vmatpush1.bf16.msra.mxu0 %v21104_v53  ;;  %v12075_v53 = vunpack.c.0.s8 %v12074_v34  ;;  %v21208_v34 = vld [vmem:[#allocation12 + $0x10ac] ss:$40 sps:$4 sm:$0xff]  }
 0x677   : > { %11674 = vmatprep.subr.bf16.mxu0 %v21112_v42  ;;  %v21155_v42 = vld [vmem:[#allocation12 + $0xc98] ss:$40 sps:$4 sm:$0xff]  }
 0x678   : > { %11726 = vmatpush1.bf16.msra.mxu1 %v21107_v47  ;;  %v21163_v47 = vld [vmem:[#allocation12 + $0x164c] ss:$40 sps:$4 sm:$0xff]  }
 0x679   : > { %11727 = vmatprep.subr.bf16.mxu1 %v21115_v62  ;;  %v21158_v62 = vld [vmem:[#allocation12 + $0x928] ss:$40 sps:$4 sm:$0xff]  }
 0x67a   : > { %11675 = vmatpush1.bf16.msra.mxu0 %v21110_v46  ;;  %v21166_v46 = vld [vmem:[#allocation12 + $0x8dc] ss:$40 sps:$4 sm:$0xff]  }
 0x67b   : > { %11676 = vmatprep.subr.bf16.mxu0 %v21118_v63 }
 0x67c   : > { %11728 = vmatpush2.bf16.msra.mxu1 %v21113_v36  ;;  %v22538_v36 = vsub.s32 %v12075_v53, %v22191_v21  ;;  %v21209_v53 = vld [vmem:[#allocation12 + $0x1738] ss:$40 sps:$4 sm:$0xff]  }
 0x67d   : > { %11729 = vmatprep.subr.bf16.mxu1 %v21121_v15  ;;  %v21161_v15 = vld [vmem:[#allocation12 + $0x1648] ss:$40 sps:$4 sm:$0xff]  }
 0x67e   : > { %11677 = vmatpush1.bf16.msra.mxu0 %v21116_v4  ;;  %v22547_v21 = vrot.slane %v18466_v3, %v22538_v36  ;;  %v21173_v3 = vld [vmem:[#allocation12 + $0x15a8] ss:$40 sps:$4 sm:$0xff]  }
 0x67f   : > { %11678 = vmatprep.subr.bf16.mxu0 %v21124_v2  ;;  %v21169_v2 = vld [vmem:[#allocation12 + $0x15fc] ss:$40 sps:$4 sm:$0xff]  }
 0x680   : > { %11730 = vmatpush2.bf16.msra.mxu1 %v21119_v35 }
 0x681   : > { %11731 = vmatprep.subr.bf16.mxu1 %v21127_v16  ;;  %v21164_v16 = vld [vmem:[#allocation12 + $0x8d8] ss:$40 sps:$4 sm:$0xff]  }
 0x682   : > { %11679 = vmatpush1.bf16.msra.mxu0 %v21122_v0 }
 0x683   : > { %11680 = vmatprep.subr.bf16.mxu0 %v21130_v48  ;;  %v21172_v48 = vld [vmem:[#allocation12 + $0x88c] ss:$40 sps:$4 sm:$0xff]  }
 0x684   : > { %11732 = vmatpush2.bf16.msra.mxu1 %v21125_v56 }
 0x685   : > { %v11376_v20 = vpop.f32.mrf.mxu0  ;;  %11733 = vmatprep.subr.bf16.mxu1 %v21133_v9  ;;  %v21167_v9 = vld [vmem:[#allocation12 + $0x15f8] ss:$40 sps:$4 sm:$0xff]  }
 0x686   : > { %v11377_v29 = vadd.f32 %v11376_v20, %v22520_v51  ;;  %11681 = vmatpush1.bf16.msra.mxu0 %v21128_v6  ;;  %v21170_v20 = vld [vmem:[#allocation12 + $0x888] ss:$40 sps:$4 sm:$0xff]  }
 0x687   : > { %v11378_v31 = vpop.f32.mrf.mxu0  ;;  %11682 = vmatprep.subr.bf16.mxu0 %v21136_v13  ;;  %v21175_v13 = vld [vmem:[#allocation12 + $0x15ac] ss:$40 sps:$4 sm:$0xff]  }
 0x688   : > { %v11418_v45 = vadd.f32 %v22525_v60, %v11377_v29  ;;  %v11379_v32 = vadd.f32 %v11378_v31, %v22523_v18  ;;  %11734 = vmatpush2.bf16.msra.mxu1 %v21131_v14  ;;  %v21151_v60 = vld [vmem:[#allocation12 + $0xcec] ss:$40 sps:$4 sm:$0xff]   ;;  %v21146_v18 = vld [vmem:[#allocation12 + $0x9c8] ss:$40 sps:$4 sm:$0xff]   ;;  %v21181_v29 = vld [vmem:[#allocation12 + $0x155c] ss:$40 sps:$4 sm:$0xff]  }
 0x689   : > { %v11380_v58 = vpop.f32.mrf.mxu0  ;;  %11735 = vmatprep.subr.bf16.mxu1 %v21139_v12  ;;  %v21184_v31 = vld [vmem:[#allocation12 + $0x7ec] ss:$40 sps:$4 sm:$0xff]  }
 0x68a   : > { %v11420_v26 = vadd.f32 %v22529_v11, %v11379_v32  ;;  %11683 = vmatpush1.bf16.msra.mxu0 %v21134_v37  ;;  %21526 = vtanh.f32 %v11418_v45  ;;  %v21157_v11 = vld [vmem:[#allocation12 + $0xc9c] ss:$40 sps:$4 sm:$0xff]   ;;  %v21176_v37 = vld [vmem:[#allocation12 + $0x838] ss:$40 sps:$4 sm:$0xff]   ;;  %v21187_v45 = vld [vmem:[#allocation12 + $0x150c] ss:$40 sps:$4 sm:$0xff]  }
 0x68b   : > { %v11381_v51 = vpop.f32.mrf.mxu0  ;;  %11684 = vmatprep.subr.bf16.mxu0 %v21142_v10  ;;  %v21179_v10 = vld [vmem:[#allocation12 + $0x1558] ss:$40 sps:$4 sm:$0xff]   ;;  %v21182_v32 = vld [vmem:[#allocation12 + $0x7e8] ss:$40 sps:$4 sm:$0xff]  }
 0x68c   : > { %21528 = vtanh.f32 %v11420_v26  ;;  %11736 = vmatpush2.bf16.msra.mxu1 %v21137_v24  ;;  %v21190_v24 = vld [vmem:[#allocation12 + $0x79c] ss:$40 sps:$4 sm:$0xff]   ;;  %v21185_v58 = vld [vmem:[#allocation12 + $0x1508] ss:$40 sps:$4 sm:$0xff]   ;;  %v21188_v26 = vld [vmem:[#allocation12 + $0x798] ss:$40 sps:$4 sm:$0xff]  }
 0x68d   : > { %11737 = vmatprep.subr.bf16.mxu1 %v21145_v61  ;;  %v21193_v61 = vld [vmem:[#allocation12 + $0x14bc] ss:$40 sps:$4 sm:$0xff]   ;;  %v21191_v51 = vld [vmem:[#allocation12 + $0x14b8] ss:$40 sps:$4 sm:$0xff]  }
 0x68e   : > { %11685 = vmatpush1.bf16.msra.mxu0 %v21140_v7  ;;  %v21196_v7 = vld [vmem:[#allocation12 + $0x114c] ss:$40 sps:$4 sm:$0xff]  }
 0x68f   : > { %11686 = vmatprep.subr.bf16.mxu0 %v21148_v54  ;;  %v21199_v54 = vld [vmem:[#allocation12 + $0x146c] ss:$40 sps:$4 sm:$0xff]  }
 0x690   : > { %11738 = vmatpush2.bf16.msra.mxu1 %v21143_v33  ;;  %v21194_v33 = vld [vmem:[#allocation12 + $0x1148] ss:$40 sps:$4 sm:$0xff]  }
 0x691   : > { %11739 = vmatprep.subr.bf16.mxu1 %v21151_v60  ;;  %v21202_v60 = vld [vmem:[#allocation12 + $0x10fc] ss:$40 sps:$4 sm:$0xff]  }
 0x692   : > { %11687 = vmatpush2.bf16.msra.mxu0 %v21146_v18  ;;  %v21197_v18 = vld [vmem:[#allocation12 + $0x1468] ss:$40 sps:$4 sm:$0xff]  }
 0x693   : > { %11688 = vmatprep.subr.bf16.mxu0 %v21154_v28  ;;  %v21205_v28 = vld [vmem:[#allocation12 + $0x141c] ss:$40 sps:$4 sm:$0xff]  }
 0x694   : > { %11740 = vmatpush2.bf16.msra.mxu1 %v21149_v49  ;;  %v21203_v49 = vld [vmem:[#allocation12 + $0x1418] ss:$40 sps:$4 sm:$0xff]  }
 0x695   : > { %11741 = vmatprep.subr.bf16.mxu1 %v21157_v11  ;;  %v21211_v11 = vld [vmem:[#allocation12 + $0x173c] ss:$40 sps:$4 sm:$0xff]  }
 0x696   : > { %11689 = vmatpush2.bf16.msra.mxu0 %v21152_v40  ;;  %v21206_v40 = vld [vmem:[#allocation12 + $0x10a8] ss:$40 sps:$4 sm:$0xff]  }
 0x697   : > { %11690 = vmatprep.subr.bf16.mxu0 %v21160_v43  ;;  %v21527_v63 = vpop.eup %21526  ;;  %v21214_v43 = vld [vmem:[#allocation12 + $0x105c] ss:$40 sps:$4 sm:$0xff]  }
 0x698   : > { %11742 = vmatpush2.bf16.msra.mxu1 %v21155_v42  ;;  %v21217_v42 = vld [vmem:[#allocation12 + $0x16ec] ss:$40 sps:$4 sm:$0xff]  }
 0x699   : > { %v21529_v4 = vpop.eup %21528  ;;  %11793 = vmatprep.subr.bf16.mxu1 %v21163_v47  ;;  %v21212_v47 = vld [vmem:[#allocation12 + $0x1058] ss:$40 sps:$4 sm:$0xff]  }
 0x69a   : > { %v18467_v35 = vpack.c.bf16 %v21529_v4, %v21527_v63  ;;  %11691 = vmatpush2.bf16.msra.mxu0 %v21158_v62  ;;  %v21220_v62 = vld [vmem:[#allocation12 + $0x100c] ss:$40 sps:$4 sm:$0xff]   ;;  %v21223_v63 = vld [vmem:[#allocation12 + $0x169c] ss:$40 sps:$4 sm:$0xff]  }
 0x69b   : > { %v22540_v0 = vpop.f32.mrf.mxu1  ;;  %11744 = vmatmul.mubr.bf16.vlgmr.msra.gmra.mxu1 %v22432_v39  ;;  %11692 = vmatprep.subr.bf16.mxu0 %v21166_v46  ;;  %v21215_v46 = vld [vmem:[#allocation12 + $0x16e8] ss:$40 sps:$4 sm:$0xff]   ;;  %v21226_v4 = vld [vmem:[#allocation12 + $0xfbc] ss:$40 sps:$4 sm:$0xff]  }
 0x69c   : > { %v22550_v56 = vrot.slane %v18467_v35, %v22538_v36  ;;  %11794 = vmatpush1.bf16.msra.mxu1 %v21161_v15  ;;  %18464 = vmatprep.mubr.msk.bf16.mxu1 %vm5408_vm2, %v22449_v50  ;;  %v21218_v15 = vld [vmem:[#allocation12 + $0x1008] ss:$40 sps:$4 sm:$0xff]   ;;  %v21229_v35 = vld [vmem:[#allocation12 + $0x754] ss:$40 sps:$4 sm:$0xff]  }
 0x69d   : > { %v22554_v6 = vpop.f32.mrf.mxu1  ;;  %11795 = vmatprep.subr.bf16.mxu1 %v21169_v2  ;;  %v21221_v2 = vld [vmem:[#allocation12 + $0x1698] ss:$40 sps:$4 sm:$0xff]  }
 0x69e   : > { %v12101_v14 = vcombine.low %v22547_v21, %v22550_v56  ;;  %11693 = vmatpush2.bf16.msra.mxu0 %v21164_v16  ;;  %v22560_v16 = vld [vmem:[#allocation14] sm:$0xff] }
 0x69f   : > { %v11503_v27 = vpop.f32.mrf.mxu1  ;;  %11694 = vmatprep.subr.bf16.mxu0 %v21172_v48  ;;  %v7230_v48 = vrot.slane %v22560_v16, %v22255_v59 }
 0x6a0   : > { %11796 = vmatpush1.bf16.msra.mxu1 %v21167_v9  ;;  %v21224_v9 = vld [vmem:[#allocation12 + $0xfb8] ss:$40 sps:$4 sm:$0xff]  }
 0x6a1   : > { %v11504_v12 = vpop.f32.mrf.mxu1  ;;  %11797 = vmatprep.subr.bf16.mxu1 %v21175_v13  ;;  %v21232_v13 = vld [vmem:[#allocation12 + $0xf6c] ss:$40 sps:$4 sm:$0xff]   ;;  %v21227_v27 = vld [vmem:[#allocation12 + $0x750] ss:$40 sps:$4 sm:$0xff]  }
 0x6a2   : > { %11695 = vmatpush2.bf16.msra.mxu0 %v21170_v20  ;;  %v7234_v20 = vrot.slane %v22560_v16, %v22216_v38 }
 0x6a3   : > { %11696 = vmatprep.subr.bf16.mxu0 %v21178_v55 }
 0x6a4   : > { %11798 = vmatpush1.bf16.msra.mxu1 %v21173_v3  ;;  %v21235_v3 = vld [vmem:[#allocation12 + $0x704] ss:$40 sps:$4 sm:$0xff]  }
 0x6a5   : > { %11799 = vmatprep.subr.bf16.mxu1 %v21181_v29  ;;  %v21230_v29 = vld [vmem:[#allocation12 + $0xf68] ss:$40 sps:$4 sm:$0xff]  }
 0x6a6   : > { %11697 = vmatpush2.bf16.msra.mxu0 %v21176_v37 }
 0x6a7   : > { %11698 = vmatprep.subr.bf16.mxu0 %v21184_v31  ;;  %v21238_v31 = vld [vmem:[#allocation12 + $0xf1c] ss:$40 sps:$4 sm:$0xff]  }
 0x6a8   : > { %11800 = vmatpush1.bf16.msra.mxu1 %v21179_v10  ;;  %v21233_v10 = vld [vmem:[#allocation12 + $0x700] ss:$40 sps:$4 sm:$0xff]  }
 0x6a9   : > { %11801 = vmatprep.subr.bf16.mxu1 %v21187_v45 }
 0x6aa   : > { %11699 = vmatpush2.bf16.msra.mxu0 %v21182_v32  ;;  %v21241_v32 = vld [vmem:[#allocation12 + $0x6b4] ss:$40 sps:$4 sm:$0xff]  }
 0x6ab   : > { %11700 = vmatprep.subr.bf16.mxu0 %v21190_v24  ;;  %v21236_v24 = vld [vmem:[#allocation12 + $0xf18] ss:$40 sps:$4 sm:$0xff]  }
 0x6ac   : > { %11802 = vmatpush1.bf16.msra.mxu1 %v21185_v58 }
 0x6ad   : > { %11803 = vmatprep.subr.bf16.mxu1 %v21193_v61 }
 0x6ae   : > { %11701 = vmatpush2.bf16.msra.mxu0 %v21188_v26  ;;  %v21244_v26 = vld [vmem:[#allocation12 + $0x13cc] ss:$40 sps:$4 sm:$0xff]  }
 0x6af   : > { %11752 = vmatprep.subr.bf16.mxu0 %v21196_v7  ;;  %v21239_v7 = vld [vmem:[#allocation12 + $0x6b0] ss:$40 sps:$4 sm:$0xff]  }
 0x6b0   : > { %11804 = vmatpush1.bf16.msra.mxu1 %v21191_v51  ;;  %v21247_v51 = vld [vmem:[#allocation12 + $0x664] ss:$40 sps:$4 sm:$0xff]  }
 0x6b1   : > { %11703 = vmatmul.mubr.bf16.vlgmr.msra.gmra.mxu0 %v22424_v5  ;;  %11805 = vmatprep.subr.bf16.mxu1 %v21199_v54  ;;  %v21245_v54 = vld [vmem:[#allocation12 + $0x660] ss:$40 sps:$4 sm:$0xff]  }
 0x6b2   : > { %11753 = vmatpush1.bf16.msra.mxu0 %v21194_v33  ;;  %11784 = vmatprep.mubr.bf16.mxu0 %v22426_v8  ;;  %v21253_v33 = vld [vmem:[#allocation12 + $0x614] ss:$40 sps:$4 sm:$0xff]  }
 0x6b3   : > { %11754 = vmatprep.subr.bf16.mxu0 %v21202_v60  ;;  %v21248_v60 = vld [vmem:[#allocation12 + $0x1378] ss:$40 sps:$4 sm:$0xff]  }
 0x6b4   : > { %11806 = vmatpush1.bf16.msra.mxu1 %v21197_v18  ;;  %v21251_v18 = vld [vmem:[#allocation12 + $0x610] ss:$40 sps:$4 sm:$0xff]  }
 0x6b5   : > { %11807 = vmatprep.subr.bf16.mxu1 %v21205_v28  ;;  %v21259_v28 = vld [vmem:[#allocation12 + $0x5c4] ss:$40 sps:$4 sm:$0xff]  }
 0x6b6   : > { %11755 = vmatpush1.bf16.msra.mxu0 %v21200_v19  ;;  %v21254_v19 = vld [vmem:[#allocation12 + $0x1328] ss:$40 sps:$4 sm:$0xff]  }
 0x6b7   : > { %11756 = vmatprep.subr.bf16.mxu0 %v21208_v34  ;;  %v21262_v34 = vld [vmem:[#allocation12 + $0x12dc] ss:$40 sps:$4 sm:$0xff]  }
 0x6b8   : > { %11808 = vmatpush1.bf16.msra.mxu1 %v21203_v49  ;;  %v21257_v49 = vld [vmem:[#allocation12 + $0x5c0] ss:$40 sps:$4 sm:$0xff]  }
 0x6b9   : > { %11819 = vmatprep.subr.bf16.mxu1 %v21211_v11  ;;  %v21265_v11 = vld [vmem:[#allocation12 + $0x574] ss:$40 sps:$4 sm:$0xff]  }
 0x6ba   : > { %11757 = vmatpush1.bf16.msra.mxu0 %v21206_v40  ;;  %v21260_v40 = vld [vmem:[#allocation12 + $0x12d8] ss:$40 sps:$4 sm:$0xff]  }
 0x6bb   : > { %11758 = vmatprep.subr.bf16.mxu0 %v21214_v43 }
 0x6bc   : > { %11820 = vmatpush2.bf16.msra.mxu1 %v21209_v53  ;;  %v21268_v53 = vld [vmem:[#allocation12 + $0x128c] ss:$40 sps:$4 sm:$0xff]  }
 0x6bd   : > { %11821 = vmatprep.subr.bf16.mxu1 %v21217_v42  ;;  %v21263_v42 = vld [vmem:[#allocation12 + $0x570] ss:$40 sps:$4 sm:$0xff]  }
 0x6be   : > { %11759 = vmatpush1.bf16.msra.mxu0 %v21212_v47 }
 0x6bf   : > { %11760 = vmatprep.subr.bf16.mxu0 %v21220_v62  ;;  %v21271_v62 = vld [vmem:[#allocation12 + $0x524] ss:$40 sps:$4 sm:$0xff]  }
 0x6c0   : > { %11822 = vmatpush2.bf16.msra.mxu1 %v21215_v46  ;;  %v21266_v46 = vld [vmem:[#allocation12 + $0x1288] ss:$40 sps:$4 sm:$0xff]  }
 0x6c1   : > { %11823 = vmatprep.subr.bf16.mxu1 %v21223_v63 }
 0x6c2   : > { %11761 = vmatpush1.bf16.msra.mxu0 %v21218_v15  ;;  %v21274_v15 = vld [vmem:[#allocation12 + $0x123c] ss:$40 sps:$4 sm:$0xff]  }
 0x6c3   : > { %11762 = vmatprep.subr.bf16.mxu0 %v21226_v4  ;;  %v21269_v4 = vld [vmem:[#allocation12 + $0x520] ss:$40 sps:$4 sm:$0xff]  }
 0x6c4   : > { %11824 = vmatpush2.bf16.msra.mxu1 %v21221_v2 }
 0x6c5   : > { %v11458_v55 = vpop.f32.mrf.mxu0  ;;  %11875 = vmatprep.subr.bf16.mxu1 %v21229_v35  ;;  %v21277_v35 = vld [vmem:[#allocation12 + $0x9d4] ss:$40 sps:$4 sm:$0xff]  }
 0x6c6   : > { %v11459_v12 = vadd.f32 %v11458_v55, %v7230_v48  ;;  %11763 = vmatpush1.bf16.msra.mxu0 %v21224_v9  ;;  %v21272_v48 = vld [vmem:[#allocation12 + $0x1238] ss:$40 sps:$4 sm:$0xff]   ;;  %v21280_v9 = vld [vmem:[#allocation12 + $0x11ec] ss:$40 sps:$4 sm:$0xff]   ;;  %v21286_v55 = vld [vmem:[#allocation12 + $0x119c] ss:$40 sps:$4 sm:$0xff]  }
 0x6c7   : > { %v11460_v37 = vpop.f32.mrf.mxu0  ;;  %11826 = vmatmul.mubr.bf16.vlgmr.msra.gmra.mxu1 %v22451_v22  ;;  %11764 = vmatprep.subr.bf16.mxu0 %v21232_v13  ;;  %v21275_v13 = vld [vmem:[#allocation12 + $0x9d0] ss:$40 sps:$4 sm:$0xff]  }
 0x6c8   : > { %v11461_v59 = vadd.f32 %v11460_v37, %v7234_v20  ;;  %11876 = vmatpush1.bf16.msra.mxu1 %v21227_v27  ;;  %11907 = vmatprep.mubr.bf16.mxu1 %v22406_v30  ;;  %v22569_v45 = vadd.f32 %v22540_v0, %v11459_v12  ;;  %v21242_v30 = vld [vmem:[#allocation12 + $0x13c8] ss:$40 sps:$4 sm:$0xff]   ;;  %v21250_v0 = vld [vmem:[#allocation12 + $0x137c] ss:$40 sps:$4 sm:$0xff]  }
 0x6c9   : > { %v11462_v38 = vpop.f32.mrf.mxu0  ;;  %11877 = vmatprep.subr.bf16.mxu1 %v21235_v3  ;;  %v21283_v20 = vld [vmem:[#allocation12 + $0x984] ss:$40 sps:$4 sm:$0xff]   ;;  %v21278_v27 = vld [vmem:[#allocation12 + $0x11e8] ss:$40 sps:$4 sm:$0xff]   ;;  %v21289_v12 = vld [vmem:[#allocation12 + $0x934] ss:$40 sps:$4 sm:$0xff]  }
 0x6ca   : > { %11765 = vmatpush1.bf16.msra.mxu0 %v21230_v29  ;;  %v22572_v58 = vadd.f32 %v22554_v6, %v11461_v59  ;;  %v21256_v6 = vld [vmem:[#allocation12 + $0x132c] ss:$40 sps:$4 sm:$0xff]   ;;  %v21281_v3 = vld [vmem:[#allocation12 + $0x980] ss:$40 sps:$4 sm:$0xff]  }
 0x6cb   : > { %v11463_v61 = vpop.f32.mrf.mxu0  ;;  %11766 = vmatprep.subr.bf16.mxu0 %v21238_v31  ;;  %v21284_v29 = vld [vmem:[#allocation12 + $0x1198] ss:$40 sps:$4 sm:$0xff]   ;;  %v21292_v37 = vld [vmem:[#allocation12 + $0x254] ss:$40 sps:$4 sm:$0xff]   ;;  %v21295_v59 = vld [vmem:[#allocation12 + $0x8e4] ss:$40 sps:$4 sm:$0xff]  }
 0x6cc   : > { %11878 = vmatpush1.bf16.msra.mxu1 %v21233_v10  ;;  %v21287_v31 = vld [vmem:[#allocation12 + $0x930] ss:$40 sps:$4 sm:$0xff]   ;;  %v21298_v38 = vld [vmem:[#allocation12 + $0x204] ss:$40 sps:$4 sm:$0xff]   ;;  %v21296_v61 = vld [vmem:[#allocation12 + $0x200] ss:$40 sps:$4 sm:$0xff]  }
 0x6cd   : > { %11879 = vmatprep.subr.bf16.mxu1 %v21241_v32  ;;  %v21290_v10 = vld [vmem:[#allocation12 + $0x250] ss:$40 sps:$4 sm:$0xff]   ;;  %v21293_v32 = vld [vmem:[#allocation12 + $0x8e0] ss:$40 sps:$4 sm:$0xff]  }
 0x6ce   : > { %11767 = vmatpush1.bf16.msra.mxu0 %v21236_v24  ;;  %v21301_v24 = vld [vmem:[#allocation12 + $0x894] ss:$40 sps:$4 sm:$0xff]  }
 0x6cf   : > { %11768 = vmatprep.subr.bf16.mxu0 %v21244_v26  ;;  %v21304_v26 = vld [vmem:[#allocation12 + $0x1b4] ss:$40 sps:$4 sm:$0xff]  }
 0x6d0   : > { %11880 = vmatpush1.bf16.msra.mxu1 %v21239_v7  ;;  %v21299_v7 = vld [vmem:[#allocation12 + $0x890] ss:$40 sps:$4 sm:$0xff]  }
 0x6d1   : > { %11881 = vmatprep.subr.bf16.mxu1 %v21247_v51  ;;  %v21307_v51 = vld [vmem:[#allocation12 + $0x844] ss:$40 sps:$4 sm:$0xff]  }
 0x6d2   : > { %11769 = vmatpush2.bf16.msra.mxu0 %v21242_v30  ;;  %v21302_v30 = vld [vmem:[#allocation12 + $0x1b0] ss:$40 sps:$4 sm:$0xff]  }
 0x6d3   : > { %11770 = vmatprep.subr.bf16.mxu0 %v21250_v0  ;;  %v21310_v0 = vld [vmem:[#allocation12 + $0x164] ss:$40 sps:$4 sm:$0xff]  }
 0x6d4   : > { %11882 = vmatpush1.bf16.msra.mxu1 %v21245_v54  ;;  %v21305_v54 = vld [vmem:[#allocation12 + $0x840] ss:$40 sps:$4 sm:$0xff]  }
 0x6d5   : > { %11883 = vmatprep.subr.bf16.mxu1 %v21253_v33  ;;  %v21313_v33 = vld [vmem:[#allocation12 + $0x7f4] ss:$40 sps:$4 sm:$0xff]  }
 0x6d6   : > { %11771 = vmatpush2.bf16.msra.mxu0 %v21248_v60  ;;  %v21308_v60 = vld [vmem:[#allocation12 + $0x160] ss:$40 sps:$4 sm:$0xff]  }
 0x6d7   : > { %11772 = vmatprep.subr.bf16.mxu0 %v21256_v6  ;;  %v21316_v6 = vld [vmem:[#allocation12 + $0x114] ss:$40 sps:$4 sm:$0xff]  }
 0x6d8   : > { %11884 = vmatpush1.bf16.msra.mxu1 %v21251_v18  ;;  %v21319_v18 = vld [vmem:[#allocation12 + $0x7a4] ss:$40 sps:$4 sm:$0xff]  }
 0x6d9   : > { %11885 = vmatprep.subr.bf16.mxu1 %v21259_v28  ;;  %v21314_v28 = vld [vmem:[#allocation12 + $0x110] ss:$40 sps:$4 sm:$0xff]  }
 0x6da   : > { %11773 = vmatpush2.bf16.msra.mxu0 %v21254_v19  ;;  %v21322_v19 = vld [vmem:[#allocation12 + $0xc4] ss:$40 sps:$4 sm:$0xff]  }
 0x6db   : > { %v22574_v43 = vpop.f32.mrf.mxu1  ;;  %11774 = vmatprep.subr.bf16.mxu0 %v21262_v34  ;;  %v21317_v34 = vld [vmem:[#allocation12 + $0x7a0] ss:$40 sps:$4 sm:$0xff]  }
 0x6dc   : > { %11886 = vmatpush1.bf16.msra.mxu1 %v21257_v49  ;;  %v21325_v49 = vld [vmem:[#allocation12 + $0x1154] ss:$40 sps:$4 sm:$0xff]  }
 0x6dd   : > { %v22576_v47 = vpop.f32.mrf.mxu1  ;;  %11887 = vmatprep.subr.bf16.mxu1 %v21265_v11  ;;  %v21320_v11 = vld [vmem:[#allocation12 + $0xc0] ss:$40 sps:$4 sm:$0xff]  }
 0x6de   : > { %11775 = vmatpush2.bf16.msra.mxu0 %v21260_v40  ;;  %v21328_v40 = vld [vmem:[#allocation12 + $0x74] ss:$40 sps:$4 sm:$0xff]  }
 0x6df   : > { %v11585_v63 = vpop.f32.mrf.mxu1  ;;  %11776 = vmatprep.subr.bf16.mxu0 %v21268_v53  ;;  %v21323_v53 = vld [vmem:[#allocation12 + $0x1150] ss:$40 sps:$4 sm:$0xff]  }
 0x6e0   : > { %11888 = vmatpush1.bf16.msra.mxu1 %v21263_v42  ;;  %v21326_v63 = vld [vmem:[#allocation12 + $0x70] ss:$40 sps:$4 sm:$0xff]  }
 0x6e1   : > { %v11586_v2 = vpop.f32.mrf.mxu1  ;;  %11889 = vmatprep.subr.bf16.mxu1 %v21271_v62  ;;  %v21331_v62 = vld [vmem:[#allocation12 + $0x1104] ss:$40 sps:$4 sm:$0xff]  }
 0x6e2   : > { %11777 = vmatpush2.bf16.msra.mxu0 %v21266_v46 }
 0x6e3   : > { %11778 = vmatprep.subr.bf16.mxu0 %v21274_v15 }
 0x6e4   : > { %11890 = vmatpush1.bf16.msra.mxu1 %v21269_v4  ;;  %v21334_v4 = vld [vmem:[#allocation12 + $0x24] ss:$40 sps:$4 sm:$0xff]  }
 0x6e5   : > { %11891 = vmatprep.subr.bf16.mxu1 %v21277_v35  ;;  %v21329_v35 = vld [vmem:[#allocation12 + $0x1100] ss:$40 sps:$4 sm:$0xff]  }
 0x6e6   : > { %11779 = vmatpush2.bf16.msra.mxu0 %v21272_v48 }
 0x6e7   : > { %11780 = vmatprep.subr.bf16.mxu0 %v21280_v9 }
 0x6e8   : > { %11892 = vmatpush2.bf16.msra.mxu1 %v21275_v13  ;;  %v21337_v13 = vld [vmem:[#allocation12 + $0x10b4] ss:$40 sps:$4 sm:$0xff]  }
 0x6e9   : > { %11893 = vmatprep.subr.bf16.mxu1 %v21283_v20 }
 0x6ea   : > { %11781 = vmatpush2.bf16.msra.mxu0 %v21278_v27  ;;  %v21340_v27 = vld [vmem:[#allocation12 + $0x4d4] ss:$40 sps:$4 sm:$0xff]  }
 0x6eb   : > { %11782 = vmatprep.subr.bf16.mxu0 %v21286_v55  ;;  %v21343_v55 = vld [vmem:[#allocation12 + $0x1064] ss:$40 sps:$4 sm:$0xff]  }
 0x6ec   : > { %11894 = vmatpush2.bf16.msra.mxu1 %v21281_v3  ;;  %v21341_v3 = vld [vmem:[#allocation12 + $0x1060] ss:$40 sps:$4 sm:$0xff]  }
 0x6ed   : > { %11895 = vmatprep.subr.bf16.mxu1 %v21289_v12  ;;  %v21349_v12 = vld [vmem:[#allocation12 + $0x1014] ss:$40 sps:$4 sm:$0xff]  }
 0x6ee   : > { %11783 = vmatpush2.bf16.msra.mxu0 %v21284_v29  ;;  %v21344_v29 = vld [vmem:[#allocation12 + $0x480] ss:$40 sps:$4 sm:$0xff]  }
 0x6ef   : > { %11834 = vmatprep.subr.bf16.mxu0 %v21292_v37  ;;  %v21347_v37 = vld [vmem:[#allocation12 + $0x1010] ss:$40 sps:$4 sm:$0xff]  }
 0x6f0   : > { %11896 = vmatpush2.bf16.msra.mxu1 %v21287_v31  ;;  %v21355_v31 = vld [vmem:[#allocation12 + $0xfc4] ss:$40 sps:$4 sm:$0xff]  }
 0x6f1   : > { %11785 = vmatmul.mubr.bf16.vlgmr.msra.gmra.mxu0 %v22441_v44  ;;  %11897 = vmatprep.subr.bf16.mxu1 %v21295_v59  ;;  %v21350_v59 = vld [vmem:[#allocation12 + $0x430] ss:$40 sps:$4 sm:$0xff]  }
 0x6f2   : > { %11835 = vmatpush1.bf16.msra.mxu0 %v21290_v10  ;;  %11866 = vmatprep.mubr.bf16.mxu0 %v22392_v17  ;;  %v21311_v17 = vld [vmem:[#allocation12 + $0x7f0] ss:$40 sps:$4 sm:$0xff]   ;;  %v21358_v10 = vld [vmem:[#allocation12 + $0x3e4] ss:$40 sps:$4 sm:$0xff]  }
 0x6f3   : > { %11836 = vmatprep.subr.bf16.mxu0 %v21298_v38  ;;  %v21353_v38 = vld [vmem:[#allocation12 + $0xfc0] ss:$40 sps:$4 sm:$0xff]  }
 0x6f4   : > { %11898 = vmatpush2.bf16.msra.mxu1 %v21293_v32  ;;  %v21361_v32 = vld [vmem:[#allocation12 + $0xf74] ss:$40 sps:$4 sm:$0xff]  }
 0x6f5   : > { %11899 = vmatprep.subr.bf16.mxu1 %v21301_v24  ;;  %v21356_v24 = vld [vmem:[#allocation12 + $0x3e0] ss:$40 sps:$4 sm:$0xff]  }
 0x6f6   : > { %11837 = vmatpush1.bf16.msra.mxu0 %v21296_v61 }
 0x6f7   : > { %11838 = vmatprep.subr.bf16.mxu0 %v21304_v26  ;;  %v21364_v26 = vld [vmem:[#allocation12 + $0x394] ss:$40 sps:$4 sm:$0xff]  }
 0x6f8   : > { %11900 = vmatpush2.bf16.msra.mxu1 %v21299_v7  ;;  %v21359_v7 = vld [vmem:[#allocation12 + $0xf70] ss:$40 sps:$4 sm:$0xff]  }
 0x6f9   : > { %11901 = vmatprep.subr.bf16.mxu1 %v21307_v51 }
 0x6fa   : > { %11839 = vmatpush1.bf16.msra.mxu0 %v21302_v30  ;;  %v21367_v30 = vld [vmem:[#allocation12 + $0xf24] ss:$40 sps:$4 sm:$0xff]  }
 0x6fb   : > { %11840 = vmatprep.subr.bf16.mxu0 %v21310_v0  ;;  %v21362_v0 = vld [vmem:[#allocation12 + $0x390] ss:$40 sps:$4 sm:$0xff]  }
 0x6fc   : > { %11902 = vmatpush2.bf16.msra.mxu1 %v21305_v54 }
 0x6fd   : > { %11903 = vmatprep.subr.bf16.mxu1 %v21313_v33  ;;  %v21370_v33 = vld [vmem:[#allocation12 + $0x344] ss:$40 sps:$4 sm:$0xff]  }
 0x6fe   : > { %11841 = vmatpush1.bf16.msra.mxu0 %v21308_v60  ;;  %v21365_v60 = vld [vmem:[#allocation12 + $0xf20] ss:$40 sps:$4 sm:$0xff]  }
 0x6ff   : > { %11842 = vmatprep.subr.bf16.mxu0 %v21316_v6 }
 0x700   : > { %11904 = vmatpush2.bf16.msra.mxu1 %v21311_v17  ;;  %v21373_v17 = vld [vmem:[#allocation12 + $0x13d4] ss:$40 sps:$4 sm:$0xff]  }
 0x701   : > { %11905 = vmatprep.subr.bf16.mxu1 %v21319_v18  ;;  %v21368_v18 = vld [vmem:[#allocation12 + $0x340] ss:$40 sps:$4 sm:$0xff]  }
 0x702   : > { %11843 = vmatpush1.bf16.msra.mxu0 %v21314_v28  ;;  %v21376_v28 = vld [vmem:[#allocation12 + $0x2f4] ss:$40 sps:$4 sm:$0xff]  }
 0x703   : > { %11844 = vmatprep.subr.bf16.mxu0 %v21322_v19  ;;  %v21371_v19 = vld [vmem:[#allocation12 + $0x13d0] ss:$40 sps:$4 sm:$0xff]  }
 0x704   : > { %11906 = vmatpush2.bf16.msra.mxu1 %v21317_v34  ;;  %v21379_v34 = vld [vmem:[#allocation12 + $0x1384] ss:$40 sps:$4 sm:$0xff]  }
 0x705   : > { %v11540_v42 = vpop.f32.mrf.mxu0  ;;  %11957 = vmatprep.subr.bf16.mxu1 %v21325_v49  ;;  %v21374_v49 = vld [vmem:[#allocation12 + $0x2f0] ss:$40 sps:$4 sm:$0xff]  }
 0x706   : > { %v11541_v46 = vadd.f32 %v11540_v42, %v22569_v45  ;;  %11845 = vmatpush1.bf16.msra.mxu0 %v21320_v11  ;;  %v21332_v45 = vld [vmem:[#allocation12 + $0x20] ss:$40 sps:$4 sm:$0xff]   ;;  %v21382_v11 = vld [vmem:[#allocation12 + $0x2a4] ss:$40 sps:$4 sm:$0xff]  }
 0x707   : > { %v11542_v15 = vpop.f32.mrf.mxu0  ;;  %11908 = vmatmul.mubr.bf16.vlgmr.msra.gmra.mxu1 %v22424_v5  ;;  %11846 = vmatprep.subr.bf16.mxu0 %v21328_v40  ;;  %v21377_v40 = vld [vmem:[#allocation12 + $0x1380] ss:$40 sps:$4 sm:$0xff]  }
 0x708   : > { %v11543_v2 = vadd.f32 %v11542_v15, %v22572_v58  ;;  %11958 = vmatpush1.bf16.msra.mxu1 %v21323_v53  ;;  %11989 = vmatprep.mubr.bf16.mxu1 %v22426_v8  ;;  %v22585_v48 = vadd.f32 %v22574_v43, %v11541_v46  ;;  %v21335_v58 = vld [vmem:[#allocation12 + $0x10b0] ss:$40 sps:$4 sm:$0xff]   ;;  %v21346_v43 = vld [vmem:[#allocation12 + $0x484] ss:$40 sps:$4 sm:$0xff]   ;;  %v21385_v53 = vld [vmem:[#allocation12 + $0x1334] ss:$40 sps:$4 sm:$0xff]  }
 0x709   : > { %v11544_v9 = vpop.f32.mrf.mxu0  ;;  %11959 = vmatprep.subr.bf16.mxu1 %v21331_v62  ;;  %v21338_v8 = vld [vmem:[#allocation12 + $0x4d0] ss:$40 sps:$4 sm:$0xff]   ;;  %v21380_v42 = vld [vmem:[#allocation12 + $0x2a0] ss:$40 sps:$4 sm:$0xff]   ;;  %v21388_v62 = vld [vmem:[#allocation12 + $0xc54] ss:$40 sps:$4 sm:$0xff]  }
 0x70a   : > { %11847 = vmatpush1.bf16.msra.mxu0 %v21326_v63  ;;  %v22588_v20 = vadd.f32 %v22576_v47, %v11543_v2  ;;  %v21352_v47 = vld [vmem:[#allocation12 + $0x434] ss:$40 sps:$4 sm:$0xff]   ;;  %v21383_v46 = vld [vmem:[#allocation12 + $0x1330] ss:$40 sps:$4 sm:$0xff]   ;;  %v21391_v63 = vld [vmem:[#allocation12 + $0x12e4] ss:$40 sps:$4 sm:$0xff]  }
 0x70b   : > { %v11545_v5 = vpop.f32.mrf.mxu0  ;;  %11848 = vmatprep.subr.bf16.mxu0 %v21334_v4  ;;  %v21386_v15 = vld [vmem:[#allocation12 + $0xc50] ss:$40 sps:$4 sm:$0xff]   ;;  %v21394_v4 = vld [vmem:[#allocation12 + $0xc04] ss:$40 sps:$4 sm:$0xff]   ;;  %v21389_v2 = vld [vmem:[#allocation12 + $0x12e0] ss:$40 sps:$4 sm:$0xff]  }
 0x70c   : > { %11960 = vmatpush1.bf16.msra.mxu1 %v21329_v35  ;;  %v21397_v9 = vld [vmem:[#allocation12 + $0x1294] ss:$40 sps:$4 sm:$0xff]  }
 0x70d   : > { %11961 = vmatprep.subr.bf16.mxu1 %v21337_v13 }
 0x70e   : > { %11849 = vmatpush1.bf16.msra.mxu0 %v21332_v45  ;;  %v21392_v45 = vld [vmem:[#allocation12 + $0xc00] ss:$40 sps:$4 sm:$0xff]  }
 0x70f   : > { %11850 = vmatprep.subr.bf16.mxu0 %v21340_v27  ;;  %v21400_v27 = vld [vmem:[#allocation12 + $0xbb4] ss:$40 sps:$4 sm:$0xff]  }
 0x710   : > { %11962 = vmatpush1.bf16.msra.mxu1 %v21335_v58 }
 0x711   : > { %11963 = vmatprep.subr.bf16.mxu1 %v21343_v55  ;;  %v21395_v55 = vld [vmem:[#allocation12 + $0x1290] ss:$40 sps:$4 sm:$0xff]  }
 0x712   : > { %11851 = vmatpush2.bf16.msra.mxu0 %v21338_v8 }
 0x713   : > { %11852 = vmatprep.subr.bf16.mxu0 %v21346_v43  ;;  %v21403_v43 = vld [vmem:[#allocation12 + $0x1244] ss:$40 sps:$4 sm:$0xff]  }
 0x714   : > { %11964 = vmatpush1.bf16.msra.mxu1 %v21341_v3 }
 0x715   : > { %11965 = vmatprep.subr.bf16.mxu1 %v21349_v12  ;;  %v21409_v12 = vld [vmem:[#allocation12 + $0x11f4] ss:$40 sps:$4 sm:$0xff]  }
 0x716   : > { %11853 = vmatpush2.bf16.msra.mxu0 %v21344_v29  ;;  %v21404_v29 = vld [vmem:[#allocation12 + $0xb60] ss:$40 sps:$4 sm:$0xff]  }
 0x717   : > { %11854 = vmatprep.subr.bf16.mxu0 %v21352_v47  ;;  %v21407_v47 = vld [vmem:[#allocation12 + $0x11f0] ss:$40 sps:$4 sm:$0xff]  }
 0x718   : > { %11966 = vmatpush1.bf16.msra.mxu1 %v21347_v37  ;;  %v21415_v37 = vld [vmem:[#allocation12 + $0x11a4] ss:$40 sps:$4 sm:$0xff]  }
 0x719   : > { %11967 = vmatprep.subr.bf16.mxu1 %v21355_v31  ;;  %v21410_v31 = vld [vmem:[#allocation12 + $0xb10] ss:$40 sps:$4 sm:$0xff]  }
 0x71a   : > { %11855 = vmatpush2.bf16.msra.mxu0 %v21350_v59  ;;  %v21418_v59 = vld [vmem:[#allocation12 + $0xac4] ss:$40 sps:$4 sm:$0xff]  }
 0x71b   : > { %v22590_v61 = vpop.f32.mrf.mxu1  ;;  %11856 = vmatprep.subr.bf16.mxu0 %v21358_v10  ;;  %v21413_v10 = vld [vmem:[#allocation12 + $0x11a0] ss:$40 sps:$4 sm:$0xff]  }
 0x71c   : > { %11968 = vmatpush1.bf16.msra.mxu1 %v21353_v38 }
 0x71d   : > { %v22592_v51 = vpop.f32.mrf.mxu1  ;;  %11969 = vmatprep.subr.bf16.mxu1 %v21361_v32  ;;  %v21416_v32 = vld [vmem:[#allocation12 + $0xac0] ss:$40 sps:$4 sm:$0xff]  }
 0x71e   : > { %11857 = vmatpush2.bf16.msra.mxu0 %v21356_v24 }
 0x71f   : > { %v11667_v54 = vpop.f32.mrf.mxu1  ;;  %11858 = vmatprep.subr.bf16.mxu0 %v21364_v26  ;;  %v21421_v26 = vld [vmem:[#allocation12 + $0xa74] ss:$40 sps:$4 sm:$0xff]  }
 0x720   : > { %11970 = vmatpush1.bf16.msra.mxu1 %v21359_v7  ;;  %v21422_v54 = vld [vmem:[#allocation12 + $0xa20] ss:$40 sps:$4 sm:$0xff]  }
 0x721   : > { %v11668_v6 = vpop.f32.mrf.mxu1  ;;  %11971 = vmatprep.subr.bf16.mxu1 %v21367_v30  ;;  %v21419_v30 = vld [vmem:[#allocation12 + $0xa70] ss:$40 sps:$4 sm:$0xff]  }
 0x722   : > { %11859 = vmatpush2.bf16.msra.mxu0 %v21362_v0  ;;  %v21424_v0 = vld [vmem:[#allocation12 + $0xa24] ss:$40 sps:$4 sm:$0xff]  }
 0x723   : > { %11860 = vmatprep.subr.bf16.mxu0 %v21370_v33  ;;  %v21427_v33 = vld [vmem:[#allocation12 + $0xed4] ss:$40 sps:$4 sm:$0xff]   ;;  %v21430_v6 = vld [vmem:[#allocation12 + $0xe84] ss:$40 sps:$4 sm:$0xff]  }
 0x724   : > { %11972 = vmatpush1.bf16.msra.mxu1 %v21365_v60  ;;  %v21425_v60 = vld [vmem:[#allocation12 + $0xed0] ss:$40 sps:$4 sm:$0xff]  }
 0x725   : > { %11973 = vmatprep.subr.bf16.mxu1 %v21373_v17  ;;  %v21428_v17 = vld [vmem:[#allocation12 + $0xe80] ss:$40 sps:$4 sm:$0xff]  }
 0x726   : > { %11861 = vmatpush2.bf16.msra.mxu0 %v21368_v18  ;;  %v21433_v18 = vld [vmem:[#allocation12 + $0xe34] ss:$40 sps:$4 sm:$0xff]  }
 0x727   : > { %11862 = vmatprep.subr.bf16.mxu0 %v21376_v28  ;;  %v21431_v28 = vld [vmem:[#allocation12 + $0xe30] ss:$40 sps:$4 sm:$0xff]  }
 0x728   : > { %11974 = vmatpush2.bf16.msra.mxu1 %v21371_v19  ;;  %v21436_v19 = vld [vmem:[#allocation12 + $0xde4] ss:$40 sps:$4 sm:$0xff]  }
 0x729   : > { %11975 = vmatprep.subr.bf16.mxu1 %v21379_v34 }
 0x72a   : > { %11863 = vmatpush2.bf16.msra.mxu0 %v21374_v49  ;;  %v21439_v49 = vld [vmem:[#allocation12 + $0xd94] ss:$40 sps:$4 sm:$0xff]  }
 0x72b   : > { %11864 = vmatprep.subr.bf16.mxu0 %v21382_v11 }
 0x72c   : > { %11976 = vmatpush2.bf16.msra.mxu1 %v21377_v40  ;;  %v21437_v40 = vld [vmem:[#allocation12 + $0xd90] ss:$40 sps:$4 sm:$0xff]  }
 0x72d   : > { %11977 = vmatprep.subr.bf16.mxu1 %v21385_v53 }
 0x72e   : > { %11865 = vmatpush2.bf16.msra.mxu0 %v21380_v42  ;;  %v21442_v42 = vld [vmem:[#allocation12 + $0xd44] ss:$40 sps:$4 sm:$0xff]  }
 0x72f   : > { %11916 = vmatprep.subr.bf16.mxu0 %v21388_v62 }
 0x730   : > { %11978 = vmatpush2.bf16.msra.mxu1 %v21383_v46  ;;  %v21440_v46 = vld [vmem:[#allocation12 + $0xd40] ss:$40 sps:$4 sm:$0xff]  }
 0x731   : > { %v11622_v35 = vpop.f32.mrf.mxu0  ;;  %11867 = vmatmul.mubr.bf16.vlgmr.msra.gmra.mxu0 %v22412_v52  ;;  %11979 = vmatprep.subr.bf16.mxu1 %v21391_v63  ;;  %v21398_v52 = vld [vmem:[#allocation12 + $0xbb0] ss:$40 sps:$4 sm:$0xff]   ;;  %v21445_v63 = vld [vmem:[#allocation12 + $0xcf4] ss:$40 sps:$4 sm:$0xff]  }
 0x732   : > { %v11623_v13 = vadd.f32 %v11622_v35, %v22585_v48  ;;  %11917 = vmatpush1.bf16.msra.mxu0 %v21386_v15  ;;  %11948 = vmatprep.mubr.bf16.mxu0 %v22414_v1  ;;  %v21406_v48 = vld [vmem:[#allocation12 + $0xb64] ss:$40 sps:$4 sm:$0xff]   ;;  %v21401_v1 = vld [vmem:[#allocation12 + $0x1240] ss:$40 sps:$4 sm:$0xff]   ;;  %v21443_v15 = vld [vmem:[#allocation12 + $0xcf0] ss:$40 sps:$4 sm:$0xff]  }
 0x733   : > { %v11624_v5 = vpop.f32.mrf.mxu0  ;;  %11918 = vmatprep.subr.bf16.mxu0 %v21394_v4  ;;  %v21448_v4 = vld [vmem:[#allocation12 + $0xca4] ss:$40 sps:$4 sm:$0xff]   ;;  %v21451_v35 = vld [vmem:[#allocation12 + $0x1654] ss:$40 sps:$4 sm:$0xff]  }
 0x734   : > { %v11625_v58 = vadd.f32 %v11624_v5, %v22588_v20  ;;  %11980 = vmatpush2.bf16.msra.mxu1 %v21389_v2  ;;  %21530 = vtanh.f32 %v11623_v13  ;;  %v21412_v20 = vld [vmem:[#allocation12 + $0xb14] ss:$40 sps:$4 sm:$0xff]   ;;  %v21446_v2 = vld [vmem:[#allocation12 + $0xca0] ss:$40 sps:$4 sm:$0xff]   ;;  %v7242_v13 = vrot.slane %v22560_v16, %v22219_v41  ;;  %v21454_v5 = vld [vmem:[#allocation12 + $0x1604] ss:$40 sps:$4 sm:$0xff]  }
 0x735   : > { %v11626_v8 = vpop.f32.mrf.mxu0  ;;  %11981 = vmatprep.subr.bf16.mxu1 %v21397_v9  ;;  %v7238_v9 = vrot.slane %v22560_v16, %v22252_v57  ;;  %v21452_v57 = vld [vmem:[#allocation12 + $0x1600] ss:$40 sps:$4 sm:$0xff]   ;;  %v21457_v41 = vld [vmem:[#allocation12 + $0x15b4] ss:$40 sps:$4 sm:$0xff]  }
 0x736   : > { %21532 = vtanh.f32 %v11625_v58  ;;  %11919 = vmatpush1.bf16.msra.mxu0 %v21392_v45  ;;  %v21449_v45 = vld [vmem:[#allocation12 + $0x1650] ss:$40 sps:$4 sm:$0xff]  }
 0x737   : > { %v11627_v3 = vpop.f32.mrf.mxu0  ;;  %11920 = vmatprep.subr.bf16.mxu0 %v21400_v27  ;;  %v11664_v27 = vadd.f32 %v22590_v61, %v7238_v9 }
 0x738   : > { %11982 = vmatpush2.bf16.msra.mxu1 %v21395_v55  ;;  %v11666_v55 = vadd.f32 %v22592_v51, %v7242_v13  ;;  %v21458_v51 = vld [vmem:[#allocation12 + $0x1560] ss:$40 sps:$4 sm:$0xff]  }
 0x739   : > { %11983 = vmatprep.subr.bf16.mxu1 %v21403_v43 }
 0x73a   : > { %11921 = vmatpush1.bf16.msra.mxu0 %v21398_v52 }
 0x73b   : > { %11922 = vmatprep.subr.bf16.mxu0 %v21406_v48  ;;  %v21455_v48 = vld [vmem:[#allocation12 + $0x15b0] ss:$40 sps:$4 sm:$0xff]  }
 0x73c   : > { %11984 = vmatpush2.bf16.msra.mxu1 %v21401_v1 }
 0x73d   : > { %11985 = vmatprep.subr.bf16.mxu1 %v21409_v12  ;;  %v21463_v12 = vld [vmem:[#allocation12 + $0x1514] ss:$40 sps:$4 sm:$0xff]  }
 0x73e   : > { %11923 = vmatpush1.bf16.msra.mxu0 %v21404_v29  ;;  %v21461_v29 = vld [vmem:[#allocation12 + $0x1510] ss:$40 sps:$4 sm:$0xff]  }
 0x73f   : > { %11924 = vmatprep.subr.bf16.mxu0 %v21412_v20  ;;  %v21464_v20 = vld [vmem:[#allocation12 + $0x14c0] ss:$40 sps:$4 sm:$0xff]  }
 0x740   : > { %11986 = vmatpush2.bf16.msra.mxu1 %v21407_v47  ;;  %v21469_v47 = vld [vmem:[#allocation12 + $0x1474] ss:$40 sps:$4 sm:$0xff]  }
 0x741   : > { %11987 = vmatprep.subr.bf16.mxu1 %v21415_v37  ;;  %v22598_v38 = vpop.eup %21530  ;;  %v21467_v37 = vld [vmem:[#allocation12 + $0x1470] ss:$40 sps:$4 sm:$0xff]  }
 0x742   : > { %11925 = vmatpush1.bf16.msra.mxu0 %v21410_v31 }
 0x743   : > { %v22600_v24 = vpop.eup %21532  ;;  %11926 = vmatprep.subr.bf16.mxu0 %v21418_v59  ;;  %v21472_v59 = vld [vmem:[#allocation12 + $0x1424] ss:$40 sps:$4 sm:$0xff]  }
 0x744   : > { %v18468_v7 = vpack.c.bf16 %v22600_v24, %v22598_v38  ;;  %11988 = vmatpush2.bf16.msra.mxu1 %v21413_v10 }
 0x746   : > { %11927 = vmatpush1.bf16.msra.mxu0 %v21416_v32  ;;  %v21470_v32 = vld [vmem:[#allocation12 + $0x1420] ss:$40 sps:$4 sm:$0xff]  }
 0x747   : > { %11990 = vmatmul.mubr.bf16.vlgmr.msra.gmra.mxu1 %v22441_v44  ;;  %11928 = vmatprep.subr.bf16.mxu0 %v21421_v26  ;;  %v21434_v44 = vld [vmem:[#allocation12 + $0xde0] ss:$40 sps:$4 sm:$0xff]  }
 0x74a   : > { %11929 = vmatpush1.bf16.msra.mxu0 %v21419_v30  ;;  %v21475_v30 = vld [vmem:[#allocation12 + $0x1744] ss:$40 sps:$4 sm:$0xff]  }
 0x74b   : > { %11930 = vmatprep.subr.bf16.mxu0 %v21424_v0 }
 0x74e   : > { %11931 = vmatpush1.bf16.msra.mxu0 %v21422_v54  ;;  %v21473_v54 = vld [vmem:[#allocation12 + $0x1740] ss:$40 sps:$4 sm:$0xff]  }
 0x74f   : > { %11932 = vmatprep.subr.bf16.mxu0 %v21427_v33  ;;  %v21478_v33 = vld [vmem:[#allocation12 + $0x16f4] ss:$40 sps:$4 sm:$0xff]  }
 0x752   : > { %11933 = vmatpush2.bf16.msra.mxu0 %v21425_v60  ;;  %v21476_v60 = vld [vmem:[#allocation12 + $0x16f0] ss:$40 sps:$4 sm:$0xff]  }
 0x753   : > { %11934 = vmatprep.subr.bf16.mxu0 %v21430_v6  ;;  %v21481_v6 = vld [vmem:[#allocation12 + $0x16a4] ss:$40 sps:$4 sm:$0xff]  }
 0x756   : > { %11935 = vmatpush2.bf16.msra.mxu0 %v21428_v17  ;;  %v21479_v17 = vld [vmem:[#allocation12 + $0x16a0] ss:$40 sps:$4 sm:$0xff]  }
 0x757   : > { %11936 = vmatprep.subr.bf16.mxu0 %v21433_v18 }
 0x75a   : > { %11937 = vmatpush2.bf16.msra.mxu0 %v21431_v28 }
 0x75b   : > { %v11745_v34 = vpop.f32.mrf.mxu1  ;;  %11938 = vmatprep.subr.bf16.mxu0 %v21436_v19 }
 0x75d   : > { %v11747_v11 = vpop.f32.mrf.mxu1 }
 0x75e   : > { %11939 = vmatpush2.bf16.msra.mxu0 %v21434_v44 }
 0x75f   : > { %v11749_v53 = vpop.f32.mrf.mxu1  ;;  %11940 = vmatprep.subr.bf16.mxu0 %v21439_v49 }
 0x761   : > { %v11750_v62 = vpop.f32.mrf.mxu1 }
 0x762   : > { %11941 = vmatpush2.bf16.msra.mxu0 %v21437_v40 }
 0x763   : > { %11942 = vmatprep.subr.bf16.mxu0 %v21442_v42 }
 0x766   : > { %11943 = vmatpush2.bf16.msra.mxu0 %v21440_v46 }
 0x767   : > { %11944 = vmatprep.subr.bf16.mxu0 %v21445_v63  ;;  %v12093_v63 = vrot.slane %v18468_v7, %v22538_v36 }
 0x76a   : > { %11945 = vmatpush2.bf16.msra.mxu0 %v21443_v15 }
 0x76b   : > { %11946 = vmatprep.subr.bf16.mxu0 %v21448_v4 }
 0x76e   : > { %11947 = vmatpush2.bf16.msra.mxu0 %v21446_v2 }
 0x76f   : > { %11998 = vmatprep.subr.bf16.mxu0 %v21451_v35  ;;  %v12109_v35 = vrot.slane %v12101_v14, %v22538_v36 }
 0x771   : > { %v11704_v58 = vpop.f32.mrf.mxu0  ;;  %11949 = vmatmul.mubr.bf16.vlgmr.msra.gmra.mxu0 %v22432_v39  ;;  %v21460_v39 = vld [vmem:[#allocation12 + $0x1564] ss:$40 sps:$4 sm:$0xff]  }
 0x772   : > { %v11705_v8 = vadd.f32 %v11704_v58, %v11664_v27  ;;  %11999 = vmatpush1.bf16.msra.mxu0 %v21449_v45  ;;  %18465 = vmatprep.mubr.msk.bf16.mxu0 %vm5408_vm2, %v22449_v50  ;;  %v21466_v50 = vld [vmem:[#allocation12 + $0x14c4] ss:$40 sps:$4 sm:$0xff]  }
 0x773   : > { %v11706_v43 = vpop.f32.mrf.mxu0  ;;  %12000 = vmatprep.subr.bf16.mxu0 %v21454_v5  ;;  %v7208_v5 = vld [vmem:[#allocation14 + $0x8] sm:$0x3] }
 0x774   : > { %v11707_v16 = vadd.f32 %v11706_v43, %v11666_v55  ;;  %v11746_v52 = vadd.f32 %v11745_v34, %v11705_v8  ;;  %v7246_v27 = vrot.slane %v7208_v5, %v22196_v23  ;;  %v7250_v38 = vrot.slane %v7208_v5, %v22202_v25 }
 0x775   : > { %v11708_v3 = vpop.f32.mrf.mxu0 }
 0x776   : > { %12001 = vmatpush1.bf16.msra.mxu0 %v21452_v57  ;;  %v11748_v61 = vadd.f32 %v11747_v11, %v11707_v16 }
 0x777   : > { %v11709_v1 = vpop.f32.mrf.mxu0  ;;  %12002 = vmatprep.subr.bf16.mxu0 %v21457_v41 }
 0x77a   : > { %12003 = vmatpush1.bf16.msra.mxu0 %v21455_v48 }
 0x77b   : > { %12004 = vmatprep.subr.bf16.mxu0 %v21460_v39 }
 0x77e   : > { %12005 = vmatpush1.bf16.msra.mxu0 %v21458_v51 }
 0x77f   : > { %12006 = vmatprep.subr.bf16.mxu0 %v21463_v12 }
 0x782   : > { %12007 = vmatpush1.bf16.msra.mxu0 %v21461_v29 }
 0x783   : > { %12008 = vmatprep.subr.bf16.mxu0 %v21466_v50 }
 0x786   : > { %12009 = vmatpush1.bf16.msra.mxu0 %v21464_v20 }
 0x787   : > { %v11827_v31 = vpop.f32.mrf.mxu1  ;;  %12010 = vmatprep.subr.bf16.mxu0 %v21469_v47 }
 0x789   : > { %v11829_v10 = vpop.f32.mrf.mxu1 }
 0x78a   : > { %12011 = vmatpush1.bf16.msra.mxu0 %v21467_v37 }
 0x78b   : > { %v11831_v26 = vpop.f32.mrf.mxu1  ;;  %12012 = vmatprep.subr.bf16.mxu0 %v21472_v59 }
 0x78d   : > { %v11832_v0 = vpop.f32.mrf.mxu1 }
 0x78e   : > { %12013 = vmatpush1.bf16.msra.mxu0 %v21470_v32 }
 0x78f   : > { %12024 = vmatprep.subr.bf16.mxu0 %v21475_v30 }
 0x792   : > { %12025 = vmatpush2.bf16.msra.mxu0 %v21473_v54 }
 0x793   : > { %12026 = vmatprep.subr.bf16.mxu0 %v21478_v33 }
 0x796   : > { %12027 = vmatpush2.bf16.msra.mxu0 %v21476_v60 }
 0x797   : > { %12028 = vmatprep.subr.bf16.mxu0 %v21481_v6 }
 0x79a   : > { %12029 = vmatpush2.bf16.msra.mxu0 %v21479_v17 }
 0x79d   : > { %12031 = vmatmul.mubr.bf16.vlgmr.msra.gmra.mxu0 %v22451_v22 }
 0x7b1   : > { %v11786_v18 = vpop.f32.mrf.mxu0 }
 0x7b2   : > { %v11787_v28 = vadd.f32 %v11786_v18, %v11746_v52 }
 0x7b3   : > { %v11788_v19 = vpop.f32.mrf.mxu0 }
 0x7b4   : > { %v11828_v44 = vadd.f32 %v11827_v31, %v11787_v28  ;;  %v11789_v34 = vadd.f32 %v11788_v19, %v11748_v61 }
 0x7b5   : > { %v11790_v49 = vpop.f32.mrf.mxu0 }
 0x7b6   : > { %v11830_v11 = vadd.f32 %v11829_v10, %v11789_v34  ;;  %21534 = vtanh.f32 %v11828_v44 }
 0x7b7   : > { %v11791_v40 = vpop.f32.mrf.mxu0 }
 0x7b8   : > { %21536 = vtanh.f32 %v11830_v11 }
 0x7c3   : > { %v21535_v53 = vpop.eup %21534 }
 0x7c5   : > { %v21537_v42 = vpop.eup %21536 }
 0x7c6   : > { %v18469_v62 = vpack.c.bf16 %v21537_v42, %v21535_v53 }
 0x7c7   : > { %v11909_v46 = vpop.f32.mrf.mxu1 }
 0x7c8   : > { %v12100_v22 = vrot.slane %v18469_v62, %v22538_v36 }
 0x7c9   : > { %v11911_v15 = vpop.f32.mrf.mxu1 }
 0x7ca   : > { %v12102_v4 = vcombine.low %v12093_v63, %v12100_v22 }
 0x7cb   : > { %v11913_v2 = vpop.f32.mrf.mxu1 }
 0x7cc   : > { %v12116_v9 = vrot.slane %v12102_v4, %v22538_v36 }
 0x7cd   : > { %v11914_v13 = vpop.f32.mrf.mxu1 }
 0x7ce   : > { %v12117_v45 = vcombine.low %v12109_v35, %v12116_v9 }
 0x7d0   : > { %12135 = vst [vmem:[#allocation2] sm:$0xff] %v12117_v45 }
 0x7f1   : > { %v11868_v24 = vpop.f32.mrf.mxu0 }
 0x7f2   : > { %v11869_v7 = vadd.f32 %v11868_v24, %v7246_v27 }
 0x7f3   : > { %v11870_v58 = vpop.f32.mrf.mxu0 }
 0x7f4   : > { %v11871_v55 = vadd.f32 %v11870_v58, %v7250_v38  ;;  %v11910_v8 = vadd.f32 %v11909_v46, %v11869_v7 }
 0x7f5   : > { %v11872_v57 = vpop.f32.mrf.mxu0 }
 0x7f6   : > { %v11912_v43 = vadd.f32 %v11911_v15, %v11871_v55 }
 0x7f7   : > { %v11873_v41 = vpop.f32.mrf.mxu0 }
 0x807   : > { %v11991_v21 = vpop.f32.mrf.mxu1 }
 0x809   : > { %v11993_v56 = vpop.f32.mrf.mxu1 }
 0x80b   : > { %v11995_v14 = vpop.f32.mrf.mxu1 }
 0x80d   : > { %v11996_v16 = vpop.f32.mrf.mxu1 }
 0x831   : > { %v11950_v52 = vpop.f32.mrf.mxu0 }
 0x832   : > { %v11951_v3 = vadd.f32 %v11950_v52, %v11910_v8 }
 0x833   : > { %v11952_v48 = vpop.f32.mrf.mxu0 }
 0x834   : > { %v11953_v61 = vadd.f32 %v11952_v48, %v11912_v43  ;;  %v11992_v1 = vadd.f32 %v11991_v21, %v11951_v3 }
 0x835   : > { %v11954_v23 = vpop.f32.mrf.mxu0 }
 0x836   : > { %v11994_v39 = vadd.f32 %v11993_v56, %v11953_v61 }
 0x837   : > { %v11955_v25 = vpop.f32.mrf.mxu0 }
 0x85d   : > { %v12032_v51 = vpop.f32.mrf.mxu0 }
 0x85e   : > { %v12033_v12 = vadd.f32 %v12032_v51, %v11992_v1 }
 0x85f   : > { %v12034_v29 = vpop.f32.mrf.mxu0 }
 0x860   : > { %v12035_v50 = vadd.f32 %v12034_v29, %v11994_v39  ;;  %21538 = vtanh.f32 %v12033_v12 }
 0x861   : > { %v12036_v20 = vpop.f32.mrf.mxu0 }
 0x862   : > { %21540 = vtanh.f32 %v12035_v50 }
 0x863   : > { %v12037_v47 = vpop.f32.mrf.mxu0 }
 0x86d   : > { %v21539_v37 = vpop.eup %21538 }
 0x86f   : > { %v21541_v31 = vpop.eup %21540 }
 0x870   : > { %v18470_v59 = vpack.c.bf16 %v21541_v31, %v21539_v37 }
 0x872   : > { %v12125_v10 = vrot.slane %v18470_v59, %v22538_v36 }
 0x874   : > { %v12132_v32 = vrot.slane %v12125_v10, %v22538_v36 }
 0x876   : > { %12139 = vst.msk [vmem:[#allocation2 + $0x8] sm:$0x3] %vm12138_vm5, %v12132_v32 }
 0x877 PF: > { %v12198_v26 = vld [vmem:[%s22162_s20 + $0x1c0] sm:$0xff]  ;;  %v12744_v38 = vlaneseq  ;;  %v21883_v24 = vmov 1966171168   ;;  %vm15866_vm6 = vcmask 392192   ;;  %s19083_s21 = sshll.u32 %s21957_s15, 8  ;;  %s16751_s17 = sshll.u32 %s22172_s19, 4  ;;  %s16752_s17 = int_to_ptr.vmem [resolvable:$true] %s16751_s17 }
 0x878   : > { %v12202_v30 = vld [vmem:[%s22162_s20 + $0x1e0] sm:$0xff]  ;;  %v12788_v7 = vunpack.c.l.s4 %v21883_v24  ;;  %s16749_s27 = scalar_lea.hbm %s23445_s9, %s19083_s21  ;;  %s16737_s14 = scalar_lea.sflag [#allocation5], %s22159_s16 }
 0x879   : > { %v12326_v0 = vld [vmem:[%s22162_s20 + $0x5c0] sm:$0xff]  ;;  %v18529_v54 = vcombine.high %v12198_v26, %v12202_v30  ;;  %v18528_v36 = vcombine.low %v12198_v26, %v12202_v30  ;;  %v22651_v14 = vshrl.u32 %v12744_v38, 7  ;;  %s21785_s23 = scalar_lea.vmem %s16752_s17, 256  ;;  %p23491_p9 = scmp.ne.s32.totalorder %s23471_s24, 0 }
 0x87a   : > { %v12330_v33 = vld [vmem:[%s22162_s20 + $0x5e0] sm:$0xff]  ;;  %v12789_v16 = vunpack.c.0.s8 %v12788_v7  ;;  %p21786_p7 = scmp.ne.s32.totalorder %s16752_s17, %s21785_s23  ;;  %s21885_s28 = smov [#allocation18]  }
 0x87b   : > { %v12190_v60 = vld [vmem:[%s22162_s20 + $0x180] sm:$0xff]  ;;  %v18657_v17 = vcombine.high %v12326_v0, %v12330_v33  ;;  %v18656_v18 = vcombine.low %v12326_v0, %v12330_v33  ;;  %15870 = vmatprep.subr.bf16.mxu0 %v18529_v54  ;;  %s21789_s15 = sshll.u32 %s21885_s28, 4  ;;  %s21790_s15 = int_to_ptr.vmem [resolvable:$false] %s21789_s15 }
 0x87c   : > { %v12194_v6 = vld [vmem:[%s22162_s20 + $0x1a0] sm:$0xff]  ;;  %15871 = vmatpush1.bf16.msra.mxu0 %v18528_v36  ;;  %v22658_v51 = vsub.s32 %v12789_v16, %v22651_v14  ;;  %p21787_p11 = pnand %p21786_p7, %p23491_p9  ;;  %s21791_s22 = scalar_lea.vmem %s21790_s15, 512 }
 0x87d   : > { %v18521_v28 = vcombine.high %v12190_v60, %v12194_v6  ;;  %v12318_v19 = vld [vmem:[%s22162_s20 + $0x580] sm:$0xff]  ;;  %15911 = vmatprep.subr.bf16.mxu1 %v18657_v17  ;;  %v18520_v42 = vcombine.low %v12190_v60, %v12194_v6  ;;  %p21792_p10 = scmp.lt.s32.totalorder %s16752_s17, %s21790_s15  ;;  %p21793_p5 = scmp.lt.s32.totalorder %s21791_s22, %s21785_s23 }
 0x87e   : > { %v12322_v44 = vld [vmem:[%s22162_s20 + $0x5a0] sm:$0xff]  ;;  %15912 = vmatpush1.bf16.msra.mxu1 %v18656_v18  ;;  %p21788_p2 = pneg %p21787_p11 }
 0x87f   : > { %v12182_v34 = vld [vmem:[%s22162_s20 + $0x140] sm:$0xff]  ;;  %v18649_v49 = vcombine.high %v12318_v19, %v12322_v44  ;;  %15872 = vmatprep.subr.bf16.mxu0 %v18521_v28  ;;  %v18648_v62 = vcombine.low %v12318_v19, %v12322_v44  ;;  %p21794_p12 = por %p21793_p5, %p21792_p10 }
 0x880   : > { %v12186_v11 = vld [vmem:[%s22162_s20 + $0x160] sm:$0xff]  ;;  %15873 = vmatpush1.bf16.msra.mxu0 %v18520_v42 }
 0x881   : > { %v12310_v40 = vld [vmem:[%s22162_s20 + $0x540] sm:$0xff]  ;;  %v18513_v46 = vcombine.high %v12182_v34, %v12186_v11  ;;  %15913 = vmatprep.subr.bf16.mxu1 %v18649_v49  ;;  %v18512_v35 = vcombine.low %v12182_v34, %v12186_v11  ;;  %p21795_p0 = pnand %p21794_p12, %p21788_p2 }
 0x882   : > { %v12314_v53 = vld [vmem:[%s22162_s20 + $0x560] sm:$0xff]  ;;  %15914 = vmatpush1.bf16.msra.mxu1 %v18648_v62 }
 0x883   : > { %v18641_v63 = vcombine.high %v12310_v40, %v12314_v53  ;;  %v12174_v22 = vld [vmem:[%s22162_s20 + $0x100] sm:$0xff]  ;;  %15874 = vmatprep.subr.bf16.mxu0 %v18513_v46  ;;  %v18640_v9 = vcombine.low %v12310_v40, %v12314_v53 }
 0x884   : > { %v12178_v15 = vld [vmem:[%s22162_s20 + $0x120] sm:$0xff]  ;;  %15875 = vmatpush1.bf16.msra.mxu0 %v18512_v35 }
 0x885   : > { %v12302_v4 = vld [vmem:[%s22162_s20 + $0x500] sm:$0xff]  ;;  %v18505_v13 = vcombine.high %v12174_v22, %v12178_v15  ;;  %15915 = vmatprep.subr.bf16.mxu1 %v18641_v63  ;;  %v18504_v8 = vcombine.low %v12174_v22, %v12178_v15 }
 0x886   : > { %v12306_v2 = vld [vmem:[%s22162_s20 + $0x520] sm:$0xff]  ;;  %15916 = vmatpush1.bf16.msra.mxu1 %v18640_v9 }
 0x887   : > { %v18633_v45 = vcombine.high %v12302_v4, %v12306_v2  ;;  %v12166_v5 = vld [vmem:[%s22162_s20 + $0xc0] sm:$0xff]  ;;  %15876 = vmatprep.subr.bf16.mxu0 %v18505_v13  ;;  %v18632_v57 = vcombine.low %v12302_v4, %v12306_v2 }
 0x888   : > { %v12170_v27 = vld [vmem:[%s22162_s20 + $0xe0] sm:$0xff]  ;;  %15877 = vmatpush1.bf16.msra.mxu0 %v18504_v8 }
 0x889   : > { %v12294_v58 = vld [vmem:[%s22162_s20 + $0x4c0] sm:$0xff]  ;;  %v18497_v43 = vcombine.high %v12166_v5, %v12170_v27  ;;  %15917 = vmatprep.subr.bf16.mxu1 %v18633_v45  ;;  %v18496_v48 = vcombine.low %v12166_v5, %v12170_v27 }
 0x88a   : > { %v12298_v55 = vld [vmem:[%s22162_s20 + $0x4e0] sm:$0xff]  ;;  %15918 = vmatpush1.bf16.msra.mxu1 %v18632_v57 }
 0x88b   : > { %v18625_v41 = vcombine.high %v12294_v58, %v12298_v55  ;;  %v12158_v21 = vld [vmem:[%s22162_s20 + $0x80] sm:$0xff]  ;;  %15878 = vmatprep.subr.bf16.mxu0 %v18497_v43  ;;  %v18624_v61 = vcombine.low %v12294_v58, %v12298_v55 }
 0x88c   : > { %v12162_v56 = vld [vmem:[%s22162_s20 + $0xa0] sm:$0xff]  ;;  %15879 = vmatpush1.bf16.msra.mxu0 %v18496_v48 }
 0x88d   : > { %v12286_v52 = vld [vmem:[%s22162_s20 + $0x480] sm:$0xff]  ;;  %v18489_v1 = vcombine.high %v12158_v21, %v12162_v56  ;;  %15919 = vmatprep.subr.bf16.mxu1 %v18625_v41  ;;  %v18488_v50 = vcombine.low %v12158_v21, %v12162_v56 }
 0x88e   : > { %v12290_v3 = vld [vmem:[%s22162_s20 + $0x4a0] sm:$0xff]  ;;  %15920 = vmatpush1.bf16.msra.mxu1 %v18624_v61 }
 0x88f   : > { %v18617_v23 = vcombine.high %v12286_v52, %v12290_v3  ;;  %v12150_v39 = vld [vmem:[%s22162_s20 + $0x40] sm:$0xff]  ;;  %15880 = vmatprep.subr.bf16.mxu0 %v18489_v1  ;;  %v18616_v20 = vcombine.low %v12286_v52, %v12290_v3 }
 0x890   : > { %v12154_v25 = vld [vmem:[%s22162_s20 + $0x60] sm:$0xff]  ;;  %15881 = vmatpush1.bf16.msra.mxu0 %v18488_v50 }
 0x891   : > { %v12278_v12 = vld [vmem:[%s22162_s20 + $0x440] sm:$0xff]  ;;  %v18481_v47 = vcombine.high %v12150_v39, %v12154_v25  ;;  %15921 = vmatprep.subr.bf16.mxu1 %v18617_v23  ;;  %v18480_v0 = vcombine.low %v12150_v39, %v12154_v25 }
 0x892   : > { %v12282_v29 = vld [vmem:[%s22162_s20 + $0x460] sm:$0xff]  ;;  %15922 = vmatpush1.bf16.msra.mxu1 %v18616_v20 }
 0x893   : > { %v12140_v37 = vld [vmem:[#allocation2] sm:$0xff]  ;;  %v18609_v31 = vcombine.high %v12278_v12, %v12282_v29  ;;  %15882 = vmatprep.subr.bf16.mxu0 %v18481_v47  ;;  %v18608_v33 = vcombine.low %v12278_v12, %v12282_v29 }
 0x894   : > { %v12142_v59 = vld [vmem:[%s22162_s20] sm:$0xff]  ;;  %v22665_v32 = vrot.slane %v12140_v37, %v22658_v51  ;;  %15883 = vmatpush1.bf16.msra.mxu0 %v18480_v0  ;;  %v12786_v62 = vcombine.high %v12140_v37, %v12140_v37 }
 0x895   : > { %v12146_v10 = vld [vmem:[%s22162_s20 + $0x20] sm:$0xff]  ;;  %15923 = vmatprep.subr.bf16.mxu1 %v18609_v31 }
 0x896   : > { %v12270_v26 = vld [vmem:[%s22162_s20 + $0x400] sm:$0xff]  ;;  %v12801_v54 = vcombine.high %v22665_v32, %v22665_v32  ;;  %v18473_v36 = vcombine.high %v12142_v59, %v12146_v10  ;;  %v18472_v44 = vcombine.low %v12142_v59, %v12146_v10  ;;  %15924 = vmatpush1.bf16.msra.mxu1 %v18608_v33  ;;  %v22691_v13 = vrot.slane %v12786_v62, %v22658_v51 }
 0x897   : > { %v12274_v30 = vld [vmem:[%s22162_s20 + $0x420] sm:$0xff] }
 0x898   : > { %v18601_v60 = vcombine.high %v12270_v26, %v12274_v30  ;;  %v12262_v6 = vld [vmem:[%s22162_s20 + $0x3c0] sm:$0xff]  ;;  %v22674_v18 = vrot.slane %v12801_v54, %v22658_v51  ;;  %15884 = vmatprep.subr.bf16.mxu0 %v18473_v36  ;;  %v18600_v49 = vcombine.low %v12270_v26, %v12274_v30  ;;  %v22697_v38 = vrot.slane %v22691_v13, %v22658_v51 }
 0x899   : > { %v12266_v17 = vld [vmem:[%s22162_s20 + $0x3e0] sm:$0xff]  ;;  %15885 = vmatpush1.bf16.msra.mxu0 %v18472_v44 }
 0x89a   : > { %v12390_v28 = vld [vmem:[%s22162_s20 + $0x7c0] sm:$0xff]  ;;  %15902 = vmatprep.mubr.bf16.mxu0 %v22674_v18  ;;  %v22681_v34 = vcombine.high %v22674_v18, %v22674_v18  ;;  %v18593_v11 = vcombine.high %v12262_v6, %v12266_v17  ;;  %15925 = vmatprep.subr.bf16.mxu1 %v18601_v60  ;;  %v18592_v22 = vcombine.low %v12262_v6, %v12266_v17 }
 0x89b   : > { %v12394_v19 = vld [vmem:[%s22162_s20 + $0x7e0] sm:$0xff]  ;;  %15926 = vmatpush1.bf16.msra.mxu1 %v18600_v49 }
 0x89c   : > { %v18721_v40 = vcombine.high %v12390_v28, %v12394_v19  ;;  %v12254_v53 = vld [vmem:[%s22162_s20 + $0x380] sm:$0xff]  ;;  %15943 = vmatprep.mubr.bf16.mxu1 %v22681_v34  ;;  %15886 = vmatprep.subr.bf16.mxu0 %v18593_v11  ;;  %v18720_v15 = vcombine.low %v12390_v28, %v12394_v19 }
 0x89d   : > { %v12258_v42 = vld [vmem:[%s22162_s20 + $0x3a0] sm:$0xff]  ;;  %15887 = vmatpush2.bf16.msra.mxu0 %v18592_v22 }
 0x89e   : > { %v12382_v46 = vld [vmem:[%s22162_s20 + $0x780] sm:$0xff]  ;;  %v18585_v4 = vcombine.high %v12254_v53, %v12258_v42  ;;  %15927 = vmatprep.subr.bf16.mxu1 %v18721_v40  ;;  %v18584_v27 = vcombine.low %v12254_v53, %v12258_v42 }
 0x89f   : > { %v12386_v63 = vld [vmem:[%s22162_s20 + $0x7a0] sm:$0xff]  ;;  %15928 = vmatpush2.bf16.msra.mxu1 %v18720_v15  ;;  %v22727_v15 = vrot.slane %v22665_v32, %v22658_v51 }
 0x8a0   : > { %v18713_v2 = vcombine.high %v12382_v46, %v12386_v63  ;;  %v12246_v35 = vld [vmem:[%s22162_s20 + $0x340] sm:$0xff]  ;;  %15888 = vmatprep.subr.bf16.mxu0 %v18585_v4  ;;  %v18712_v24 = vcombine.low %v12382_v46, %v12386_v63  ;;  %v12802_v63 = vcombine.high %v22691_v13, %v22691_v13 }
 0x8a1   : > { %v12250_v9 = vld [vmem:[%s22162_s20 + $0x360] sm:$0xff]  ;;  %15889 = vmatpush2.bf16.msra.mxu0 %v18584_v27  ;;  %v22738_v32 = vcombine.high %v22727_v15, %v22727_v15 }
 0x8a2   : > { %v12374_v45 = vld [vmem:[%s22162_s20 + $0x740] sm:$0xff]  ;;  %v18577_v7 = vcombine.high %v12246_v35, %v12250_v9  ;;  %15929 = vmatprep.subr.bf16.mxu1 %v18713_v2  ;;  %v18576_v41 = vcombine.low %v12246_v35, %v12250_v9  ;;  %v22734_v27 = vrot.slane %v12802_v63, %v22658_v51 }
 0x8a3   : > { %v12378_v5 = vld [vmem:[%s22162_s20 + $0x760] sm:$0xff]  ;;  %15930 = vmatpush2.bf16.msra.mxu1 %v18712_v24 }
 0x8a4   : > { %v18705_v58 = vcombine.high %v12374_v45, %v12378_v5  ;;  %v12238_v55 = vld [vmem:[%s22162_s20 + $0x300] sm:$0xff]  ;;  %15890 = vmatprep.subr.bf16.mxu0 %v18577_v7  ;;  %v18704_v21 = vcombine.low %v12374_v45, %v12378_v5 }
 0x8a5   : > { %v12242_v8 = vld [vmem:[%s22162_s20 + $0x320] sm:$0xff]  ;;  %15891 = vmatpush2.bf16.msra.mxu0 %v18576_v41 }
 0x8a6   : > { %v12366_v57 = vld [vmem:[%s22162_s20 + $0x700] sm:$0xff]  ;;  %v18569_v56 = vcombine.high %v12238_v55, %v12242_v8  ;;  %15931 = vmatprep.subr.bf16.mxu1 %v18705_v58  ;;  %v18568_v1 = vcombine.low %v12238_v55, %v12242_v8 }
 0x8a7   : > { %v12370_v43 = vld [vmem:[%s22162_s20 + $0x720] sm:$0xff]  ;;  %15932 = vmatpush2.bf16.msra.mxu1 %v18704_v21  ;;  %v22747_v21 = vcombine.high %v22734_v27, %v22734_v27 }
 0x8a8   : > { %v18697_v16 = vcombine.high %v12366_v57, %v12370_v43  ;;  %v12230_v52 = vld [vmem:[%s22162_s20 + $0x2c0] sm:$0xff]  ;;  %15892 = vmatprep.subr.bf16.mxu0 %v18569_v56  ;;  %v18696_v23 = vcombine.low %v12366_v57, %v12370_v43 }
 0x8a9   : > { %v12234_v3 = vld [vmem:[%s22162_s20 + $0x2e0] sm:$0xff]  ;;  %15893 = vmatpush2.bf16.msra.mxu0 %v18568_v1 }
 0x8aa   : > { %v12358_v48 = vld [vmem:[%s22162_s20 + $0x6c0] sm:$0xff]  ;;  %v18561_v39 = vcombine.high %v12230_v52, %v12234_v3  ;;  %15933 = vmatprep.subr.bf16.mxu1 %v18697_v16  ;;  %v18560_v47 = vcombine.low %v12230_v52, %v12234_v3 }
 0x8ab   : > { %v12362_v61 = vld [vmem:[%s22162_s20 + $0x6e0] sm:$0xff]  ;;  %15934 = vmatpush2.bf16.msra.mxu1 %v18696_v23 }
 0x8ac   : > { %v18689_v25 = vcombine.high %v12358_v48, %v12362_v61  ;;  %v12222_v12 = vld [vmem:[%s22162_s20 + $0x280] sm:$0xff]  ;;  %15894 = vmatprep.subr.bf16.mxu0 %v18561_v39  ;;  %v18688_v37 = vcombine.low %v12358_v48, %v12362_v61 }
 0x8ad   : > { %v12226_v29 = vld [vmem:[%s22162_s20 + $0x2a0] sm:$0xff]  ;;  %15895 = vmatpush2.bf16.msra.mxu0 %v18560_v47 }
 0x8ae   : > { %v12350_v50 = vld [vmem:[%s22162_s20 + $0x680] sm:$0xff]  ;;  %v18553_v31 = vcombine.high %v12222_v12, %v12226_v29  ;;  %15935 = vmatprep.subr.bf16.mxu1 %v18689_v25  ;;  %v18552_v54 = vcombine.low %v12222_v12, %v12226_v29 }
 0x8af   : > { %v12354_v20 = vld [vmem:[%s22162_s20 + $0x6a0] sm:$0xff]  ;;  %15936 = vmatpush2.bf16.msra.mxu1 %v18688_v37 }
 0x8b0   : > { %v18681_v59 = vcombine.high %v12350_v50, %v12354_v20  ;;  %v12214_v10 = vld [vmem:[%s22162_s20 + $0x240] sm:$0xff]  ;;  %15896 = vmatprep.subr.bf16.mxu0 %v18553_v31  ;;  %v18680_v33 = vcombine.low %v12350_v50, %v12354_v20 }
 0x8b1   : > { %v12218_v26 = vld [vmem:[%s22162_s20 + $0x260] sm:$0xff]  ;;  %15897 = vmatpush2.bf16.msra.mxu0 %v18552_v54 }
 0x8b2   : > { %v12342_v30 = vld [vmem:[%s22162_s20 + $0x640] sm:$0xff]  ;;  %v18545_v36 = vcombine.high %v12214_v10, %v12218_v26  ;;  %15937 = vmatprep.subr.bf16.mxu1 %v18681_v59  ;;  %v18544_v44 = vcombine.low %v12214_v10, %v12218_v26 }
 0x8b3   : > { %v12346_v0 = vld [vmem:[%s22162_s20 + $0x660] sm:$0xff]  ;;  %15938 = vmatpush2.bf16.msra.mxu1 %v18680_v33 }
 0x8b4   : > { %v18673_v60 = vcombine.high %v12342_v30, %v12346_v0  ;;  %v12206_v6 = vld [vmem:[%s22162_s20 + $0x200] sm:$0xff]  ;;  %15898 = vmatprep.subr.bf16.mxu0 %v18545_v36  ;;  %v18672_v49 = vcombine.low %v12342_v30, %v12346_v0 }
 0x8b5   : > { %v12210_v17 = vld [vmem:[%s22162_s20 + $0x220] sm:$0xff]  ;;  %15899 = vmatpush2.bf16.msra.mxu0 %v18544_v44 }
 0x8b6   : > { %v12334_v28 = vld [vmem:[%s22162_s20 + $0x600] sm:$0xff]  ;;  %v18537_v11 = vcombine.high %v12206_v6, %v12210_v17  ;;  %15939 = vmatprep.subr.bf16.mxu1 %v18673_v60  ;;  %v18536_v22 = vcombine.low %v12206_v6, %v12210_v17 }
 0x8b7   : > { %v12338_v19 = vld [vmem:[%s22162_s20 + $0x620] sm:$0xff]  ;;  %15940 = vmatpush2.bf16.msra.mxu1 %v18672_v49 }
 0x8b8   : > { %v18665_v40 = vcombine.high %v12334_v28, %v12338_v19  ;;  %v12454_v53 = vld [vmem:[%s22162_s20 + $0x9c0] sm:$0xff]  ;;  %15900 = vmatprep.subr.bf16.mxu0 %v18537_v11  ;;  %v18664_v4 = vcombine.low %v12334_v28, %v12338_v19 }
 0x8b9   : > { %v12458_v42 = vld [vmem:[%s22162_s20 + $0x9e0] sm:$0xff]  ;;  %15901 = vmatpush2.bf16.msra.mxu0 %v18536_v22 }
 0x8ba   : > { %v12582_v62 = vld [vmem:[%s22162_s20 + $0xdc0] sm:$0xff]  ;;  %v18785_v2 = vcombine.high %v12454_v53, %v12458_v42  ;;  %15941 = vmatprep.subr.bf16.mxu1 %v18665_v40  ;;  %v18784_v24 = vcombine.low %v12454_v53, %v12458_v42 }
 0x8bb   : > { %v12586_v46 = vld [vmem:[%s22162_s20 + $0xde0] sm:$0xff]  ;;  %15942 = vmatpush2.bf16.msra.mxu1 %v18664_v4 }
 0x8bc   : > { %v18913_v35 = vcombine.high %v12582_v62, %v12586_v46  ;;  %v12446_v9 = vld [vmem:[%s22162_s20 + $0x980] sm:$0xff]  ;;  %15952 = vmatprep.subr.bf16.mxu0 %v18785_v2  ;;  %v18912_v7 = vcombine.low %v12582_v62, %v12586_v46  ;;  %15903 = vmatmul.mubr.bf16.vlgmr.msra.gmra.mxu0 %v22727_v15 }
 0x8bd   : > { %v12450_v45 = vld [vmem:[%s22162_s20 + $0x9a0] sm:$0xff]  ;;  %15953 = vmatpush1.bf16.msra.mxu0 %v18784_v24  ;;  %15984 = vmatprep.mubr.bf16.mxu0 %v22734_v27 }
 0x8be   : > { %v12574_v5 = vld [vmem:[%s22162_s20 + $0xd80] sm:$0xff]  ;;  %v18777_v58 = vcombine.high %v12446_v9, %v12450_v45  ;;  %15993 = vmatprep.subr.bf16.mxu1 %v18913_v35  ;;  %15944 = vmatmul.mubr.bf16.vlgmr.msra.gmra.mxu1 %v22738_v32  ;;  %v18776_v56 = vcombine.low %v12446_v9, %v12450_v45 }
 0x8bf   : > { %v12578_v13 = vld [vmem:[%s22162_s20 + $0xda0] sm:$0xff]  ;;  %15994 = vmatpush1.bf16.msra.mxu1 %v18912_v7  ;;  %16025 = vmatprep.mubr.bf16.mxu1 %v22747_v21 }
 0x8c0   : > { %v18905_v55 = vcombine.high %v12574_v5, %v12578_v13  ;;  %v12438_v8 = vld [vmem:[%s22162_s20 + $0x940] sm:$0xff]  ;;  %15954 = vmatprep.subr.bf16.mxu0 %v18777_v58  ;;  %v18904_v16 = vcombine.low %v12574_v5, %v12578_v13 }
 0x8c1   : > { %v12442_v57 = vld [vmem:[%s22162_s20 + $0x960] sm:$0xff]  ;;  %15955 = vmatpush1.bf16.msra.mxu0 %v18776_v56 }
 0x8c2   : > { %v12566_v43 = vld [vmem:[%s22162_s20 + $0xd40] sm:$0xff]  ;;  %v18769_v52 = vcombine.high %v12438_v8, %v12442_v57  ;;  %15995 = vmatprep.subr.bf16.mxu1 %v18905_v55  ;;  %v18768_v39 = vcombine.low %v12438_v8, %v12442_v57 }
 0x8c3   : > { %v12570_v41 = vld [vmem:[%s22162_s20 + $0xd60] sm:$0xff]  ;;  %15996 = vmatpush1.bf16.msra.mxu1 %v18904_v16 }
 0x8c4   : > { %v18897_v3 = vcombine.high %v12566_v43, %v12570_v41  ;;  %v12430_v48 = vld [vmem:[%s22162_s20 + $0x900] sm:$0xff]  ;;  %15956 = vmatprep.subr.bf16.mxu0 %v18769_v52  ;;  %v18896_v25 = vcombine.low %v12566_v43, %v12570_v41 }
 0x8c5   : > { %v12434_v61 = vld [vmem:[%s22162_s20 + $0x920] sm:$0xff]  ;;  %15957 = vmatpush1.bf16.msra.mxu0 %v18768_v39 }
 0x8c6   : > { %v12558_v1 = vld [vmem:[%s22162_s20 + $0xd00] sm:$0xff]  ;;  %v18761_v12 = vcombine.high %v12430_v48, %v12434_v61  ;;  %15997 = vmatprep.subr.bf16.mxu1 %v18897_v3  ;;  %v18760_v31 = vcombine.low %v12430_v48, %v12434_v61 }
 0x8c7   : > { %v12562_v23 = vld [vmem:[%s22162_s20 + $0xd20] sm:$0xff]  ;;  %15998 = vmatpush1.bf16.msra.mxu1 %v18896_v25 }
 0x8c8   : > { %v18889_v29 = vcombine.high %v12558_v1, %v12562_v23  ;;  %v12422_v50 = vld [vmem:[%s22162_s20 + $0x8c0] sm:$0xff]  ;;  %15958 = vmatprep.subr.bf16.mxu0 %v18761_v12  ;;  %v18888_v59 = vcombine.low %v12558_v1, %v12562_v23 }
 0x8c9   : > { %v12426_v20 = vld [vmem:[%s22162_s20 + $0x8e0] sm:$0xff]  ;;  %15959 = vmatpush1.bf16.msra.mxu0 %v18760_v31 }
 0x8ca   : > { %v12550_v47 = vld [vmem:[%s22162_s20 + $0xcc0] sm:$0xff]  ;;  %v18753_v10 = vcombine.high %v12422_v50, %v12426_v20  ;;  %15999 = vmatprep.subr.bf16.mxu1 %v18889_v29  ;;  %v18752_v36 = vcombine.low %v12422_v50, %v12426_v20 }
 0x8cb   : > { %v12554_v37 = vld [vmem:[%s22162_s20 + $0xce0] sm:$0xff]  ;;  %16000 = vmatpush1.bf16.msra.mxu1 %v18888_v59 }
 0x8cc   : > { %v18881_v26 = vcombine.high %v12550_v47, %v12554_v37  ;;  %v12414_v30 = vld [vmem:[%s22162_s20 + $0x880] sm:$0xff]  ;;  %15960 = vmatprep.subr.bf16.mxu0 %v18753_v10  ;;  %v18880_v60 = vcombine.low %v12550_v47, %v12554_v37 }
 0x8cd   : > { %v12418_v0 = vld [vmem:[%s22162_s20 + $0x8a0] sm:$0xff]  ;;  %15961 = vmatpush1.bf16.msra.mxu0 %v18752_v36 }
 0x8ce   : > { %v12542_v54 = vld [vmem:[%s22162_s20 + $0xc80] sm:$0xff]  ;;  %v18745_v6 = vcombine.high %v12414_v30, %v12418_v0  ;;  %16001 = vmatprep.subr.bf16.mxu1 %v18881_v26  ;;  %v18744_v11 = vcombine.low %v12414_v30, %v12418_v0 }
 0x8cf   : > { %v12546_v33 = vld [vmem:[%s22162_s20 + $0xca0] sm:$0xff]  ;;  %16002 = vmatpush1.bf16.msra.mxu1 %v18880_v60 }
 0x8d0   : > { %v18873_v17 = vcombine.high %v12542_v54, %v12546_v33  ;;  %v12406_v28 = vld [vmem:[%s22162_s20 + $0x840] sm:$0xff]  ;;  %15962 = vmatprep.subr.bf16.mxu0 %v18745_v6  ;;  %v18872_v40 = vcombine.low %v12542_v54, %v12546_v33 }
 0x8d1   : > { %v12410_v19 = vld [vmem:[%s22162_s20 + $0x860] sm:$0xff]  ;;  %15963 = vmatpush1.bf16.msra.mxu0 %v18744_v11 }
 0x8d2   : > { %v12534_v44 = vld [vmem:[%s22162_s20 + $0xc40] sm:$0xff]  ;;  %v18737_v53 = vcombine.high %v12406_v28, %v12410_v19  ;;  %16003 = vmatprep.subr.bf16.mxu1 %v18873_v17  ;;  %v18736_v4 = vcombine.low %v12406_v28, %v12410_v19 }
 0x8d3   : > { %v12538_v49 = vld [vmem:[%s22162_s20 + $0xc60] sm:$0xff]  ;;  %16004 = vmatpush1.bf16.msra.mxu1 %v18872_v40 }
 0x8d4   : > { %v18865_v42 = vcombine.high %v12534_v44, %v12538_v49  ;;  %v12398_v62 = vld [vmem:[%s22162_s20 + $0x800] sm:$0xff]  ;;  %15964 = vmatprep.subr.bf16.mxu0 %v18737_v53  ;;  %v18864_v2 = vcombine.low %v12534_v44, %v12538_v49 }
 0x8d5   : > { %v12402_v46 = vld [vmem:[%s22162_s20 + $0x820] sm:$0xff]  ;;  %15965 = vmatpush1.bf16.msra.mxu0 %v18736_v4 }
 0x8d6   : > { %v12526_v63 = vld [vmem:[%s22162_s20 + $0xc00] sm:$0xff]  ;;  %v18729_v35 = vcombine.high %v12398_v62, %v12402_v46  ;;  %16005 = vmatprep.subr.bf16.mxu1 %v18865_v42  ;;  %v18728_v7 = vcombine.low %v12398_v62, %v12402_v46 }
 0x8d7   : > { %v12530_v22 = vld [vmem:[%s22162_s20 + $0xc20] sm:$0xff]  ;;  %16006 = vmatpush1.bf16.msra.mxu1 %v18864_v2 }
 0x8d8   : > { %v18857_v9 = vcombine.high %v12526_v63, %v12530_v22  ;;  %v12518_v45 = vld [vmem:[%s22162_s20 + $0xbc0] sm:$0xff]  ;;  %15966 = vmatprep.subr.bf16.mxu0 %v18729_v35  ;;  %v18856_v58 = vcombine.low %v12526_v63, %v12530_v22 }
 0x8d9   : > { %v12522_v5 = vld [vmem:[%s22162_s20 + $0xbe0] sm:$0xff]  ;;  %15967 = vmatpush1.bf16.msra.mxu0 %v18728_v7 }
 0x8da   : > { %v12646_v13 = vld [vmem:[%s22162_s20 + $0xfc0] sm:$0xff]  ;;  %v18849_v55 = vcombine.high %v12518_v45, %v12522_v5  ;;  %16007 = vmatprep.subr.bf16.mxu1 %v18857_v9  ;;  %v18848_v16 = vcombine.low %v12518_v45, %v12522_v5 }
 0x8db   : > { %v12650_v24 = vld [vmem:[%s22162_s20 + $0xfe0] sm:$0xff]  ;;  %16008 = vmatpush1.bf16.msra.mxu1 %v18856_v58 }
 0x8dc   : > { %v18977_v8 = vcombine.high %v12646_v13, %v12650_v24  ;;  %v12510_v57 = vld [vmem:[%s22162_s20 + $0xb80] sm:$0xff]  ;;  %15968 = vmatprep.subr.bf16.mxu0 %v18849_v55  ;;  %v18976_v52 = vcombine.low %v12646_v13, %v12650_v24 }
 0x8dd   : > { %v12514_v43 = vld [vmem:[%s22162_s20 + $0xba0] sm:$0xff]  ;;  %15969 = vmatpush2.bf16.msra.mxu0 %v18848_v16  ;;  %v12203_v16 = vld [vmem:[%s22162_s20 + $0x1e8] sm:$0xff] }
 0x8de   : > { %v12638_v41 = vld [vmem:[%s22162_s20 + $0xf80] sm:$0xff]  ;;  %v18841_v3 = vcombine.high %v12510_v57, %v12514_v43  ;;  %16009 = vmatprep.subr.bf16.mxu1 %v18977_v8  ;;  %v18840_v25 = vcombine.low %v12510_v57, %v12514_v43 }
 0x8df   : > { %v12642_v56 = vld [vmem:[%s22162_s20 + $0xfa0] sm:$0xff]  ;;  %16010 = vmatpush2.bf16.msra.mxu1 %v18976_v52  ;;  %v22808_v52 = vld.sshfl [vmem:[#allocation2 + $0x8] sm:$0x11 pattern:$0x75316420] }
 0x8e0   : > { %v18969_v48 = vcombine.high %v12638_v41, %v12642_v56  ;;  %v12502_v61 = vld [vmem:[%s22162_s20 + $0xb40] sm:$0xff]  ;;  %15970 = vmatprep.subr.bf16.mxu0 %v18841_v3  ;;  %v18968_v12 = vcombine.low %v12638_v41, %v12642_v56  ;;  %v12199_v56 = vld [vmem:[%s22162_s20 + $0x1c8] sm:$0xff] }
 0x8e1   : > { %v12506_v1 = vld [vmem:[%s22162_s20 + $0xb60] sm:$0xff]  ;;  %15971 = vmatpush2.bf16.msra.mxu0 %v18840_v25  ;;  %v12842_v25 = vcombine.high %v22808_v52, %v22808_v52 }
 0x8e2   : > { %v12630_v23 = vld [vmem:[%s22162_s20 + $0xf40] sm:$0xff]  ;;  %v18833_v29 = vcombine.high %v12502_v61, %v12506_v1  ;;  %16011 = vmatprep.subr.bf16.mxu1 %v18969_v48  ;;  %v18832_v59 = vcombine.low %v12502_v61, %v12506_v1  ;;  %v18531_v1 = vcombine.high %v12199_v56, %v12203_v16 }
 0x8e3   : > { %v12634_v39 = vld [vmem:[%s22162_s20 + $0xf60] sm:$0xff]  ;;  %16012 = vmatpush2.bf16.msra.mxu1 %v18968_v12  ;;  %v12191_v12 = vld [vmem:[%s22162_s20 + $0x188] sm:$0xff] }
 0x8e4   : > { %v18961_v50 = vcombine.high %v12630_v23, %v12634_v39  ;;  %v12494_v20 = vld [vmem:[%s22162_s20 + $0xb00] sm:$0xff]  ;;  %15972 = vmatprep.subr.bf16.mxu0 %v18833_v29  ;;  %v18960_v10 = vcombine.low %v12630_v23, %v12634_v39  ;;  %v12195_v29 = vld [vmem:[%s22162_s20 + $0x1a8] sm:$0xff] }
 0x8e5   : > { %v12498_v47 = vld [vmem:[%s22162_s20 + $0xb20] sm:$0xff]  ;;  %15973 = vmatpush2.bf16.msra.mxu0 %v18832_v59 }
 0x8e6   : > { %v12622_v37 = vld [vmem:[%s22162_s20 + $0xf00] sm:$0xff]  ;;  %v18825_v26 = vcombine.high %v12494_v20, %v12498_v47  ;;  %16013 = vmatprep.subr.bf16.mxu1 %v18961_v50  ;;  %v18824_v60 = vcombine.low %v12494_v20, %v12498_v47  ;;  %v22818_v50 = vcombine.high %v22697_v38, %v22697_v38  ;;  %v18530_v47 = vcombine.low %v12199_v56, %v12203_v16 }
 0x8e7   : > { %v12626_v31 = vld [vmem:[%s22162_s20 + $0xf20] sm:$0xff]  ;;  %16014 = vmatpush2.bf16.msra.mxu1 %v18960_v10 }
 0x8e8   : > { %v18953_v30 = vcombine.high %v12622_v37, %v12626_v31  ;;  %v12486_v0 = vld [vmem:[%s22162_s20 + $0xac0] sm:$0xff]  ;;  %15974 = vmatprep.subr.bf16.mxu0 %v18825_v26  ;;  %v18952_v6 = vcombine.low %v12622_v37, %v12626_v31  ;;  %v18523_v31 = vcombine.high %v12191_v12, %v12195_v29  ;;  %v22823_v26 = vrot.slane %v12842_v25, %v22658_v51 }
 0x8e9   : > { %v12490_v54 = vld [vmem:[%s22162_s20 + $0xae0] sm:$0xff]  ;;  %15975 = vmatpush2.bf16.msra.mxu0 %v18824_v60 }
 0x8ea   : > { %v12614_v33 = vld [vmem:[%s22162_s20 + $0xec0] sm:$0xff]  ;;  %v18817_v17 = vcombine.high %v12486_v0, %v12490_v54  ;;  %16015 = vmatprep.subr.bf16.mxu1 %v18953_v30  ;;  %v18816_v40 = vcombine.low %v12486_v0, %v12490_v54  ;;  %v12183_v30 = vld [vmem:[%s22162_s20 + $0x148] sm:$0xff] }
 0x8eb   : > { %v12618_v36 = vld [vmem:[%s22162_s20 + $0xee0] sm:$0xff]  ;;  %16016 = vmatpush2.bf16.msra.mxu1 %v18952_v6  ;;  %v12187_v0 = vld [vmem:[%s22162_s20 + $0x168] sm:$0xff] }
 0x8ec   : > { %v18945_v28 = vcombine.high %v12614_v33, %v12618_v36  ;;  %v12478_v19 = vld [vmem:[%s22162_s20 + $0xa80] sm:$0xff]  ;;  %15976 = vmatprep.subr.bf16.mxu0 %v18817_v17  ;;  %v18944_v53 = vcombine.low %v12614_v33, %v12618_v36  ;;  %v18522_v33 = vcombine.low %v12191_v12, %v12195_v29  ;;  %v18515_v60 = vcombine.high %v12183_v30, %v12187_v0 }
 0x8ed   : > { %v12482_v44 = vld [vmem:[%s22162_s20 + $0xaa0] sm:$0xff]  ;;  %15977 = vmatpush2.bf16.msra.mxu0 %v18816_v40 }
 0x8ee   : > { %v12606_v49 = vld [vmem:[%s22162_s20 + $0xe80] sm:$0xff]  ;;  %v18809_v42 = vcombine.high %v12478_v19, %v12482_v44  ;;  %16017 = vmatprep.subr.bf16.mxu1 %v18945_v28  ;;  %v18808_v2 = vcombine.low %v12478_v19, %v12482_v44  ;;  %v12175_v28 = vld [vmem:[%s22162_s20 + $0x108] sm:$0xff] }
 0x8ef   : > { %v12610_v11 = vld [vmem:[%s22162_s20 + $0xea0] sm:$0xff]  ;;  %16018 = vmatpush2.bf16.msra.mxu1 %v18944_v53  ;;  %v12179_v19 = vld [vmem:[%s22162_s20 + $0x128] sm:$0xff] }
 0x8f0   : > { %v18937_v62 = vcombine.high %v12606_v49, %v12610_v11  ;;  %v12470_v46 = vld [vmem:[%s22162_s20 + $0xa40] sm:$0xff]  ;;  %15978 = vmatprep.subr.bf16.mxu0 %v18809_v42  ;;  %v18936_v35 = vcombine.low %v12606_v49, %v12610_v11  ;;  %v18514_v49 = vcombine.low %v12183_v30, %v12187_v0  ;;  %v18507_v40 = vcombine.high %v12175_v28, %v12179_v19 }
 0x8f1   : > { %v12474_v63 = vld [vmem:[%s22162_s20 + $0xa60] sm:$0xff]  ;;  %15979 = vmatpush2.bf16.msra.mxu0 %v18808_v2 }
 0x8f2   : > { %v12598_v22 = vld [vmem:[%s22162_s20 + $0xe40] sm:$0xff]  ;;  %v18801_v9 = vcombine.high %v12470_v46, %v12474_v63  ;;  %16019 = vmatprep.subr.bf16.mxu1 %v18937_v62  ;;  %v18800_v58 = vcombine.low %v12470_v46, %v12474_v63  ;;  %v12167_v62 = vld [vmem:[%s22162_s20 + $0xc8] sm:$0xff] }
 0x8f3   : > { %v12602_v4 = vld [vmem:[%s22162_s20 + $0xe60] sm:$0xff]  ;;  %16020 = vmatpush2.bf16.msra.mxu1 %v18936_v35  ;;  %v12171_v46 = vld [vmem:[%s22162_s20 + $0xe8] sm:$0xff] }
 0x8f4   : > { %v18929_v45 = vcombine.high %v12598_v22, %v12602_v4  ;;  %v12462_v5 = vld [vmem:[%s22162_s20 + $0xa00] sm:$0xff]  ;;  %15980 = vmatprep.subr.bf16.mxu0 %v18801_v9  ;;  %v18928_v55 = vcombine.low %v12598_v22, %v12602_v4  ;;  %v18506_v22 = vcombine.low %v12175_v28, %v12179_v19  ;;  %v18499_v2 = vcombine.high %v12167_v62, %v12171_v46 }
 0x8f5   : > { %v12466_v13 = vld [vmem:[%s22162_s20 + $0xa20] sm:$0xff]  ;;  %15981 = vmatpush2.bf16.msra.mxu0 %v18800_v58 }
 0x8f6   : > { %v12590_v24 = vld [vmem:[%s22162_s20 + $0xe00] sm:$0xff]  ;;  %v18793_v8 = vcombine.high %v12462_v5, %v12466_v13  ;;  %16021 = vmatprep.subr.bf16.mxu1 %v18929_v45  ;;  %v18792_v3 = vcombine.low %v12462_v5, %v12466_v13  ;;  %v12159_v45 = vld [vmem:[%s22162_s20 + $0x88] sm:$0xff] }
 0x8f7   : > { %v12594_v7 = vld [vmem:[%s22162_s20 + $0xe20] sm:$0xff]  ;;  %16022 = vmatpush2.bf16.msra.mxu1 %v18928_v55  ;;  %v12163_v5 = vld [vmem:[%s22162_s20 + $0xa8] sm:$0xff] }
 0x8f8   : > { %v18921_v57 = vcombine.high %v12590_v24, %v12594_v7  ;;  %v12710_v43 = vld [vmem:[%s22162_s20 + $0x11c0] sm:$0xff]  ;;  %15982 = vmatprep.subr.bf16.mxu0 %v18793_v8  ;;  %v18920_v48 = vcombine.low %v12590_v24, %v12594_v7  ;;  %v18498_v24 = vcombine.low %v12167_v62, %v12171_v46  ;;  %v18491_v58 = vcombine.high %v12159_v45, %v12163_v5 }
 0x8f9   : > { %v12714_v41 = vld [vmem:[%s22162_s20 + $0x11e0] sm:$0xff]  ;;  %15983 = vmatpush2.bf16.msra.mxu0 %v18792_v3  ;;  %v18490_v56 = vcombine.low %v12159_v45, %v12163_v5 }
 0x8fa   : > { %v19041_v61 = vcombine.high %v12710_v43, %v12714_v41  ;;  %16023 = vmatprep.subr.bf16.mxu1 %v18921_v57  ;;  %v12702_v23 = vld [vmem:[%s22162_s20 + $0x1180] sm:$0xff]  ;;  %v19040_v20 = vcombine.low %v12710_v43, %v12714_v41  ;;  %v12151_v57 = vld [vmem:[%s22162_s20 + $0x48] sm:$0xff] }
 0x8fb   : > { %v12706_v39 = vld [vmem:[%s22162_s20 + $0x11a0] sm:$0xff]  ;;  %16024 = vmatpush2.bf16.msra.mxu1 %v18920_v48  ;;  %v12155_v43 = vld [vmem:[%s22162_s20 + $0x68] sm:$0xff] }
 0x8fc   : > { %16034 = vmatprep.subr.bf16.mxu0 %v19041_v61  ;;  %v19033_v37 = vcombine.high %v12702_v23, %v12706_v39  ;;  %16075 = vmatprep.subr.bf16.mxu1 %v18531_v1  ;;  %v12694_v59 = vld [vmem:[%s22162_s20 + $0x1140] sm:$0xff]  ;;  %v19032_v54 = vcombine.low %v12702_v23, %v12706_v39  ;;  %v18483_v3 = vcombine.high %v12151_v57, %v12155_v43  ;;  %v12143_v1 = vld [vmem:[%s22162_s20 + $0x8] sm:$0xff] }
 0x8fd   : > { %v12698_v10 = vld [vmem:[%s22162_s20 + $0x1160] sm:$0xff]  ;;  %15985 = vmatmul.mubr.bf16.vlgmr.msra.gmra.mxu0 %v22697_v38  ;;  %v12147_v23 = vld [vmem:[%s22162_s20 + $0x28] sm:$0xff]  ;;  %v18482_v25 = vcombine.low %v12151_v57, %v12155_v43 }
 0x8fe   : > { %16026 = vmatmul.mubr.bf16.vlgmr.msra.gmra.mxu1 %v22818_v50  ;;  %16035 = vmatpush1.bf16.msra.mxu0 %v19040_v20  ;;  %v19025_v36 = vcombine.high %v12694_v59, %v12698_v10  ;;  %v12686_v6 = vld [vmem:[%s22162_s20 + $0x1100] sm:$0xff]  ;;  %v19024_v44 = vcombine.low %v12694_v59, %v12698_v10  ;;  %v18475_v29 = vcombine.high %v12143_v1, %v12147_v23 }
 0x8ff   : > { %16076 = vmatpush1.bf16.msra.mxu1 %v18530_v47  ;;  %16036 = vmatprep.subr.bf16.mxu0 %v19033_v37  ;;  %v12690_v17 = vld [vmem:[%s22162_s20 + $0x1120] sm:$0xff]  ;;  %v12263_v37 = vld [vmem:[%s22162_s20 + $0x3c8] sm:$0xff]  ;;  %v18474_v10 = vcombine.low %v12143_v1, %v12147_v23 }
 0x900   : > { %16077 = vmatprep.subr.bf16.mxu1 %v18523_v31  ;;  %19072 = vmatprep.mubr.msk.bf16.mxu0 %vm15866_vm6, %v22823_v26  ;;  %v19017_v11 = vcombine.high %v12686_v6, %v12690_v17  ;;  %v12678_v53 = vld [vmem:[%s22162_s20 + $0x10c0] sm:$0xff]  ;;  %v19016_v63 = vcombine.low %v12686_v6, %v12690_v17  ;;  %v12267_v31 = vld [vmem:[%s22162_s20 + $0x3e8] sm:$0xff] }
 0x901   : > { %16107 = vmatprep.mubr.bf16.mxu1 %v22674_v18  ;;  %v12682_v42 = vld [vmem:[%s22162_s20 + $0x10e0] sm:$0xff]  ;;  %v18595_v0 = vcombine.high %v12263_v37, %v12267_v31  ;;  %v18594_v17 = vcombine.low %v12263_v37, %v12267_v31  ;;  %v12303_v23 = vld [vmem:[%s22162_s20 + $0x508] sm:$0xff] }
 0x902   : > { %16037 = vmatpush1.bf16.msra.mxu0 %v19032_v54  ;;  %v19009_v4 = vcombine.high %v12678_v53, %v12682_v42  ;;  %v12670_v35 = vld [vmem:[%s22162_s20 + $0x1080] sm:$0xff]  ;;  %v19008_v13 = vcombine.low %v12678_v53, %v12682_v42  ;;  %v12295_v31 = vld [vmem:[%s22162_s20 + $0x4c8] sm:$0xff] }
 0x903   : > { %16078 = vmatpush1.bf16.msra.mxu1 %v18522_v33  ;;  %16038 = vmatprep.subr.bf16.mxu0 %v19025_v36  ;;  %v12674_v9 = vld [vmem:[%s22162_s20 + $0x10a0] sm:$0xff]  ;;  %v12255_v36 = vld [vmem:[%s22162_s20 + $0x388] sm:$0xff] }
 0x904   : > { %16079 = vmatprep.subr.bf16.mxu1 %v18515_v60  ;;  %v19001_v7 = vcombine.high %v12670_v35, %v12674_v9  ;;  %v12662_v55 = vld [vmem:[%s22162_s20 + $0x1040] sm:$0xff]  ;;  %v19000_v41 = vcombine.low %v12670_v35, %v12674_v9  ;;  %v12259_v60 = vld [vmem:[%s22162_s20 + $0x3a8] sm:$0xff] }
 0x905   : > { %v12666_v8 = vld [vmem:[%s22162_s20 + $0x1060] sm:$0xff]  ;;  %v18587_v19 = vcombine.high %v12255_v36, %v12259_v60  ;;  %v18586_v42 = vcombine.low %v12255_v36, %v12259_v60  ;;  %v12287_v60 = vld [vmem:[%s22162_s20 + $0x488] sm:$0xff] }
 0x906   : > { %16039 = vmatpush1.bf16.msra.mxu0 %v19024_v44  ;;  %v18993_v16 = vcombine.high %v12662_v55, %v12666_v8  ;;  %v12654_v48 = vld [vmem:[%s22162_s20 + $0x1000] sm:$0xff]  ;;  %v18992_v39 = vcombine.low %v12662_v55, %v12666_v8  ;;  %v12235_v55 = vld [vmem:[%s22162_s20 + $0x2e8] sm:$0xff] }
 0x907   : > { %16080 = vmatpush1.bf16.msra.mxu1 %v18514_v49  ;;  %16040 = vmatprep.subr.bf16.mxu0 %v19017_v11  ;;  %v12658_v61 = vld [vmem:[%s22162_s20 + $0x1020] sm:$0xff]  ;;  %v12247_v11 = vld [vmem:[%s22162_s20 + $0x348] sm:$0xff] }
 0x908   : > { %16081 = vmatprep.subr.bf16.mxu1 %v18507_v40  ;;  %v18985_v12 = vcombine.high %v12654_v48, %v12658_v61  ;;  %v12734_v20 = vld [vmem:[%s22162_s20 + $0x1280] sm:$0xff]  ;;  %v18984_v59 = vcombine.low %v12654_v48, %v12658_v61  ;;  %v12251_v40 = vld [vmem:[%s22162_s20 + $0x368] sm:$0xff] }
 0x909   : > { %v12738_v47 = vld [vmem:[%s22162_s20 + $0x12a0] sm:$0xff]  ;;  %v18579_v46 = vcombine.high %v12247_v11, %v12251_v40  ;;  %v18578_v9 = vcombine.low %v12247_v11, %v12251_v40  ;;  %v12279_v40 = vld [vmem:[%s22162_s20 + $0x448] sm:$0xff] }
 0x90a   : > { %16041 = vmatpush1.bf16.msra.mxu0 %v19016_v63  ;;  %v19065_v30 = vcombine.high %v12734_v20, %v12738_v47  ;;  %v12726_v54 = vld [vmem:[%s22162_s20 + $0x1240] sm:$0xff]  ;;  %v19064_v6 = vcombine.low %v12734_v20, %v12738_v47  ;;  %v12327_v63 = vld [vmem:[%s22162_s20 + $0x5c8] sm:$0xff] }
 0x90b   : > { %16082 = vmatpush1.bf16.msra.mxu1 %v18506_v22  ;;  %16042 = vmatprep.subr.bf16.mxu0 %v19009_v4  ;;  %v12730_v33 = vld [vmem:[%s22162_s20 + $0x1260] sm:$0xff]  ;;  %v12331_v22 = vld [vmem:[%s22162_s20 + $0x5e8] sm:$0xff] }
 0x90c   : > { %16083 = vmatprep.subr.bf16.mxu1 %v18499_v2  ;;  %v19057_v28 = vcombine.high %v12726_v54, %v12730_v33  ;;  %v12718_v44 = vld [vmem:[%s22162_s20 + $0x1200] sm:$0xff]  ;;  %v19056_v53 = vcombine.low %v12726_v54, %v12730_v33  ;;  %v12239_v4 = vld [vmem:[%s22162_s20 + $0x308] sm:$0xff]  ;;  %v18659_v45 = vcombine.high %v12327_v63, %v12331_v22  ;;  %v18658_v8 = vcombine.low %v12327_v63, %v12331_v22 }
 0x90d   : > { %v12722_v49 = vld [vmem:[%s22162_s20 + $0x1220] sm:$0xff]  ;;  %v12243_v2 = vld [vmem:[%s22162_s20 + $0x328] sm:$0xff] }
 0x90e   : > { %16043 = vmatpush1.bf16.msra.mxu0 %v19008_v13  ;;  %v19049_v62 = vcombine.high %v12718_v44, %v12722_v49  ;;  %v19048_v35 = vcombine.low %v12718_v44, %v12722_v49  ;;  %v18571_v5 = vcombine.high %v12239_v4, %v12243_v2  ;;  %v12319_v13 = vld [vmem:[%s22162_s20 + $0x588] sm:$0xff]  ;;  %v18570_v57 = vcombine.low %v12239_v4, %v12243_v2 }
 0x90f   : > { %16084 = vmatpush1.bf16.msra.mxu1 %v18498_v24  ;;  %16044 = vmatprep.subr.bf16.mxu0 %v19001_v7  ;;  %v12323_v24 = vld [vmem:[%s22162_s20 + $0x5a8] sm:$0xff]  ;;  %v22872_v7 = vrot.slane %v22808_v52, %v22658_v51 }
 0x910   : > { %16085 = vmatprep.subr.bf16.mxu1 %v18491_v58  ;;  %v12231_v58 = vld [vmem:[%s22162_s20 + $0x2c8] sm:$0xff]  ;;  %v18651_v43 = vcombine.high %v12319_v13, %v12323_v24 }
 0x911   : > { %v12223_v51 = vld [vmem:[%s22162_s20 + $0x288] sm:$0xff]  ;;  %v18562_v48 = vcombine.low %v12231_v58, %v12235_v55 }
 0x912   : > { %16045 = vmatpush1.bf16.msra.mxu0 %v19000_v41  ;;  %v18563_v41 = vcombine.high %v12231_v58, %v12235_v55  ;;  %v12227_v52 = vld [vmem:[%s22162_s20 + $0x2a8] sm:$0xff] }
 0x913   : > { %16086 = vmatpush1.bf16.msra.mxu1 %v18490_v56  ;;  %16046 = vmatprep.subr.bf16.mxu0 %v18993_v16  ;;  %v12311_v56 = vld [vmem:[%s22162_s20 + $0x548] sm:$0xff]  ;;  %v18555_v1 = vcombine.high %v12223_v51, %v12227_v52  ;;  %v18554_v20 = vcombine.low %v12223_v51, %v12227_v52 }
 0x914   : > { %16087 = vmatprep.subr.bf16.mxu1 %v18483_v3  ;;  %v12315_v16 = vld [vmem:[%s22162_s20 + $0x568] sm:$0xff]  ;;  %v18650_v3 = vcombine.low %v12319_v13, %v12323_v24 }
 0x915   : > { %v18643_v61 = vcombine.high %v12311_v56, %v12315_v16  ;;  %v12271_v2 = vld [vmem:[%s22162_s20 + $0x408] sm:$0xff] }
 0x916   : > { %16047 = vmatpush1.bf16.msra.mxu0 %v18992_v39  ;;  %v12307_v39 = vld [vmem:[%s22162_s20 + $0x528] sm:$0xff] }
 0x917   : > { %16088 = vmatpush1.bf16.msra.mxu1 %v18482_v25  ;;  %16048 = vmatprep.subr.bf16.mxu0 %v18985_v12  ;;  %v12215_v25 = vld [vmem:[%s22162_s20 + $0x248] sm:$0xff]  ;;  %v18635_v47 = vcombine.high %v12303_v23, %v12307_v39 }
 0x918   : > { %16089 = vmatprep.subr.bf16.mxu1 %v18475_v29  ;;  %v12219_v12 = vld [vmem:[%s22162_s20 + $0x268] sm:$0xff]  ;;  %v18642_v29 = vcombine.low %v12311_v56, %v12315_v16 }
 0x919   : > { %v18547_v37 = vcombine.high %v12215_v25, %v12219_v12  ;;  %v18546_v54 = vcombine.low %v12215_v25, %v12219_v12  ;;  %v12391_v55 = vld [vmem:[%s22162_s20 + $0x7c8] sm:$0xff] }
 0x91a   : > { %16049 = vmatpush1.bf16.msra.mxu0 %v18984_v59  ;;  %v12299_v59 = vld [vmem:[%s22162_s20 + $0x4e8] sm:$0xff] }
 0x91b   : > { %16090 = vmatpush1.bf16.msra.mxu1 %v18474_v10  ;;  %16060 = vmatprep.subr.bf16.mxu0 %v19065_v30  ;;  %v12207_v10 = vld [vmem:[%s22162_s20 + $0x208] sm:$0xff]  ;;  %v18627_v33 = vcombine.high %v12295_v31, %v12299_v59 }
 0x91c   : > { %16091 = vmatprep.subr.bf16.mxu1 %v18595_v0  ;;  %v12211_v30 = vld [vmem:[%s22162_s20 + $0x228] sm:$0xff]  ;;  %v18634_v0 = vcombine.low %v12303_v23, %v12307_v39 }
 0x91d   : > { %v18539_v36 = vcombine.high %v12207_v10, %v12211_v30  ;;  %v18538_v44 = vcombine.low %v12207_v10, %v12211_v30  ;;  %v12383_v52 = vld [vmem:[%s22162_s20 + $0x788] sm:$0xff] }
 0x91e   : > { %16061 = vmatpush2.bf16.msra.mxu0 %v19064_v6  ;;  %v12291_v6 = vld [vmem:[%s22162_s20 + $0x4a8] sm:$0xff] }
 0x91f   : > { %16092 = vmatpush2.bf16.msra.mxu1 %v18594_v17  ;;  %16062 = vmatprep.subr.bf16.mxu0 %v19057_v28  ;;  %v12455_v17 = vld [vmem:[%s22162_s20 + $0x9c8] sm:$0xff]  ;;  %v18619_v49 = vcombine.high %v12287_v60, %v12291_v6 }
 0x920   : > { %16093 = vmatprep.subr.bf16.mxu1 %v18587_v19  ;;  %v12459_v28 = vld [vmem:[%s22162_s20 + $0x9e8] sm:$0xff]  ;;  %v18626_v19 = vcombine.low %v12295_v31, %v12299_v59 }
 0x921   : > { %v18787_v11 = vcombine.high %v12455_v17, %v12459_v28  ;;  %v18786_v63 = vcombine.low %v12455_v17, %v12459_v28  ;;  %v12375_v12 = vld [vmem:[%s22162_s20 + $0x748] sm:$0xff] }
 0x922   : > { %16063 = vmatpush2.bf16.msra.mxu0 %v19056_v53  ;;  %v12283_v53 = vld [vmem:[%s22162_s20 + $0x468] sm:$0xff] }
 0x923   : > { %16094 = vmatpush2.bf16.msra.mxu1 %v18586_v42  ;;  %16064 = vmatprep.subr.bf16.mxu0 %v19049_v62  ;;  %v12447_v42 = vld [vmem:[%s22162_s20 + $0x988] sm:$0xff]  ;;  %v18611_v22 = vcombine.high %v12279_v40, %v12283_v53 }
 0x924   : > { %16095 = vmatprep.subr.bf16.mxu1 %v18579_v46  ;;  %v12451_v62 = vld [vmem:[%s22162_s20 + $0x9a8] sm:$0xff]  ;;  %v18618_v46 = vcombine.low %v12287_v60, %v12291_v6 }
 0x925   : > { %v18779_v4 = vcombine.high %v12447_v42, %v12451_v62  ;;  %v18778_v13 = vcombine.low %v12447_v42, %v12451_v62  ;;  %v12367_v30 = vld [vmem:[%s22162_s20 + $0x708] sm:$0xff] }
 0x926   : > { %16065 = vmatpush2.bf16.msra.mxu0 %v19048_v35  ;;  %v12275_v35 = vld [vmem:[%s22162_s20 + $0x428] sm:$0xff] }
 0x927   : > { %16096 = vmatpush2.bf16.msra.mxu1 %v18578_v9  ;;  %16116 = vmatprep.subr.bf16.mxu0 %v18659_v45  ;;  %v12439_v9 = vld [vmem:[%s22162_s20 + $0x948] sm:$0xff]  ;;  %v18603_v24 = vcombine.high %v12271_v2, %v12275_v35 }
 0x928   : > { %16097 = vmatprep.subr.bf16.mxu1 %v18571_v5  ;;  %v12443_v45 = vld [vmem:[%s22162_s20 + $0x968] sm:$0xff]  ;;  %v18610_v5 = vcombine.low %v12279_v40, %v12283_v53 }
 0x929   : > { %16067 = vmatmul.mubr.bf16.vlgmr.msra.gmra.mxu0 %v22872_v7  ;;  %v18771_v58 = vcombine.high %v12439_v9, %v12443_v45  ;;  %v18770_v56 = vcombine.low %v12439_v9, %v12443_v45  ;;  %v12359_v28 = vld [vmem:[%s22162_s20 + $0x6c8] sm:$0xff] }
 0x92a   : > { %16117 = vmatpush1.bf16.msra.mxu0 %v18658_v8  ;;  %16148 = vmatprep.mubr.bf16.mxu0 %v22681_v34  ;;  %v12395_v8 = vld [vmem:[%s22162_s20 + $0x7e8] sm:$0xff] }
 0x92b   : > { %16098 = vmatpush2.bf16.msra.mxu1 %v18570_v57  ;;  %16118 = vmatprep.subr.bf16.mxu0 %v18651_v43  ;;  %v12431_v57 = vld [vmem:[%s22162_s20 + $0x908] sm:$0xff]  ;;  %v18723_v16 = vcombine.high %v12391_v55, %v12395_v8 }
 0x92c   : > { %16099 = vmatprep.subr.bf16.mxu1 %v18563_v41  ;;  %v12435_v43 = vld [vmem:[%s22162_s20 + $0x928] sm:$0xff]  ;;  %v18602_v41 = vcombine.low %v12271_v2, %v12275_v35 }
 0x92d   : > { %v18763_v51 = vcombine.high %v12431_v57, %v12435_v43  ;;  %v18762_v23 = vcombine.low %v12431_v57, %v12435_v43  ;;  %v12351_v62 = vld [vmem:[%s22162_s20 + $0x688] sm:$0xff] }
 0x92e   : > { %16119 = vmatpush1.bf16.msra.mxu0 %v18650_v3  ;;  %v12387_v3 = vld [vmem:[%s22162_s20 + $0x7a8] sm:$0xff] }
 0x92f   : > { %16100 = vmatpush2.bf16.msra.mxu1 %v18562_v48  ;;  %16120 = vmatprep.subr.bf16.mxu0 %v18643_v61  ;;  %v12423_v48 = vld [vmem:[%s22162_s20 + $0x8c8] sm:$0xff]  ;;  %v18715_v39 = vcombine.high %v12383_v52, %v12387_v3 }
 0x930   : > { %16101 = vmatprep.subr.bf16.mxu1 %v18555_v1  ;;  %v12427_v61 = vld [vmem:[%s22162_s20 + $0x8e8] sm:$0xff]  ;;  %v18722_v1 = vcombine.low %v12391_v55, %v12395_v8 }
 0x931   : > { %v18755_v25 = vcombine.high %v12423_v48, %v12427_v61  ;;  %v18754_v31 = vcombine.low %v12423_v48, %v12427_v61  ;;  %v12343_v45 = vld [vmem:[%s22162_s20 + $0x648] sm:$0xff] }
 0x932   : > { %16121 = vmatpush1.bf16.msra.mxu0 %v18642_v29  ;;  %v12379_v29 = vld [vmem:[%s22162_s20 + $0x768] sm:$0xff] }
 0x933   : > { %16102 = vmatpush2.bf16.msra.mxu1 %v18554_v20  ;;  %16122 = vmatprep.subr.bf16.mxu0 %v18635_v47  ;;  %v12415_v20 = vld [vmem:[%s22162_s20 + $0x888] sm:$0xff]  ;;  %v18707_v59 = vcombine.high %v12375_v12, %v12379_v29 }
 0x934   : > { %16103 = vmatprep.subr.bf16.mxu1 %v18547_v37  ;;  %v12419_v47 = vld [vmem:[%s22162_s20 + $0x8a8] sm:$0xff]  ;;  %v18714_v37 = vcombine.low %v12383_v52, %v12387_v3 }
 0x935   : > { %v18747_v10 = vcombine.high %v12415_v20, %v12419_v47  ;;  %v18746_v60 = vcombine.low %v12415_v20, %v12419_v47  ;;  %v12335_v43 = vld [vmem:[%s22162_s20 + $0x608] sm:$0xff] }
 0x936   : > { %16123 = vmatpush1.bf16.msra.mxu0 %v18634_v0  ;;  %v12371_v0 = vld [vmem:[%s22162_s20 + $0x728] sm:$0xff] }
 0x937   : > { %16104 = vmatpush2.bf16.msra.mxu1 %v18546_v54  ;;  %16124 = vmatprep.subr.bf16.mxu0 %v18627_v33  ;;  %v12407_v54 = vld [vmem:[%s22162_s20 + $0x848] sm:$0xff]  ;;  %v18699_v6 = vcombine.high %v12367_v30, %v12371_v0 }
 0x938   : > { %16105 = vmatprep.subr.bf16.mxu1 %v18539_v36  ;;  %v12411_v33 = vld [vmem:[%s22162_s20 + $0x868] sm:$0xff]  ;;  %v18706_v36 = vcombine.low %v12375_v12, %v12379_v29 }
 0x939   : > { %v18739_v17 = vcombine.high %v12407_v54, %v12411_v33  ;;  %v18738_v40 = vcombine.low %v12407_v54, %v12411_v33  ;;  %v12583_v61 = vld [vmem:[%s22162_s20 + $0xdc8] sm:$0xff] }
 0x93a   : > { %16125 = vmatpush1.bf16.msra.mxu0 %v18626_v19  ;;  %v12363_v19 = vld [vmem:[%s22162_s20 + $0x6e8] sm:$0xff] }
 0x93b   : > { %16106 = vmatpush2.bf16.msra.mxu1 %v18538_v44  ;;  %16126 = vmatprep.subr.bf16.mxu0 %v18619_v49  ;;  %v12399_v44 = vld [vmem:[%s22162_s20 + $0x808] sm:$0xff]  ;;  %v18691_v53 = vcombine.high %v12359_v28, %v12363_v19 }
 0x93c   : > { %16157 = vmatprep.subr.bf16.mxu1 %v18787_v11  ;;  %v12403_v49 = vld [vmem:[%s22162_s20 + $0x828] sm:$0xff]  ;;  %v18698_v11 = vcombine.low %v12367_v30, %v12371_v0 }
 0x93d   : > { %v18731_v42 = vcombine.high %v12399_v44, %v12403_v49  ;;  %v18730_v2 = vcombine.low %v12399_v44, %v12403_v49  ;;  %v12575_v47 = vld [vmem:[%s22162_s20 + $0xd88] sm:$0xff] }
 0x93e   : > { %16108 = vmatmul.mubr.bf16.vlgmr.msra.gmra.mxu1 %v22727_v15  ;;  %16127 = vmatpush1.bf16.msra.mxu0 %v18618_v46  ;;  %v12355_v46 = vld [vmem:[%s22162_s20 + $0x6a8] sm:$0xff] }
 0x93f   : > { %16158 = vmatpush1.bf16.msra.mxu1 %v18786_v63  ;;  %16128 = vmatprep.subr.bf16.mxu0 %v18611_v22  ;;  %v12519_v63 = vld [vmem:[%s22162_s20 + $0xbc8] sm:$0xff]  ;;  %v18683_v35 = vcombine.high %v12351_v62, %v12355_v46 }
 0x940   : > { %16159 = vmatprep.subr.bf16.mxu1 %v18779_v4  ;;  %16189 = vmatprep.mubr.bf16.mxu1 %v22734_v27  ;;  %v12523_v22 = vld [vmem:[%s22162_s20 + $0xbe8] sm:$0xff]  ;;  %v18690_v4 = vcombine.low %v12359_v28, %v12363_v19 }
 0x941   : > { %v18851_v9 = vcombine.high %v12519_v63, %v12523_v22  ;;  %v18850_v55 = vcombine.low %v12519_v63, %v12523_v22  ;;  %v12567_v33 = vld [vmem:[%s22162_s20 + $0xd48] sm:$0xff] }
 0x942   : > { %16129 = vmatpush1.bf16.msra.mxu0 %v18610_v5  ;;  %v12347_v5 = vld [vmem:[%s22162_s20 + $0x668] sm:$0xff] }
 0x943   : > { %16160 = vmatpush1.bf16.msra.mxu1 %v18778_v13  ;;  %16130 = vmatprep.subr.bf16.mxu0 %v18603_v24  ;;  %v12511_v13 = vld [vmem:[%s22162_s20 + $0xb88] sm:$0xff]  ;;  %v18675_v8 = vcombine.high %v12343_v45, %v12347_v5 }
 0x944   : > { %16161 = vmatprep.subr.bf16.mxu1 %v18771_v58  ;;  %v12515_v24 = vld [vmem:[%s22162_s20 + $0xba8] sm:$0xff]  ;;  %v18682_v58 = vcombine.low %v12351_v62, %v12355_v46 }
 0x945   : > { %v18843_v57 = vcombine.high %v12511_v13, %v12515_v24  ;;  %v18842_v52 = vcombine.low %v12511_v13, %v12515_v24  ;;  %v12559_v49 = vld [vmem:[%s22162_s20 + $0xd08] sm:$0xff] }
 0x946   : > { %16131 = vmatpush1.bf16.msra.mxu0 %v18602_v41  ;;  %v12339_v41 = vld [vmem:[%s22162_s20 + $0x628] sm:$0xff] }
 0x947   : > { %16162 = vmatpush1.bf16.msra.mxu1 %v18770_v56  ;;  %16132 = vmatprep.subr.bf16.mxu0 %v18723_v16  ;;  %v12503_v56 = vld [vmem:[%s22162_s20 + $0xb48] sm:$0xff]  ;;  %v18667_v3 = vcombine.high %v12335_v43, %v12339_v41 }
 0x948   : > { %16163 = vmatprep.subr.bf16.mxu1 %v18763_v51  ;;  %v12507_v16 = vld [vmem:[%s22162_s20 + $0xb68] sm:$0xff]  ;;  %v18674_v51 = vcombine.low %v12343_v45, %v12347_v5 }
 0x949   : > { %v18835_v48 = vcombine.high %v12503_v56, %v12507_v16  ;;  %v18834_v12 = vcombine.low %v12503_v56, %v12507_v16  ;;  %v12551_v22 = vld [vmem:[%s22162_s20 + $0xcc8] sm:$0xff] }
 0x94a   : > { %16133 = vmatpush2.bf16.msra.mxu0 %v18722_v1  ;;  %v12587_v1 = vld [vmem:[%s22162_s20 + $0xde8] sm:$0xff] }
 0x94b   : > { %16164 = vmatpush1.bf16.msra.mxu1 %v18762_v23  ;;  %16134 = vmatprep.subr.bf16.mxu0 %v18715_v39  ;;  %v12495_v23 = vld [vmem:[%s22162_s20 + $0xb08] sm:$0xff]  ;;  %v18915_v29 = vcombine.high %v12583_v61, %v12587_v1 }
 0x94c   : > { %16165 = vmatprep.subr.bf16.mxu1 %v18755_v25  ;;  %v12499_v39 = vld [vmem:[%s22162_s20 + $0xb28] sm:$0xff]  ;;  %v18666_v25 = vcombine.low %v12335_v43, %v12339_v41  ;;  %v12746_v43 = vsub.s32 0, %v22651_v14 }
 0x94d   : > { %v18827_v20 = vcombine.high %v12495_v23, %v12499_v39  ;;  %v18826_v30 = vcombine.low %v12495_v23, %v12499_v39  ;;  %v12543_v24 = vld [vmem:[%s22162_s20 + $0xc88] sm:$0xff] }
 0x94e   : > { %16135 = vmatpush2.bf16.msra.mxu0 %v18714_v37  ;;  %v12579_v37 = vld [vmem:[%s22162_s20 + $0xda8] sm:$0xff] }
 0x94f   : > { %16166 = vmatpush1.bf16.msra.mxu1 %v18754_v31  ;;  %16136 = vmatprep.subr.bf16.mxu0 %v18707_v59  ;;  %v12487_v31 = vld [vmem:[%s22162_s20 + $0xac8] sm:$0xff]  ;;  %v18907_v0 = vcombine.high %v12575_v47, %v12579_v37 }
 0x950   : > { %16167 = vmatprep.subr.bf16.mxu1 %v18747_v10  ;;  %v12491_v59 = vld [vmem:[%s22162_s20 + $0xae8] sm:$0xff]  ;;  %v18914_v10 = vcombine.low %v12583_v61, %v12587_v1 }
 0x951   : > { %v18819_v54 = vcombine.high %v12487_v31, %v12491_v59  ;;  %v18818_v28 = vcombine.low %v12487_v31, %v12491_v59  ;;  %v12742_v56 = vld [vmem:[%s22170_s7] sm:$0xff] }
 0x952   : > { %16137 = vmatpush2.bf16.msra.mxu0 %v18706_v36  ;;  %v12571_v36 = vld [vmem:[%s22162_s20 + $0xd68] sm:$0xff]  ;;  %v12747_v23 = vrot.slane %v12742_v56, %v12746_v43 }
 0x953   : > { %16168 = vmatpush1.bf16.msra.mxu1 %v18746_v60  ;;  %16138 = vmatprep.subr.bf16.mxu0 %v18699_v6  ;;  %v12479_v60 = vld [vmem:[%s22162_s20 + $0xa88] sm:$0xff]  ;;  %v18899_v19 = vcombine.high %v12567_v33, %v12571_v36 }
 0x954   : > { %16169 = vmatprep.subr.bf16.mxu1 %v18739_v17  ;;  %v12483_v6 = vld [vmem:[%s22162_s20 + $0xaa8] sm:$0xff]  ;;  %v18906_v17 = vcombine.low %v12575_v47, %v12579_v37 }
 0x955   : > { %v18811_v44 = vcombine.high %v12479_v60, %v12483_v6  ;;  %v18810_v62 = vcombine.low %v12479_v60, %v12483_v6  ;;  %v12703_v61 = vld [vmem:[%s22162_s20 + $0x1188] sm:$0xff] }
 0x956   : > { %16139 = vmatpush2.bf16.msra.mxu0 %v18698_v11  ;;  %v12563_v11 = vld [vmem:[%s22162_s20 + $0xd28] sm:$0xff] }
 0x957   : > { %16170 = vmatpush1.bf16.msra.mxu1 %v18738_v40  ;;  %16140 = vmatprep.subr.bf16.mxu0 %v18691_v53  ;;  %v12471_v40 = vld [vmem:[%s22162_s20 + $0xa48] sm:$0xff]  ;;  %v18891_v46 = vcombine.high %v12559_v49, %v12563_v11 }
 0x958   : > { %16171 = vmatprep.subr.bf16.mxu1 %v18731_v42  ;;  %v12475_v53 = vld [vmem:[%s22162_s20 + $0xa68] sm:$0xff]  ;;  %v18898_v42 = vcombine.low %v12567_v33, %v12571_v36 }
 0x959   : > { %v18803_v63 = vcombine.high %v12471_v40, %v12475_v53  ;;  %v18802_v45 = vcombine.low %v12471_v40, %v12475_v53  ;;  %v12707_v1 = vld [vmem:[%s22162_s20 + $0x11a8] sm:$0xff] }
 0x95a   : > { %16141 = vmatpush2.bf16.msra.mxu0 %v18690_v4  ;;  %v12555_v4 = vld [vmem:[%s22162_s20 + $0xce8] sm:$0xff]  ;;  %v19034_v36 = vcombine.low %v12703_v61, %v12707_v1 }
 0x95b   : > { %16172 = vmatpush1.bf16.msra.mxu1 %v18730_v2  ;;  %16142 = vmatprep.subr.bf16.mxu0 %v18683_v35  ;;  %v12463_v2 = vld [vmem:[%s22162_s20 + $0xa08] sm:$0xff]  ;;  %v18883_v5 = vcombine.high %v12551_v22, %v12555_v4 }
 0x95c   : > { %16173 = vmatprep.subr.bf16.mxu1 %v18851_v9  ;;  %v12467_v35 = vld [vmem:[%s22162_s20 + $0xa28] sm:$0xff]  ;;  %v18890_v9 = vcombine.low %v12559_v49, %v12563_v11 }
 0x95d   : > { %v18795_v13 = vcombine.high %v12463_v2, %v12467_v35  ;;  %v18794_v41 = vcombine.low %v12463_v2, %v12467_v35  ;;  %v12527_v47 = vld [vmem:[%s22162_s20 + $0xc08] sm:$0xff] }
 0x95e   : > { %16143 = vmatpush2.bf16.msra.mxu0 %v18682_v58  ;;  %v12547_v58 = vld [vmem:[%s22162_s20 + $0xca8] sm:$0xff] }
 0x95f   : > { %16174 = vmatpush2.bf16.msra.mxu1 %v18850_v55  ;;  %16144 = vmatprep.subr.bf16.mxu0 %v18675_v8  ;;  %v12711_v55 = vld [vmem:[%s22162_s20 + $0x11c8] sm:$0xff]  ;;  %v18875_v16 = vcombine.high %v12543_v24, %v12547_v58  ;;  %v18874_v39 = vcombine.low %v12543_v24, %v12547_v58 }
 0x960   : > { %16175 = vmatprep.subr.bf16.mxu1 %v18843_v57  ;;  %v12715_v8 = vld [vmem:[%s22162_s20 + $0x11e8] sm:$0xff]  ;;  %v18882_v57 = vcombine.low %v12551_v22, %v12555_v4 }
 0x961   : > { %v12531_v37 = vld [vmem:[%s22162_s20 + $0xc28] sm:$0xff] }
 0x962   : > { %16145 = vmatpush2.bf16.msra.mxu0 %v18674_v51  ;;  %v19043_v51 = vcombine.high %v12711_v55, %v12715_v8  ;;  %v12695_v59 = vld [vmem:[%s22162_s20 + $0x1148] sm:$0xff]  ;;  %v18859_v60 = vcombine.high %v12527_v47, %v12531_v37 }
 0x963   : > { %16176 = vmatpush2.bf16.msra.mxu1 %v18842_v52  ;;  %16146 = vmatprep.subr.bf16.mxu0 %v18667_v3  ;;  %v12750_v52 = vsub.s32 1, %v22651_v14  ;;  %v12535_v3 = vld [vmem:[%s22162_s20 + $0xc48] sm:$0xff] }
 0x964   : > { %16177 = vmatprep.subr.bf16.mxu1 %v18835_v48  ;;  %v12539_v48 = vld [vmem:[%s22162_s20 + $0xc68] sm:$0xff] }
 0x965   : > { %v12651_v49 = vld [vmem:[%s22162_s20 + $0xfe8] sm:$0xff] }
 0x966   : > { %16147 = vmatpush2.bf16.msra.mxu0 %v18666_v25  ;;  %v19042_v25 = vcombine.low %v12711_v55, %v12715_v8  ;;  %v12687_v40 = vld [vmem:[%s22162_s20 + $0x1108] sm:$0xff] }
 0x967   : > { %16178 = vmatpush2.bf16.msra.mxu1 %v18834_v12  ;;  %16198 = vmatprep.subr.bf16.mxu0 %v18915_v29  ;;  %v18867_v12 = vcombine.high %v12535_v3, %v12539_v48  ;;  %v12751_v29 = vrot.slane %v12742_v56, %v12750_v52  ;;  %v12691_v53 = vld [vmem:[%s22162_s20 + $0x1128] sm:$0xff] }
 0x968   : > { %16179 = vmatprep.subr.bf16.mxu1 %v18827_v20  ;;  %v19035_v20 = vcombine.high %v12703_v61, %v12707_v1  ;;  %v19019_v35 = vcombine.high %v12687_v40, %v12691_v53  ;;  %v19018_v58 = vcombine.low %v12687_v40, %v12691_v53  ;;  %v12635_v43 = vld [vmem:[%s22162_s20 + $0xf68] sm:$0xff] }
 0x969   : > { %16149 = vmatmul.mubr.bf16.vlgmr.msra.gmra.mxu0 %v22738_v32  ;;  %v12675_v56 = vld [vmem:[%s22162_s20 + $0x10a8] sm:$0xff] }
 0x96a   : > { %16199 = vmatpush1.bf16.msra.mxu0 %v18914_v10  ;;  %16230 = vmatprep.mubr.bf16.mxu0 %v22747_v21  ;;  %v12699_v10 = vld [vmem:[%s22162_s20 + $0x1168] sm:$0xff] }
 0x96b   : > { %16180 = vmatpush2.bf16.msra.mxu1 %v18826_v30  ;;  %16200 = vmatprep.subr.bf16.mxu0 %v18907_v0  ;;  %v19026_v22 = vcombine.low %v12695_v59, %v12699_v10  ;;  %v12627_v61 = vld [vmem:[%s22162_s20 + $0xf28] sm:$0xff] }
 0x96c   : > { %16181 = vmatprep.subr.bf16.mxu1 %v18819_v54  ;;  %v18866_v54 = vcombine.low %v12535_v3, %v12539_v48  ;;  %v12623_v48 = vld [vmem:[%s22162_s20 + $0xf08] sm:$0xff] }
 0x96d   : > { %v12663_v1 = vld [vmem:[%s22162_s20 + $0x1048] sm:$0xff] }
 0x96e   : > { %16201 = vmatpush1.bf16.msra.mxu0 %v18906_v17  ;;  %v12727_v40 = vld [vmem:[%s22162_s20 + $0x1248] sm:$0xff] }
 0x96f   : > { %16182 = vmatpush2.bf16.msra.mxu1 %v18818_v28  ;;  %16202 = vmatprep.subr.bf16.mxu0 %v18899_v19  ;;  %v19027_v19 = vcombine.high %v12695_v59, %v12699_v10  ;;  %v18954_v59 = vcombine.low %v12623_v48, %v12627_v61  ;;  %v12731_v53 = vld [vmem:[%s22162_s20 + $0x1268] sm:$0xff] }
 0x970   : > { %16183 = vmatprep.subr.bf16.mxu1 %v18811_v44  ;;  %v12647_v44 = vld [vmem:[%s22162_s20 + $0xfc8] sm:$0xff] }
 0x971   : > { %v18979_v4 = vcombine.high %v12647_v44, %v12651_v49  ;;  %v18978_v24 = vcombine.low %v12647_v44, %v12651_v49  ;;  %v12599_v49 = vld [vmem:[%s22162_s20 + $0xe48] sm:$0xff] }
 0x972   : > { %16203 = vmatpush1.bf16.msra.mxu0 %v18898_v42 }
 0x973   : > { %16184 = vmatpush2.bf16.msra.mxu1 %v18810_v62  ;;  %16204 = vmatprep.subr.bf16.mxu0 %v18891_v46  ;;  %v18858_v46 = vcombine.low %v12527_v47, %v12531_v37  ;;  %v12619_v47 = vld [vmem:[%s22162_s20 + $0xee8] sm:$0xff] }
 0x974   : > { %16185 = vmatprep.subr.bf16.mxu1 %v18803_v63  ;;  %v12655_v37 = vld [vmem:[%s22162_s20 + $0x1008] sm:$0xff] }
 0x976   : > { %16205 = vmatpush1.bf16.msra.mxu0 %v18890_v9  ;;  %v12639_v9 = vld [vmem:[%s22162_s20 + $0xf88] sm:$0xff] }
 0x977   : > { %16186 = vmatpush2.bf16.msra.mxu1 %v18802_v45  ;;  %16206 = vmatprep.subr.bf16.mxu0 %v18883_v5  ;;  %v12643_v45 = vld [vmem:[%s22162_s20 + $0xfa8] sm:$0xff] }
 0x978   : > { %16187 = vmatprep.subr.bf16.mxu1 %v18795_v13  ;;  %v12679_v5 = vld [vmem:[%s22162_s20 + $0x10c8] sm:$0xff]  ;;  %v18971_v55 = vcombine.high %v12639_v9, %v12643_v45 }
 0x979   : > { %v12683_v13 = vld [vmem:[%s22162_s20 + $0x10e8] sm:$0xff] }
 0x97a   : > { %16207 = vmatpush1.bf16.msra.mxu0 %v18882_v57  ;;  %v19011_v8 = vcombine.high %v12679_v5, %v12683_v13  ;;  %v12631_v57 = vld [vmem:[%s22162_s20 + $0xf48] sm:$0xff] }
 0x97b   : > { %16188 = vmatpush2.bf16.msra.mxu1 %v18794_v41  ;;  %16208 = vmatprep.subr.bf16.mxu0 %v18875_v16  ;;  %v12671_v41 = vld [vmem:[%s22162_s20 + $0x1088] sm:$0xff]  ;;  %v18970_v16 = vcombine.low %v12639_v9, %v12643_v45  ;;  %v18963_v52 = vcombine.high %v12631_v57, %v12635_v43 }
 0x97c   : > { %16239 = vmatprep.subr.bf16.mxu1 %v19043_v51  ;;  %v15904_v31 = vpop.f32.mrf.mxu0  ;;  %v19010_v51 = vcombine.low %v12679_v5, %v12683_v13  ;;  %v19003_v3 = vcombine.high %v12671_v41, %v12675_v56  ;;  %v12723_v9 = vld [vmem:[%s22162_s20 + $0x1228] sm:$0xff]  ;;  %v19058_v5 = vcombine.low %v12727_v40, %v12731_v53 }
 0x97d   : > { %v15905_v30 = vadd.f32 %v15904_v31, %v12747_v23  ;;  %v12667_v23 = vld [vmem:[%s22162_s20 + $0x1068] sm:$0xff] }
 0x97e   : > { %v15945_v0 = vpop.f32.mrf.mxu1  ;;  %16190 = vmatmul.mubr.bf16.vlgmr.msra.gmra.mxu1 %v22697_v38  ;;  %16209 = vmatpush1.bf16.msra.mxu0 %v18874_v39  ;;  %v15906_v33 = vpop.f32.mrf.mxu0  ;;  %v18962_v39 = vcombine.low %v12631_v57, %v12635_v43  ;;  %v12659_v31 = vld [vmem:[%s22162_s20 + $0x1028] sm:$0xff]  ;;  %v18994_v10 = vcombine.low %v12663_v1, %v12667_v23  ;;  %v12332_v57 = vld [vmem:[%s22162_s20 + $0x5f0] sm:$0xff] }
 0x97f   : > { %16240 = vmatpush1.bf16.msra.mxu1 %v19042_v25  ;;  %16210 = vmatprep.subr.bf16.mxu0 %v18867_v12  ;;  %v22974_v6 = vadd.f32 %v15945_v0, %v15905_v30  ;;  %v15907_v17 = vadd.f32 %v15906_v33, %v12751_v29  ;;  %v19002_v25 = vcombine.low %v12671_v41, %v12675_v56  ;;  %v12611_v33 = vld [vmem:[%s22162_s20 + $0xea8] sm:$0xff] }
 0x980   : > { %v15947_v28 = vpop.f32.mrf.mxu1  ;;  %16241 = vmatprep.subr.bf16.mxu1 %v19035_v20  ;;  %19073 = vmatprep.mubr.msk.bf16.mxu1 %vm15866_vm6, %v22823_v26  ;;  %v15908_v11 = vpop.f32.mrf.mxu0  ;;  %v18955_v12 = vcombine.high %v12623_v48, %v12627_v61  ;;  %v18995_v29 = vcombine.high %v12663_v1, %v12667_v23  ;;  %v12615_v20 = vld [vmem:[%s22162_s20 + $0xec8] sm:$0xff]  ;;  %v18987_v0 = vcombine.high %v12655_v37, %v12659_v31  ;;  %v12324_v48 = vld [vmem:[%s22162_s20 + $0x5b0] sm:$0xff] }
 0x981   : > { %v22982_v42 = vadd.f32 %v15947_v28, %v15907_v17  ;;  %v18947_v30 = vcombine.high %v12615_v20, %v12619_v47  ;;  %v18946_v17 = vcombine.low %v12615_v20, %v12619_v47  ;;  %v18986_v28 = vcombine.low %v12655_v37, %v12659_v31  ;;  %v12603_v11 = vld [vmem:[%s22162_s20 + $0xe68] sm:$0xff]  ;;  %v12316_v20 = vld [vmem:[%s22162_s20 + $0x570] sm:$0xff] }
 0x982   : > { %v15949_v62 = vpop.f32.mrf.mxu1  ;;  %16211 = vmatpush1.bf16.msra.mxu0 %v18866_v54  ;;  %v15909_v63 = vpop.f32.mrf.mxu0  ;;  %v12607_v54 = vld [vmem:[%s22162_s20 + $0xe88] sm:$0xff]  ;;  %v18930_v45 = vcombine.low %v12599_v49, %v12603_v11 }
 0x983   : > { %16242 = vmatpush1.bf16.msra.mxu1 %v19034_v36  ;;  %16212 = vmatprep.subr.bf16.mxu0 %v18859_v60  ;;  %v12735_v36 = vld [vmem:[%s22162_s20 + $0x1288] sm:$0xff]  ;;  %v18938_v62 = vcombine.low %v12607_v54, %v12611_v33  ;;  %v18931_v63 = vcombine.high %v12599_v49, %v12603_v11  ;;  %v12300_v49 = vld [vmem:[%s22162_s20 + $0x4f0] sm:$0xff] }
 0x984   : > { %v15950_v2 = vpop.f32.mrf.mxu1  ;;  %16243 = vmatprep.subr.bf16.mxu1 %v19027_v19  ;;  %v12739_v60 = vld [vmem:[%s22162_s20 + $0x12a8] sm:$0xff]  ;;  %v18939_v19 = vcombine.high %v12607_v54, %v12611_v33  ;;  %v12308_v54 = vld [vmem:[%s22162_s20 + $0x530] sm:$0xff] }
 0x985   : > { %v19067_v44 = vcombine.high %v12735_v36, %v12739_v60  ;;  %v12595_v2 = vld [vmem:[%s22162_s20 + $0xe28] sm:$0xff] }
 0x986   : > { %16213 = vmatpush1.bf16.msra.mxu0 %v18858_v46  ;;  %v19066_v46 = vcombine.low %v12735_v36, %v12739_v60 }
 0x987   : > { %16244 = vmatpush1.bf16.msra.mxu1 %v19026_v22  ;;  %16214 = vmatprep.subr.bf16.mxu0 %v18979_v4  ;;  %v19059_v22 = vcombine.high %v12727_v40, %v12731_v53  ;;  %v12591_v4 = vld [vmem:[%s22162_s20 + $0xe08] sm:$0xff] }
 0x988   : > { %16245 = vmatprep.subr.bf16.mxu1 %v19019_v35  ;;  %v12719_v35 = vld [vmem:[%s22162_s20 + $0x1208] sm:$0xff]  ;;  %v18923_v13 = vcombine.high %v12591_v4, %v12595_v2  ;;  %v18922_v43 = vcombine.low %v12591_v4, %v12595_v2  ;;  %v12292_v4 = vld [vmem:[%s22162_s20 + $0x4b0] sm:$0xff] }
 0x989   : > { %v19050_v41 = vcombine.low %v12719_v35, %v12723_v9 }
 0x98a   : > { %16215 = vmatpush2.bf16.msra.mxu0 %v18978_v24  ;;  %v19051_v24 = vcombine.high %v12719_v35, %v12723_v9 }
 0x98b   : > { %16246 = vmatpush1.bf16.msra.mxu1 %v19018_v58  ;;  %16216 = vmatprep.subr.bf16.mxu0 %v18971_v55  ;;  %v12200_v58 = vld [vmem:[%s22162_s20 + $0x1d0] sm:$0xff] }
 0x98c   : > { %16247 = vmatprep.subr.bf16.mxu1 %v19011_v8  ;;  %v12204_v55 = vld [vmem:[%s22162_s20 + $0x1f0] sm:$0xff] }
 0x98d   : > { %v12328_v8 = vld [vmem:[%s22162_s20 + $0x5d0] sm:$0xff]  ;;  %v18533_v56 = vcombine.high %v12200_v58, %v12204_v55  ;;  %v18532_v61 = vcombine.low %v12200_v58, %v12204_v55 }
 0x98e   : > { %16217 = vmatpush2.bf16.msra.mxu0 %v18970_v16  ;;  %v18661_v16 = vcombine.high %v12328_v8, %v12332_v57  ;;  %v18660_v1 = vcombine.low %v12328_v8, %v12332_v57  ;;  %v12284_v58 = vld [vmem:[%s22162_s20 + $0x470] sm:$0xff] }
 0x98f   : > { %16248 = vmatpush1.bf16.msra.mxu1 %v19010_v51  ;;  %16218 = vmatprep.subr.bf16.mxu0 %v18963_v52  ;;  %v12192_v51 = vld [vmem:[%s22162_s20 + $0x190] sm:$0xff] }
 0x990   : > { %16249 = vmatprep.subr.bf16.mxu1 %v19003_v3  ;;  %v12196_v52 = vld [vmem:[%s22162_s20 + $0x1b0] sm:$0xff] }
 0x991   : > { %v12320_v3 = vld [vmem:[%s22162_s20 + $0x590] sm:$0xff]  ;;  %v18525_v23 = vcombine.high %v12192_v51, %v12196_v52  ;;  %v18524_v47 = vcombine.low %v12192_v51, %v12196_v52 }
 0x992   : > { %16219 = vmatpush2.bf16.msra.mxu0 %v18962_v39  ;;  %v18653_v39 = vcombine.high %v12320_v3, %v12324_v48  ;;  %v18652_v37 = vcombine.low %v12320_v3, %v12324_v48  ;;  %v12272_v51 = vld [vmem:[%s22162_s20 + $0x410] sm:$0xff] }
 0x993   : > { %16250 = vmatpush1.bf16.msra.mxu1 %v19002_v25  ;;  %16220 = vmatprep.subr.bf16.mxu0 %v18955_v12  ;;  %v12184_v25 = vld [vmem:[%s22162_s20 + $0x150] sm:$0xff] }
 0x994   : > { %16251 = vmatprep.subr.bf16.mxu1 %v18995_v29  ;;  %v12188_v12 = vld [vmem:[%s22162_s20 + $0x170] sm:$0xff] }
 0x995   : > { %v12312_v29 = vld [vmem:[%s22162_s20 + $0x550] sm:$0xff]  ;;  %v18517_v31 = vcombine.high %v12184_v25, %v12188_v12  ;;  %v18516_v33 = vcombine.low %v12184_v25, %v12188_v12 }
 0x996   : > { %16221 = vmatpush2.bf16.msra.mxu0 %v18954_v59  ;;  %v18645_v59 = vcombine.high %v12312_v29, %v12316_v20  ;;  %v18644_v36 = vcombine.low %v12312_v29, %v12316_v20  ;;  %v12276_v52 = vld [vmem:[%s22162_s20 + $0x430] sm:$0xff] }
 0x997   : > { %16252 = vmatpush1.bf16.msra.mxu1 %v18994_v10  ;;  %16222 = vmatprep.subr.bf16.mxu0 %v18947_v30  ;;  %v12176_v10 = vld [vmem:[%s22162_s20 + $0x110] sm:$0xff]  ;;  %v18605_v20 = vcombine.high %v12272_v51, %v12276_v52 }
 0x998   : > { %16253 = vmatprep.subr.bf16.mxu1 %v18987_v0  ;;  %v12180_v30 = vld [vmem:[%s22162_s20 + $0x130] sm:$0xff] }
 0x999   : > { %v12304_v0 = vld [vmem:[%s22162_s20 + $0x510] sm:$0xff]  ;;  %v18509_v60 = vcombine.high %v12176_v10, %v12180_v30  ;;  %v18508_v11 = vcombine.low %v12176_v10, %v12180_v30 }
 0x99a   : > { %16223 = vmatpush2.bf16.msra.mxu0 %v18946_v17  ;;  %v18637_v17 = vcombine.high %v12304_v0, %v12308_v54  ;;  %v18636_v40 = vcombine.low %v12304_v0, %v12308_v54 }
 0x99b   : > { %16254 = vmatpush1.bf16.msra.mxu1 %v18986_v28  ;;  %16224 = vmatprep.subr.bf16.mxu0 %v18939_v19  ;;  %v12168_v28 = vld [vmem:[%s22162_s20 + $0xd0] sm:$0xff] }
 0x99c   : > { %16265 = vmatprep.subr.bf16.mxu1 %v19067_v44  ;;  %v12172_v19 = vld [vmem:[%s22162_s20 + $0xf0] sm:$0xff] }
 0x99d   : > { %v12296_v44 = vld [vmem:[%s22162_s20 + $0x4d0] sm:$0xff]  ;;  %v18501_v53 = vcombine.high %v12168_v28, %v12172_v19  ;;  %v18500_v2 = vcombine.low %v12168_v28, %v12172_v19 }
 0x99e   : > { %16225 = vmatpush2.bf16.msra.mxu0 %v18938_v62  ;;  %v18629_v62 = vcombine.high %v12296_v44, %v12300_v49  ;;  %v18628_v35 = vcombine.low %v12296_v44, %v12300_v49  ;;  %v12260_v28 = vld [vmem:[%s22162_s20 + $0x3b0] sm:$0xff] }
 0x99f   : > { %16266 = vmatpush2.bf16.msra.mxu1 %v19066_v46  ;;  %16226 = vmatprep.subr.bf16.mxu0 %v18931_v63  ;;  %v12160_v46 = vld [vmem:[%s22162_s20 + $0x90] sm:$0xff] }
 0x9a0   : > { %16267 = vmatprep.subr.bf16.mxu1 %v19059_v22  ;;  %v12164_v63 = vld [vmem:[%s22162_s20 + $0xb0] sm:$0xff] }
 0x9a1   : > { %v12288_v22 = vld [vmem:[%s22162_s20 + $0x490] sm:$0xff]  ;;  %v18493_v9 = vcombine.high %v12160_v46, %v12164_v63  ;;  %v18492_v55 = vcombine.low %v12160_v46, %v12164_v63 }
 0x9a2   : > { %16227 = vmatpush2.bf16.msra.mxu0 %v18930_v45  ;;  %v18621_v45 = vcombine.high %v12288_v22, %v12292_v4  ;;  %v18620_v8 = vcombine.low %v12288_v22, %v12292_v4  ;;  %v12384_v19 = vld [vmem:[%s22162_s20 + $0x790] sm:$0xff] }
 0x9a3   : > { %16268 = vmatpush2.bf16.msra.mxu1 %v19058_v5  ;;  %16228 = vmatprep.subr.bf16.mxu0 %v18923_v13  ;;  %v12152_v5 = vld [vmem:[%s22162_s20 + $0x50] sm:$0xff] }
 0x9a4   : > { %16269 = vmatprep.subr.bf16.mxu1 %v19051_v24  ;;  %v12156_v13 = vld [vmem:[%s22162_s20 + $0x70] sm:$0xff] }
 0x9a5   : > { %v12280_v24 = vld [vmem:[%s22162_s20 + $0x450] sm:$0xff]  ;;  %v18485_v57 = vcombine.high %v12152_v5, %v12156_v13 }
 0x9a6   : > { %16229 = vmatpush2.bf16.msra.mxu0 %v18922_v43  ;;  %v18613_v43 = vcombine.high %v12280_v24, %v12284_v58  ;;  %v12388_v44 = vld [vmem:[%s22162_s20 + $0x7b0] sm:$0xff] }
 0x9a7   : > { %16270 = vmatpush2.bf16.msra.mxu1 %v19050_v41  ;;  %16280 = vmatprep.subr.bf16.mxu0 %v18533_v56  ;;  %v12144_v41 = vld [vmem:[%s22162_s20 + $0x10] sm:$0xff] }
 0x9a8   : > { %16321 = vmatprep.subr.bf16.mxu1 %v18661_v16  ;;  %v12148_v56 = vld [vmem:[%s22162_s20 + $0x30] sm:$0xff] }
 0x9a9   : > { %16231 = vmatmul.mubr.bf16.vlgmr.msra.gmra.mxu0 %v22818_v50  ;;  %v18476_v0 = vcombine.low %v12144_v41, %v12148_v56  ;;  %v12252_v46 = vld [vmem:[%s22162_s20 + $0x370] sm:$0xff] }
 0x9aa   : > { %16272 = vmatmul.mubr.bf16.vlgmr.msra.gmra.mxu1 %v22872_v7  ;;  %16281 = vmatpush1.bf16.msra.mxu0 %v18532_v61  ;;  %v18484_v61 = vcombine.low %v12152_v5, %v12156_v13  ;;  %v12376_v63 = vld [vmem:[%s22162_s20 + $0x750] sm:$0xff] }
 0x9ab   : > { %16322 = vmatpush1.bf16.msra.mxu1 %v18660_v1  ;;  %16282 = vmatprep.subr.bf16.mxu0 %v18525_v23  ;;  %v18612_v23 = vcombine.low %v12280_v24, %v12284_v58  ;;  %v12380_v22 = vld [vmem:[%s22162_s20 + $0x770] sm:$0xff] }
 0x9ac   : > { %16323 = vmatprep.subr.bf16.mxu1 %v18653_v39  ;;  %16312 = vmatprep.mubr.bf16.mxu0 %v22674_v18  ;;  %v18477_v39 = vcombine.high %v12144_v41, %v12148_v56  ;;  %v12244_v5 = vld [vmem:[%s22162_s20 + $0x330] sm:$0xff] }
 0x9ad   : > { %16353 = vmatprep.mubr.bf16.mxu1 %v22681_v34  ;;  %v12368_v13 = vld [vmem:[%s22162_s20 + $0x710] sm:$0xff] }
 0x9ae   : > { %16283 = vmatpush1.bf16.msra.mxu0 %v18524_v47  ;;  %v12264_v47 = vld [vmem:[%s22162_s20 + $0x3d0] sm:$0xff] }
 0x9af   : > { %16324 = vmatpush1.bf16.msra.mxu1 %v18652_v37  ;;  %16284 = vmatprep.subr.bf16.mxu0 %v18517_v31  ;;  %v12268_v37 = vld [vmem:[%s22162_s20 + $0x3f0] sm:$0xff] }
 0x9b0   : > { %16325 = vmatprep.subr.bf16.mxu1 %v18645_v59  ;;  %v12392_v31 = vld [vmem:[%s22162_s20 + $0x7d0] sm:$0xff]  ;;  %v18596_v49 = vcombine.low %v12264_v47, %v12268_v37 }
 0x9b1   : > { %v12396_v59 = vld [vmem:[%s22162_s20 + $0x7f0] sm:$0xff] }
 0x9b2   : > { %16285 = vmatpush1.bf16.msra.mxu0 %v18516_v33  ;;  %v18597_v33 = vcombine.high %v12264_v47, %v12268_v37  ;;  %v12372_v24 = vld [vmem:[%s22162_s20 + $0x730] sm:$0xff] }
 0x9b3   : > { %16326 = vmatpush1.bf16.msra.mxu1 %v18644_v36  ;;  %16286 = vmatprep.subr.bf16.mxu0 %v18509_v60  ;;  %v18725_v60 = vcombine.high %v12392_v31, %v12396_v59  ;;  %v12236_v41 = vld [vmem:[%s22162_s20 + $0x2f0] sm:$0xff] }
 0x9b4   : > { %16327 = vmatprep.subr.bf16.mxu1 %v18637_v17  ;;  %v12256_v17 = vld [vmem:[%s22162_s20 + $0x390] sm:$0xff] }
 0x9b5   : > { %v18588_v4 = vcombine.low %v12256_v17, %v12260_v28  ;;  %v12360_v56 = vld [vmem:[%s22162_s20 + $0x6d0] sm:$0xff] }
 0x9b6   : > { %16287 = vmatpush1.bf16.msra.mxu0 %v18508_v11  ;;  %v18724_v11 = vcombine.low %v12392_v31, %v12396_v59  ;;  %v12216_v37 = vld [vmem:[%s22162_s20 + $0x250] sm:$0xff] }
 0x9b7   : > { %16328 = vmatpush1.bf16.msra.mxu1 %v18636_v40  ;;  %16288 = vmatprep.subr.bf16.mxu0 %v18501_v53  ;;  %v18589_v40 = vcombine.high %v12256_v17, %v12260_v28  ;;  %v18717_v53 = vcombine.high %v12384_v19, %v12388_v44  ;;  %v12344_v31 = vld [vmem:[%s22162_s20 + $0x650] sm:$0xff] }
 0x9b8   : > { %16329 = vmatprep.subr.bf16.mxu1 %v18629_v62  ;;  %v12248_v62 = vld [vmem:[%s22162_s20 + $0x350] sm:$0xff] }
 0x9b9   : > { %v18580_v58 = vcombine.low %v12248_v62, %v12252_v46  ;;  %v12348_v59 = vld [vmem:[%s22162_s20 + $0x670] sm:$0xff] }
 0x9ba   : > { %16289 = vmatpush1.bf16.msra.mxu0 %v18500_v2  ;;  %v18716_v2 = vcombine.low %v12384_v19, %v12388_v44  ;;  %v12340_v17 = vld [vmem:[%s22162_s20 + $0x630] sm:$0xff]  ;;  %v18676_v19 = vcombine.low %v12344_v31, %v12348_v59 }
 0x9bb   : > { %16330 = vmatpush1.bf16.msra.mxu1 %v18628_v35  ;;  %16290 = vmatprep.subr.bf16.mxu0 %v18493_v9  ;;  %v18581_v35 = vcombine.high %v12248_v62, %v12252_v46  ;;  %v18709_v9 = vcombine.high %v12376_v63, %v12380_v22  ;;  %v12588_v62 = vld [vmem:[%s22162_s20 + $0xdf0] sm:$0xff] }
 0x9bc   : > { %16331 = vmatprep.subr.bf16.mxu1 %v18621_v45  ;;  %v12240_v45 = vld [vmem:[%s22162_s20 + $0x310] sm:$0xff] }
 0x9bd   : > { %v15986_v16 = vpop.f32.mrf.mxu0 }
 0x9be   : > { %v15987_v3 = vadd.f32 %v15986_v16, %v22974_v6  ;;  %v16027_v48 = vpop.f32.mrf.mxu1  ;;  %16291 = vmatpush1.bf16.msra.mxu0 %v18492_v55  ;;  %v18708_v55 = vcombine.low %v12376_v63, %v12380_v22  ;;  %v12364_v16 = vld [vmem:[%s22162_s20 + $0x6f0] sm:$0xff] }
 0x9bf   : > { %16332 = vmatpush1.bf16.msra.mxu1 %v18620_v8  ;;  %v15988_v1 = vpop.f32.mrf.mxu0  ;;  %16292 = vmatprep.subr.bf16.mxu0 %v18485_v57  ;;  %v18573_v8 = vcombine.high %v12240_v45, %v12244_v5  ;;  %v18701_v57 = vcombine.high %v12368_v13, %v12372_v24 }
 0x9c0   : > { %v23049_v25 = vadd.f32 %v16027_v48, %v15987_v3  ;;  %v15989_v12 = vadd.f32 %v15988_v1, %v22982_v42  ;;  %v16029_v29 = vpop.f32.mrf.mxu1  ;;  %16333 = vmatprep.subr.bf16.mxu1 %v18613_v43  ;;  %v18604_v42 = vcombine.low %v12272_v51, %v12276_v52  ;;  %v12232_v43 = vld [vmem:[%s22162_s20 + $0x2d0] sm:$0xff]  ;;  %v18572_v51 = vcombine.low %v12240_v45, %v12244_v5 }
 0x9c1   : > { %v15990_v6 = vpop.f32.mrf.mxu0  ;;  %v18700_v52 = vcombine.low %v12368_v13, %v12372_v24  ;;  %v18565_v3 = vcombine.high %v12232_v43, %v12236_v41  ;;  %v18693_v48 = vcombine.high %v12360_v56, %v12364_v16  ;;  %v12228_v1 = vld [vmem:[%s22162_s20 + $0x2b0] sm:$0xff] }
 0x9c2   : > { %v23056_v10 = vadd.f32 %v16029_v29, %v15989_v12  ;;  %v16031_v30 = vpop.f32.mrf.mxu1  ;;  %16293 = vmatpush1.bf16.msra.mxu0 %v18484_v61  ;;  %v12224_v61 = vld [vmem:[%s22162_s20 + $0x290] sm:$0xff]  ;;  %v18564_v12 = vcombine.low %v12232_v43, %v12236_v41  ;;  %v18692_v29 = vcombine.low %v12360_v56, %v12364_v16 }
 0x9c3   : > { %16334 = vmatpush1.bf16.msra.mxu1 %v18612_v23  ;;  %v15991_v54 = vpop.f32.mrf.mxu0  ;;  %16294 = vmatprep.subr.bf16.mxu0 %v18477_v39  ;;  %v12352_v23 = vld [vmem:[%s22162_s20 + $0x690] sm:$0xff]  ;;  %v18556_v30 = vcombine.low %v12224_v61, %v12228_v1 }
 0x9c4   : > { %v16032_v36 = vpop.f32.mrf.mxu1  ;;  %16335 = vmatprep.subr.bf16.mxu1 %v18605_v20  ;;  %v12356_v39 = vld [vmem:[%s22162_s20 + $0x6b0] sm:$0xff]  ;;  %v18557_v20 = vcombine.high %v12224_v61, %v12228_v1 }
 0x9c5   : > { %v18685_v47 = vcombine.high %v12352_v23, %v12356_v39  ;;  %v12220_v6 = vld [vmem:[%s22162_s20 + $0x270] sm:$0xff] }
 0x9c6   : > { %16295 = vmatpush1.bf16.msra.mxu0 %v18476_v0  ;;  %v18684_v0 = vcombine.low %v12352_v23, %v12356_v39  ;;  %v18549_v54 = vcombine.high %v12216_v37, %v12220_v6  ;;  %v12212_v36 = vld [vmem:[%s22162_s20 + $0x230] sm:$0xff]  ;;  %v18548_v28 = vcombine.low %v12216_v37, %v12220_v6 }
 0x9c7   : > { %16336 = vmatpush1.bf16.msra.mxu1 %v18604_v42  ;;  %16296 = vmatprep.subr.bf16.mxu0 %v18597_v33  ;;  %v18677_v42 = vcombine.high %v12344_v31, %v12348_v59  ;;  %v12208_v33 = vld [vmem:[%s22162_s20 + $0x210] sm:$0xff] }
 0x9c8   : > { %16337 = vmatprep.subr.bf16.mxu1 %v18725_v60  ;;  %v12336_v60 = vld [vmem:[%s22162_s20 + $0x610] sm:$0xff]  ;;  %v18541_v44 = vcombine.high %v12208_v33, %v12212_v36  ;;  %v18540_v46 = vcombine.low %v12208_v33, %v12212_v36 }
 0x9c9   : > { %v18668_v63 = vcombine.low %v12336_v60, %v12340_v17  ;;  %v12580_v45 = vld [vmem:[%s22162_s20 + $0xdb0] sm:$0xff] }
 0x9ca   : > { %16297 = vmatpush2.bf16.msra.mxu0 %v18596_v49  ;;  %v18669_v49 = vcombine.high %v12336_v60, %v12340_v17  ;;  %v12568_v43 = vld [vmem:[%s22162_s20 + $0xd50] sm:$0xff] }
 0x9cb   : > { %16338 = vmatpush2.bf16.msra.mxu1 %v18724_v11  ;;  %16298 = vmatprep.subr.bf16.mxu0 %v18589_v40  ;;  %v12456_v11 = vld [vmem:[%s22162_s20 + $0x9d0] sm:$0xff] }
 0x9cc   : > { %16339 = vmatprep.subr.bf16.mxu1 %v18717_v53  ;;  %v12460_v40 = vld [vmem:[%s22162_s20 + $0x9f0] sm:$0xff] }
 0x9cd   : > { %v12584_v53 = vld [vmem:[%s22162_s20 + $0xdd0] sm:$0xff]  ;;  %v18789_v22 = vcombine.high %v12456_v11, %v12460_v40  ;;  %v18788_v5 = vcombine.low %v12456_v11, %v12460_v40 }
 0x9ce   : > { %16299 = vmatpush2.bf16.msra.mxu0 %v18588_v4  ;;  %v18917_v4 = vcombine.high %v12584_v53, %v12588_v62  ;;  %v18916_v13 = vcombine.low %v12584_v53, %v12588_v62  ;;  %v12572_v41 = vld [vmem:[%s22162_s20 + $0xd70] sm:$0xff] }
 0x9cf   : > { %16340 = vmatpush2.bf16.msra.mxu1 %v18716_v2  ;;  %16300 = vmatprep.subr.bf16.mxu0 %v18581_v35  ;;  %v12448_v2 = vld [vmem:[%s22162_s20 + $0x990] sm:$0xff]  ;;  %v18901_v61 = vcombine.high %v12568_v43, %v12572_v41 }
 0x9d0   : > { %16341 = vmatprep.subr.bf16.mxu1 %v18709_v9  ;;  %v12452_v35 = vld [vmem:[%s22162_s20 + $0x9b0] sm:$0xff] }
 0x9d1   : > { %v12576_v9 = vld [vmem:[%s22162_s20 + $0xd90] sm:$0xff]  ;;  %v18781_v24 = vcombine.high %v12448_v2, %v12452_v35  ;;  %v18780_v16 = vcombine.low %v12448_v2, %v12452_v35 }
 0x9d2   : > { %16301 = vmatpush2.bf16.msra.mxu0 %v18580_v58  ;;  %v18909_v58 = vcombine.high %v12576_v9, %v12580_v45  ;;  %v12432_v1 = vld [vmem:[%s22162_s20 + $0x910] sm:$0xff] }
 0x9d3   : > { %16342 = vmatpush2.bf16.msra.mxu1 %v18708_v55  ;;  %16302 = vmatprep.subr.bf16.mxu0 %v18573_v8  ;;  %v12440_v55 = vld [vmem:[%s22162_s20 + $0x950] sm:$0xff] }
 0x9d4   : > { %16343 = vmatprep.subr.bf16.mxu1 %v18701_v57  ;;  %v12444_v8 = vld [vmem:[%s22162_s20 + $0x970] sm:$0xff] }
 0x9d5   : > { %v12436_v23 = vld [vmem:[%s22162_s20 + $0x930] sm:$0xff] }
 0x9d6   : > { %16303 = vmatpush2.bf16.msra.mxu0 %v18572_v51  ;;  %v12560_v39 = vld [vmem:[%s22162_s20 + $0xd10] sm:$0xff]  ;;  %v18765_v37 = vcombine.high %v12432_v1, %v12436_v23 }
 0x9d7   : > { %16344 = vmatpush2.bf16.msra.mxu1 %v18700_v52  ;;  %16304 = vmatprep.subr.bf16.mxu0 %v18565_v3  ;;  %v18908_v52 = vcombine.low %v12576_v9, %v12580_v45  ;;  %v18773_v3 = vcombine.high %v12440_v55, %v12444_v8  ;;  %v12424_v31 = vld [vmem:[%s22162_s20 + $0x8d0] sm:$0xff] }
 0x9d8   : > { %16345 = vmatprep.subr.bf16.mxu1 %v18693_v48  ;;  %v12428_v59 = vld [vmem:[%s22162_s20 + $0x8f0] sm:$0xff] }
 0x9d9   : > { %v18757_v33 = vcombine.high %v12424_v31, %v12428_v59  ;;  %v12416_v60 = vld [vmem:[%s22162_s20 + $0x890] sm:$0xff] }
 0x9da   : > { %16305 = vmatpush2.bf16.msra.mxu0 %v18564_v12  ;;  %v12564_v12 = vld [vmem:[%s22162_s20 + $0xd30] sm:$0xff] }
 0x9db   : > { %16346 = vmatpush2.bf16.msra.mxu1 %v18692_v29  ;;  %16306 = vmatprep.subr.bf16.mxu0 %v18557_v20  ;;  %v18893_v6 = vcombine.high %v12560_v39, %v12564_v12  ;;  %v12420_v17 = vld [vmem:[%s22162_s20 + $0x8b0] sm:$0xff] }
 0x9dc   : > { %16347 = vmatprep.subr.bf16.mxu1 %v18685_v47  ;;  %v18900_v47 = vcombine.low %v12568_v43, %v12572_v41  ;;  %v18749_v11 = vcombine.high %v12416_v60, %v12420_v17  ;;  %v12408_v53 = vld [vmem:[%s22162_s20 + $0x850] sm:$0xff] }
 0x9dd   : > { %v12412_v62 = vld [vmem:[%s22162_s20 + $0x870] sm:$0xff] }
 0x9de   : > { %16307 = vmatpush2.bf16.msra.mxu0 %v18556_v30  ;;  %v12552_v30 = vld [vmem:[%s22162_s20 + $0xcd0] sm:$0xff]  ;;  %v18741_v2 = vcombine.high %v12408_v53, %v12412_v62 }
 0x9df   : > { %16348 = vmatpush2.bf16.msra.mxu1 %v18684_v0  ;;  %16308 = vmatprep.subr.bf16.mxu0 %v18549_v54  ;;  %v12556_v0 = vld [vmem:[%s22162_s20 + $0xcf0] sm:$0xff]  ;;  %v18764_v54 = vcombine.low %v12432_v1, %v12436_v23 }
 0x9e0   : > { %16349 = vmatprep.subr.bf16.mxu1 %v18677_v42  ;;  %v18892_v42 = vcombine.low %v12560_v39, %v12564_v12  ;;  %v18885_v36 = vcombine.high %v12552_v30, %v12556_v0  ;;  %v12400_v9 = vld [vmem:[%s22162_s20 + $0x810] sm:$0xff] }
 0x9e1   : > { %v12404_v45 = vld [vmem:[%s22162_s20 + $0x830] sm:$0xff] }
 0x9e2   : > { %16309 = vmatpush2.bf16.msra.mxu0 %v18548_v28  ;;  %v12544_v28 = vld [vmem:[%s22162_s20 + $0xc90] sm:$0xff] }
 0x9e3   : > { %16350 = vmatpush2.bf16.msra.mxu1 %v18676_v19  ;;  %16310 = vmatprep.subr.bf16.mxu0 %v18541_v44  ;;  %v12548_v19 = vld [vmem:[%s22162_s20 + $0xcb0] sm:$0xff]  ;;  %v18756_v44 = vcombine.low %v12424_v31, %v12428_v59 }
 0x9e4   : > { %16351 = vmatprep.subr.bf16.mxu1 %v18669_v49  ;;  %v18884_v49 = vcombine.low %v12552_v30, %v12556_v0  ;;  %v18877_v40 = vcombine.high %v12544_v28, %v12548_v19  ;;  %v12520_v41 = vld [vmem:[%s22162_s20 + $0xbd0] sm:$0xff] }
 0x9e5   : > { %v12512_v12 = vld [vmem:[%s22162_s20 + $0xb90] sm:$0xff] }
 0x9e6   : > { %16311 = vmatpush2.bf16.msra.mxu0 %v18540_v46  ;;  %v12536_v46 = vld [vmem:[%s22162_s20 + $0xc50] sm:$0xff] }
 0x9e7   : > { %16352 = vmatpush2.bf16.msra.mxu1 %v18668_v63  ;;  %16362 = vmatprep.subr.bf16.mxu0 %v18789_v22  ;;  %v12540_v63 = vld [vmem:[%s22162_s20 + $0xc70] sm:$0xff]  ;;  %v18748_v22 = vcombine.low %v12416_v60, %v12420_v17 }
 0x9e8   : > { %16403 = vmatprep.subr.bf16.mxu1 %v18917_v4  ;;  %v18876_v4 = vcombine.low %v12544_v28, %v12548_v19  ;;  %v18869_v35 = vcombine.high %v12536_v46, %v12540_v63  ;;  %v12504_v30 = vld [vmem:[%s22162_s20 + $0xb50] sm:$0xff] }
 0x9e9   : > { %v16068_v57 = vpop.f32.mrf.mxu0  ;;  %16313 = vmatmul.mubr.bf16.vlgmr.msra.gmra.mxu0 %v22727_v15  ;;  %v12508_v0 = vld [vmem:[%s22162_s20 + $0xb70] sm:$0xff] }
 0x9ea   : > { %v23100_v56 = vadd.f32 %v16068_v57, %v23049_v25  ;;  %16354 = vmatmul.mubr.bf16.vlgmr.msra.gmra.mxu1 %v22738_v32  ;;  %16363 = vmatpush1.bf16.msra.mxu0 %v18788_v5  ;;  %v12528_v5 = vld [vmem:[%s22162_s20 + $0xc10] sm:$0xff]  ;;  %v18837_v60 = vcombine.high %v12504_v30, %v12508_v0 }
 0x9eb   : > { %16404 = vmatpush1.bf16.msra.mxu1 %v18916_v13  ;;  %v16070_v51 = vpop.f32.mrf.mxu0  ;;  %16364 = vmatprep.subr.bf16.mxu0 %v18781_v24  ;;  %v12532_v13 = vld [vmem:[%s22162_s20 + $0xc30] sm:$0xff] }
 0x9ec   : > { %v23104_v48 = vadd.f32 %v16070_v51, %v23056_v10  ;;  %16405 = vmatprep.subr.bf16.mxu1 %v18909_v58  ;;  %16394 = vmatprep.mubr.bf16.mxu0 %v22734_v27  ;;  %v18772_v10 = vcombine.low %v12440_v55, %v12444_v8  ;;  %v18740_v58 = vcombine.low %v12408_v53, %v12412_v62  ;;  %v12648_v51 = vld [vmem:[%s22162_s20 + $0xfd0] sm:$0xff] }
 0x9ed   : > { %v16072_v25 = vpop.f32.mrf.mxu0  ;;  %16435 = vmatprep.mubr.bf16.mxu1 %v22747_v21  ;;  %v18868_v55 = vcombine.low %v12536_v46, %v12540_v63  ;;  %v18733_v8 = vcombine.high %v12400_v9, %v12404_v45  ;;  %v18861_v43 = vcombine.high %v12528_v5, %v12532_v13  ;;  %v18860_v1 = vcombine.low %v12528_v5, %v12532_v13  ;;  %v12496_v28 = vld [vmem:[%s22162_s20 + $0xb10] sm:$0xff] }
 0x9ee   : > { %v16698_v29 = vcombine.low %v23100_v56, %v23104_v48  ;;  %16365 = vmatpush1.bf16.msra.mxu0 %v18780_v16  ;;  %v12524_v16 = vld [vmem:[%s22162_s20 + $0xbf0] sm:$0xff]  ;;  %v12417_v56 = vld [vmem:[%s22162_s20 + $0x898] sm:$0xff] }
 0x9ef   : > { %16406 = vmatpush1.bf16.msra.mxu1 %v18908_v52  ;;  %v16073_v20 = vpop.f32.mrf.mxu0  ;;  %16366 = vmatprep.subr.bf16.mxu0 %v18773_v3  ;;  %v12652_v52 = vld [vmem:[%s22162_s20 + $0xff0] sm:$0xff]  ;;  %v18853_v23 = vcombine.high %v12520_v41, %v12524_v16  ;;  %v12421_v48 = vld [vmem:[%s22162_s20 + $0x8b8] sm:$0xff] }
 0x9f0   : > { %16407 = vmatprep.subr.bf16.mxu1 %v18901_v61  ;;  %v18732_v61 = vcombine.low %v12400_v9, %v12404_v45  ;;  %v18981_v39 = vcombine.high %v12648_v51, %v12652_v52  ;;  %v12640_v20 = vld [vmem:[%s22162_s20 + $0xf90] sm:$0xff] }
 0x9f1   : > { %v12500_v19 = vld [vmem:[%s22162_s20 + $0xb30] sm:$0xff] }
 0x9f2   : > { %16367 = vmatpush1.bf16.msra.mxu0 %v18772_v10  ;;  %v12516_v10 = vld [vmem:[%s22162_s20 + $0xbb0] sm:$0xff]  ;;  %v18829_v53 = vcombine.high %v12496_v28, %v12500_v19 }
 0x9f3   : > { %16408 = vmatpush1.bf16.msra.mxu1 %v18900_v47  ;;  %16368 = vmatprep.subr.bf16.mxu0 %v18765_v37  ;;  %v12644_v47 = vld [vmem:[%s22162_s20 + $0xfb0] sm:$0xff]  ;;  %v18852_v37 = vcombine.low %v12520_v41, %v12524_v16  ;;  %v18845_v31 = vcombine.high %v12512_v12, %v12516_v10 }
 0x9f4   : > { %16409 = vmatprep.subr.bf16.mxu1 %v18893_v6  ;;  %v18980_v6 = vcombine.low %v12648_v51, %v12652_v52  ;;  %v18973_v59 = vcombine.high %v12640_v20, %v12644_v47  ;;  %v12488_v46 = vld [vmem:[%s22162_s20 + $0xad0] sm:$0xff] }
 0x9f5   : > { %v12492_v63 = vld [vmem:[%s22162_s20 + $0xaf0] sm:$0xff] }
 0x9f6   : > { %16369 = vmatpush1.bf16.msra.mxu0 %v18764_v54  ;;  %v12632_v54 = vld [vmem:[%s22162_s20 + $0xf50] sm:$0xff]  ;;  %v18821_v9 = vcombine.high %v12488_v46, %v12492_v63 }
 0x9f7   : > { %16410 = vmatpush1.bf16.msra.mxu1 %v18892_v42  ;;  %16370 = vmatprep.subr.bf16.mxu0 %v18757_v33  ;;  %v12636_v42 = vld [vmem:[%s22162_s20 + $0xf70] sm:$0xff]  ;;  %v18844_v33 = vcombine.low %v12512_v12, %v12516_v10 }
 0x9f8   : > { %16411 = vmatprep.subr.bf16.mxu1 %v18885_v36  ;;  %v18972_v36 = vcombine.low %v12640_v20, %v12644_v47  ;;  %v18965_v17 = vcombine.high %v12632_v54, %v12636_v42  ;;  %v12480_v5 = vld [vmem:[%s22162_s20 + $0xa90] sm:$0xff] }
 0x9f9   : > { %v12484_v13 = vld [vmem:[%s22162_s20 + $0xab0] sm:$0xff] }
 0x9fa   : > { %16371 = vmatpush1.bf16.msra.mxu0 %v18756_v44  ;;  %v12624_v44 = vld [vmem:[%s22162_s20 + $0xf10] sm:$0xff]  ;;  %v18813_v41 = vcombine.high %v12480_v5, %v12484_v13 }
 0x9fb   : > { %16412 = vmatpush1.bf16.msra.mxu1 %v18884_v49  ;;  %16372 = vmatprep.subr.bf16.mxu0 %v18749_v11  ;;  %v12628_v49 = vld [vmem:[%s22162_s20 + $0xf30] sm:$0xff]  ;;  %v18836_v11 = vcombine.low %v12504_v30, %v12508_v0 }
 0x9fc   : > { %16413 = vmatprep.subr.bf16.mxu1 %v18877_v40  ;;  %v18964_v40 = vcombine.low %v12632_v54, %v12636_v42  ;;  %v18957_v62 = vcombine.high %v12624_v44, %v12628_v49  ;;  %v12472_v51 = vld [vmem:[%s22162_s20 + $0xa50] sm:$0xff]  ;;  %v12201_v54 = vld [vmem:[%s22162_s20 + $0x1d8] sm:$0xff] }
 0x9fd   : > { %v12476_v52 = vld [vmem:[%s22162_s20 + $0xa70] sm:$0xff]  ;;  %v12205_v42 = vld [vmem:[%s22162_s20 + $0x1f8] sm:$0xff] }
 0x9fe   : > { %v23130_v24 = vpop.f32.mrf.mxu1  ;;  %16373 = vmatpush1.bf16.msra.mxu0 %v18748_v22  ;;  %v12616_v22 = vld [vmem:[%s22162_s20 + $0xed0] sm:$0xff] }
 0x9ff   : > { %16414 = vmatpush1.bf16.msra.mxu1 %v18876_v4  ;;  %16374 = vmatprep.subr.bf16.mxu0 %v18741_v2  ;;  %v12620_v4 = vld [vmem:[%s22162_s20 + $0xef0] sm:$0xff]  ;;  %v18828_v2 = vcombine.low %v12496_v28, %v12500_v19 }
 0xa00   : > { %v23132_v57 = vpop.f32.mrf.mxu1  ;;  %16415 = vmatprep.subr.bf16.mxu1 %v18869_v35  ;;  %v18956_v35 = vcombine.low %v12624_v44, %v12628_v49  ;;  %v18949_v45 = vcombine.high %v12616_v22, %v12620_v4  ;;  %v12464_v12 = vld [vmem:[%s22162_s20 + $0xa10] sm:$0xff]  ;;  %v12193_v44 = vld [vmem:[%s22162_s20 + $0x198] sm:$0xff] }
 0xa01   : > { %v12468_v10 = vld [vmem:[%s22162_s20 + $0xa30] sm:$0xff]  ;;  %v12197_v49 = vld [vmem:[%s22162_s20 + $0x1b8] sm:$0xff] }
 0xa02   : > { %v16113_v3 = vpop.f32.mrf.mxu1  ;;  %16375 = vmatpush1.bf16.msra.mxu0 %v18740_v58  ;;  %v12608_v58 = vld [vmem:[%s22162_s20 + $0xe90] sm:$0xff] }
 0xa03   : > { %16416 = vmatpush1.bf16.msra.mxu1 %v18868_v55  ;;  %16376 = vmatprep.subr.bf16.mxu0 %v18733_v8  ;;  %v12612_v55 = vld [vmem:[%s22162_s20 + $0xeb0] sm:$0xff]  ;;  %v18820_v8 = vcombine.low %v12488_v46, %v12492_v63 }
 0xa04   : > { %v16114_v25 = vpop.f32.mrf.mxu1  ;;  %16417 = vmatprep.subr.bf16.mxu1 %v18861_v43  ;;  %v18948_v43 = vcombine.low %v12616_v22, %v12620_v4  ;;  %v18941_v16 = vcombine.high %v12608_v58, %v12612_v55  ;;  %v12600_v3 = vld [vmem:[%s22162_s20 + $0xe50] sm:$0xff]  ;;  %v12185_v4 = vld [vmem:[%s22162_s20 + $0x158] sm:$0xff] }
 0xa05   : > { %v18805_v25 = vcombine.high %v12472_v51, %v12476_v52  ;;  %v12592_v20 = vld [vmem:[%s22162_s20 + $0xe10] sm:$0xff] }
 0xa06   : > { %16377 = vmatpush1.bf16.msra.mxu0 %v18732_v61  ;;  %v12604_v61 = vld [vmem:[%s22162_s20 + $0xe70] sm:$0xff] }
 0xa07   : > { %16418 = vmatpush1.bf16.msra.mxu1 %v18860_v1  ;;  %16378 = vmatprep.subr.bf16.mxu0 %v18853_v23  ;;  %v18812_v1 = vcombine.low %v12480_v5, %v12484_v13  ;;  %v18940_v23 = vcombine.low %v12608_v58, %v12612_v55  ;;  %v12596_v47 = vld [vmem:[%s22162_s20 + $0xe30] sm:$0xff] }
 0xa08   : > { %16419 = vmatprep.subr.bf16.mxu1 %v18981_v39  ;;  %v18933_v39 = vcombine.high %v12600_v3, %v12604_v61  ;;  %v12712_v30 = vld [vmem:[%s22162_s20 + $0x11d0] sm:$0xff] }
 0xa09   : > { %v12716_v0 = vld [vmem:[%s22162_s20 + $0x11f0] sm:$0xff] }
 0xa0a   : > { %16379 = vmatpush2.bf16.msra.mxu0 %v18852_v37  ;;  %v18804_v37 = vcombine.low %v12472_v51, %v12476_v52  ;;  %v12704_v28 = vld [vmem:[%s22162_s20 + $0x1190] sm:$0xff] }
 0xa0b   : > { %16420 = vmatpush2.bf16.msra.mxu1 %v18980_v6  ;;  %16380 = vmatprep.subr.bf16.mxu0 %v18845_v31  ;;  %v18932_v6 = vcombine.low %v12600_v3, %v12604_v61  ;;  %v18797_v31 = vcombine.high %v12464_v12, %v12468_v10  ;;  %v12708_v19 = vld [vmem:[%s22162_s20 + $0x11b0] sm:$0xff] }
 0xa0c   : > { %16421 = vmatprep.subr.bf16.mxu1 %v18973_v59  ;;  %v18925_v59 = vcombine.high %v12592_v20, %v12596_v47  ;;  %v12696_v46 = vld [vmem:[%s22162_s20 + $0x1150] sm:$0xff] }
 0xa0d   : > { %v12700_v63 = vld [vmem:[%s22162_s20 + $0x1170] sm:$0xff] }
 0xa0e   : > { %16381 = vmatpush2.bf16.msra.mxu0 %v18844_v33  ;;  %v18796_v33 = vcombine.low %v12464_v12, %v12468_v10  ;;  %v19029_v5 = vcombine.high %v12696_v46, %v12700_v63  ;;  %v12688_v58 = vld [vmem:[%s22162_s20 + $0x1110] sm:$0xff] }
 0xa0f   : > { %16422 = vmatpush2.bf16.msra.mxu1 %v18972_v36  ;;  %16382 = vmatprep.subr.bf16.mxu0 %v18837_v60  ;;  %v18924_v36 = vcombine.low %v12592_v20, %v12596_v47  ;;  %v19045_v60 = vcombine.high %v12712_v30, %v12716_v0  ;;  %v12692_v55 = vld [vmem:[%s22162_s20 + $0x1130] sm:$0xff] }
 0xa10   : > { %16423 = vmatprep.subr.bf16.mxu1 %v18965_v17  ;;  %v18535_v17 = vcombine.high %v12201_v54, %v12205_v42  ;;  %v19021_v3 = vcombine.high %v12688_v58, %v12692_v55  ;;  %v19020_v12 = vcombine.low %v12688_v58, %v12692_v55  ;;  %v12672_v47 = vld [vmem:[%s22162_s20 + $0x1090] sm:$0xff]  ;;  %v12269_v58 = vld [vmem:[%s22162_s20 + $0x3f8] sm:$0xff] }
 0xa12   : > { %16383 = vmatpush2.bf16.msra.mxu0 %v18836_v11  ;;  %v19044_v11 = vcombine.low %v12712_v30, %v12716_v0 }
 0xa13   : > { %16424 = vmatpush2.bf16.msra.mxu1 %v18964_v40  ;;  %16384 = vmatprep.subr.bf16.mxu0 %v18829_v53  ;;  %v18534_v40 = vcombine.low %v12201_v54, %v12205_v42  ;;  %v19037_v53 = vcombine.high %v12704_v28, %v12708_v19  ;;  %v12664_v42 = vld [vmem:[%s22162_s20 + $0x1050] sm:$0xff] }
 0xa14   : > { %16425 = vmatprep.subr.bf16.mxu1 %v18957_v62  ;;  %v18527_v62 = vcombine.high %v12193_v44, %v12197_v49 }
 0xa16   : > { %16385 = vmatpush2.bf16.msra.mxu0 %v18828_v2  ;;  %v12189_v2 = vld [vmem:[%s22162_s20 + $0x178] sm:$0xff] }
 0xa17   : > { %16426 = vmatpush2.bf16.msra.mxu1 %v18956_v35  ;;  %16386 = vmatprep.subr.bf16.mxu0 %v18821_v9  ;;  %v19036_v35 = vcombine.low %v12704_v28, %v12708_v19  ;;  %v18519_v13 = vcombine.high %v12185_v4, %v12189_v2  ;;  %v18518_v52 = vcombine.low %v12185_v4, %v12189_v2 }
 0xa18   : > { %16427 = vmatprep.subr.bf16.mxu1 %v18949_v45  ;;  %v18526_v45 = vcombine.low %v12193_v44, %v12197_v49  ;;  %v12656_v49 = vld [vmem:[%s22162_s20 + $0x1010] sm:$0xff] }
 0xa1a   : > { %16387 = vmatpush2.bf16.msra.mxu0 %v18820_v8 }
 0xa1b   : > { %16428 = vmatpush2.bf16.msra.mxu1 %v18948_v43  ;;  %16388 = vmatprep.subr.bf16.mxu0 %v18813_v41  ;;  %v12177_v43 = vld [vmem:[%s22162_s20 + $0x118] sm:$0xff] }
 0xa1c   : > { %16429 = vmatprep.subr.bf16.mxu1 %v18941_v16  ;;  %v12181_v41 = vld [vmem:[%s22162_s20 + $0x138] sm:$0xff]  ;;  %v19028_v16 = vcombine.low %v12696_v46, %v12700_v63 }
 0xa1d   : > { %v18511_v61 = vcombine.high %v12177_v43, %v12181_v41 }
 0xa1e   : > { %16389 = vmatpush2.bf16.msra.mxu0 %v18812_v1  ;;  %v12680_v1 = vld [vmem:[%s22162_s20 + $0x10d0] sm:$0xff] }
 0xa1f   : > { %16430 = vmatpush2.bf16.msra.mxu1 %v18940_v23  ;;  %16390 = vmatprep.subr.bf16.mxu0 %v18805_v25  ;;  %v12684_v23 = vld [vmem:[%s22162_s20 + $0x10f0] sm:$0xff]  ;;  %v12169_v25 = vld [vmem:[%s22162_s20 + $0xd8] sm:$0xff] }
 0xa20   : > { %16431 = vmatprep.subr.bf16.mxu1 %v18933_v39  ;;  %v12173_v39 = vld [vmem:[%s22162_s20 + $0xf8] sm:$0xff]  ;;  %v19013_v10 = vcombine.high %v12680_v1, %v12684_v23 }
 0xa21   : > { %v18503_v20 = vcombine.high %v12169_v25, %v12173_v39  ;;  %v18502_v30 = vcombine.low %v12169_v25, %v12173_v39 }
 0xa22   : > { %16391 = vmatpush2.bf16.msra.mxu0 %v18804_v37  ;;  %v12676_v37 = vld [vmem:[%s22162_s20 + $0x10b0] sm:$0xff] }
 0xa23   : > { %16432 = vmatpush2.bf16.msra.mxu1 %v18932_v6  ;;  %16392 = vmatprep.subr.bf16.mxu0 %v18797_v31  ;;  %v12161_v6 = vld [vmem:[%s22162_s20 + $0x98] sm:$0xff]  ;;  %v19005_v0 = vcombine.high %v12672_v47, %v12676_v37 }
 0xa24   : > { %16433 = vmatprep.subr.bf16.mxu1 %v18925_v59  ;;  %v12165_v31 = vld [vmem:[%s22162_s20 + $0xb8] sm:$0xff]  ;;  %v19012_v59 = vcombine.low %v12680_v1, %v12684_v23 }
 0xa25   : > { %v18495_v54 = vcombine.high %v12161_v6, %v12165_v31  ;;  %v18494_v28 = vcombine.low %v12161_v6, %v12165_v31  ;;  %v12261_v1 = vld [vmem:[%s22162_s20 + $0x3b8] sm:$0xff] }
 0xa26   : > { %16393 = vmatpush2.bf16.msra.mxu0 %v18796_v33  ;;  %v12668_v33 = vld [vmem:[%s22162_s20 + $0x1070] sm:$0xff] }
 0xa27   : > { %16434 = vmatpush2.bf16.msra.mxu1 %v18924_v36  ;;  %16444 = vmatprep.subr.bf16.mxu0 %v19045_v60  ;;  %v12153_v36 = vld [vmem:[%s22162_s20 + $0x58] sm:$0xff]  ;;  %v18997_v19 = vcombine.high %v12664_v42, %v12668_v33  ;;  %v18996_v46 = vcombine.low %v12664_v42, %v12668_v33 }
 0xa28   : > { %16485 = vmatprep.subr.bf16.mxu1 %v18535_v17  ;;  %v12157_v60 = vld [vmem:[%s22162_s20 + $0x78] sm:$0xff]  ;;  %v19004_v17 = vcombine.low %v12672_v47, %v12676_v37 }
 0xa29   : > { %v23176_v22 = vpop.f32.mrf.mxu0  ;;  %16395 = vmatmul.mubr.bf16.vlgmr.msra.gmra.mxu0 %v22697_v38  ;;  %v18487_v44 = vcombine.high %v12153_v36, %v12157_v60  ;;  %v18486_v63 = vcombine.low %v12153_v36, %v12157_v60  ;;  %v12253_v47 = vld [vmem:[%s22162_s20 + $0x378] sm:$0xff] }
 0xa2a   : > { %16436 = vmatmul.mubr.bf16.vlgmr.msra.gmra.mxu1 %v22818_v50  ;;  %16445 = vmatpush1.bf16.msra.mxu0 %v19044_v11  ;;  %v12660_v11 = vld [vmem:[%s22162_s20 + $0x1030] sm:$0xff]  ;;  %v12245_v42 = vld [vmem:[%s22162_s20 + $0x338] sm:$0xff] }
 0xa2b   : > { %16486 = vmatpush1.bf16.msra.mxu1 %v18534_v40  ;;  %v23182_v9 = vpop.f32.mrf.mxu0  ;;  %16446 = vmatprep.subr.bf16.mxu0 %v19037_v53  ;;  %v12145_v40 = vld [vmem:[%s22162_s20 + $0x18] sm:$0xff]  ;;  %v18989_v4 = vcombine.high %v12656_v49, %v12660_v11 }
 0xa2c   : > { %16487 = vmatprep.subr.bf16.mxu1 %v18527_v62  ;;  %19074 = vmatprep.mubr.msk.bf16.mxu0 %vm15866_vm6, %v22823_v26  ;;  %v12149_v53 = vld [vmem:[%s22162_s20 + $0x38] sm:$0xff] }
 0xa2d   : > { %v16154_v8 = vpop.f32.mrf.mxu0  ;;  %16517 = vmatprep.mubr.bf16.mxu1 %v22674_v18  ;;  %v18510_v18 = vcombine.low %v12177_v43, %v12181_v41  ;;  %v18478_v43 = vcombine.low %v12145_v40, %v12149_v53 }
 0xa2e   : > { %16447 = vmatpush1.bf16.msra.mxu0 %v19036_v35  ;;  %v18479_v35 = vcombine.high %v12145_v40, %v12149_v53  ;;  %v18988_v8 = vcombine.low %v12656_v49, %v12660_v11  ;;  %v12237_v49 = vld [vmem:[%s22162_s20 + $0x2f8] sm:$0xff] }
 0xa2f   : > { %16488 = vmatpush1.bf16.msra.mxu1 %v18526_v45  ;;  %v16155_v51 = vpop.f32.mrf.mxu0  ;;  %16448 = vmatprep.subr.bf16.mxu0 %v19029_v5  ;;  %v12736_v45 = vld [vmem:[%s22162_s20 + $0x1290] sm:$0xff] }
 0xa30   : > { %16489 = vmatprep.subr.bf16.mxu1 %v18519_v13  ;;  %v12740_v5 = vld [vmem:[%s22162_s20 + $0x12b0] sm:$0xff]  ;;  %v12265_v13 = vld [vmem:[%s22162_s20 + $0x3d8] sm:$0xff] }
 0xa31   : > { %v19069_v41 = vcombine.high %v12736_v45, %v12740_v5  ;;  %v18599_v51 = vcombine.high %v12265_v13, %v12269_v58  ;;  %v19068_v23 = vcombine.low %v12736_v45, %v12740_v5  ;;  %v18598_v25 = vcombine.low %v12265_v13, %v12269_v58  ;;  %v12229_v45 = vld [vmem:[%s22162_s20 + $0x2b8] sm:$0xff] }
 0xa32   : > { %16449 = vmatpush1.bf16.msra.mxu0 %v19028_v16 }
 0xa33   : > { %16490 = vmatpush1.bf16.msra.mxu1 %v18518_v52  ;;  %16450 = vmatprep.subr.bf16.mxu0 %v19021_v3  ;;  %v12728_v52 = vld [vmem:[%s22162_s20 + $0x1250] sm:$0xff] }
 0xa34   : > { %16491 = vmatprep.subr.bf16.mxu1 %v18511_v61  ;;  %v12732_v3 = vld [vmem:[%s22162_s20 + $0x1270] sm:$0xff]  ;;  %v12257_v61 = vld [vmem:[%s22162_s20 + $0x398] sm:$0xff] }
 0xa35   : > { %v19061_v39 = vcombine.high %v12728_v52, %v12732_v3  ;;  %v19060_v37 = vcombine.low %v12728_v52, %v12732_v3  ;;  %v18590_v6 = vcombine.low %v12257_v61, %v12261_v1  ;;  %v12754_v3 = vsub.s32 2, %v22651_v14 }
 0xa36   : > { %16451 = vmatpush1.bf16.msra.mxu0 %v19020_v12  ;;  %v18591_v12 = vcombine.high %v12257_v61, %v12261_v1  ;;  %v12297_v1 = vld [vmem:[%s22162_s20 + $0x4d8] sm:$0xff] }
 0xa37   : > { %16492 = vmatpush1.bf16.msra.mxu1 %v18510_v18  ;;  %16452 = vmatprep.subr.bf16.mxu0 %v19013_v10  ;;  %v12720_v18 = vld [vmem:[%s22162_s20 + $0x1210] sm:$0xff] }
 0xa38   : > { %16493 = vmatprep.subr.bf16.mxu1 %v18503_v20  ;;  %v12724_v10 = vld [vmem:[%s22162_s20 + $0x1230] sm:$0xff]  ;;  %v12249_v20 = vld [vmem:[%s22162_s20 + $0x358] sm:$0xff] }
 0xa39   : > { %v19053_v31 = vcombine.high %v12720_v18, %v12724_v10  ;;  %v19052_v33 = vcombine.low %v12720_v18, %v12724_v10  ;;  %v18582_v36 = vcombine.low %v12249_v20, %v12253_v47 }
 0xa3a   : > { %16453 = vmatpush1.bf16.msra.mxu0 %v19012_v59  ;;  %v18583_v59 = vcombine.high %v12249_v20, %v12253_v47  ;;  %v23248_v47 = vld [vmem:[%s22170_s7] sm:$0xff] }
 0xa3b   : > { %16494 = vmatpush1.bf16.msra.mxu1 %v18502_v30  ;;  %16454 = vmatprep.subr.bf16.mxu0 %v19005_v0  ;;  %v12329_v30 = vld [vmem:[%s22162_s20 + $0x5d8] sm:$0xff] }
 0xa3c   : > { %16495 = vmatprep.subr.bf16.mxu1 %v18495_v54  ;;  %v12333_v0 = vld [vmem:[%s22162_s20 + $0x5f8] sm:$0xff] }
 0xa3d   : > { %v12241_v54 = vld [vmem:[%s22162_s20 + $0x318] sm:$0xff]  ;;  %v18663_v60 = vcombine.high %v12329_v30, %v12333_v0  ;;  %v18662_v11 = vcombine.low %v12329_v30, %v12333_v0 }
 0xa3e   : > { %v23207_v62 = vpop.f32.mrf.mxu1  ;;  %16455 = vmatpush1.bf16.msra.mxu0 %v19004_v17  ;;  %v18575_v17 = vcombine.high %v12241_v54, %v12245_v42  ;;  %v18574_v40 = vcombine.low %v12241_v54, %v12245_v42  ;;  %v12457_v30 = vld [vmem:[%s22162_s20 + $0x9d8] sm:$0xff] }
 0xa3f   : > { %16496 = vmatpush1.bf16.msra.mxu1 %v18494_v28  ;;  %16456 = vmatprep.subr.bf16.mxu0 %v18997_v19  ;;  %v12321_v28 = vld [vmem:[%s22162_s20 + $0x598] sm:$0xff] }
 0xa40   : > { %v23209_v2 = vpop.f32.mrf.mxu1  ;;  %16497 = vmatprep.subr.bf16.mxu1 %v18487_v44  ;;  %v12325_v19 = vld [vmem:[%s22162_s20 + $0x5b8] sm:$0xff] }
 0xa41   : > { %v12233_v44 = vld [vmem:[%s22162_s20 + $0x2d8] sm:$0xff]  ;;  %v18655_v53 = vcombine.high %v12321_v28, %v12325_v19  ;;  %v18654_v5 = vcombine.low %v12321_v28, %v12325_v19 }
 0xa42   : > { %v16195_v55 = vpop.f32.mrf.mxu1  ;;  %16457 = vmatpush1.bf16.msra.mxu0 %v18996_v46  ;;  %v18567_v46 = vcombine.high %v12233_v44, %v12237_v49  ;;  %v18566_v13 = vcombine.low %v12233_v44, %v12237_v49  ;;  %v12461_v0 = vld [vmem:[%s22162_s20 + $0x9f8] sm:$0xff] }
 0xa43   : > { %16498 = vmatpush1.bf16.msra.mxu1 %v18486_v63  ;;  %16458 = vmatprep.subr.bf16.mxu0 %v18989_v4  ;;  %v12313_v63 = vld [vmem:[%s22162_s20 + $0x558] sm:$0xff] }
 0xa44   : > { %v16196_v16 = vpop.f32.mrf.mxu1  ;;  %16499 = vmatprep.subr.bf16.mxu1 %v18479_v35  ;;  %v12317_v4 = vld [vmem:[%s22162_s20 + $0x578] sm:$0xff] }
 0xa45   : > { %v12225_v35 = vld [vmem:[%s22162_s20 + $0x298] sm:$0xff]  ;;  %v18647_v58 = vcombine.high %v12313_v63, %v12317_v4 }
 0xa46   : > { %16459 = vmatpush1.bf16.msra.mxu0 %v18988_v8  ;;  %v18559_v55 = vcombine.high %v12225_v35, %v12229_v45  ;;  %v12305_v8 = vld [vmem:[%s22162_s20 + $0x518] sm:$0xff]  ;;  %v18558_v52 = vcombine.low %v12225_v35, %v12229_v45 }
 0xa47   : > { %16500 = vmatpush1.bf16.msra.mxu1 %v18478_v43  ;;  %16470 = vmatprep.subr.bf16.mxu0 %v19069_v41  ;;  %v12309_v43 = vld [vmem:[%s22162_s20 + $0x538] sm:$0xff] }
 0xa48   : > { %16501 = vmatprep.subr.bf16.mxu1 %v18599_v51  ;;  %v12217_v41 = vld [vmem:[%s22162_s20 + $0x258] sm:$0xff]  ;;  %v18646_v51 = vcombine.low %v12313_v63, %v12317_v4  ;;  %v18638_v18 = vcombine.low %v12305_v8, %v12309_v43 }
 0xa49   : > { %v12221_v16 = vld [vmem:[%s22162_s20 + $0x278] sm:$0xff] }
 0xa4a   : > { %16471 = vmatpush2.bf16.msra.mxu0 %v19068_v23  ;;  %v18551_v61 = vcombine.high %v12217_v41, %v12221_v16  ;;  %v12301_v23 = vld [vmem:[%s22162_s20 + $0x4f8] sm:$0xff]  ;;  %v18550_v10 = vcombine.low %v12217_v41, %v12221_v16 }
 0xa4b   : > { %16502 = vmatpush2.bf16.msra.mxu1 %v18598_v25  ;;  %16472 = vmatprep.subr.bf16.mxu0 %v19061_v39  ;;  %v12209_v25 = vld [vmem:[%s22162_s20 + $0x218] sm:$0xff]  ;;  %v18631_v20 = vcombine.high %v12297_v1, %v12301_v23  ;;  %v18630_v42 = vcombine.low %v12297_v1, %v12301_v23 }
 0xa4c   : > { %16503 = vmatprep.subr.bf16.mxu1 %v18591_v12  ;;  %v12213_v39 = vld [vmem:[%s22162_s20 + $0x238] sm:$0xff]  ;;  %v12758_v12 = vsub.s32 3, %v22651_v14 }
 0xa4d   : > { %v12281_v28 = vld [vmem:[%s22162_s20 + $0x458] sm:$0xff] }
 0xa4e   : > { %16473 = vmatpush2.bf16.msra.mxu0 %v19060_v37  ;;  %v12755_v37 = vrot.slane %v23248_v47, %v12754_v3  ;;  %v12759_v54 = vrot.slane %v23248_v47, %v12758_v12  ;;  %v12285_v19 = vld [vmem:[%s22162_s20 + $0x478] sm:$0xff] }
 0xa4f   : > { %16504 = vmatpush2.bf16.msra.mxu1 %v18590_v6  ;;  %16474 = vmatprep.subr.bf16.mxu0 %v19053_v31  ;;  %v18543_v6 = vcombine.high %v12209_v25, %v12213_v39  ;;  %v12289_v31 = vld [vmem:[%s22162_s20 + $0x498] sm:$0xff]  ;;  %v18615_v4 = vcombine.high %v12281_v28, %v12285_v19 }
 0xa50   : > { %16505 = vmatprep.subr.bf16.mxu1 %v18583_v59  ;;  %v12293_v59 = vld [vmem:[%s22162_s20 + $0x4b8] sm:$0xff] }
 0xa51   : > { %v12449_v44 = vld [vmem:[%s22162_s20 + $0x998] sm:$0xff]  ;;  %v18622_v63 = vcombine.low %v12289_v31, %v12293_v59 }
 0xa52   : > { %16475 = vmatpush2.bf16.msra.mxu0 %v19052_v33  ;;  %v18542_v33 = vcombine.low %v12209_v25, %v12213_v39  ;;  %v12453_v49 = vld [vmem:[%s22162_s20 + $0x9b8] sm:$0xff] }
 0xa53   : > { %16506 = vmatpush2.bf16.msra.mxu1 %v18582_v36  ;;  %16526 = vmatprep.subr.bf16.mxu0 %v18663_v60  ;;  %v18623_v36 = vcombine.high %v12289_v31, %v12293_v59  ;;  %v16110_v60 = vadd.f32 %v23130_v24, %v12755_v37  ;;  %v18790_v24 = vcombine.low %v12457_v30, %v12461_v0  ;;  %v12393_v1 = vld [vmem:[%s22162_s20 + $0x7d8] sm:$0xff] }
 0xa54   : > { %16507 = vmatprep.subr.bf16.mxu1 %v18575_v17  ;;  %v18791_v17 = vcombine.high %v12457_v30, %v12461_v0  ;;  %v12433_v25 = vld [vmem:[%s22162_s20 + $0x918] sm:$0xff] }
 0xa55   : > { %16477 = vmatmul.mubr.bf16.vlgmr.msra.gmra.mxu0 %v22872_v7  ;;  %v12385_v0 = vld [vmem:[%s22162_s20 + $0x798] sm:$0xff] }
 0xa56   : > { %16527 = vmatpush1.bf16.msra.mxu0 %v18662_v11  ;;  %16558 = vmatprep.mubr.bf16.mxu0 %v22681_v34  ;;  %v18639_v34 = vcombine.high %v12305_v8, %v12309_v43  ;;  %v21884_v11 = vmov 1983009808   ;;  %v12441_v8 = vld [vmem:[%s22162_s20 + $0x958] sm:$0xff] }
 0xa57   : > { %16508 = vmatpush2.bf16.msra.mxu1 %v18574_v40  ;;  %16528 = vmatprep.subr.bf16.mxu0 %v18655_v53  ;;  %v16701_v40 = vunpack.c.l.s4 %v21884_v11  ;;  %v16112_v53 = vadd.f32 %v23132_v57, %v12759_v54  ;;  %v12445_v57 = vld [vmem:[%s22162_s20 + $0x978] sm:$0xff] }
 0xa58   : > { %16509 = vmatprep.subr.bf16.mxu1 %v18567_v46  ;;  %v16151_v46 = vadd.f32 %v23176_v22, %v16110_v60  ;;  %v12389_v54 = vld [vmem:[%s22162_s20 + $0x7b8] sm:$0xff] }
 0xa59   : > { %v16153_v35 = vadd.f32 %v23182_v9, %v16112_v53  ;;  %v16702_v43 = vunpack.c.0.s8 %v16701_v40  ;;  %v18614_v9 = vcombine.low %v12281_v28, %v12285_v19  ;;  %v18719_v19 = vcombine.high %v12385_v0, %v12389_v54  ;;  %v12381_v11 = vld [vmem:[%s22162_s20 + $0x778] sm:$0xff] }
 0xa5a   : > { %16529 = vmatpush1.bf16.msra.mxu0 %v18654_v5  ;;  %v16192_v45 = vadd.f32 %v23207_v62, %v16151_v46  ;;  %v18783_v5 = vcombine.high %v12449_v44, %v12453_v49 }
 0xa5b   : > { %16510 = vmatpush2.bf16.msra.mxu1 %v18566_v13  ;;  %16530 = vmatprep.subr.bf16.mxu0 %v18647_v58  ;;  %v12273_v13 = vld [vmem:[%s22162_s20 + $0x418] sm:$0xff]  ;;  %v16194_v22 = vadd.f32 %v23209_v2, %v16153_v35  ;;  %v23277_v39 = vsub.s32 %v16702_v43, %v22651_v14 }
 0xa5c   : > { %16511 = vmatprep.subr.bf16.mxu1 %v18559_v55  ;;  %v12277_v58 = vld [vmem:[%s22162_s20 + $0x438] sm:$0xff] }
 0xa5d   : > { %v12397_v2 = vld [vmem:[%s22162_s20 + $0x7f8] sm:$0xff] }
 0xa5e   : > { %16531 = vmatpush1.bf16.msra.mxu0 %v18646_v51  ;;  %v18782_v51 = vcombine.low %v12449_v44, %v12453_v49  ;;  %v12377_v49 = vld [vmem:[%s22162_s20 + $0x758] sm:$0xff] }
 0xa5f   : > { %16512 = vmatpush2.bf16.msra.mxu1 %v18558_v52  ;;  %16532 = vmatprep.subr.bf16.mxu0 %v18639_v34  ;;  %v18607_v52 = vcombine.high %v12273_v13, %v12277_v58  ;;  %v18711_v46 = vcombine.high %v12377_v49, %v12381_v11  ;;  %v12409_v35 = vld [vmem:[%s22162_s20 + $0x858] sm:$0xff] }
 0xa60   : > { %16513 = vmatprep.subr.bf16.mxu1 %v18551_v61  ;;  %v18775_v61 = vcombine.high %v12441_v8, %v12445_v57  ;;  %v12401_v43 = vld [vmem:[%s22162_s20 + $0x818] sm:$0xff] }
 0xa62   : > { %16533 = vmatpush1.bf16.msra.mxu0 %v18638_v18 }
 0xa63   : > { %16514 = vmatpush2.bf16.msra.mxu1 %v18550_v10  ;;  %16534 = vmatprep.subr.bf16.mxu0 %v18631_v20  ;;  %v18606_v20 = vcombine.low %v12273_v13, %v12277_v58  ;;  %v18750_v13 = vcombine.low %v12417_v56, %v12421_v48 }
 0xa64   : > { %16515 = vmatprep.subr.bf16.mxu1 %v18543_v6  ;;  %v18774_v6 = vcombine.low %v12441_v8, %v12445_v57  ;;  %v12361_v8 = vld [vmem:[%s22162_s20 + $0x6d8] sm:$0xff] }
 0xa65   : > { %v12365_v57 = vld [vmem:[%s22162_s20 + $0x6f8] sm:$0xff] }
 0xa66   : > { %16535 = vmatpush1.bf16.msra.mxu0 %v18630_v42  ;;  %v12425_v42 = vld [vmem:[%s22162_s20 + $0x8d8] sm:$0xff] }
 0xa67   : > { %16516 = vmatpush2.bf16.msra.mxu1 %v18542_v33  ;;  %16536 = vmatprep.subr.bf16.mxu0 %v18623_v36  ;;  %v12429_v33 = vld [vmem:[%s22162_s20 + $0x8f8] sm:$0xff]  ;;  %v16706_v36 = vrot.slane %v16698_v29, %v23277_v39  ;;  %v18718_v29 = vcombine.low %v12385_v0, %v12389_v54 }
 0xa68   : > { %16567 = vmatprep.subr.bf16.mxu1 %v18791_v17  ;;  %v18726_v17 = vcombine.low %v12393_v1, %v12397_v2  ;;  %v18759_v44 = vcombine.high %v12425_v42, %v12429_v33  ;;  %v18758_v53 = vcombine.low %v12425_v42, %v12429_v33 }
 0xa69   : > { %v16232_v55 = vpop.f32.mrf.mxu0 }
 0xa6a   : > { %v16233_v41 = vadd.f32 %v16232_v55, %v16192_v45  ;;  %v16273_v16 = vpop.f32.mrf.mxu1  ;;  %16518 = vmatmul.mubr.bf16.vlgmr.msra.gmra.mxu1 %v22727_v15  ;;  %16537 = vmatpush1.bf16.msra.mxu0 %v18622_v63  ;;  %v12437_v15 = vld [vmem:[%s22162_s20 + $0x938] sm:$0xff]  ;;  %v18751_v63 = vcombine.high %v12417_v56, %v12421_v48 }
 0xa6b   : > { %16568 = vmatpush1.bf16.msra.mxu1 %v18790_v24  ;;  %v16234_v62 = vpop.f32.mrf.mxu0  ;;  %16538 = vmatprep.subr.bf16.mxu0 %v18615_v4  ;;  %v18767_v30 = vcombine.high %v12433_v25, %v12437_v15  ;;  %v18766_v28 = vcombine.low %v12433_v25, %v12437_v15  ;;  %v12369_v24 = vld [vmem:[%s22162_s20 + $0x718] sm:$0xff] }
 0xa6c   : > { %v16235_v34 = vadd.f32 %v16234_v62, %v16194_v22  ;;  %v16275_v3 = vpop.f32.mrf.mxu1  ;;  %16569 = vmatprep.subr.bf16.mxu1 %v18783_v5  ;;  %16599 = vmatprep.mubr.bf16.mxu1 %v22734_v27  ;;  %v16274_v12 = vadd.f32 %v16273_v16, %v16233_v41  ;;  %v18727_v27 = vcombine.high %v12393_v1, %v12397_v2  ;;  %v12373_v4 = vld [vmem:[%s22162_s20 + $0x738] sm:$0xff] }
 0xa6d   : > { %v16236_v23 = vpop.f32.mrf.mxu0  ;;  %v12413_v45 = vld [vmem:[%s22162_s20 + $0x878] sm:$0xff]  ;;  %v18710_v5 = vcombine.low %v12377_v49, %v12381_v11  ;;  %v18703_v58 = vcombine.high %v12369_v24, %v12373_v4  ;;  %v18702_v41 = vcombine.low %v12369_v24, %v12373_v4 }
 0xa6e   : > { %v16276_v18 = vadd.f32 %v16275_v3, %v16235_v34  ;;  %v16277_v10 = vpop.f32.mrf.mxu1  ;;  %16539 = vmatpush1.bf16.msra.mxu0 %v18614_v9  ;;  %v18743_v55 = vcombine.high %v12409_v35, %v12413_v45  ;;  %v12405_v22 = vld [vmem:[%s22162_s20 + $0x838] sm:$0xff]  ;;  %v18742_v16 = vcombine.low %v12409_v35, %v12413_v45  ;;  %v18695_v9 = vcombine.high %v12361_v8, %v12365_v57 }
 0xa6f   : > { %16570 = vmatpush1.bf16.msra.mxu1 %v18782_v51  ;;  %v16237_v37 = vpop.f32.mrf.mxu0  ;;  %16540 = vmatprep.subr.bf16.mxu0 %v18607_v52  ;;  %v18735_v62 = vcombine.high %v12401_v43, %v12405_v22  ;;  %v12353_v51 = vld [vmem:[%s22162_s20 + $0x698] sm:$0xff]  ;;  %v18734_v1 = vcombine.low %v12401_v43, %v12405_v22 }
 0xa70   : > { %v16699_v31 = vcombine.low %v16274_v12, %v16276_v18  ;;  %v16278_v59 = vpop.f32.mrf.mxu1  ;;  %16571 = vmatprep.subr.bf16.mxu1 %v18775_v61  ;;  %v12357_v52 = vld [vmem:[%s22162_s20 + $0x6b8] sm:$0xff]  ;;  %v18694_v61 = vcombine.low %v12361_v8, %v12365_v57 }
 0xa71   : > { %v12521_v34 = vld [vmem:[%s22162_s20 + $0xbd8] sm:$0xff]  ;;  %v18687_v2 = vcombine.high %v12353_v51, %v12357_v52  ;;  %v18686_v10 = vcombine.low %v12353_v51, %v12357_v52 }
 0xa72   : > { %v16713_v60 = vrot.slane %v16699_v31, %v23277_v39  ;;  %16541 = vmatpush1.bf16.msra.mxu0 %v18606_v20  ;;  %v12525_v3 = vld [vmem:[%s22162_s20 + $0xbf8] sm:$0xff] }
 0xa73   : > { %16572 = vmatpush1.bf16.msra.mxu1 %v18774_v6  ;;  %16542 = vmatprep.subr.bf16.mxu0 %v18727_v27  ;;  %v18855_v23 = vcombine.high %v12521_v34, %v12525_v3  ;;  %v12345_v25 = vld [vmem:[%s22162_s20 + $0x658] sm:$0xff]  ;;  %v18854_v20 = vcombine.low %v12521_v34, %v12525_v3 }
 0xa74   : > { %16573 = vmatprep.subr.bf16.mxu1 %v18767_v30  ;;  %v16714_v40 = vcombine.low %v16706_v36, %v16713_v60  ;;  %v12349_v15 = vld [vmem:[%s22162_s20 + $0x678] sm:$0xff] }
 0xa75   : > { %v12513_v12 = vld [vmem:[%s22162_s20 + $0xb98] sm:$0xff]  ;;  %v18679_v37 = vcombine.high %v12345_v25, %v12349_v15  ;;  %v18678_v0 = vcombine.low %v12345_v25, %v12349_v15 }
 0xa76   : > { %16543 = vmatpush2.bf16.msra.mxu0 %v18726_v17  ;;  %16734 = vst [vmem:[%s22172_s19] sm:$0xff] %v16714_v40  ;;  %v12517_v18 = vld [vmem:[%s22162_s20 + $0xbb8] sm:$0xff] }
 0xa77   : > { %16574 = vmatpush1.bf16.msra.mxu1 %v18766_v28  ;;  %16544 = vmatprep.subr.bf16.mxu0 %v18719_v19  ;;  %v18847_v6 = vcombine.high %v12513_v12, %v12517_v18  ;;  %v12337_v27 = vld [vmem:[%s22162_s20 + $0x618] sm:$0xff]  ;;  %v18846_v54 = vcombine.low %v12513_v12, %v12517_v18 }
 0xa78   : > { %16575 = vmatprep.subr.bf16.mxu1 %v18759_v44  ;;  %v12341_v31 = vld [vmem:[%s22162_s20 + $0x638] sm:$0xff] }
 0xa79   : > { %v12505_v59 = vld [vmem:[%s22162_s20 + $0xb58] sm:$0xff]  ;;  %v18671_v42 = vcombine.high %v12337_v27, %v12341_v31  ;;  %v18670_v19 = vcombine.low %v12337_v27, %v12341_v31  ;;  %v12766_v27 = vsub.s32 5, %v22651_v14 }
 0xa7a   : > { %16545 = vmatpush2.bf16.msra.mxu0 %v18718_v29  ;;  %v12509_v30 = vld [vmem:[%s22162_s20 + $0xb78] sm:$0xff] }
 0xa7b   : > { %16576 = vmatpush1.bf16.msra.mxu1 %v18758_v53  ;;  %16546 = vmatprep.subr.bf16.mxu0 %v18711_v46  ;;  %v18839_v33 = vcombine.high %v12505_v59, %v12509_v30  ;;  %v12585_v36 = vld [vmem:[%s22162_s20 + $0xdd8] sm:$0xff]  ;;  %v18838_v44 = vcombine.low %v12505_v59, %v12509_v30 }
 0xa7c   : > { %16577 = vmatprep.subr.bf16.mxu1 %v18751_v63  ;;  %v12589_v60 = vld [vmem:[%s22162_s20 + $0xdf8] sm:$0xff] }
 0xa7d   : > { %v12497_v17 = vld [vmem:[%s22162_s20 + $0xb18] sm:$0xff]  ;;  %v18919_v49 = vcombine.high %v12585_v36, %v12589_v60  ;;  %v18918_v53 = vcombine.low %v12585_v36, %v12589_v60  ;;  %v12767_v60 = vrot.slane %v23248_v47, %v12766_v27 }
 0xa7e   : > { %16547 = vmatpush2.bf16.msra.mxu0 %v18710_v5  ;;  %v12501_v28 = vld [vmem:[%s22162_s20 + $0xb38] sm:$0xff] }
 0xa7f   : > { %16578 = vmatpush1.bf16.msra.mxu1 %v18750_v13  ;;  %16548 = vmatprep.subr.bf16.mxu0 %v18703_v58  ;;  %v18831_v11 = vcombine.high %v12497_v17, %v12501_v28  ;;  %v12577_v40 = vld [vmem:[%s22162_s20 + $0xd98] sm:$0xff]  ;;  %v18830_v46 = vcombine.low %v12497_v17, %v12501_v28 }
 0xa80   : > { %16579 = vmatprep.subr.bf16.mxu1 %v18743_v55  ;;  %v12581_v56 = vld [vmem:[%s22162_s20 + $0xdb8] sm:$0xff] }
 0xa81   : > { %v12489_v48 = vld [vmem:[%s22162_s20 + $0xad8] sm:$0xff]  ;;  %v18911_v63 = vcombine.high %v12577_v40, %v12581_v56  ;;  %v18910_v13 = vcombine.low %v12577_v40, %v12581_v56 }
 0xa82   : > { %16549 = vmatpush2.bf16.msra.mxu0 %v18702_v41  ;;  %v12493_v29 = vld [vmem:[%s22162_s20 + $0xaf8] sm:$0xff] }
 0xa83   : > { %16580 = vmatpush1.bf16.msra.mxu1 %v18742_v16  ;;  %16550 = vmatprep.subr.bf16.mxu0 %v18695_v9  ;;  %v18823_v24 = vcombine.high %v12489_v48, %v12493_v29  ;;  %v12569_v4 = vld [vmem:[%s22162_s20 + $0xd58] sm:$0xff]  ;;  %v18822_v58 = vcombine.low %v12489_v48, %v12493_v29 }
 0xa84   : > { %16581 = vmatprep.subr.bf16.mxu1 %v18735_v62  ;;  %v12573_v35 = vld [vmem:[%s22162_s20 + $0xd78] sm:$0xff] }
 0xa85   : > { %v12481_v45 = vld [vmem:[%s22162_s20 + $0xa98] sm:$0xff]  ;;  %v18903_v55 = vcombine.high %v12569_v4, %v12573_v35  ;;  %v18902_v41 = vcombine.low %v12569_v4, %v12573_v35 }
 0xa86   : > { %16551 = vmatpush2.bf16.msra.mxu0 %v18694_v61  ;;  %v12485_v5 = vld [vmem:[%s22162_s20 + $0xab8] sm:$0xff] }
 0xa87   : > { %16582 = vmatpush1.bf16.msra.mxu1 %v18734_v1  ;;  %16552 = vmatprep.subr.bf16.mxu0 %v18687_v2  ;;  %v18815_v8 = vcombine.high %v12481_v45, %v12485_v5  ;;  %v12561_v57 = vld [vmem:[%s22162_s20 + $0xd18] sm:$0xff]  ;;  %v18814_v16 = vcombine.low %v12481_v45, %v12485_v5 }
 0xa88   : > { %16583 = vmatprep.subr.bf16.mxu1 %v18855_v23  ;;  %v12565_v43 = vld [vmem:[%s22162_s20 + $0xd38] sm:$0xff] }
 0xa89   : > { %v12473_v22 = vld [vmem:[%s22162_s20 + $0xa58] sm:$0xff]  ;;  %v18894_v3 = vcombine.low %v12561_v57, %v12565_v43 }
 0xa8a   : > { %16553 = vmatpush2.bf16.msra.mxu0 %v18686_v10  ;;  %v12553_v62 = vld [vmem:[%s22162_s20 + $0xcd8] sm:$0xff]  ;;  %v12762_v10 = vsub.s32 4, %v22651_v14 }
 0xa8b   : > { %16584 = vmatpush2.bf16.msra.mxu1 %v18854_v20  ;;  %16554 = vmatprep.subr.bf16.mxu0 %v18679_v37  ;;  %v12557_v51 = vld [vmem:[%s22162_s20 + $0xcf8] sm:$0xff] }
 0xa8c   : > { %16585 = vmatprep.subr.bf16.mxu1 %v18847_v6  ;;  %v12465_v52 = vld [vmem:[%s22162_s20 + $0xa18] sm:$0xff]  ;;  %v18887_v1 = vcombine.high %v12553_v62, %v12557_v51  ;;  %v18886_v18 = vcombine.low %v12553_v62, %v12557_v51 }
 0xa8d   : > { %v12469_v34 = vld [vmem:[%s22162_s20 + $0xa38] sm:$0xff] }
 0xa8e   : > { %16555 = vmatpush2.bf16.msra.mxu0 %v18678_v0  ;;  %v18799_v2 = vcombine.high %v12465_v52, %v12469_v34  ;;  %v12545_v23 = vld [vmem:[%s22162_s20 + $0xc98] sm:$0xff]  ;;  %v18798_v20 = vcombine.low %v12465_v52, %v12469_v34 }
 0xa8f   : > { %16586 = vmatpush2.bf16.msra.mxu1 %v18846_v54  ;;  %16556 = vmatprep.subr.bf16.mxu0 %v18671_v42  ;;  %v12549_v25 = vld [vmem:[%s22162_s20 + $0xcb8] sm:$0xff]  ;;  %v12763_v54 = vrot.slane %v23248_v47, %v12762_v10 }
 0xa90   : > { %16587 = vmatprep.subr.bf16.mxu1 %v18839_v33  ;;  %v12713_v15 = vld [vmem:[%s22162_s20 + $0x11d8] sm:$0xff]  ;;  %v18879_v37 = vcombine.high %v12545_v23, %v12549_v25  ;;  %v18878_v42 = vcombine.low %v12545_v23, %v12549_v25 }
 0xa91   : > { %v12717_v12 = vld [vmem:[%s22162_s20 + $0x11f8] sm:$0xff] }
 0xa92   : > { %16557 = vmatpush2.bf16.msra.mxu0 %v18670_v19  ;;  %v19047_v6 = vcombine.high %v12713_v15, %v12717_v12  ;;  %v12537_v31 = vld [vmem:[%s22162_s20 + $0xc58] sm:$0xff]  ;;  %v19046_v33 = vcombine.low %v12713_v15, %v12717_v12 }
 0xa93   : > { %16588 = vmatpush2.bf16.msra.mxu1 %v18838_v44  ;;  %16608 = vmatprep.subr.bf16.mxu0 %v18919_v49  ;;  %v12541_v59 = vld [vmem:[%s22162_s20 + $0xc78] sm:$0xff] }
 0xa94   : > { %16589 = vmatprep.subr.bf16.mxu1 %v18831_v11  ;;  %v12705_v30 = vld [vmem:[%s22162_s20 + $0x1198] sm:$0xff]  ;;  %v18871_v36 = vcombine.high %v12537_v31, %v12541_v59  ;;  %v18870_v48 = vcombine.low %v12537_v31, %v12541_v59 }
 0xa95   : > { %16559 = vmatmul.mubr.bf16.vlgmr.msra.gmra.mxu0 %v22738_v32  ;;  %v12477_v32 = vld [vmem:[%s22162_s20 + $0xa78] sm:$0xff] }
 0xa96   : > { %16609 = vmatpush1.bf16.msra.mxu0 %v18918_v53  ;;  %16640 = vmatprep.mubr.bf16.mxu0 %v22747_v21  ;;  %v18895_v21 = vcombine.high %v12561_v57, %v12565_v43  ;;  %v18807_v9 = vcombine.high %v12473_v22, %v12477_v32  ;;  %v18806_v61 = vcombine.low %v12473_v22, %v12477_v32  ;;  %v12709_v0 = vld [vmem:[%s22162_s20 + $0x11b8] sm:$0xff] }
 0xa97   : > { %16590 = vmatpush2.bf16.msra.mxu1 %v18830_v46  ;;  %16610 = vmatprep.subr.bf16.mxu0 %v18911_v63  ;;  %v19039_v17 = vcombine.high %v12705_v30, %v12709_v0  ;;  %v12529_v28 = vld [vmem:[%s22162_s20 + $0xc18] sm:$0xff]  ;;  %v19038_v53 = vcombine.low %v12705_v30, %v12709_v0 }
 0xa98   : > { %16591 = vmatprep.subr.bf16.mxu1 %v18823_v24  ;;  %v12533_v19 = vld [vmem:[%s22162_s20 + $0xc38] sm:$0xff] }
 0xa99   : > { %v12697_v49 = vld [vmem:[%s22162_s20 + $0x1158] sm:$0xff]  ;;  %v18863_v46 = vcombine.high %v12529_v28, %v12533_v19  ;;  %v18862_v57 = vcombine.low %v12529_v28, %v12533_v19 }
 0xa9a   : > { %16611 = vmatpush1.bf16.msra.mxu0 %v18910_v13  ;;  %v12701_v11 = vld [vmem:[%s22162_s20 + $0x1178] sm:$0xff] }
 0xa9b   : > { %16592 = vmatpush2.bf16.msra.mxu1 %v18822_v58  ;;  %16612 = vmatprep.subr.bf16.mxu0 %v18903_v55  ;;  %v19031_v35 = vcombine.high %v12697_v49, %v12701_v11  ;;  %v12649_v45 = vld [vmem:[%s22162_s20 + $0xfd8] sm:$0xff]  ;;  %v19030_v22 = vcombine.low %v12697_v49, %v12701_v11 }
 0xa9c   : > { %16593 = vmatprep.subr.bf16.mxu1 %v18815_v8  ;;  %v12653_v5 = vld [vmem:[%s22162_s20 + $0xff8] sm:$0xff] }
 0xa9d   : > { %v12689_v13 = vld [vmem:[%s22162_s20 + $0x1118] sm:$0xff]  ;;  %v18983_v32 = vcombine.high %v12649_v45, %v12653_v5  ;;  %v18982_v51 = vcombine.low %v12649_v45, %v12653_v5 }
 0xa9e   : > { %16613 = vmatpush1.bf16.msra.mxu0 %v18902_v41  ;;  %v12693_v58 = vld [vmem:[%s22162_s20 + $0x1138] sm:$0xff] }
 0xa9f   : > { %16594 = vmatpush2.bf16.msra.mxu1 %v18814_v16  ;;  %16614 = vmatprep.subr.bf16.mxu0 %v18895_v21  ;;  %v12641_v16 = vld [vmem:[%s22162_s20 + $0xf98] sm:$0xff]  ;;  %v19022_v52 = vcombine.low %v12689_v13, %v12693_v58 }
 0xaa0   : > { %16595 = vmatprep.subr.bf16.mxu1 %v18807_v9  ;;  %v12645_v21 = vld [vmem:[%s22162_s20 + $0xfb8] sm:$0xff] }
 0xaa1   : > { %v12681_v9 = vld [vmem:[%s22162_s20 + $0x10d8] sm:$0xff]  ;;  %v18975_v34 = vcombine.high %v12641_v16, %v12645_v21  ;;  %v18974_v25 = vcombine.low %v12641_v16, %v12645_v21 }
 0xaa2   : > { %16615 = vmatpush1.bf16.msra.mxu0 %v18894_v3  ;;  %v12685_v62 = vld [vmem:[%s22162_s20 + $0x10f8] sm:$0xff] }
 0xaa3   : > { %16596 = vmatpush2.bf16.msra.mxu1 %v18806_v61  ;;  %16616 = vmatprep.subr.bf16.mxu0 %v18887_v1  ;;  %v19015_v3 = vcombine.high %v12681_v9, %v12685_v62  ;;  %v12633_v61 = vld [vmem:[%s22162_s20 + $0xf58] sm:$0xff]  ;;  %v19014_v15 = vcombine.low %v12681_v9, %v12685_v62 }
 0xaa4   : > { %16597 = vmatprep.subr.bf16.mxu1 %v18799_v2  ;;  %v12637_v1 = vld [vmem:[%s22162_s20 + $0xf78] sm:$0xff] }
 0xaa5   : > { %v12673_v2 = vld [vmem:[%s22162_s20 + $0x1098] sm:$0xff]  ;;  %v18967_v12 = vcombine.high %v12633_v61, %v12637_v1  ;;  %v18966_v27 = vcombine.low %v12633_v61, %v12637_v1 }
 0xaa6   : > { %16617 = vmatpush1.bf16.msra.mxu0 %v18886_v18  ;;  %v12677_v23 = vld [vmem:[%s22162_s20 + $0x10b8] sm:$0xff] }
 0xaa7   : > { %16598 = vmatpush2.bf16.msra.mxu1 %v18798_v20  ;;  %16618 = vmatprep.subr.bf16.mxu0 %v18879_v37  ;;  %v19007_v18 = vcombine.high %v12673_v2, %v12677_v23  ;;  %v12625_v10 = vld [vmem:[%s22162_s20 + $0xf18] sm:$0xff]  ;;  %v19006_v31 = vcombine.low %v12673_v2, %v12677_v23 }
 0xaa8   : > { %16649 = vmatprep.subr.bf16.mxu1 %v19047_v6  ;;  %v12629_v20 = vld [vmem:[%s22162_s20 + $0xf38] sm:$0xff] }
 0xaa9   : > { %v16314_v44 = vpop.f32.mrf.mxu0  ;;  %v12665_v37 = vld [vmem:[%s22162_s20 + $0x1058] sm:$0xff]  ;;  %v18959_v59 = vcombine.high %v12625_v10, %v12629_v20 }
 0xaaa   : > { %v16315_v40 = vadd.f32 %v16314_v44, %v12763_v54  ;;  %v16355_v56 = vpop.f32.mrf.mxu1  ;;  %16600 = vmatmul.mubr.bf16.vlgmr.msra.gmra.mxu1 %v22697_v38  ;;  %16619 = vmatpush1.bf16.msra.mxu0 %v18878_v42  ;;  %v12669_v6 = vld [vmem:[%s22162_s20 + $0x1078] sm:$0xff] }
 0xaab   : > { %16650 = vmatpush1.bf16.msra.mxu1 %v19046_v33  ;;  %v16316_v29 = vpop.f32.mrf.mxu0  ;;  %16620 = vmatprep.subr.bf16.mxu0 %v18871_v36  ;;  %v18999_v30 = vcombine.high %v12665_v37, %v12669_v6  ;;  %v12617_v0 = vld [vmem:[%s22162_s20 + $0xed8] sm:$0xff]  ;;  %v18958_v36 = vcombine.low %v12625_v10, %v12629_v20 }
 0xaac   : > { %v23352_v63 = vadd.f32 %v16355_v56, %v16315_v40  ;;  %v16317_v24 = vadd.f32 %v16316_v29, %v12767_v60  ;;  %v16357_v4 = vpop.f32.mrf.mxu1  ;;  %16651 = vmatprep.subr.bf16.mxu1 %v19039_v17  ;;  %19075 = vmatprep.mubr.msk.bf16.mxu1 %vm15866_vm6, %v22823_v26  ;;  %v19023_v26 = vcombine.high %v12689_v13, %v12693_v58  ;;  %v12621_v54 = vld [vmem:[%s22162_s20 + $0xef8] sm:$0xff] }
 0xaad   : > { %v16318_v38 = vpop.f32.mrf.mxu0  ;;  %v12657_v42 = vld [vmem:[%s22162_s20 + $0x1018] sm:$0xff]  ;;  %v18998_v60 = vcombine.low %v12665_v37, %v12669_v6  ;;  %v18951_v17 = vcombine.high %v12617_v0, %v12621_v54  ;;  %v18950_v40 = vcombine.low %v12617_v0, %v12621_v54 }
 0xaae   : > { %v23360_v55 = vadd.f32 %v16357_v4, %v16317_v24  ;;  %v16359_v8 = vpop.f32.mrf.mxu1  ;;  %16621 = vmatpush1.bf16.msra.mxu0 %v18870_v48  ;;  %v12661_v33 = vld [vmem:[%s22162_s20 + $0x1038] sm:$0xff] }
 0xaaf   : > { %16652 = vmatpush1.bf16.msra.mxu1 %v19038_v53  ;;  %v16319_v43 = vpop.f32.mrf.mxu0  ;;  %16622 = vmatprep.subr.bf16.mxu0 %v18863_v46  ;;  %v18991_v28 = vcombine.high %v12657_v42, %v12661_v33  ;;  %v12609_v19 = vld [vmem:[%s22162_s20 + $0xe98] sm:$0xff]  ;;  %v18990_v56 = vcombine.low %v12657_v42, %v12661_v33 }
 0xab0   : > { %v16360_v41 = vpop.f32.mrf.mxu1  ;;  %16653 = vmatprep.subr.bf16.mxu1 %v19031_v35  ;;  %v12613_v44 = vld [vmem:[%s22162_s20 + $0xeb8] sm:$0xff] }
 0xab1   : > { %v12737_v49 = vld [vmem:[%s22162_s20 + $0x1298] sm:$0xff]  ;;  %v18943_v48 = vcombine.high %v12609_v19, %v12613_v44  ;;  %v18942_v35 = vcombine.low %v12609_v19, %v12613_v44 }
 0xab2   : > { %16623 = vmatpush1.bf16.msra.mxu0 %v18862_v57  ;;  %v12741_v11 = vld [vmem:[%s22162_s20 + $0x12b8] sm:$0xff] }
 0xab3   : > { %16654 = vmatpush1.bf16.msra.mxu1 %v19030_v22  ;;  %16624 = vmatprep.subr.bf16.mxu0 %v18983_v32  ;;  %v19071_v29 = vcombine.high %v12737_v49, %v12741_v11  ;;  %v12601_v53 = vld [vmem:[%s22162_s20 + $0xe58] sm:$0xff]  ;;  %v19070_v45 = vcombine.low %v12737_v49, %v12741_v11 }
 0xab4   : > { %16655 = vmatprep.subr.bf16.mxu1 %v19023_v26  ;;  %v12605_v46 = vld [vmem:[%s22162_s20 + $0xe78] sm:$0xff] }
 0xab5   : > { %v12729_v24 = vld [vmem:[%s22162_s20 + $0x1258] sm:$0xff]  ;;  %v18935_v5 = vcombine.high %v12601_v53, %v12605_v46  ;;  %v18934_v43 = vcombine.low %v12601_v53, %v12605_v46 }
 0xab6   : > { %16625 = vmatpush2.bf16.msra.mxu0 %v18982_v51  ;;  %v12733_v4 = vld [vmem:[%s22162_s20 + $0x1278] sm:$0xff] }
 0xab7   : > { %16656 = vmatpush1.bf16.msra.mxu1 %v19022_v52  ;;  %16626 = vmatprep.subr.bf16.mxu0 %v18975_v34  ;;  %v19063_v38 = vcombine.high %v12729_v24, %v12733_v4  ;;  %v12593_v13 = vld [vmem:[%s22162_s20 + $0xe18] sm:$0xff]  ;;  %v19062_v22 = vcombine.low %v12729_v24, %v12733_v4 }
 0xab8   : > { %16657 = vmatprep.subr.bf16.mxu1 %v19015_v3  ;;  %v12597_v58 = vld [vmem:[%s22162_s20 + $0xe38] sm:$0xff] }
 0xab9   : > { %v12721_v8 = vld [vmem:[%s22162_s20 + $0x1218] sm:$0xff]  ;;  %v18927_v32 = vcombine.high %v12593_v13, %v12597_v58  ;;  %v18926_v26 = vcombine.low %v12593_v13, %v12597_v58 }
 0xaba   : > { %16627 = vmatpush2.bf16.msra.mxu0 %v18974_v25  ;;  %v12725_v57 = vld [vmem:[%s22162_s20 + $0x1238] sm:$0xff] }
 0xabb   : > { %16658 = vmatpush1.bf16.msra.mxu1 %v19014_v15  ;;  %16628 = vmatprep.subr.bf16.mxu0 %v18967_v12  ;;  %v19055_v41 = vcombine.high %v12721_v8, %v12725_v57  ;;  %v19054_v16 = vcombine.low %v12721_v8, %v12725_v57 }
 0xabc   : > { %16659 = vmatprep.subr.bf16.mxu1 %v19007_v18 }
 0xabe   : > { %16629 = vmatpush2.bf16.msra.mxu0 %v18966_v27 }
 0xabf   : > { %16660 = vmatpush1.bf16.msra.mxu1 %v19006_v31  ;;  %16630 = vmatprep.subr.bf16.mxu0 %v18959_v59 }
 0xac0   : > { %16661 = vmatprep.subr.bf16.mxu1 %v18999_v30 }
 0xac2   : > { %16631 = vmatpush2.bf16.msra.mxu0 %v18958_v36  ;;  %v12770_v36 = vsub.s32 6, %v22651_v14 }
 0xac3   : > { %16662 = vmatpush1.bf16.msra.mxu1 %v18998_v60  ;;  %16632 = vmatprep.subr.bf16.mxu0 %v18951_v17  ;;  %v12774_v60 = vsub.s32 7, %v22651_v14 }
 0xac4   : > { %16663 = vmatprep.subr.bf16.mxu1 %v18991_v28  ;;  %v12771_v17 = vrot.slane %v23248_v47, %v12770_v36 }
 0xac5   : > { %v12775_v28 = vrot.slane %v23248_v47, %v12774_v60 }
 0xac6   : > { %16633 = vmatpush2.bf16.msra.mxu0 %v18950_v40 }
 0xac7   : > { %16664 = vmatpush1.bf16.msra.mxu1 %v18990_v56  ;;  %16634 = vmatprep.subr.bf16.mxu0 %v18943_v48 }
 0xac8   : > { %16675 = vmatprep.subr.bf16.mxu1 %v19071_v29 }
 0xaca   : > { %16635 = vmatpush2.bf16.msra.mxu0 %v18942_v35 }
 0xacb   : > { %16676 = vmatpush2.bf16.msra.mxu1 %v19070_v45  ;;  %16636 = vmatprep.subr.bf16.mxu0 %v18935_v5 }
 0xacc   : > { %16677 = vmatprep.subr.bf16.mxu1 %v19063_v38 }
 0xace   : > { %16637 = vmatpush2.bf16.msra.mxu0 %v18934_v43 }
 0xacf   : > { %16678 = vmatpush2.bf16.msra.mxu1 %v19062_v22  ;;  %16638 = vmatprep.subr.bf16.mxu0 %v18927_v32 }
 0xad0   : > { %16679 = vmatprep.subr.bf16.mxu1 %v19055_v41 }
 0xad2   : > { %16639 = vmatpush2.bf16.msra.mxu0 %v18926_v26 }
 0xad3   : > { %16680 = vmatpush2.bf16.msra.mxu1 %v19054_v16 }
 0xad5   : > { %16641 = vmatmul.mubr.bf16.vlgmr.msra.gmra.mxu0 %v22818_v50 }
 0xad6   : > { %16682 = vmatmul.mubr.bf16.vlgmr.msra.gmra.mxu1 %v22872_v7 }
 0xae9   : > { %v16396_v21 = vpop.f32.mrf.mxu0 }
 0xaea   : > { %v16397_v9 = vadd.f32 %v16396_v21, %v23352_v63  ;;  %v16437_v62 = vpop.f32.mrf.mxu1 }
 0xaeb   : > { %v16398_v51 = vpop.f32.mrf.mxu0 }
 0xaec   : > { %v16438_v52 = vadd.f32 %v16437_v62, %v16397_v9  ;;  %v16399_v34 = vadd.f32 %v16398_v51, %v23360_v55  ;;  %v16439_v3 = vpop.f32.mrf.mxu1 }
 0xaed   : > { %v16400_v61 = vpop.f32.mrf.mxu0 }
 0xaee   : > { %v16440_v1 = vadd.f32 %v16439_v3, %v16399_v34  ;;  %v16441_v2 = vpop.f32.mrf.mxu1 }
 0xaef   : > { %v16401_v23 = vpop.f32.mrf.mxu0 }
 0xaf0   : > { %v16442_v25 = vpop.f32.mrf.mxu1 }
 0xb15   : > { %v16478_v15 = vpop.f32.mrf.mxu0 }
 0xb16   : > { %v16479_v12 = vadd.f32 %v16478_v15, %v16438_v52 }
 0xb17   : > { %v16480_v18 = vpop.f32.mrf.mxu0 }
 0xb18   : > { %v16481_v50 = vadd.f32 %v16480_v18, %v16440_v1 }
 0xb19   : > { %v16482_v10 = vpop.f32.mrf.mxu0 }
 0xb1a   : > { %v16715_v7 = vcombine.low %v16479_v12, %v16481_v50 }
 0xb1b   : > { %v16483_v20 = vpop.f32.mrf.mxu0 }
 0xb1c   : > { %v16723_v58 = vrot.slane %v16715_v7, %v23277_v39 }
 0xb2a   : > { %v16519_v37 = vpop.f32.mrf.mxu1 }
 0xb2b   : > { %v16520_v19 = vadd.f32 %v16519_v37, %v12771_v17 }
 0xb2c   : > { %v16521_v63 = vpop.f32.mrf.mxu1 }
 0xb2d   : > { %v16522_v44 = vadd.f32 %v16521_v63, %v12775_v28 }
 0xb2e   : > { %v16523_v6 = vpop.f32.mrf.mxu1 }
 0xb30   : > { %v16524_v27 = vpop.f32.mrf.mxu1 }
 0xb55   : > { %v16560_v31 = vpop.f32.mrf.mxu0 }
 0xb56   : > { %v16561_v49 = vadd.f32 %v16560_v31, %v16520_v19 }
 0xb57   : > { %v16562_v59 = vpop.f32.mrf.mxu0 }
 0xb58   : > { %v16563_v11 = vadd.f32 %v16562_v59, %v16522_v44 }
 0xb59   : > { %v16564_v55 = vpop.f32.mrf.mxu0 }
 0xb5b   : > { %v16565_v30 = vpop.f32.mrf.mxu0 }
 0xb6a   : > { %v16601_v0 = vpop.f32.mrf.mxu1 }
 0xb6b   : > { %v16602_v40 = vadd.f32 %v16601_v0, %v16561_v49 }
 0xb6c   : > { %v16603_v54 = vpop.f32.mrf.mxu1 }
 0xb6d   : > { %v16604_v48 = vadd.f32 %v16603_v54, %v16563_v11 }
 0xb6e   : > { %v16605_v42 = vpop.f32.mrf.mxu1 }
 0xb70   : > { %v16606_v33 = vpop.f32.mrf.mxu1 }
 0xb95   : > { %v16642_v56 = vpop.f32.mrf.mxu0 }
 0xb96   : > { %v16643_v29 = vadd.f32 %v16642_v56, %v16602_v40  ;;  %v16683_v53 = vpop.f32.mrf.mxu1 }
 0xb97   : > { %v16644_v46 = vpop.f32.mrf.mxu0 }
 0xb98   : > { %v16645_v24 = vadd.f32 %v16644_v46, %v16604_v48  ;;  %v16685_v4 = vpop.f32.mrf.mxu1  ;;  %v16684_v35 = vadd.f32 %v16683_v53, %v16643_v29 }
 0xb99   : > { %v16646_v14 = vpop.f32.mrf.mxu0 }
 0xb9a   : > { %v16686_v45 = vadd.f32 %v16685_v4, %v16645_v24  ;;  %v16687_v47 = vpop.f32.mrf.mxu1 }
 0xb9b   : > { %v16647_v5 = vpop.f32.mrf.mxu0 }
 0xb9c   : > { %v16716_v38 = vcombine.low %v16684_v35, %v16686_v45  ;;  %v16688_v13 = vpop.f32.mrf.mxu1 }
 0xb9e   : > { %v16730_v8 = vrot.slane %v16716_v38, %v23277_v39 }
 0xba0   : > { %v16731_v57 = vcombine.low %v16723_v58, %v16730_v8 }
 0xba2   : > { %16735 = vst [vmem:[%s22172_s19 + $0x8] sm:$0xff] %v16731_v57 }
 0xba3   : > { %21798 = shalt.err (!%p21795_p0)
}
 0xba4   : > { %s21799_s5 = scalar_lea.hbm %s16749_s27, 256  ;;  %s21803_s13 = scalar_lea.hbm %s23445_s9, 1024 }
 0xba5   : > { %p21800_p3 = scmp.ne.s32.totalorder %s16749_s27, %s21799_s5  ;;  %p21804_p4 = scmp.lt.s32.totalorder %s16749_s27, %s23445_s9 }
 0xba6   : > { %p21805_p6 = scmp.lt.s32.totalorder %s21803_s13, %s21799_s5 }
 0xba7   : > { %p21801_p13 = pnand %p21800_p3, %p23491_p9 }
 0xba8   : > { %p21806_p8 = por %p21805_p6, %p21804_p4 }
 0xba9   : > { %p21802_p1 = pneg %p21801_p13 }
 0xbab   : > { %p21807_p7 = pnand %p21806_p8, %p21802_p1 }
 0xbad   : > { %21810 = shalt.err (!%p21807_p7)
}
 0xbae   : > { %19118 = dma.vmem_to_hbm [thread:$0]  (%p23491_p9), %s16752_s17, 256, %s16749_s27, %s16737_s14  }
 0xbaf PF: > { %p19168_p11 = scmp.ge.s32.totalorder %s21865_s12, 2  ;;  %s16763_s1 = sand.u32 1, %s21853_s30  }
 0xbb0   : > { %p23492_p2 = scmp.ne.s32.totalorder %s23472_s29, 0  ;;  %s16764_s7 = scalar_lea.sflag [#allocation5], %s16763_s1 }
 0xbb2   : > { %p19150_p10 = pnand %p19168_p11, %p23492_p2 }
 0xbb4   : > { %p19151_p5 = pneg %p19150_p10 }
 0xbb6   : > { %21848 = dma.done.wait (%p19151_p5), %s16764_s7, 256  }
 0xbb7   : > { %21850 = vsyncadd (%p19151_p5), %s16764_s7, 4294967040  ;;  %s23493_s12 = sld [smem:[#allocation25_spill]]  ;;  %s23495_s30 = smov %s21857_s10 }
 0xbb8   : > { %s23494_s19 = sld [smem:[#allocation26_spill]]  ;;  %s23496_s10 = smov %s21861_s11 }
 0xbbd   : > { %p26_p12 = scmp.ge.s32.totalorder %s23493_s12, 6  }
 0xbbe   : > { %s23497_s11 = smov %s23494_s19 }
 0xbbf   :  { %28 = sbr.rel (!%p26_p12) target bundleno = 14 (0xe), region = 145 }
 0xbc4   :  { %16769 = vsyncpa [#allocation4], 1 }
 0xbc5   :  { %16771 = vsyncpa [#allocation4 + $0x1], 1 }
 0xbc6   :  { %16772 = vsyncpa [#allocation7], 1 }
 0xbc7   :  { %16773 = vsyncpa [#allocation10], 1 }
 0xbc8   :  { %16774 = vsyncpa [#allocation13], 1 }
 0xbc9   :  { %16775 = vsyncpa [#allocation16], 1 }
 0xbca   :  { %16777 = vsyncpa [#allocation16 + $0x1], 1 }
 0xbcb   :  { %16778 = vsyncpa [#allocation5], 1 }
 0xbcc   :  { %16780 = vsyncpa [#allocation5 + $0x1], 1 }

</bundles_post_ra>
